<compile_context>
chip_gen: v7x
topology: tpu7x:2x2x1
jax: 0.10.0
libtpu: 0.0.40
codegen_flags: <defaults>
</compile_context>

<pallas_src>
import math

import jax
import jax.numpy as jnp
from jax.experimental import pallas as pl
from jax.experimental.pallas import tpu as pltpu

EPS = 1e-5  # nn.BatchNorm2d default
_VMEM = pltpu.MemorySpace.VMEM


def _default_vmem_limit():
    # ~3/4 of physical VMEM, clamped to [32 MiB, 100 MiB]; falls back to 64 MiB.
    try:
        info = pltpu.get_tpu_info()
        cap = getattr(info, "vmem_capacity_bytes", None)
        if cap:
            return int(min(max((cap * 3) // 4, 32 * 1024 * 1024), 100 * 1024 * 1024))
    except Exception:
        pass
    return 64 * 1024 * 1024


_VMEM_LIMIT = _default_vmem_limit()


def _make_divisible(v, divisor, min_value=None):
    if min_value is None:
        min_value = divisor
    new_v = max(min_value, int(v + divisor / 2) // divisor * divisor)
    if new_v < 0.9 * v:
        new_v += divisor
    return new_v


# ------------------------- in-kernel compute helpers --------------------------
# act codes: 0 = identity, 1 = ReLU, 2 = ReLU6, 3 = h_swish
def _apply_act(y, act):
    if act == 0:
        return y
    if act == 1:
        return jnp.maximum(y, 0.0)
    if act == 2:
        return jnp.clip(y, 0.0, 6.0)
    if act == 3:
        return y * (jnp.clip(y + 3.0, 0.0, 6.0) * (1.0 / 6.0))
    raise ValueError(act)


def _bn_train(y2d, g, b):
    # y2d: (M, C) f32; g/b: (1, C).  Batch-statistic BN (biased variance, like torch).
    mean = jnp.mean(y2d, axis=0, keepdims=True)
    var = jnp.mean(jnp.square(y2d - mean), axis=0, keepdims=True)
    return (y2d - mean) * jax.lax.rsqrt(var + EPS) * g + b


def _mxu_matmul(x2d, w):
    # bf16 operands in, f32 accumulation on the MXU.
    return jnp.dot(x2d.astype(jnp.bfloat16), w.astype(jnp.bfloat16),
                   preferred_element_type=jnp.float32)


def _se_apply(x4, w1, b1, w2, b2):
    # SELayer: global avg-pool -> FC -> ReLU -> FC -> h_sigmoid -> rescale.
    n, h, w, c = x4.shape
    x3 = x4.reshape(n, h * w, c)
    y = jnp.mean(x3, axis=1)                                  # (N, C)
    y = _mxu_matmul(y, w1) + b1
    y = jnp.maximum(y, 0.0)
    y = _mxu_matmul(y, w2) + b2
    y = jnp.clip(y + 3.0, 0.0, 6.0) * (1.0 / 6.0)             # h_sigmoid
    return (x3 * y[:, None, :]).reshape(n, h, w, c)


def _zero_halo(pad_ref, n, h, w, pd, c):
    # Zero only the halo strips; the interior is overwritten right after.
    wp = w + 2 * pd
    zrow = jnp.zeros((n, pd, wp, c), jnp.float32)
    pad_ref[:, :pd, :, :] = zrow
    pad_ref[:, pd + h:, :, :] = zrow
    zcol = jnp.zeros((n, h, pd, c), jnp.float32)
    pad_ref[:, pd:pd + h, :pd, :] = zcol
    pad_ref[:, pd:pd + h, pd + w:, :] = zcol


def _tap(pad_ref, kh, kw, ho, wo, stride):
    # Read one conv tap directly at output resolution.
    if stride == 1:
        return pad_ref[:, kh:kh + ho, kw:kw + wo, :]
    return pad_ref[:, pl.ds(kh, ho, stride=stride), pl.ds(kw, wo, stride=stride), :]


# ------------------------------ fused stem kernel ------------------------------
def stem_forward(params, x_nhwc, k=3, stride=2):
    n, h, w, cin = x_nhwc.shape
    cout = params['stem_w'].shape[-1]
    pd = (k - 1) // 2
    ho = (h - 1) // stride + 1
    wo = (w - 1) // stride + 1
    w2d = params['stem_w'].reshape(k * k * cin, cout)          # (27, cout) bf16

    def kernel(x_ref, w_ref, g_ref, b_ref, o_ref, pad_ref):
        _zero_halo(pad_ref, n, h, w, pd, cin)
        pad_ref[:, pd:pd + h, pd:pd + w, :] = x_ref[...].astype(jnp.float32)
        # im2col at output resolution (strided reads) -> one K=k*k*cin MXU matmul.
        taps = []
        for kh in range(k):
            for kw in range(k):
                taps.append(_tap(pad_ref, kh, kw, ho, wo, stride))
        col = jnp.concatenate(taps, axis=-1).reshape(n * ho * wo, k * k * cin)
        acc = _mxu_matmul(col, w_ref[...])
        ym = _apply_act(_bn_train(acc, g_ref[...], b_ref[...]), 3)   # h_swish
        o_ref[...] = ym.reshape(n, ho, wo, cout).astype(jnp.bfloat16)

    return pl.pallas_call(
        kernel,
        out_shape=jax.ShapeDtypeStruct((n, ho, wo, cout), jnp.bfloat16),
        in_specs=[pl.BlockSpec(memory_space=_VMEM)] * 4,
        out_specs=pl.BlockSpec(memory_space=_VMEM),
        scratch_shapes=[pltpu.VMEM((n, h + 2 * pd, w + 2 * pd, cin), jnp.float32)],
        compiler_params=pltpu.CompilerParams(vmem_limit_bytes=_VMEM_LIMIT),
    )(x_nhwc, w2d, params['stem_g'], params['stem_b'])


# --------------------------- fused inverted-residual ---------------------------
def block_forward(p, x_nhwc):
    inp, hidden, oup, k, stride, use_se, use_hs = p['cfg']
    n, h, w, _ = x_nhwc.shape
    act = 3 if use_hs else 1
    has_expand = (inp != hidden)
    identity = (stride == 1 and inp == oup)
    pd = (k - 1) // 2
    ho = (h - 1) // stride + 1
    wo = (w - 1) // stride + 1

    def kernel(*refs):
        it = iter(refs)
        x_ref = next(it)
        if has_expand:
            exp_w, exp_g, exp_b = next(it), next(it), next(it)
        dw_w, dw_g, dw_b = next(it), next(it), next(it)
        if use_se:
            se_w1, se_b1, se_w2, se_b2 = next(it), next(it), next(it), next(it)
        proj_w, proj_g, proj_b = next(it), next(it), next(it)
        o_ref = next(it)
        pad_ref = next(it)

        xb = x_ref[...]                                        # (N, H, W, Cin) bf16

        # ---- expand 1x1 conv + BN + act (MXU, bf16 in / f32 acc) ----
        if has_expand:
            hm = _mxu_matmul(xb.reshape(n * h * w, inp), exp_w[...])
            hm = _apply_act(_bn_train(hm, exp_g[...], exp_b[...]), act)
            h4 = hm.reshape(n, h, w, hidden)
        else:
            h4 = xb.astype(jnp.float32)

        # ---- depthwise kxk conv: zero halo + interior write + strided taps ----
        _zero_halo(pad_ref, n, h, w, pd, hidden)
        pad_ref[:, pd:pd + h, pd:pd + w, :] = h4
        wk = dw_w[...]                                         # (k, k, hidden) f32
        acc = jnp.zeros((n, ho, wo, hidden), jnp.float32)
        for kh in range(k):
            for kw in range(k):
                wt = wk[kh:kh + 1, kw:kw + 1, :].reshape(1, 1, 1, hidden)
                acc = acc + _tap(pad_ref, kh, kw, ho, wo, stride) * wt

        # ---- BN + SE + activation (same ordering as the torch module) ----
        ym = _bn_train(acc.reshape(n * ho * wo, hidden), dw_g[...], dw_b[...])
        if has_expand:
            if use_se:
                se4 = _se_apply(ym.reshape(n, ho, wo, hidden),
                                se_w1[...], se_b1[...], se_w2[...], se_b2[...])
                ym = _apply_act(se4, act).reshape(n * ho * wo, hidden)
            else:
                ym = _apply_act(ym, act)
        else:
            ym = _apply_act(ym, act)
            if use_se:
                se4 = _se_apply(ym.reshape(n, ho, wo, hidden),
                                se_w1[...], se_b1[...], se_w2[...], se_b2[...])
                ym = se4.reshape(n * ho * wo, hidden)

        # ---- project 1x1 conv + BN (+ fused residual add) ----
        om = _bn_train(_mxu_matmul(ym, proj_w[...]), proj_g[...], proj_b[...])
        out4 = om.reshape(n, ho, wo, oup)
        if identity:
            out4 = out4 + xb.astype(jnp.float32)
        o_ref[...] = out4.astype(jnp.bfloat16)

    args = [x_nhwc]
    if has_expand:
        args += [p['exp_w'], p['exp_g'], p['exp_b']]
    args += [p['dw_w'], p['dw_g'], p['dw_b']]
    if use_se:
        args += [p['se']['w1'], p['se']['b1'], p['se']['w2'], p['se']['b2']]
    args += [p['proj_w'], p['proj_g'], p['proj_b']]

    return pl.pallas_call(
        kernel,
        out_shape=jax.ShapeDtypeStruct((n, ho, wo, oup), jnp.bfloat16),
        in_specs=[pl.BlockSpec(memory_space=_VMEM)] * len(args),
        out_specs=pl.BlockSpec(memory_space=_VMEM),
        scratch_shapes=[pltpu.VMEM((n, h + 2 * pd, w + 2 * pd, hidden), jnp.float32)],
        compiler_params=pltpu.CompilerParams(vmem_limit_bytes=_VMEM_LIMIT),
    )(*args)


# ------------------------------- fused head kernel ------------------------------
def head_forward(params, x_nhwc):
    n, h, w, cin = x_nhwc.shape
    cout = params['head_w'].shape[-1]
    use_se = 'head_se' in params

    def kernel(*refs):
        it = iter(refs)
        x_ref, w_ref, g_ref, b_ref = next(it), next(it), next(it), next(it)
        se = [next(it) for _ in range(4)] if use_se else None
        o_ref = next(it)
        x2 = x_ref[...].reshape(n * h * w, cin)                # bf16
        y = _apply_act(_bn_train(_mxu_matmul(x2, w_ref[...]), g_ref[...], b_ref[...]), 3)
        y4 = y.reshape(n, h, w, cout)
        if use_se:
            y4 = _se_apply(y4, se[0][...], se[1][...], se[2][...], se[3][...])
        o_ref[...] = y4.astype(jnp.bfloat16)

    args = [x_nhwc, params['head_w'], params['head_g'], params['head_b']]
    if use_se:
        s = params['head_se']
        args += [s['w1'], s['b1'], s['w2'], s['b2']]

    return pl.pallas_call(
        kernel,
        out_shape=jax.ShapeDtypeStruct((n, h, w, cout), jnp.bfloat16),
        in_specs=[pl.BlockSpec(memory_space=_VMEM)] * len(args),
        out_specs=pl.BlockSpec(memory_space=_VMEM),
        compiler_params=pltpu.CompilerParams(vmem_limit_bytes=_VMEM_LIMIT),
    )(*args)


# ------------------------------ parameter setup --------------------------------
class KeyGen:
    def __init__(self, seed):
        self._key = jax.random.PRNGKey(seed)

    def next(self):
        self._key, k = jax.random.split(self._key)
        return k


def conv_weight(kg, shape, fan_n, dtype=jnp.float32):
    # PyTorch init: normal(0, sqrt(2 / (k*k*out_channels)))
    w = math.sqrt(2.0 / fan_n) * jax.random.normal(kg.next(), shape, jnp.float32)
    return w.astype(dtype)


def linear_weight(kg, shape, dtype=jnp.bfloat16):
    return (0.01 * jax.random.normal(kg.next(), shape, jnp.float32)).astype(dtype)


def bn_params(c):
    return jnp.ones((1, c), jnp.float32), jnp.zeros((1, c), jnp.float32)


def make_se_params(kg, c):
    cr = _make_divisible(c // 4, 8)
    return {'w1': linear_weight(kg, (c, cr)), 'b1': jnp.zeros((1, cr), jnp.float32),
            'w2': linear_weight(kg, (cr, c)), 'b2': jnp.zeros((1, c), jnp.float32)}


def make_block(kg, inp, hidden, oup, k, stride, use_se, use_hs):
    p = {'cfg': (inp, hidden, oup, k, stride, use_se, use_hs)}
    if inp != hidden:
        p['exp_w'] = conv_weight(kg, (inp, hidden), 1 * 1 * hidden, dtype=jnp.bfloat16)
        p['exp_g'], p['exp_b'] = bn_params(hidden)
    p['dw_w'] = conv_weight(kg, (k, k, hidden), k * k * hidden, dtype=jnp.float32)
    p['dw_g'], p['dw_b'] = bn_params(hidden)
    if use_se:
        p['se'] = make_se_params(kg, hidden)
    p['proj_w'] = conv_weight(kg, (hidden, oup), 1 * 1 * oup, dtype=jnp.bfloat16)
    p['proj_g'], p['proj_b'] = bn_params(oup)
    return p


def make_mobilenetv3_params(kg, cfgs, mode='small', width_mult=1.0):
    assert mode in ('large', 'small')
    input_channel = _make_divisible(16 * width_mult, 8)
    params = {'mode': mode}
    params['stem_w'] = conv_weight(kg, (3, 3, 3, input_channel),
                                   3 * 3 * input_channel, dtype=jnp.bfloat16)
    params['stem_g'], params['stem_b'] = bn_params(input_channel)

    groups = []          # replicate the "all_layers" splitting logic of the torch module
    cur = ['stem']
    temp = 1
    exp_size = 16
    for k, exp_size, c, use_se, use_hs, s in cfgs:
        if use_se == temp:
            groups.append(cur)
            cur = []
            temp = 1 - temp
        output_channel = _make_divisible(c * width_mult, 8)
        cur.append(make_block(kg, input_channel, exp_size, output_channel, k, s, use_se, use_hs))
        input_channel = output_channel
    groups.append(cur)
    params['groups'] = groups

    last_exp = _make_divisible(exp_size * width_mult, 8)
    params['head_w'] = conv_weight(kg, (input_channel, last_exp), 1 * 1 * last_exp,
                                   dtype=jnp.bfloat16)
    params['head_g'], params['head_b'] = bn_params(last_exp)
    if mode == 'small':
        params['head_se'] = make_se_params(kg, last_exp)
    return params


# ---------------------------------- forward ------------------------------------
def mobilenetv3_forward(params, x_nchw):
    x = jnp.transpose(x_nchw, (0, 2, 3, 1)).astype(jnp.float32)  # NCHW -> NHWC
    features = []
    for group in params['groups']:
        for item in group:
            if isinstance(item, str) and item == 'stem':
                x = stem_forward(params, x)
            else:
                x = block_forward(item, x)
        features.append(jnp.transpose(x, (0, 3, 1, 2)).astype(jnp.float32))  # NHWC -> NCHW
    x = head_forward(params, x)
    features.append(jnp.transpose(x, (0, 3, 1, 2)).astype(jnp.float32))
    # TODO(synk): `self.extras` branch skipped — it only exists when enable_extra=True
    # (and that __init__ path indexes an int with a str), so forward matches enable_extra=False.
    return features


# ------------------------------------ main --------------------------------------
if __name__ == "__main__":
    # MobileNetV3-small style cfgs (truncated to keep shapes small):
    #         k, exp, c, use_se, use_hs, s
    cfgs = [
        [3, 16, 16, 1, 0, 2],
        [3, 72, 24, 0, 0, 2],
        [3, 88, 24, 0, 0, 1],
        [5, 96, 40, 1, 1, 2],
    ]
    kg = KeyGen(42)
    params = make_mobilenetv3_params(kg, cfgs, mode='small', width_mult=1.0)

    x = jax.random.normal(jax.random.PRNGKey(0), (2, 3, 32, 32), jnp.float32)
    feats = mobilenetv3_forward(params, x)
    feats = jax.block_until_ready(feats)

    expected = [(2, 16, 16, 16), (2, 16, 8, 8), (2, 24, 4, 4), (2, 40, 2, 2), (2, 96, 2, 2)]
    got = [tuple(f.shape) for f in feats]
    assert got == expected, f"shape mismatch: {got} vs {expected}"
    assert all(bool(jnp.all(jnp.isfinite(f))) for f in feats), "non-finite output"
    print("KERNEL_OK")
</pallas_src>

<mosaic_0001>
module attributes {stable_mosaic.version = 11 : i64} {
  func.func @kernel(%arg0: memref<2x32x32x3xf32, #tpu.memory_space<vmem>>, %arg1: memref<27x16xbf16, #tpu.memory_space<vmem>>, %arg2: memref<1x16xf32, #tpu.memory_space<vmem>>, %arg3: memref<1x16xf32, #tpu.memory_space<vmem>>, %arg4: memref<2x16x16x16xbf16, #tpu.memory_space<vmem>>, %arg5: memref<2x34x34x3xf32, #tpu.memory_space<vmem>>) attributes {dimension_semantics = [], scalar_prefetch = 0 : i64, scratch_operands = 1 : i64, tpu.core_type = #tpu.core_type<tc>} {
    %cst = arith.constant 0.000000e+00 : f32
    %0 = vector.broadcast %cst : f32 to vector<2x1x34x3xf32>
    %c0 = arith.constant 0 : index
    %c0_0 = arith.constant 0 : index
    %c0_1 = arith.constant 0 : index
    %c0_2 = arith.constant 0 : index
    %1 = vector.load %arg5[%c0, %c0_0, %c0_1, %c0_2] : memref<2x34x34x3xf32, #tpu.memory_space<vmem>>, vector<2x1x34x3xf32>
    tpu.vector_store %arg5[%c0, %c0_0, %c0_1, %c0_2], %0 {strides = array<i32>} : memref<2x34x34x3xf32, #tpu.memory_space<vmem>>, vector<2x1x34x3xf32>,
    %c0_3 = arith.constant 0 : index
    %c33 = arith.constant 33 : index
    %c0_4 = arith.constant 0 : index
    %c0_5 = arith.constant 0 : index
    %2 = vector.load %arg5[%c0_3, %c33, %c0_4, %c0_5] : memref<2x34x34x3xf32, #tpu.memory_space<vmem>>, vector<2x1x34x3xf32>
    tpu.vector_store %arg5[%c0_3, %c33, %c0_4, %c0_5], %0 {strides = array<i32>} : memref<2x34x34x3xf32, #tpu.memory_space<vmem>>, vector<2x1x34x3xf32>,
    %cst_6 = arith.constant 0.000000e+00 : f32
    %3 = vector.broadcast %cst_6 : f32 to vector<2x32x1x3xf32>
    %c0_7 = arith.constant 0 : index
    %c1 = arith.constant 1 : index
    %c0_8 = arith.constant 0 : index
    %c0_9 = arith.constant 0 : index
    %4 = vector.load %arg5[%c0_7, %c1, %c0_8, %c0_9] : memref<2x34x34x3xf32, #tpu.memory_space<vmem>>, vector<2x32x1x3xf32>
    tpu.vector_store %arg5[%c0_7, %c1, %c0_8, %c0_9], %3 {strides = array<i32>} : memref<2x34x34x3xf32, #tpu.memory_space<vmem>>, vector<2x32x1x3xf32>,
    %c0_10 = arith.constant 0 : index
    %c1_11 = arith.constant 1 : index
    %c33_12 = arith.constant 33 : index
    %c0_13 = arith.constant 0 : index
    %5 = vector.load %arg5[%c0_10, %c1_11, %c33_12, %c0_13] : memref<2x34x34x3xf32, #tpu.memory_space<vmem>>, vector<2x32x1x3xf32>
    tpu.vector_store %arg5[%c0_10, %c1_11, %c33_12, %c0_13], %3 {strides = array<i32>} : memref<2x34x34x3xf32, #tpu.memory_space<vmem>>, vector<2x32x1x3xf32>,
    %c0_14 = arith.constant 0 : index
    %c0_15 = arith.constant 0 : index
    %c0_16 = arith.constant 0 : index
    %c0_17 = arith.constant 0 : index
    %6 = vector.load %arg0[%c0_14, %c0_15, %c0_16, %c0_17] : memref<2x32x32x3xf32, #tpu.memory_space<vmem>>, vector<2x32x32x3xf32>
    %c0_18 = arith.constant 0 : index
    %c1_19 = arith.constant 1 : index
    %c1_20 = arith.constant 1 : index
    %c0_21 = arith.constant 0 : index
    %7 = vector.load %arg5[%c0_18, %c1_19, %c1_20, %c0_21] : memref<2x34x34x3xf32, #tpu.memory_space<vmem>>, vector<2x32x32x3xf32>
    tpu.vector_store %arg5[%c0_18, %c1_19, %c1_20, %c0_21], %6 {strides = array<i32>} : memref<2x34x34x3xf32, #tpu.memory_space<vmem>>, vector<2x32x32x3xf32>,
    %c0_22 = arith.constant 0 : index
    %c0_23 = arith.constant 0 : index
    %c0_24 = arith.constant 0 : index
    %c0_25 = arith.constant 0 : index
    %8 = tpu.strided_load %arg5[%c0_22, %c0_23, %c0_24, %c0_25] {strides = array<i32: 1, 2, 2, 1>} : memref<2x34x34x3xf32, #tpu.memory_space<vmem>>, vector<2x16x16x3xf32>
    %c0_26 = arith.constant 0 : index
    %c0_27 = arith.constant 0 : index
    %c1_28 = arith.constant 1 : index
    %c0_29 = arith.constant 0 : index
    %9 = tpu.strided_load %arg5[%c0_26, %c0_27, %c1_28, %c0_29] {strides = array<i32: 1, 2, 2, 1>} : memref<2x34x34x3xf32, #tpu.memory_space<vmem>>, vector<2x16x16x3xf32>
    %c0_30 = arith.constant 0 : index
    %c0_31 = arith.constant 0 : index
    %c2 = arith.constant 2 : index
    %c0_32 = arith.constant 0 : index
    %10 = tpu.strided_load %arg5[%c0_30, %c0_31, %c2, %c0_32] {strides = array<i32: 1, 2, 2, 1>} : memref<2x34x34x3xf32, #tpu.memory_space<vmem>>, vector<2x16x16x3xf32>
    %c0_33 = arith.constant 0 : index
    %c1_34 = arith.constant 1 : index
    %c0_35 = arith.constant 0 : index
    %c0_36 = arith.constant 0 : index
    %11 = tpu.strided_load %arg5[%c0_33, %c1_34, %c0_35, %c0_36] {strides = array<i32: 1, 2, 2, 1>} : memref<2x34x34x3xf32, #tpu.memory_space<vmem>>, vector<2x16x16x3xf32>
    %c0_37 = arith.constant 0 : index
    %c1_38 = arith.constant 1 : index
    %c1_39 = arith.constant 1 : index
    %c0_40 = arith.constant 0 : index
    %12 = tpu.strided_load %arg5[%c0_37, %c1_38, %c1_39, %c0_40] {strides = array<i32: 1, 2, 2, 1>} : memref<2x34x34x3xf32, #tpu.memory_space<vmem>>, vector<2x16x16x3xf32>
    %c0_41 = arith.constant 0 : index
    %c1_42 = arith.constant 1 : index
    %c2_43 = arith.constant 2 : index
    %c0_44 = arith.constant 0 : index
    %13 = tpu.strided_load %arg5[%c0_41, %c1_42, %c2_43, %c0_44] {strides = array<i32: 1, 2, 2, 1>} : memref<2x34x34x3xf32, #tpu.memory_space<vmem>>, vector<2x16x16x3xf32>
    %c0_45 = arith.constant 0 : index
    %c2_46 = arith.constant 2 : index
    %c0_47 = arith.constant 0 : index
    %c0_48 = arith.constant 0 : index
    %14 = tpu.strided_load %arg5[%c0_45, %c2_46, %c0_47, %c0_48] {strides = array<i32: 1, 2, 2, 1>} : memref<2x34x34x3xf32, #tpu.memory_space<vmem>>, vector<2x16x16x3xf32>
    %c0_49 = arith.constant 0 : index
    %c2_50 = arith.constant 2 : index
    %c1_51 = arith.constant 1 : index
    %c0_52 = arith.constant 0 : index
    %15 = tpu.strided_load %arg5[%c0_49, %c2_50, %c1_51, %c0_52] {strides = array<i32: 1, 2, 2, 1>} : memref<2x34x34x3xf32, #tpu.memory_space<vmem>>, vector<2x16x16x3xf32>
    %c0_53 = arith.constant 0 : index
    %c2_54 = arith.constant 2 : index
    %c2_55 = arith.constant 2 : index
    %c0_56 = arith.constant 0 : index
    %16 = tpu.strided_load %arg5[%c0_53, %c2_54, %c2_55, %c0_56] {strides = array<i32: 1, 2, 2, 1>} : memref<2x34x34x3xf32, #tpu.memory_space<vmem>>, vector<2x16x16x3xf32>
    %17 = tpu.concatenate %8, %9, %10, %11, %12, %13, %14, %15, %16 in 3 : vector<2x16x16x3xf32>, vector<2x16x16x3xf32>, vector<2x16x16x3xf32>, vector<2x16x16x3xf32>, vector<2x16x16x3xf32>, vector<2x16x16x3xf32>, vector<2x16x16x3xf32>, vector<2x16x16x3xf32>, vector<2x16x16x3xf32> -> vector<2x16x16x27xf32>
    %18 = vector.shape_cast %17 : vector<2x16x16x27xf32> to vector<512x27xf32>
    %c0_57 = arith.constant 0 : index
    %c0_58 = arith.constant 0 : index
    %19 = vector.load %arg1[%c0_57, %c0_58] : memref<27x16xbf16, #tpu.memory_space<vmem>>, vector<27x16xbf16>
    %20 = arith.truncf %18 : vector<512x27xf32> to vector<512x27xbf16>
    %cst_59 = arith.constant dense<0.000000e+00> : vector<512x16xf32>
    %21 = tpu.matmul %20, %19, %cst_59 {dimension_numbers = #tpu.dot_dimension_numbers<[1], [0], [0], [1], [0, 0, 1, 1], [], []>} : vector<512x27xbf16>, vector<27x16xbf16>, vector<512x16xf32> -> vector<512x16xf32>
    %c0_60 = arith.constant 0 : index
    %c0_61 = arith.constant 0 : index
    %22 = vector.load %arg2[%c0_60, %c0_61] : memref<1x16xf32, #tpu.memory_space<vmem>>, vector<1x16xf32>
    %c0_62 = arith.constant 0 : index
    %c0_63 = arith.constant 0 : index
    %23 = vector.load %arg3[%c0_62, %c0_63] : memref<1x16xf32, #tpu.memory_space<vmem>>, vector<1x16xf32>
    %cst_64 = arith.constant dense<0.000000e+00> : vector<16xf32>
    %24 = vector.multi_reduction <add>, %21, %cst_64 [0] : vector<512x16xf32> to vector<16xf32>
    %25 = vector.shape_cast %24 : vector<16xf32> to vector<1x16xf32>
    %cst_65 = arith.constant 5.120000e+02 : f32
    %26 = vector.broadcast %cst_65 : f32 to vector<1x16xf32>
    %27 = arith.divf %25, %26 : vector<1x16xf32>
    %28 = vector.broadcast %27 : vector<1x16xf32> to vector<512x16xf32>
    %29 = arith.subf %21, %28 : vector<512x16xf32>
    %30 = arith.mulf %29, %29 : vector<512x16xf32>
    %cst_66 = arith.constant dense<0.000000e+00> : vector<16xf32>
    %31 = vector.multi_reduction <add>, %30, %cst_66 [0] : vector<512x16xf32> to vector<16xf32>
    %32 = vector.shape_cast %31 : vector<16xf32> to vector<1x16xf32>
    %cst_67 = arith.constant 5.120000e+02 : f32
    %33 = vector.broadcast %cst_67 : f32 to vector<1x16xf32>
    %34 = arith.divf %32, %33 : vector<1x16xf32>
    %35 = vector.broadcast %27 : vector<1x16xf32> to vector<512x16xf32>
    %36 = arith.subf %21, %35 : vector<512x16xf32>
    %cst_68 = arith.constant 9.99999974E-6 : f32
    %37 = vector.broadcast %cst_68 : f32 to vector<1x16xf32>
    %38 = arith.addf %34, %37 : vector<1x16xf32>
    %39 = math.rsqrt %38 : vector<1x16xf32>
    %40 = vector.broadcast %39 : vector<1x16xf32> to vector<512x16xf32>
    %41 = arith.mulf %36, %40 : vector<512x16xf32>
    %42 = vector.broadcast %22 : vector<1x16xf32> to vector<512x16xf32>
    %43 = arith.mulf %41, %42 : vector<512x16xf32>
    %44 = vector.broadcast %23 : vector<1x16xf32> to vector<512x16xf32>
    %45 = arith.addf %43, %44 : vector<512x16xf32>
    %cst_69 = arith.constant 3.000000e+00 : f32
    %46 = vector.broadcast %cst_69 : f32 to vector<512x16xf32>
    %47 = arith.addf %45, %46 : vector<512x16xf32>
    %cst_70 = arith.constant 0.000000e+00 : f32
    %cst_71 = arith.constant 6.000000e+00 : f32
    %48 = vector.broadcast %cst_70 : f32 to vector<512x16xf32>
    %49 = arith.maximumf %48, %47 : vector<512x16xf32>
    %50 = vector.broadcast %cst_71 : f32 to vector<512x16xf32>
    %51 = arith.minimumf %50, %49 : vector<512x16xf32>
    %cst_72 = arith.constant 0.166666672 : f32
    %52 = vector.broadcast %cst_72 : f32 to vector<512x16xf32>
    %53 = arith.mulf %51, %52 : vector<512x16xf32>
    %54 = arith.mulf %45, %53 : vector<512x16xf32>
    %55 = vector.shape_cast %54 : vector<512x16xf32> to vector<2x16x16x16xf32>
    %56 = arith.truncf %55 : vector<2x16x16x16xf32> to vector<2x16x16x16xbf16>
    %c0_73 = arith.constant 0 : index
    %c0_74 = arith.constant 0 : index
    %c0_75 = arith.constant 0 : index
    %c0_76 = arith.constant 0 : index
    %57 = vector.load %arg4[%c0_73, %c0_74, %c0_75, %c0_76] : memref<2x16x16x16xbf16, #tpu.memory_space<vmem>>, vector<2x16x16x16xbf16>
    tpu.vector_store %arg4[%c0_73, %c0_74, %c0_75, %c0_76], %56 {strides = array<i32>} : memref<2x16x16x16xbf16, #tpu.memory_space<vmem>>, vector<2x16x16x16xbf16>,
    return
  }
}

</mosaic_0001>

<bundles_post_ra>
// kernel: tpu_custom_call.1
= control target key start
LH: loop header
LB: loop body
LE: loop exit
PB: predicated region body
PF: predicated region fallthrough
CT: control target
= control target key end

     0   :  { %9 = vsyncpa [#allocation4], 0  ;;  %s12918_s0 = inlined_call_operand.hbm [shape: f32[2,32,32,3], index: 0, kind: input, shape index: {}]   ;;  %s12919_s1 = inlined_call_operand.hbm [shape: bf16[27,16], index: 1, kind: input, shape index: {}]   ;;  %s12920_s2 = inlined_call_operand.hbm [shape: f32[1,16], index: 2, kind: input, shape index: {}]   ;;  %s12921_s3 = inlined_call_operand.hbm [shape: f32[1,16], index: 3, kind: input, shape index: {}]   ;;  %s12922_s4 = inlined_call_operand.hbm [shape: bf16[2,16,16,16], index: 4, kind: output, shape index: {}]  }
   0x1   :  { %10 = vsyncpa [#allocation7], 0 }
   0x2   :  { %11 = vsyncpa [#allocation10], 0 }
   0x3   :  { %12 = vsyncpa [#allocation5], 0  ;;  %s8231_s15 = smov [#allocation6]   ;;  %s8113_s19 = scalar_lea.hbm %s12919_s1, 256 }
   0x4   :  { %s30_s16 = sshll.u32 %s8231_s15, 4  ;;  %p8114_p0 = scmp.ne.s32.totalorder %s12919_s1, %s8113_s19  ;;  %s31_s16 = int_to_ptr.vmem [resolvable:$true] %s30_s16 }
   0x5   :  { %p8117_p1 = scmp.lt.u32.totalorder %s8113_s19, %s12919_s1 }
   0x7   :  { %p8119_p2 = pnand %p8117_p1, %p8114_p0 }
   0x9   :  { %8122 = shalt.err (!%p8119_p2)
}
   0xa   :  { %s8123_s24 = scalar_lea.vmem %s31_s16, 256  ;;  %p8128_p4 = scmp.lt.s32.totalorder %s31_s16, %s31_s16 }
   0xb   :  { %p8124_p3 = scmp.ne.s32.totalorder %s31_s16, %s8123_s24  ;;  %p8129_p5 = scmp.lt.s32.totalorder %s8123_s24, %s8123_s24 }
   0xd   :  { %p8130_p6 = por %p8129_p5, %p8128_p4 }
   0xf   :  { %p8131_p7 = pnand %p8130_p6, %p8124_p3 }
  0x11   :  { %8134 = shalt.err (!%p8131_p7)
}
  0x12   :  { %s8232_s25 = smov 64   ;;  %s8233_s26 = smov 4  }
  0x13   :  { %36 = dma.hbm_to_vmem [thread:$0]  %s12919_s1, 256, %s31_s16, [#allocation7], %s8232_s25, %s8232_s25, %s8233_s26  }
  0x14   :  { %s8234_s29 = smov [#allocation3]   ;;  %s8135_s7 = scalar_lea.hbm %s12918_s0, 32768 }
  0x15   :  { %s18_s30 = sshll.u32 %s8234_s29, 4  ;;  %p8136_p8 = scmp.ne.s32.totalorder %s12918_s0, %s8135_s7  ;;  %s19_s30 = int_to_ptr.vmem [resolvable:$true] %s18_s30 }
  0x16   :  { %p8139_p9 = scmp.lt.u32.totalorder %s8135_s7, %s12918_s0 }
  0x18   :  { %p8141_p10 = pnand %p8139_p9, %p8136_p8 }
  0x1a   :  { %8144 = shalt.err (!%p8141_p10)
}
  0x1b   :  { %s8145_s12 = scalar_lea.vmem %s19_s30, 32768  ;;  %p8150_p12 = scmp.lt.s32.totalorder %s19_s30, %s19_s30 }
  0x1c   :  { %p8146_p11 = scmp.ne.s32.totalorder %s19_s30, %s8145_s12  ;;  %p8151_p13 = scmp.lt.s32.totalorder %s8145_s12, %s8145_s12 }
  0x1e   :  { %p8152_p0 = por %p8151_p13, %p8150_p12 }
  0x20   :  { %p8153_p1 = pnand %p8152_p0, %p8146_p11 }
  0x22   :  { %8156 = shalt.err (!%p8153_p1)
}
  0x23   :  { %s8235_s1 = smov 128   ;;  %s8236_s13 = smov 8  }
  0x24   :  { %24 = dma.hbm_to_vmem [thread:$0]  %s12918_s0, 32768, %s19_s30, [#allocation4], %s8235_s1, %s8235_s1, %s8236_s13  }
  0x25   :  { %s8237_s16 = smov [#allocation8]   ;;  %s8238_s18 = smov [#allocation9]  }
  0x26   :  { %s43_s17 = sshll.u32 %s8237_s16, 4  ;;  %s53_s19 = sshll.u32 %s8238_s18, 4  ;;  %s44_s17 = int_to_ptr.vmem [resolvable:$true] %s43_s17  ;;  %s54_s19 = int_to_ptr.vmem [resolvable:$true] %s53_s19 }
  0x27   :  { %s8157_s22 = scalar_lea.hbm %s12920_s2, 16 }
  0x28   :  { %p8158_p2 = scmp.ne.s32.totalorder %s12920_s2, %s8157_s22  ;;  %p8161_p3 = scmp.lt.u32.totalorder %s8157_s22, %s12920_s2 }
  0x2a   :  { %p8163_p4 = pnand %p8161_p3, %p8158_p2 }
  0x2c   :  { %8166 = shalt.err (!%p8163_p4)
}
  0x2d   :  { %s8167_s0 = scalar_lea.vmem %s44_s17, 16  ;;  %s8171_s29 = scalar_lea.vmem %s44_s17, 32 }
  0x2e   :  { %p8168_p5 = scmp.ne.s32.totalorder %s44_s17, %s8167_s0  ;;  %p8172_p6 = scmp.lt.s32.totalorder %s44_s17, %s44_s17 }
  0x2f   :  { %p8173_p7 = scmp.lt.s32.totalorder %s8171_s29, %s8167_s0 }
  0x31   :  { %p8174_p8 = por %p8173_p7, %p8172_p6 }
  0x33   :  { %p8175_p9 = pnand %p8174_p8, %p8168_p5 }
  0x35   :  { %8178 = shalt.err (!%p8175_p9)
}
  0x36   :  { %46 = dma.hbm_to_vmem [thread:$0]  %s12920_s2, 16, %s44_s17, [#allocation7]  }
  0x37   :  { %s8179_s8 = scalar_lea.hbm %s12921_s3, 16 }
  0x38   :  { %p8180_p10 = scmp.ne.s32.totalorder %s12921_s3, %s8179_s8  ;;  %p8183_p11 = scmp.lt.u32.totalorder %s8179_s8, %s12921_s3 }
  0x3a   :  { %p8185_p12 = pnand %p8183_p11, %p8180_p10 }
  0x3c   :  { %8188 = shalt.err (!%p8185_p12)
}
  0x3d   :  { %s8189_s1 = scalar_lea.vmem %s54_s19, 16  ;;  %s8193_s13 = scalar_lea.vmem %s54_s19, 32 }
  0x3e   :  { %p8190_p13 = scmp.ne.s32.totalorder %s54_s19, %s8189_s1  ;;  %p8194_p0 = scmp.lt.s32.totalorder %s54_s19, %s54_s19 }
  0x3f   :  { %p8195_p1 = scmp.lt.s32.totalorder %s8193_s13, %s8189_s1 }
  0x41   :  { %p8196_p2 = por %p8195_p1, %p8194_p0 }
  0x43   :  { %p8197_p3 = pnand %p8196_p2, %p8190_p13 }
  0x45   :  { %8200 = shalt.err (!%p8197_p3)
}
  0x46   :  { %56 = dma.hbm_to_vmem [thread:$0]  %s12921_s3, 16, %s54_s19, [#allocation10]  }
  0x47   :  { %8223 = dma.done.wait [#allocation4], 32768  }
  0x48   :  { %8224 = vsyncadd [#allocation4], 4294934528 }
  0x49   :  { %8225 = dma.done.wait [#allocation7], 272  }
  0x4a   :  { %8226 = vsyncadd [#allocation7], 4294967024 }
  0x4b   :  { %8227 = dma.done.wait [#allocation10], 16  }
  0x4c   :  { %8228 = vsyncadd [#allocation10], 4294967280  ;;  %vm70_vm0 = vcmask 23552   ;;  %vm94_vm1 = vcmask 16384   ;;  %v8239_v0 = vmov 0.0   ;;  %vm75_vm2 = vcmask 17408  }
  0x4d   :  { %71 = vst.msk [vmem:[#allocation2] sm:$0xff] %vm70_vm0, %v8239_v0  ;;  %72 = vst.msk [vmem:[#allocation2 + $0x8] sm:$0xff] %vm70_vm0, %v8239_v0  ;;  %v235_v1 = vld [vmem:[#allocation3 + $0x60] sm:$0xff]  ;;  %v236_v2 = vld [vmem:[#allocation3 + $0x68] sm:$0xff]  ;;  %s8240_s3 = smov 3   ;;  %s8241_s15 = smov 6  }
  0x4e   :  { %73 = vst.msk [vmem:[#allocation2 + $0x10] sm:$0xff] %vm70_vm0, %v8239_v0  ;;  %74 = vst.msk [vmem:[#allocation2 + $0x18] sm:$0xff] %vm70_vm0, %v8239_v0  ;;  %v237_v3 = vld [vmem:[#allocation3 + $0x70] sm:$0xff]  ;;  %v238_v6 = vld [vmem:[#allocation3 + $0x78] sm:$0xff]  ;;  %s8242_s16 = smov 9   ;;  %s8243_s17 = smov 12  }
  0x4f   :  { %77 = vst.msk [vmem:[#allocation2 + $0x550] sm:$0xff] %vm70_vm0, %v8239_v0  ;;  %78 = vst.msk [vmem:[#allocation2 + $0x558] sm:$0xff] %vm70_vm0, %v8239_v0  ;;  %v227_v8 = vld [vmem:[#allocation3 + $0x20] sm:$0xff]  ;;  %v228_v9 = vld [vmem:[#allocation3 + $0x28] sm:$0xff]  ;;  %vm4596_vm3 = vcmask 1044480   ;;  %s8244_s18 = smov 15  }
  0x50   :  { %79 = vst.msk [vmem:[#allocation2 + $0x560] sm:$0xff] %vm70_vm0, %v8239_v0  ;;  %80 = vst.msk [vmem:[#allocation2 + $0x568] sm:$0xff] %vm70_vm0, %v8239_v0  ;;  %v229_v10 = vld [vmem:[#allocation3 + $0x30] sm:$0xff]  ;;  %v230_v11 = vld [vmem:[#allocation3 + $0x38] sm:$0xff]  ;;  %vm4597_vm4 = vcmask 1045504   ;;  %s8246_s19 = smov 18  }
  0x51   :  { %95 = vst.msk [vmem:[#allocation2 + $0x28] sm:$0x1] %vm94_vm1, %v8239_v0  ;;  %96 = vst.msk [vmem:[#allocation2 + $0x50] sm:$0x1] %vm94_vm1, %v8239_v0  ;;  %v243_v12 = vld [vmem:[#allocation3 + $0xa0] sm:$0xff]  ;;  %v244_v13 = vld [vmem:[#allocation3 + $0xa8] sm:$0xff] }
  0x52   :  { %97 = vst.msk [vmem:[#allocation2 + $0x78] sm:$0x1] %vm94_vm1, %v8239_v0  ;;  %98 = vst.msk [vmem:[#allocation2 + $0xa0] sm:$0x1] %vm94_vm1, %v8239_v0  ;;  %v245_v14 = vld [vmem:[#allocation3 + $0xb0] sm:$0xff]  ;;  %v246_v15 = vld [vmem:[#allocation3 + $0xb8] sm:$0xff] }
  0x53   :  { %99 = vst.msk [vmem:[#allocation2 + $0xc8] sm:$0x1] %vm94_vm1, %v8239_v0  ;;  %100 = vst.msk [vmem:[#allocation2 + $0xf0] sm:$0x1] %vm94_vm1, %v8239_v0  ;;  %v251_v16 = vld [vmem:[#allocation3 + $0xe0] sm:$0xff]  ;;  %v252_v17 = vld [vmem:[#allocation3 + $0xe8] sm:$0xff] }
  0x54   :  { %101 = vst.msk [vmem:[#allocation2 + $0x118] sm:$0x1] %vm94_vm1, %v8239_v0  ;;  %102 = vst.msk [vmem:[#allocation2 + $0x140] sm:$0x1] %vm94_vm1, %v8239_v0  ;;  %v863_v4 = vld [vmem:[#allocation2 + $0x1] ss:$2 sm:$0xff] }
  0x55   :  { %103 = vst.msk [vmem:[#allocation2 + $0x168] sm:$0x1] %vm94_vm1, %v8239_v0  ;;  %104 = vst.msk [vmem:[#allocation2 + $0x190] sm:$0x1] %vm94_vm1, %v8239_v0  ;;  %v865_v5 = vld [vmem:[#allocation2 + $0x11] ss:$2 sm:$0xff] }
  0x56   :  { %105 = vst.msk [vmem:[#allocation2 + $0x1b8] sm:$0x1] %vm94_vm1, %v8239_v0  ;;  %106 = vst.msk [vmem:[#allocation2 + $0x1e0] sm:$0x1] %vm94_vm1, %v8239_v0  ;;  %v6829_v7 = vpack.i.bf16 %v865_v5, %v863_v4  ;;  %v253_v18 = vld [vmem:[#allocation3 + $0xf0] sm:$0xff]  ;;  %v254_v19 = vld [vmem:[#allocation3 + $0xf8] sm:$0xff] }
  0x57   :  { %107 = vst.msk [vmem:[#allocation2 + $0x208] sm:$0x1] %vm94_vm1, %v8239_v0  ;;  %108 = vst.msk [vmem:[#allocation2 + $0x230] sm:$0x1] %vm94_vm1, %v8239_v0  ;;  %v259_v20 = vld [vmem:[#allocation3 + $0x120] sm:$0xff]  ;;  %v260_v21 = vld [vmem:[#allocation3 + $0x128] sm:$0xff] }
  0x58   :  { %109 = vst.msk [vmem:[#allocation2 + $0x258] sm:$0x1] %vm94_vm1, %v8239_v0  ;;  %110 = vst.msk [vmem:[#allocation2 + $0x280] sm:$0x1] %vm94_vm1, %v8239_v0  ;;  %6830 = vrot.lane.b32.xlu0 %v6829_v7, %s8240_s3  ;;  %v261_v22 = vld [vmem:[#allocation3 + $0x130] sm:$0xff]  ;;  %v262_v23 = vld [vmem:[#allocation3 + $0x138] sm:$0xff] }
  0x59   :  { %111 = vst.msk [vmem:[#allocation2 + $0x2a8] sm:$0x1] %vm94_vm1, %v8239_v0  ;;  %112 = vst.msk [vmem:[#allocation2 + $0x2d0] sm:$0x1] %vm94_vm1, %v8239_v0  ;;  %v267_v24 = vld [vmem:[#allocation3 + $0x160] sm:$0xff]  ;;  %v268_v25 = vld [vmem:[#allocation3 + $0x168] sm:$0xff] }
  0x5a   :  { %113 = vst.msk [vmem:[#allocation2 + $0x2f8] sm:$0x1] %vm94_vm1, %v8239_v0  ;;  %114 = vst.msk [vmem:[#allocation2 + $0x320] sm:$0x1] %vm94_vm1, %v8239_v0  ;;  %v269_v27 = vld [vmem:[#allocation3 + $0x170] sm:$0xff]  ;;  %v270_v28 = vld [vmem:[#allocation3 + $0x178] sm:$0xff] }
  0x5b   :  { %115 = vst.msk [vmem:[#allocation2 + $0x348] sm:$0x1] %vm94_vm1, %v8239_v0  ;;  %116 = vst.msk [vmem:[#allocation2 + $0x370] sm:$0x1] %vm94_vm1, %v8239_v0  ;;  %v275_v30 = vld [vmem:[#allocation3 + $0x1a0] sm:$0xff]  ;;  %v276_v31 = vld [vmem:[#allocation3 + $0x1a8] sm:$0xff] }
  0x5c   :  { %117 = vst.msk [vmem:[#allocation2 + $0x398] sm:$0x1] %vm94_vm1, %v8239_v0  ;;  %118 = vst.msk [vmem:[#allocation2 + $0x3c0] sm:$0x1] %vm94_vm1, %v8239_v0  ;;  %v277_v34 = vld [vmem:[#allocation3 + $0x1b0] sm:$0xff]  ;;  %v278_v35 = vld [vmem:[#allocation3 + $0x1b8] sm:$0xff] }
  0x5d   :  { %119 = vst.msk [vmem:[#allocation2 + $0x3e8] sm:$0x1] %vm94_vm1, %v8239_v0  ;;  %120 = vst.msk [vmem:[#allocation2 + $0x410] sm:$0x1] %vm94_vm1, %v8239_v0  ;;  %v283_v38 = vld [vmem:[#allocation3 + $0x1e0] sm:$0xff]  ;;  %v284_v41 = vld [vmem:[#allocation3 + $0x1e8] sm:$0xff] }
  0x5e   :  { %121 = vst.msk [vmem:[#allocation2 + $0x438] sm:$0x1] %vm94_vm1, %v8239_v0  ;;  %122 = vst.msk [vmem:[#allocation2 + $0x460] sm:$0x1] %vm94_vm1, %v8239_v0  ;;  %v285_v42 = vld [vmem:[#allocation3 + $0x1f0] sm:$0xff]  ;;  %v286_v46 = vld [vmem:[#allocation3 + $0x1f8] sm:$0xff] }
  0x5f   :  { %123 = vst.msk [vmem:[#allocation2 + $0x488] sm:$0x1] %vm94_vm1, %v8239_v0  ;;  %124 = vst.msk [vmem:[#allocation2 + $0x4b0] sm:$0x1] %vm94_vm1, %v8239_v0  ;;  %v291_v49 = vld [vmem:[#allocation3 + $0x220] sm:$0xff]  ;;  %v292_v50 = vld [vmem:[#allocation3 + $0x228] sm:$0xff] }
  0x60   :  { %125 = vst.msk [vmem:[#allocation2 + $0x4d8] sm:$0x1] %vm94_vm1, %v8239_v0  ;;  %126 = vst.msk [vmem:[#allocation2 + $0x500] sm:$0x1] %vm94_vm1, %v8239_v0  ;;  %v293_v53 = vld [vmem:[#allocation3 + $0x230] sm:$0xff]  ;;  %v294_v56 = vld [vmem:[#allocation3 + $0x238] sm:$0xff] }
  0x61   :  { %127 = vst.msk [vmem:[#allocation2 + $0x578] sm:$0x1] %vm94_vm1, %v8239_v0  ;;  %128 = vst.msk [vmem:[#allocation2 + $0x5a0] sm:$0x1] %vm94_vm1, %v8239_v0  ;;  %v299_v57 = vld [vmem:[#allocation3 + $0x260] sm:$0xff]  ;;  %v300_v59 = vld [vmem:[#allocation3 + $0x268] sm:$0xff] }
  0x62   :  { %129 = vst.msk [vmem:[#allocation2 + $0x5c8] sm:$0x1] %vm94_vm1, %v8239_v0  ;;  %130 = vst.msk [vmem:[#allocation2 + $0x5f0] sm:$0x1] %vm94_vm1, %v8239_v0  ;;  %v301_v60 = vld [vmem:[#allocation3 + $0x270] sm:$0xff]  ;;  %v302_v63 = vld [vmem:[#allocation3 + $0x278] sm:$0xff] }
  0x63   :  { %131 = vst.msk [vmem:[#allocation2 + $0x618] sm:$0x1] %vm94_vm1, %v8239_v0  ;;  %132 = vst.msk [vmem:[#allocation2 + $0x640] sm:$0x1] %vm94_vm1, %v8239_v0  ;;  %v316_v7 = vld [vmem:[#allocation3 + $0x2e8] sm:$0xff]  ;;  %s8247_s20 = smov 21  }
  0x64   :  { %133 = vst.msk [vmem:[#allocation2 + $0x668] sm:$0x1] %vm94_vm1, %v8239_v0  ;;  %134 = vst.msk [vmem:[#allocation2 + $0x690] sm:$0x1] %vm94_vm1, %v8239_v0  ;;  %s8248_s21 = smov 24   ;;  %vm3997_vm5 = vcmask 48128  }
  0x65   :  { %135 = vst.msk [vmem:[#allocation2 + $0x6b8] sm:$0x1] %vm94_vm1, %v8239_v0  ;;  %136 = vst.msk [vmem:[#allocation2 + $0x6e0] sm:$0x1] %vm94_vm1, %v8239_v0  ;;  %vm4062_vm6 = vcmask 72704   ;;  %vm4127_vm7 = vcmask 97280  }
  0x66   :  { %137 = vst.msk [vmem:[#allocation2 + $0x708] sm:$0x1] %vm94_vm1, %v8239_v0  ;;  %138 = vst.msk [vmem:[#allocation2 + $0x730] sm:$0x1] %vm94_vm1, %v8239_v0  ;;  %vm4192_vm8 = vcmask 121856   ;;  %vm4257_vm9 = vcmask 146432  }
  0x67   :  { %139 = vst.msk [vmem:[#allocation2 + $0x758] sm:$0x1] %vm94_vm1, %v8239_v0  ;;  %140 = vst.msk [vmem:[#allocation2 + $0x780] sm:$0x1] %vm94_vm1, %v8239_v0  ;;  %vm4322_vm10 = vcmask 171008   ;;  %vm4387_vm11 = vcmask 195584  }
  0x68   :  { %141 = vst.msk [vmem:[#allocation2 + $0x7a8] sm:$0x1] %vm94_vm1, %v8239_v0  ;;  %142 = vst.msk [vmem:[#allocation2 + $0x7d0] sm:$0x1] %vm94_vm1, %v8239_v0  ;;  %vm4499_vm12 = vcmask 220160   ;;  %vm4894_vm13 = vcmask 130048  }
  0x69   :  { %143 = vst.msk [vmem:[#allocation2 + $0x7f8] sm:$0x1] %vm94_vm1, %v8239_v0  ;;  %144 = vst.msk [vmem:[#allocation2 + $0x820] sm:$0x1] %vm94_vm1, %v8239_v0  ;;  %vm6074_vm14 = vcmask 125952   ;;  %s8249_s22 = smov [#allocation11]  }
  0x6a   :  { %145 = vst.msk [vmem:[#allocation2 + $0x848] sm:$0x1] %vm94_vm1, %v8239_v0  ;;  %146 = vst.msk [vmem:[#allocation2 + $0x870] sm:$0x1] %vm94_vm1, %v8239_v0  ;;  %s6144_s23 = sshll.u32 %s8249_s22, 4  ;;  %s6145_s23 = int_to_ptr.vmem [resolvable:$true] %s6144_s23 }
  0x6b   :  { %147 = vst.msk [vmem:[#allocation2 + $0x898] sm:$0x1] %vm94_vm1, %v8239_v0  ;;  %148 = vst.msk [vmem:[#allocation2 + $0x8c0] sm:$0x1] %vm94_vm1, %v8239_v0  ;;  %s8201_s24 = scalar_lea.vmem %s6145_s23, 4096  ;;  %p8206_p5 = scmp.lt.s32.totalorder %s6145_s23, %s6145_s23 }
  0x6c   :  { %149 = vst.msk [vmem:[#allocation2 + $0x8e8] sm:$0x1] %vm94_vm1, %v8239_v0  ;;  %150 = vst.msk [vmem:[#allocation2 + $0x910] sm:$0x1] %vm94_vm1, %v8239_v0  ;;  %p8202_p4 = scmp.ne.s32.totalorder %s6145_s23, %s8201_s24  ;;  %p8207_p6 = scmp.lt.s32.totalorder %s8201_s24, %s8201_s24 }
  0x6d   :  { %151 = vst.msk [vmem:[#allocation2 + $0x938] sm:$0x1] %vm94_vm1, %v8239_v0  ;;  %152 = vst.msk [vmem:[#allocation2 + $0x960] sm:$0x1] %vm94_vm1, %v8239_v0 }
  0x6e   :  { %153 = vst.msk [vmem:[#allocation2 + $0x988] sm:$0x1] %vm94_vm1, %v8239_v0  ;;  %154 = vst.msk [vmem:[#allocation2 + $0x9b0] sm:$0x1] %vm94_vm1, %v8239_v0  ;;  %p8208_p7 = por %p8207_p6, %p8206_p5 }
  0x6f   :  { %155 = vst.msk [vmem:[#allocation2 + $0x9d8] sm:$0x1] %vm94_vm1, %v8239_v0  ;;  %156 = vst.msk [vmem:[#allocation2 + $0xa00] sm:$0x1] %vm94_vm1, %v8239_v0 }
  0x70   :  { %157 = vst.msk [vmem:[#allocation2 + $0xa28] sm:$0x1] %vm94_vm1, %v8239_v0  ;;  %158 = vst.msk [vmem:[#allocation2 + $0xa50] sm:$0x1] %vm94_vm1, %v8239_v0  ;;  %p8209_p8 = pnand %p8208_p7, %p8202_p4 }
  0x71   :  { %76 = vst.msk [vmem:[#allocation2 + $0x20] sm:$0x3] %vm75_vm2, %v8239_v0  ;;  %81 = vst.msk [vmem:[#allocation2 + $0x570] sm:$0x3] %vm75_vm2, %v8239_v0  ;;  %v307_v0 = vld [vmem:[#allocation3 + $0x2a0] sm:$0xff] }
  0x72   :  { %491 = vst.msk [vmem:[#allocation2 + $0xa1] sm:$0xff] %vm70_vm0, %v235_v1  ;;  %492 = vst.msk [vmem:[#allocation2 + $0xa9] sm:$0xff] %vm70_vm0, %v236_v2  ;;  %v308_v1 = vld [vmem:[#allocation3 + $0x2a8] sm:$0xff]  ;;  %v309_v2 = vld [vmem:[#allocation3 + $0x2b0] sm:$0xff] }
  0x73   :  { %493 = vst.msk [vmem:[#allocation2 + $0xb1] sm:$0xff] %vm70_vm0, %v237_v3  ;;  %494 = vst.msk [vmem:[#allocation2 + $0xb9] sm:$0xff] %vm70_vm0, %v238_v6  ;;  %v310_v3 = vld [vmem:[#allocation3 + $0x2b8] sm:$0xff]  ;;  %v315_v6 = vld [vmem:[#allocation3 + $0x2e0] sm:$0xff] }
  0x74   :  { %483 = vst.msk [vmem:[#allocation2 + $0x51] sm:$0xff] %vm70_vm0, %v227_v8  ;;  %484 = vst.msk [vmem:[#allocation2 + $0x59] sm:$0xff] %vm70_vm0, %v228_v9  ;;  %v317_v9 = vld [vmem:[#allocation3 + $0x2f0] sm:$0xff] }
  0x75   :  { %485 = vst.msk [vmem:[#allocation2 + $0x61] sm:$0xff] %vm70_vm0, %v229_v10  ;;  %486 = vst.msk [vmem:[#allocation2 + $0x69] sm:$0xff] %vm70_vm0, %v230_v11  ;;  %v318_v10 = vld [vmem:[#allocation3 + $0x2f8] sm:$0xff] }
  0x76   :  { %499 = vst.msk [vmem:[#allocation2 + $0xf1] sm:$0xff] %vm70_vm0, %v243_v12  ;;  %500 = vst.msk [vmem:[#allocation2 + $0xf9] sm:$0xff] %vm70_vm0, %v244_v13  ;;  %v323_v13 = vld [vmem:[#allocation3 + $0x320] sm:$0xff] }
  0x77   :  { %501 = vst.msk [vmem:[#allocation2 + $0x101] sm:$0xff] %vm70_vm0, %v245_v14  ;;  %502 = vst.msk [vmem:[#allocation2 + $0x109] sm:$0xff] %vm70_vm0, %v246_v15  ;;  %v324_v14 = vld [vmem:[#allocation3 + $0x328] sm:$0xff]  ;;  %v325_v15 = vld [vmem:[#allocation3 + $0x330] sm:$0xff] }
  0x78   :  { %507 = vst.msk [vmem:[#allocation2 + $0x141] sm:$0xff] %vm70_vm0, %v251_v16  ;;  %508 = vst.msk [vmem:[#allocation2 + $0x149] sm:$0xff] %vm70_vm0, %v252_v17  ;;  %v326_v16 = vld [vmem:[#allocation3 + $0x338] sm:$0xff]  ;;  %v331_v17 = vld [vmem:[#allocation3 + $0x360] sm:$0xff] }
  0x79   :  { %509 = vst.msk [vmem:[#allocation2 + $0x151] sm:$0xff] %vm70_vm0, %v253_v18  ;;  %510 = vst.msk [vmem:[#allocation2 + $0x159] sm:$0xff] %vm70_vm0, %v254_v19  ;;  %v871_v26 = vld [vmem:[#allocation2 + $0xa1] ss:$2 sm:$0xff] }
  0x7a   :  { %515 = vst.msk [vmem:[#allocation2 + $0x191] sm:$0xff] %vm70_vm0, %v259_v20  ;;  %516 = vst.msk [vmem:[#allocation2 + $0x199] sm:$0xff] %vm70_vm0, %v260_v21  ;;  %v873_v29 = vld [vmem:[#allocation2 + $0xb1] ss:$2 sm:$0xff]  ;;  %v332_v19 = vld [vmem:[#allocation3 + $0x368] sm:$0xff] }
  0x7b   :  { %517 = vst.msk [vmem:[#allocation2 + $0x1a1] sm:$0xff] %vm70_vm0, %v261_v22  ;;  %518 = vst.msk [vmem:[#allocation2 + $0x1a9] sm:$0xff] %vm70_vm0, %v262_v23  ;;  %v6839_v32 = vpack.i.bf16 %v873_v29, %v871_v26  ;;  %v867_v33 = vld [vmem:[#allocation2 + $0x51] ss:$2 sm:$0xff]  ;;  %v340_v26 = vld [vmem:[#allocation3 + $0x3a8] sm:$0xff] }
  0x7c   :  { %523 = vst.msk [vmem:[#allocation2 + $0x1e1] sm:$0xff] %vm70_vm0, %v267_v24  ;;  %524 = vst.msk [vmem:[#allocation2 + $0x1e9] sm:$0xff] %vm70_vm0, %v268_v25  ;;  %v869_v36 = vld [vmem:[#allocation2 + $0x61] ss:$2 sm:$0xff]  ;;  %v333_v20 = vld [vmem:[#allocation3 + $0x370] sm:$0xff] }
  0x7d   :  { %525 = vst.msk [vmem:[#allocation2 + $0x1f1] sm:$0xff] %vm70_vm0, %v269_v27  ;;  %526 = vst.msk [vmem:[#allocation2 + $0x1f9] sm:$0xff] %vm70_vm0, %v270_v28  ;;  %v875_v37 = vld [vmem:[#allocation2 + $0xf1] ss:$2 sm:$0xff]  ;;  %6840 = vrot.lane.b32.xlu1 %v6839_v32, %s8240_s3  ;;  %v6834_v39 = vpack.i.bf16 %v869_v36, %v867_v33  ;;  %v339_v24 = vld [vmem:[#allocation3 + $0x3a0] sm:$0xff] }
  0x7e   :  { %531 = vst.msk [vmem:[#allocation2 + $0x231] sm:$0xff] %vm70_vm0, %v275_v30  ;;  %532 = vst.msk [vmem:[#allocation2 + $0x239] sm:$0xff] %vm70_vm0, %v276_v31  ;;  %v877_v40 = vld [vmem:[#allocation2 + $0x101] ss:$2 sm:$0xff]  ;;  %v334_v23 = vld [vmem:[#allocation3 + $0x378] sm:$0xff] }
  0x7f   :  { %533 = vst.msk [vmem:[#allocation2 + $0x241] sm:$0xff] %vm70_vm0, %v277_v34  ;;  %534 = vst.msk [vmem:[#allocation2 + $0x249] sm:$0xff] %vm70_vm0, %v278_v35  ;;  %v6844_v43 = vpack.i.bf16 %v877_v40, %v875_v37  ;;  %v879_v44 = vld [vmem:[#allocation2 + $0x141] ss:$2 sm:$0xff]  ;;  %6835 = vrot.lane.b32.xlu0 %v6834_v39, %s8240_s3  ;;  %v341_v27 = vld [vmem:[#allocation3 + $0x3b0] sm:$0xff] }
  0x80   :  { %539 = vst.msk [vmem:[#allocation2 + $0x281] sm:$0xff] %vm70_vm0, %v283_v38  ;;  %v881_v45 = vld [vmem:[#allocation2 + $0x151] ss:$2 sm:$0xff]  ;;  %540 = vst.msk [vmem:[#allocation2 + $0x289] sm:$0xff] %vm70_vm0, %v284_v41  ;;  %v355_v35 = vld [vmem:[#allocation3 + $0x420] sm:$0xff] }
  0x81   :  { %541 = vst.msk [vmem:[#allocation2 + $0x291] sm:$0xff] %vm70_vm0, %v285_v42  ;;  %v6849_v47 = vpack.i.bf16 %v881_v45, %v879_v44  ;;  %v883_v48 = vld [vmem:[#allocation2 + $0x191] ss:$2 sm:$0xff]  ;;  %542 = vst.msk [vmem:[#allocation2 + $0x299] sm:$0xff] %vm70_vm0, %v286_v46  ;;  %6845 = vrot.lane.b32.xlu1 %v6844_v43, %s8240_s3  ;;  %v356_v36 = vld [vmem:[#allocation3 + $0x428] sm:$0xff] }
  0x82   :  { %v885_v51 = vld [vmem:[#allocation2 + $0x1a1] ss:$2 sm:$0xff]  ;;  %547 = vst.msk [vmem:[#allocation2 + $0x2d1] sm:$0xff] %vm70_vm0, %v291_v49  ;;  %548 = vst.msk [vmem:[#allocation2 + $0x2d9] sm:$0xff] %vm70_vm0, %v292_v50  ;;  %v342_v31 = vld [vmem:[#allocation3 + $0x3b8] sm:$0xff] }
  0x83   :  { %v887_v52 = vld [vmem:[#allocation2 + $0x1e1] ss:$2 sm:$0xff]  ;;  %v6854_v54 = vpack.i.bf16 %v885_v51, %v883_v48  ;;  %549 = vst.msk [vmem:[#allocation2 + $0x2e1] sm:$0xff] %vm70_vm0, %v293_v53  ;;  %550 = vst.msk [vmem:[#allocation2 + $0x2e9] sm:$0xff] %vm70_vm0, %v294_v56  ;;  %6850 = vrot.lane.b32.xlu0 %v6849_v47, %s8240_s3  ;;  %v357_v39 = vld [vmem:[#allocation3 + $0x430] sm:$0xff] }
  0x84   :  { %v889_v55 = vld [vmem:[#allocation2 + $0x1f1] ss:$2 sm:$0xff]  ;;  %555 = vst.msk [vmem:[#allocation2 + $0x321] sm:$0xff] %vm70_vm0, %v299_v57  ;;  %556 = vst.msk [vmem:[#allocation2 + $0x329] sm:$0xff] %vm70_vm0, %v300_v59  ;;  %v363_v42 = vld [vmem:[#allocation3 + $0x460] sm:$0xff] }
  0x85   :  { %v891_v58 = vld [vmem:[#allocation2 + $0x231] ss:$2 sm:$0xff]  ;;  %v6859_v61 = vpack.i.bf16 %v889_v55, %v887_v52  ;;  %557 = vst.msk [vmem:[#allocation2 + $0x331] sm:$0xff] %vm70_vm0, %v301_v60  ;;  %558 = vst.msk [vmem:[#allocation2 + $0x339] sm:$0xff] %vm70_vm0, %v302_v63  ;;  %6855 = vrot.lane.b32.xlu1 %v6854_v54, %s8240_s3  ;;  %v364_v43 = vld [vmem:[#allocation3 + $0x468] sm:$0xff] }
  0x86   :  { %v893_v62 = vld [vmem:[#allocation2 + $0x241] ss:$2 sm:$0xff]  ;;  %563 = vst.msk [vmem:[#allocation2 + $0x371] sm:$0xff] %vm70_vm0, %v307_v0  ;;  %564 = vst.msk [vmem:[#allocation2 + $0x379] sm:$0xff] %vm70_vm0, %v308_v1  ;;  %v358_v40 = vld [vmem:[#allocation3 + $0x438] sm:$0xff] }
  0x87   :  { %v6864_v4 = vpack.i.bf16 %v893_v62, %v891_v58  ;;  %v895_v5 = vld [vmem:[#allocation2 + $0x281] ss:$2 sm:$0xff]  ;;  %565 = vst.msk [vmem:[#allocation2 + $0x381] sm:$0xff] %vm70_vm0, %v309_v2  ;;  %566 = vst.msk [vmem:[#allocation2 + $0x389] sm:$0xff] %vm70_vm0, %v310_v3  ;;  %6860 = vrot.lane.b32.xlu0 %v6859_v61, %s8240_s3  ;;  %v365_v46 = vld [vmem:[#allocation3 + $0x470] sm:$0xff] }
  0x88   :  { %v897_v8 = vld [vmem:[#allocation2 + $0x291] ss:$2 sm:$0xff]  ;;  %571 = vst.msk [vmem:[#allocation2 + $0x3c1] sm:$0xff] %vm70_vm0, %v315_v6  ;;  %572 = vst.msk [vmem:[#allocation2 + $0x3c9] sm:$0xff] %vm70_vm0, %v316_v7  ;;  %v929_v50 = vld [vmem:[#allocation2 + $0x561] ss:$2 sm:$0xff] }
  0x89   :  { %v6869_v11 = vpack.i.bf16 %v897_v8, %v895_v5  ;;  %v899_v12 = vld [vmem:[#allocation2 + $0x2d1] ss:$2 sm:$0xff]  ;;  %573 = vst.msk [vmem:[#allocation2 + $0x3d1] sm:$0xff] %vm70_vm0, %v317_v9  ;;  %574 = vst.msk [vmem:[#allocation2 + $0x3d9] sm:$0xff] %vm70_vm0, %v318_v10  ;;  %6865 = vrot.lane.b32.xlu1 %v6864_v4, %s8240_s3  ;;  %v371_v51 = vld [vmem:[#allocation3 + $0x4a0] sm:$0xff] }
  0x8a   :  { %579 = vst.msk [vmem:[#allocation2 + $0x411] sm:$0xff] %vm70_vm0, %v323_v13  ;;  %580 = vst.msk [vmem:[#allocation2 + $0x419] sm:$0xff] %vm70_vm0, %v324_v14  ;;  %v901_v18 = vld [vmem:[#allocation2 + $0x2e1] ss:$2 sm:$0xff]  ;;  %v366_v47 = vld [vmem:[#allocation3 + $0x478] sm:$0xff] }
  0x8b   :  { %581 = vst.msk [vmem:[#allocation2 + $0x421] sm:$0xff] %vm70_vm0, %v325_v15  ;;  %582 = vst.msk [vmem:[#allocation2 + $0x429] sm:$0xff] %vm70_vm0, %v326_v16  ;;  %v6874_v21 = vpack.i.bf16 %v901_v18, %v899_v12  ;;  %v903_v22 = vld [vmem:[#allocation2 + $0x321] ss:$2 sm:$0xff]  ;;  %6870 = vrot.lane.b32.xlu0 %v6869_v11, %s8240_s3  ;;  %v927_v49 = vld [vmem:[#allocation2 + $0x551] ss:$2 sm:$0xff] }
  0x8c   :  { %587 = vst.msk [vmem:[#allocation2 + $0x461] sm:$0xff] %vm70_vm0, %v331_v17  ;;  %588 = vst.msk [vmem:[#allocation2 + $0x469] sm:$0xff] %vm70_vm0, %v332_v19  ;;  %v905_v25 = vld [vmem:[#allocation2 + $0x331] ss:$2 sm:$0xff]  ;;  %v372_v52 = vld [vmem:[#allocation3 + $0x4a8] sm:$0xff]  ;;  %v6909_v3 = vpack.i.bf16 %v929_v50, %v927_v49 }
  0x8d   :  { %589 = vst.msk [vmem:[#allocation2 + $0x471] sm:$0xff] %vm70_vm0, %v333_v20  ;;  %590 = vst.msk [vmem:[#allocation2 + $0x479] sm:$0xff] %vm70_vm0, %v334_v23  ;;  %v6879_v28 = vpack.i.bf16 %v905_v25, %v903_v22  ;;  %v907_v29 = vld [vmem:[#allocation2 + $0x371] ss:$2 sm:$0xff]  ;;  %6875 = vrot.lane.b32.xlu1 %v6874_v21, %s8240_s3  ;;  %v379_v58 = vld [vmem:[#allocation3 + $0x4e0] sm:$0xff] }
  0x8e   :  { %595 = vst.msk [vmem:[#allocation2 + $0x4b1] sm:$0xff] %vm70_vm0, %v339_v24  ;;  %v909_v30 = vld [vmem:[#allocation2 + $0x381] ss:$2 sm:$0xff]  ;;  %596 = vst.msk [vmem:[#allocation2 + $0x4b9] sm:$0xff] %vm70_vm0, %v340_v26  ;;  %v373_v55 = vld [vmem:[#allocation3 + $0x4b0] sm:$0xff] }
  0x8f   :  { %597 = vst.msk [vmem:[#allocation2 + $0x4c1] sm:$0xff] %vm70_vm0, %v341_v27  ;;  %v6884_v32 = vpack.i.bf16 %v909_v30, %v907_v29  ;;  %v911_v33 = vld [vmem:[#allocation2 + $0x3c1] ss:$2 sm:$0xff]  ;;  %598 = vst.msk [vmem:[#allocation2 + $0x4c9] sm:$0xff] %vm70_vm0, %v342_v31  ;;  %6880 = vrot.lane.b32.xlu0 %v6879_v28, %s8240_s3  ;;  %v374_v56 = vld [vmem:[#allocation3 + $0x4b8] sm:$0xff] }
  0x90   :  { %v913_v34 = vld [vmem:[#allocation2 + $0x3d1] ss:$2 sm:$0xff]  ;;  %611 = vst.msk [vmem:[#allocation2 + $0x5a1] sm:$0xff] %vm70_vm0, %v355_v35  ;;  %612 = vst.msk [vmem:[#allocation2 + $0x5a9] sm:$0xff] %vm70_vm0, %v356_v36  ;;  %v380_v59 = vld [vmem:[#allocation3 + $0x4e8] sm:$0xff] }
  0x91   :  { %v6889_v37 = vpack.i.bf16 %v913_v34, %v911_v33  ;;  %v915_v38 = vld [vmem:[#allocation2 + $0x411] ss:$2 sm:$0xff]  ;;  %613 = vst.msk [vmem:[#allocation2 + $0x5b1] sm:$0xff] %vm70_vm0, %v357_v39  ;;  %614 = vst.msk [vmem:[#allocation2 + $0x5b9] sm:$0xff] %vm70_vm0, %v358_v40  ;;  %6885 = vrot.lane.b32.xlu1 %v6884_v32, %s8240_s3  ;;  %v387_v63 = vld [vmem:[#allocation3 + $0x520] sm:$0xff] }
  0x92   :  { %v917_v41 = vld [vmem:[#allocation2 + $0x421] ss:$2 sm:$0xff]  ;;  %619 = vst.msk [vmem:[#allocation2 + $0x5f1] sm:$0xff] %vm70_vm0, %v363_v42  ;;  %620 = vst.msk [vmem:[#allocation2 + $0x5f9] sm:$0xff] %vm70_vm0, %v364_v43  ;;  %v381_v61 = vld [vmem:[#allocation3 + $0x4f0] sm:$0xff] }
  0x93   :  { %v6894_v44 = vpack.i.bf16 %v917_v41, %v915_v38  ;;  %v919_v45 = vld [vmem:[#allocation2 + $0x461] ss:$2 sm:$0xff]  ;;  %621 = vst.msk [vmem:[#allocation2 + $0x601] sm:$0xff] %vm70_vm0, %v365_v46  ;;  %622 = vst.msk [vmem:[#allocation2 + $0x609] sm:$0xff] %vm70_vm0, %v366_v47  ;;  %6890 = vrot.lane.b32.xlu0 %v6889_v37, %s8240_s3  ;;  %v382_v62 = vld [vmem:[#allocation3 + $0x4f8] sm:$0xff] }
  0x94   :  { %v921_v48 = vld [vmem:[#allocation2 + $0x471] ss:$2 sm:$0xff]  ;;  %627 = vst.msk [vmem:[#allocation2 + $0x641] sm:$0xff] %vm70_vm0, %v371_v51  ;;  %628 = vst.msk [vmem:[#allocation2 + $0x649] sm:$0xff] %vm70_vm0, %v372_v52  ;;  %v388_v1 = vld [vmem:[#allocation3 + $0x528] sm:$0xff] }
  0x95   :  { %v6899_v53 = vpack.i.bf16 %v921_v48, %v919_v45  ;;  %v923_v54 = vld [vmem:[#allocation2 + $0x4b1] ss:$2 sm:$0xff]  ;;  %629 = vst.msk [vmem:[#allocation2 + $0x651] sm:$0xff] %vm70_vm0, %v373_v55  ;;  %630 = vst.msk [vmem:[#allocation2 + $0x659] sm:$0xff] %vm70_vm0, %v374_v56  ;;  %6895 = vrot.lane.b32.xlu1 %v6894_v44, %s8240_s3  ;;  %v395_v6 = vld [vmem:[#allocation3 + $0x560] sm:$0xff] }
  0x96   :  { %v925_v57 = vld [vmem:[#allocation2 + $0x4c1] ss:$2 sm:$0xff]  ;;  %635 = vst.msk [vmem:[#allocation2 + $0x691] sm:$0xff] %vm70_vm0, %v379_v58  ;;  %636 = vst.msk [vmem:[#allocation2 + $0x699] sm:$0xff] %vm70_vm0, %v380_v59  ;;  %v389_v2 = vld [vmem:[#allocation3 + $0x530] sm:$0xff] }
  0x97   :  { %v6904_v60 = vpack.i.bf16 %v925_v57, %v923_v54  ;;  %v931_v0 = vld [vmem:[#allocation2 + $0x5a1] ss:$2 sm:$0xff]  ;;  %637 = vst.msk [vmem:[#allocation2 + $0x6a1] sm:$0xff] %vm70_vm0, %v381_v61  ;;  %638 = vst.msk [vmem:[#allocation2 + $0x6a9] sm:$0xff] %vm70_vm0, %v382_v62  ;;  %6900 = vrot.lane.b32.xlu0 %v6899_v53, %s8240_s3  ;;  %v390_v5 = vld [vmem:[#allocation3 + $0x538] sm:$0xff] }
  0x98   :  { %643 = vst.msk [vmem:[#allocation2 + $0x6e1] sm:$0xff] %vm70_vm0, %v387_v63  ;;  %v933_v4 = vld [vmem:[#allocation2 + $0x5b1] ss:$2 sm:$0xff]  ;;  %644 = vst.msk [vmem:[#allocation2 + $0x6e9] sm:$0xff] %vm70_vm0, %v388_v1  ;;  %v396_v8 = vld [vmem:[#allocation3 + $0x568] sm:$0xff] }
  0x99   :  { %645 = vst.msk [vmem:[#allocation2 + $0x6f1] sm:$0xff] %vm70_vm0, %v389_v2  ;;  %v935_v7 = vld [vmem:[#allocation2 + $0x5f1] ss:$2 sm:$0xff]  ;;  %646 = vst.msk [vmem:[#allocation2 + $0x6f9] sm:$0xff] %vm70_vm0, %v390_v5  ;;  %6905 = vrot.lane.b32.xlu1 %v6904_v60, %s8240_s3  ;;  %v6914_v10 = vpack.i.bf16 %v933_v4, %v931_v0  ;;  %v403_v13 = vld [vmem:[#allocation3 + $0x5a0] sm:$0xff] }
  0x9a   :  { %v397_v9 = vld [vmem:[#allocation3 + $0x570] sm:$0xff]  ;;  %651 = vst.msk [vmem:[#allocation2 + $0x731] sm:$0xff] %vm70_vm0, %v395_v6  ;;  %v937_v11 = vld [vmem:[#allocation2 + $0x601] ss:$2 sm:$0xff]  ;;  %v398_v12 = vld [vmem:[#allocation3 + $0x578] sm:$0xff] }
  0x9b   :  { %652 = vst.msk [vmem:[#allocation2 + $0x739] sm:$0xff] %vm70_vm0, %v396_v8  ;;  %653 = vst.msk [vmem:[#allocation2 + $0x741] sm:$0xff] %vm70_vm0, %v397_v9  ;;  %v939_v14 = vld [vmem:[#allocation2 + $0x641] ss:$2 sm:$0xff]  ;;  %v405_v16 = vld [vmem:[#allocation3 + $0x5b0] sm:$0xff]  ;;  %6910 = vrot.lane.b32.xlu0 %v6909_v3, %s8240_s3  ;;  %v6919_v17 = vpack.i.bf16 %v937_v11, %v935_v7 }
  0x9c   :  { %654 = vst.msk [vmem:[#allocation2 + $0x749] sm:$0xff] %vm70_vm0, %v398_v12  ;;  %v404_v15 = vld [vmem:[#allocation3 + $0x5a8] sm:$0xff]  ;;  %659 = vst.msk [vmem:[#allocation2 + $0x781] sm:$0xff] %vm70_vm0, %v403_v13  ;;  %v941_v18 = vld [vmem:[#allocation2 + $0x651] ss:$2 sm:$0xff] }
  0x9d   :  { %v406_v19 = vld [vmem:[#allocation3 + $0x5b8] sm:$0xff]  ;;  %660 = vst.msk [vmem:[#allocation2 + $0x789] sm:$0xff] %vm70_vm0, %v404_v15  ;;  %661 = vst.msk [vmem:[#allocation2 + $0x791] sm:$0xff] %vm70_vm0, %v405_v16  ;;  %v411_v20 = vld [vmem:[#allocation3 + $0x5e0] sm:$0xff]  ;;  %6915 = vrot.lane.b32.xlu1 %v6914_v10, %s8240_s3  ;;  %v6924_v24 = vpack.i.bf16 %v941_v18, %v939_v14 }
  0x9e   :  { %v943_v21 = vld [vmem:[#allocation2 + $0x691] ss:$2 sm:$0xff]  ;;  %662 = vst.msk [vmem:[#allocation2 + $0x799] sm:$0xff] %vm70_vm0, %v406_v19  ;;  %v412_v22 = vld [vmem:[#allocation3 + $0x5e8] sm:$0xff]  ;;  %667 = vst.msk [vmem:[#allocation2 + $0x7d1] sm:$0xff] %vm70_vm0, %v411_v20 }
  0x9f   :  { %v413_v23 = vld [vmem:[#allocation3 + $0x5f0] sm:$0xff]  ;;  %v945_v25 = vld [vmem:[#allocation2 + $0x6a1] ss:$2 sm:$0xff]  ;;  %v414_v26 = vld [vmem:[#allocation3 + $0x5f8] sm:$0xff]  ;;  %668 = vst.msk [vmem:[#allocation2 + $0x7d9] sm:$0xff] %vm70_vm0, %v412_v22  ;;  %6920 = vrot.lane.b32.xlu0 %v6919_v17, %s8240_s3 }
  0xa0   :  { %669 = vst.msk [vmem:[#allocation2 + $0x7e1] sm:$0xff] %vm70_vm0, %v413_v23  ;;  %v419_v27 = vld [vmem:[#allocation3 + $0x620] sm:$0xff]  ;;  %670 = vst.msk [vmem:[#allocation2 + $0x7e9] sm:$0xff] %vm70_vm0, %v414_v26  ;;  %v420_v29 = vld [vmem:[#allocation3 + $0x628] sm:$0xff]  ;;  %v6929_v31 = vpack.i.bf16 %v945_v25, %v943_v21 }
  0xa1   :  { %v947_v28 = vld [vmem:[#allocation2 + $0x6e1] ss:$2 sm:$0xff]  ;;  %v421_v30 = vld [vmem:[#allocation3 + $0x630] sm:$0xff]  ;;  %675 = vst.msk [vmem:[#allocation2 + $0x821] sm:$0xff] %vm70_vm0, %v419_v27  ;;  %v422_v33 = vld [vmem:[#allocation3 + $0x638] sm:$0xff]  ;;  %6925 = vrot.lane.b32.xlu1 %v6924_v24, %s8240_s3 }
  0xa2   :  { %v949_v32 = vld [vmem:[#allocation2 + $0x6f1] ss:$2 sm:$0xff]  ;;  %676 = vst.msk [vmem:[#allocation2 + $0x829] sm:$0xff] %vm70_vm0, %v420_v29  ;;  %677 = vst.msk [vmem:[#allocation2 + $0x831] sm:$0xff] %vm70_vm0, %v421_v30  ;;  %v427_v34 = vld [vmem:[#allocation3 + $0x660] sm:$0xff] }
  0xa3   :  { %v951_v35 = vld [vmem:[#allocation2 + $0x731] ss:$2 sm:$0xff]  ;;  %678 = vst.msk [vmem:[#allocation2 + $0x839] sm:$0xff] %vm70_vm0, %v422_v33  ;;  %v428_v36 = vld [vmem:[#allocation3 + $0x668] sm:$0xff]  ;;  %683 = vst.msk [vmem:[#allocation2 + $0x871] sm:$0xff] %vm70_vm0, %v427_v34  ;;  %v6934_v38 = vpack.i.bf16 %v949_v32, %v947_v28  ;;  %6930 = vrot.lane.b32.xlu0 %v6929_v31, %s8240_s3 }
  0xa4   :  { %v429_v37 = vld [vmem:[#allocation3 + $0x670] sm:$0xff]  ;;  %v953_v39 = vld [vmem:[#allocation2 + $0x741] ss:$2 sm:$0xff]  ;;  %v430_v40 = vld [vmem:[#allocation3 + $0x678] sm:$0xff]  ;;  %684 = vst.msk [vmem:[#allocation2 + $0x879] sm:$0xff] %vm70_vm0, %v428_v36 }
  0xa5   :  { %685 = vst.msk [vmem:[#allocation2 + $0x881] sm:$0xff] %vm70_vm0, %v429_v37  ;;  %v435_v41 = vld [vmem:[#allocation3 + $0x6a0] sm:$0xff]  ;;  %686 = vst.msk [vmem:[#allocation2 + $0x889] sm:$0xff] %vm70_vm0, %v430_v40  ;;  %v436_v43 = vld [vmem:[#allocation3 + $0x6a8] sm:$0xff]  ;;  %v6939_v45 = vpack.i.bf16 %v953_v39, %v951_v35  ;;  %6935 = vrot.lane.b32.xlu1 %v6934_v38, %s8240_s3 }
  0xa6   :  { %v955_v42 = vld [vmem:[#allocation2 + $0x781] ss:$2 sm:$0xff]  ;;  %v437_v44 = vld [vmem:[#allocation3 + $0x6b0] sm:$0xff]  ;;  %691 = vst.msk [vmem:[#allocation2 + $0x8c1] sm:$0xff] %vm70_vm0, %v435_v41  ;;  %v438_v47 = vld [vmem:[#allocation3 + $0x6b8] sm:$0xff] }
  0xa7   :  { %v957_v46 = vld [vmem:[#allocation2 + $0x791] ss:$2 sm:$0xff]  ;;  %692 = vst.msk [vmem:[#allocation2 + $0x8c9] sm:$0xff] %vm70_vm0, %v436_v43  ;;  %693 = vst.msk [vmem:[#allocation2 + $0x8d1] sm:$0xff] %vm70_vm0, %v437_v44  ;;  %v443_v48 = vld [vmem:[#allocation3 + $0x6e0] sm:$0xff]  ;;  %6940 = vrot.lane.b32.xlu0 %v6939_v45, %s8240_s3 }
  0xa8   :  { %v959_v49 = vld [vmem:[#allocation2 + $0x7d1] ss:$2 sm:$0xff]  ;;  %694 = vst.msk [vmem:[#allocation2 + $0x8d9] sm:$0xff] %vm70_vm0, %v438_v47  ;;  %v444_v50 = vld [vmem:[#allocation3 + $0x6e8] sm:$0xff]  ;;  %699 = vst.msk [vmem:[#allocation2 + $0x911] sm:$0xff] %vm70_vm0, %v443_v48  ;;  %v6944_v52 = vpack.i.bf16 %v957_v46, %v955_v42 }
  0xa9   :  { %v445_v51 = vld [vmem:[#allocation3 + $0x6f0] sm:$0xff]  ;;  %v961_v53 = vld [vmem:[#allocation2 + $0x7e1] ss:$2 sm:$0xff]  ;;  %v446_v54 = vld [vmem:[#allocation3 + $0x6f8] sm:$0xff]  ;;  %700 = vst.msk [vmem:[#allocation2 + $0x919] sm:$0xff] %vm70_vm0, %v444_v50 }
  0xaa   :  { %701 = vst.msk [vmem:[#allocation2 + $0x921] sm:$0xff] %vm70_vm0, %v445_v51  ;;  %v451_v55 = vld [vmem:[#allocation3 + $0x720] sm:$0xff]  ;;  %702 = vst.msk [vmem:[#allocation2 + $0x929] sm:$0xff] %vm70_vm0, %v446_v54  ;;  %v452_v57 = vld [vmem:[#allocation3 + $0x728] sm:$0xff]  ;;  %v6949_v59 = vpack.i.bf16 %v961_v53, %v959_v49  ;;  %6945 = vrot.lane.b32.xlu1 %v6944_v52, %s8240_s3 }
  0xab   :  { %v963_v56 = vld [vmem:[#allocation2 + $0x821] ss:$2 sm:$0xff]  ;;  %v453_v58 = vld [vmem:[#allocation3 + $0x730] sm:$0xff]  ;;  %707 = vst.msk [vmem:[#allocation2 + $0x961] sm:$0xff] %vm70_vm0, %v451_v55  ;;  %v454_v61 = vld [vmem:[#allocation3 + $0x738] sm:$0xff] }
  0xac   :  { %v965_v60 = vld [vmem:[#allocation2 + $0x831] ss:$2 sm:$0xff]  ;;  %708 = vst.msk [vmem:[#allocation2 + $0x969] sm:$0xff] %vm70_vm0, %v452_v57  ;;  %709 = vst.msk [vmem:[#allocation2 + $0x971] sm:$0xff] %vm70_vm0, %v453_v58  ;;  %v459_v62 = vld [vmem:[#allocation3 + $0x760] sm:$0xff]  ;;  %6950 = vrot.lane.b32.xlu0 %v6949_v59, %s8240_s3 }
  0xad   :  { %v967_v63 = vld [vmem:[#allocation2 + $0x871] ss:$2 sm:$0xff]  ;;  %710 = vst.msk [vmem:[#allocation2 + $0x979] sm:$0xff] %vm70_vm0, %v454_v61  ;;  %v460_v0 = vld [vmem:[#allocation3 + $0x768] sm:$0xff]  ;;  %715 = vst.msk [vmem:[#allocation2 + $0x9b1] sm:$0xff] %vm70_vm0, %v459_v62  ;;  %v6954_v2 = vpack.i.bf16 %v965_v60, %v963_v56 }
  0xae   :  { %v461_v1 = vld [vmem:[#allocation3 + $0x770] sm:$0xff]  ;;  %v969_v3 = vld [vmem:[#allocation2 + $0x881] ss:$2 sm:$0xff]  ;;  %v462_v4 = vld [vmem:[#allocation3 + $0x778] sm:$0xff]  ;;  %716 = vst.msk [vmem:[#allocation2 + $0x9b9] sm:$0xff] %vm70_vm0, %v460_v0 }
  0xaf   :  { %717 = vst.msk [vmem:[#allocation2 + $0x9c1] sm:$0xff] %vm70_vm0, %v461_v1  ;;  %v467_v5 = vld [vmem:[#allocation3 + $0x7a0] sm:$0xff]  ;;  %718 = vst.msk [vmem:[#allocation2 + $0x9c9] sm:$0xff] %vm70_vm0, %v462_v4  ;;  %v468_v7 = vld [vmem:[#allocation3 + $0x7a8] sm:$0xff]  ;;  %v6959_v9 = vpack.i.bf16 %v969_v3, %v967_v63  ;;  %6955 = vrot.lane.b32.xlu1 %v6954_v2, %s8240_s3 }
  0xb0   :  { %v971_v6 = vld [vmem:[#allocation2 + $0x8c1] ss:$2 sm:$0xff]  ;;  %v469_v8 = vld [vmem:[#allocation3 + $0x7b0] sm:$0xff]  ;;  %723 = vst.msk [vmem:[#allocation2 + $0xa01] sm:$0xff] %vm70_vm0, %v467_v5  ;;  %v470_v11 = vld [vmem:[#allocation3 + $0x7b8] sm:$0xff] }
  0xb1   :  { %v973_v10 = vld [vmem:[#allocation2 + $0x8d1] ss:$2 sm:$0xff]  ;;  %724 = vst.msk [vmem:[#allocation2 + $0xa09] sm:$0xff] %vm70_vm0, %v468_v7  ;;  %725 = vst.msk [vmem:[#allocation2 + $0xa11] sm:$0xff] %vm70_vm0, %v469_v8  ;;  %v977_v14 = vld [vmem:[#allocation2 + $0x921] ss:$2 sm:$0xff]  ;;  %6960 = vrot.lane.b32.xlu0 %v6959_v9, %s8240_s3 }
  0xb2   :  { %v975_v12 = vld [vmem:[#allocation2 + $0x911] ss:$2 sm:$0xff]  ;;  %726 = vst.msk [vmem:[#allocation2 + $0xa19] sm:$0xff] %vm70_vm0, %v470_v11  ;;  %v6964_v13 = vpack.i.bf16 %v973_v10, %v971_v6  ;;  %v991_v24 = vld [vmem:[#allocation2 + $0x2] ss:$2 sm:$0xff] }
  0xb3   :  { %v979_v15 = vld [vmem:[#allocation2 + $0x961] ss:$2 sm:$0xff]  ;;  %v6969_v16 = vpack.i.bf16 %v977_v14, %v975_v12  ;;  %v993_v25 = vld [vmem:[#allocation2 + $0x12] ss:$2 sm:$0xff]  ;;  %v997_v28 = vld [vmem:[#allocation2 + $0x62] ss:$2 sm:$0xff] }
  0xb4   :  { %v981_v17 = vld [vmem:[#allocation2 + $0x971] ss:$2 sm:$0xff]  ;;  %6965 = vrot.lane.b32.xlu1 %v6964_v13, %s8240_s3  ;;  %v995_v27 = vld [vmem:[#allocation2 + $0x52] ss:$2 sm:$0xff]  ;;  %v6989_v29 = vpack.i.bf16 %v993_v25, %v991_v24  ;;  %v999_v30 = vld [vmem:[#allocation2 + $0xa2] ss:$2 sm:$0xff] }
  0xb5   :  { %v983_v18 = vld [vmem:[#allocation2 + $0x9b1] ss:$2 sm:$0xff]  ;;  %v6974_v19 = vpack.i.bf16 %v981_v17, %v979_v15  ;;  %6970 = vrot.lane.b32.xlu0 %v6969_v16, %s8240_s3  ;;  %v1001_v31 = vld [vmem:[#allocation2 + $0xb2] ss:$2 sm:$0xff]  ;;  %v6994_v32 = vpack.i.bf16 %v997_v28, %v995_v27  ;;  %v1005_v34 = vld [vmem:[#allocation2 + $0x102] ss:$2 sm:$0xff] }
  0xb6   :  { %v985_v20 = vld [vmem:[#allocation2 + $0x9c1] ss:$2 sm:$0xff]  ;;  %v1003_v33 = vld [vmem:[#allocation2 + $0xf2] ss:$2 sm:$0xff]  ;;  %v6999_v35 = vpack.i.bf16 %v1001_v31, %v999_v30  ;;  %v1007_v36 = vld [vmem:[#allocation2 + $0x142] ss:$2 sm:$0xff] }
  0xb7   :  { %v6979_v22 = vpack.i.bf16 %v985_v20, %v983_v18  ;;  %v1009_v37 = vld [vmem:[#allocation2 + $0x152] ss:$2 sm:$0xff]  ;;  %v7004_v38 = vpack.i.bf16 %v1005_v34, %v1003_v33  ;;  %v1013_v40 = vld [vmem:[#allocation2 + $0x1a2] ss:$2 sm:$0xff] }
  0xb8   :  { %v987_v21 = vld [vmem:[#allocation2 + $0xa01] ss:$2 sm:$0xff]  ;;  %6975 = vrot.lane.b32.xlu1 %v6974_v19, %s8240_s3  ;;  %v1011_v39 = vld [vmem:[#allocation2 + $0x192] ss:$2 sm:$0xff]  ;;  %v7009_v41 = vpack.i.bf16 %v1009_v37, %v1007_v36  ;;  %v1015_v42 = vld [vmem:[#allocation2 + $0x1e2] ss:$2 sm:$0xff] }
  0xb9   :  { %v989_v23 = vld [vmem:[#allocation2 + $0xa11] ss:$2 sm:$0xff]  ;;  %6980 = vrot.lane.b32.xlu0 %v6979_v22, %s8240_s3  ;;  %v1017_v43 = vld [vmem:[#allocation2 + $0x1f2] ss:$2 sm:$0xff]  ;;  %v7014_v44 = vpack.i.bf16 %v1013_v40, %v1011_v39  ;;  %v1021_v46 = vld [vmem:[#allocation2 + $0x242] ss:$2 sm:$0xff] }
  0xba   :  { %v6984_v26 = vpack.i.bf16 %v989_v23, %v987_v21  ;;  %v1019_v45 = vld [vmem:[#allocation2 + $0x232] ss:$2 sm:$0xff]  ;;  %v7019_v47 = vpack.i.bf16 %v1017_v43, %v1015_v42  ;;  %v1023_v48 = vld [vmem:[#allocation2 + $0x282] ss:$2 sm:$0xff] }
  0xbb   :  { %v1025_v49 = vld [vmem:[#allocation2 + $0x292] ss:$2 sm:$0xff]  ;;  %v7024_v50 = vpack.i.bf16 %v1021_v46, %v1019_v45  ;;  %v1029_v52 = vld [vmem:[#allocation2 + $0x2e2] ss:$2 sm:$0xff] }
  0xbc   :  { %6985 = vrot.lane.b32.xlu1 %v6984_v26, %s8240_s3  ;;  %v1027_v51 = vld [vmem:[#allocation2 + $0x2d2] ss:$2 sm:$0xff]  ;;  %v7029_v53 = vpack.i.bf16 %v1025_v49, %v1023_v48  ;;  %v1031_v54 = vld [vmem:[#allocation2 + $0x322] ss:$2 sm:$0xff] }
  0xbd   :  { %6990 = vrot.lane.b32.xlu0 %v6989_v29, %s8241_s15  ;;  %v1033_v55 = vld [vmem:[#allocation2 + $0x332] ss:$2 sm:$0xff]  ;;  %v224_v57 = vld [vmem:[#allocation3 + $0x8] sm:$0xff]  ;;  %v7034_v58 = vpack.i.bf16 %v1029_v52, %v1027_v51 }
  0xbe   :  { %v223_v56 = vld [vmem:[#allocation3] sm:$0xff]  ;;  %v225_v60 = vld [vmem:[#allocation3 + $0x10] sm:$0xff]  ;;  %v226_v61 = vld [vmem:[#allocation3 + $0x18] sm:$0xff]  ;;  %480 = vst.msk [vmem:[#allocation2 + $0x31] sm:$0xff] %vm70_vm0, %v224_v57  ;;  %v7039_v1 = vpack.i.bf16 %v1033_v55, %v1031_v54 }
  0xbf   :  { %v1035_v59 = vld [vmem:[#allocation2 + $0x372] ss:$2 sm:$0xff]  ;;  %479 = vst.msk [vmem:[#allocation2 + $0x29] sm:$0xff] %vm70_vm0, %v223_v56  ;;  %v1037_v62 = vld [vmem:[#allocation2 + $0x382] ss:$2 sm:$0xff]  ;;  %481 = vst.msk [vmem:[#allocation2 + $0x39] sm:$0xff] %vm70_vm0, %v225_v60 }
  0xc0   :  { %6995 = vrot.lane.b32.xlu1 %v6994_v32, %s8241_s15  ;;  %v1039_v63 = vld [vmem:[#allocation2 + $0x3c2] ss:$2 sm:$0xff]  ;;  %v1041_v0 = vld [vmem:[#allocation2 + $0x3d2] ss:$2 sm:$0xff]  ;;  %482 = vst.msk [vmem:[#allocation2 + $0x41] sm:$0xff] %vm70_vm0, %v226_v61  ;;  %v7044_v8 = vpack.i.bf16 %v1037_v62, %v1035_v59 }
  0xc1   :  { %7000 = vrot.lane.b32.xlu0 %v6999_v35, %s8241_s15  ;;  %v231_v2 = vld [vmem:[#allocation3 + $0x40] sm:$0xff]  ;;  %v232_v3 = vld [vmem:[#allocation3 + $0x48] sm:$0xff]  ;;  %v233_v4 = vld [vmem:[#allocation3 + $0x50] sm:$0xff]  ;;  %v7049_v14 = vpack.i.bf16 %v1041_v0, %v1039_v63 }
  0xc2   :  { %v234_v5 = vld [vmem:[#allocation3 + $0x58] sm:$0xff]  ;;  %487 = vst.msk [vmem:[#allocation2 + $0x79] sm:$0xff] %vm70_vm0, %v231_v2  ;;  %488 = vst.msk [vmem:[#allocation2 + $0x81] sm:$0xff] %vm70_vm0, %v232_v3  ;;  %v239_v6 = vld [vmem:[#allocation3 + $0x80] sm:$0xff] }
  0xc3   :  { %489 = vst.msk [vmem:[#allocation2 + $0x89] sm:$0xff] %vm70_vm0, %v233_v4  ;;  %v240_v7 = vld [vmem:[#allocation3 + $0x88] sm:$0xff]  ;;  %490 = vst.msk [vmem:[#allocation2 + $0x91] sm:$0xff] %vm70_vm0, %v234_v5  ;;  %v241_v9 = vld [vmem:[#allocation3 + $0x90] sm:$0xff] }
  0xc4   :  { %7005 = vrot.lane.b32.xlu1 %v7004_v38, %s8241_s15  ;;  %v242_v10 = vld [vmem:[#allocation3 + $0x98] sm:$0xff]  ;;  %495 = vst.msk [vmem:[#allocation2 + $0xc9] sm:$0xff] %vm70_vm0, %v239_v6  ;;  %496 = vst.msk [vmem:[#allocation2 + $0xd1] sm:$0xff] %vm70_vm0, %v240_v7  ;;  %v1045_v12 = vld [vmem:[#allocation2 + $0x422] ss:$2 sm:$0xff] }
  0xc5   :  { %7010 = vrot.lane.b32.xlu0 %v7009_v41, %s8241_s15  ;;  %v1043_v11 = vld [vmem:[#allocation2 + $0x412] ss:$2 sm:$0xff]  ;;  %v1047_v13 = vld [vmem:[#allocation2 + $0x462] ss:$2 sm:$0xff]  ;;  %497 = vst.msk [vmem:[#allocation2 + $0xd9] sm:$0xff] %vm70_vm0, %v241_v9  ;;  %498 = vst.msk [vmem:[#allocation2 + $0xe1] sm:$0xff] %vm70_vm0, %v242_v10 }
  0xc6   :  { %v247_v15 = vld [vmem:[#allocation3 + $0xc0] sm:$0xff]  ;;  %v248_v16 = vld [vmem:[#allocation3 + $0xc8] sm:$0xff]  ;;  %v249_v17 = vld [vmem:[#allocation3 + $0xd0] sm:$0xff]  ;;  %v7054_v21 = vpack.i.bf16 %v1045_v12, %v1043_v11 }
  0xc7   :  { %v1049_v18 = vld [vmem:[#allocation2 + $0x472] ss:$2 sm:$0xff]  ;;  %503 = vst.msk [vmem:[#allocation2 + $0x119] sm:$0xff] %vm70_vm0, %v247_v15  ;;  %504 = vst.msk [vmem:[#allocation2 + $0x121] sm:$0xff] %vm70_vm0, %v248_v16  ;;  %v256_v22 = vld [vmem:[#allocation3 + $0x108] sm:$0xff] }
  0xc8   :  { %7015 = vrot.lane.b32.xlu1 %v7014_v44, %s8241_s15  ;;  %v250_v19 = vld [vmem:[#allocation3 + $0xd8] sm:$0xff]  ;;  %505 = vst.msk [vmem:[#allocation2 + $0x129] sm:$0xff] %vm70_vm0, %v249_v17  ;;  %v255_v20 = vld [vmem:[#allocation3 + $0x100] sm:$0xff]  ;;  %v257_v23 = vld [vmem:[#allocation3 + $0x110] sm:$0xff]  ;;  %v7059_v27 = vpack.i.bf16 %v1049_v18, %v1047_v13 }
  0xc9   :  { %7020 = vrot.lane.b32.xlu0 %v7019_v47, %s8241_s15  ;;  %506 = vst.msk [vmem:[#allocation2 + $0x131] sm:$0xff] %vm70_vm0, %v250_v19  ;;  %511 = vst.msk [vmem:[#allocation2 + $0x169] sm:$0xff] %vm70_vm0, %v255_v20  ;;  %v1051_v24 = vld [vmem:[#allocation2 + $0x4b2] ss:$2 sm:$0xff]  ;;  %v1053_v25 = vld [vmem:[#allocation2 + $0x4c2] ss:$2 sm:$0xff] }
  0xca   :  { %v258_v26 = vld [vmem:[#allocation3 + $0x118] sm:$0xff]  ;;  %512 = vst.msk [vmem:[#allocation2 + $0x171] sm:$0xff] %vm70_vm0, %v256_v22  ;;  %513 = vst.msk [vmem:[#allocation2 + $0x179] sm:$0xff] %vm70_vm0, %v257_v23  ;;  %v1057_v29 = vld [vmem:[#allocation2 + $0x562] ss:$2 sm:$0xff]  ;;  %v7064_v32 = vpack.i.bf16 %v1053_v25, %v1051_v24 }
  0xcb   :  { %v1055_v28 = vld [vmem:[#allocation2 + $0x552] ss:$2 sm:$0xff]  ;;  %514 = vst.msk [vmem:[#allocation2 + $0x181] sm:$0xff] %vm70_vm0, %v258_v26  ;;  %v1059_v30 = vld [vmem:[#allocation2 + $0x5a2] ss:$2 sm:$0xff] }
  0xcc   :  { %7025 = vrot.lane.b32.xlu1 %v7024_v50, %s8241_s15  ;;  %v263_v31 = vld [vmem:[#allocation3 + $0x140] sm:$0xff]  ;;  %v264_v34 = vld [vmem:[#allocation3 + $0x148] sm:$0xff]  ;;  %v265_v35 = vld [vmem:[#allocation3 + $0x150] sm:$0xff]  ;;  %v7069_v39 = vpack.i.bf16 %v1057_v29, %v1055_v28 }
  0xcd   :  { %7030 = vrot.lane.b32.xlu0 %v7029_v53, %s8241_s15  ;;  %v1061_v33 = vld [vmem:[#allocation2 + $0x5b2] ss:$2 sm:$0xff]  ;;  %519 = vst.msk [vmem:[#allocation2 + $0x1b9] sm:$0xff] %vm70_vm0, %v263_v31  ;;  %520 = vst.msk [vmem:[#allocation2 + $0x1c1] sm:$0xff] %vm70_vm0, %v264_v34  ;;  %v272_v38 = vld [vmem:[#allocation3 + $0x188] sm:$0xff] }
  0xce   :  { %v266_v36 = vld [vmem:[#allocation3 + $0x158] sm:$0xff]  ;;  %521 = vst.msk [vmem:[#allocation2 + $0x1c9] sm:$0xff] %vm70_vm0, %v265_v35  ;;  %v271_v37 = vld [vmem:[#allocation3 + $0x180] sm:$0xff]  ;;  %v273_v40 = vld [vmem:[#allocation3 + $0x190] sm:$0xff]  ;;  %v7074_v44 = vpack.i.bf16 %v1061_v33, %v1059_v30  ;;  %v8701_v35 = vpop.permute.xlu0 %6830 }
  0xcf   :  { %522 = vst.msk [vmem:[#allocation2 + $0x1d1] sm:$0xff] %vm70_vm0, %v266_v36  ;;  %v274_v41 = vld [vmem:[#allocation3 + $0x198] sm:$0xff]  ;;  %527 = vst.msk [vmem:[#allocation2 + $0x209] sm:$0xff] %vm70_vm0, %v271_v37  ;;  %v1065_v43 = vld [vmem:[#allocation2 + $0x602] ss:$2 sm:$0xff] }
  0xd0   :  { %7035 = vrot.lane.b32.xlu1 %v7034_v58, %s8241_s15  ;;  %528 = vst.msk [vmem:[#allocation2 + $0x211] sm:$0xff] %vm70_vm0, %v272_v38  ;;  %v1063_v42 = vld [vmem:[#allocation2 + $0x5f2] ss:$2 sm:$0xff]  ;;  %529 = vst.msk [vmem:[#allocation2 + $0x219] sm:$0xff] %vm70_vm0, %v273_v40  ;;  %v1067_v45 = vld [vmem:[#allocation2 + $0x642] ss:$2 sm:$0xff] }
  0xd1   :  { %7040 = vrot.lane.b32.xlu0 %v7039_v1, %s8241_s15  ;;  %530 = vst.msk [vmem:[#allocation2 + $0x221] sm:$0xff] %vm70_vm0, %v274_v41  ;;  %v1069_v46 = vld [vmem:[#allocation2 + $0x652] ss:$2 sm:$0xff]  ;;  %v1073_v48 = vld [vmem:[#allocation2 + $0x6a2] ss:$2 sm:$0xff]  ;;  %v7079_v51 = vpack.i.bf16 %v1065_v43, %v1063_v42  ;;  %13078 = vst [vmem:[#allocation16_spill] sm:$0xff] %v8701_v35 }
  0xd2   :  { %v1071_v47 = vld [vmem:[#allocation2 + $0x692] ss:$2 sm:$0xff]  ;;  %v280_v50 = vld [vmem:[#allocation3 + $0x1c8] sm:$0xff]  ;;  %v7084_v58 = vpack.i.bf16 %v1069_v46, %v1067_v45 }
  0xd3   :  { %v279_v49 = vld [vmem:[#allocation3 + $0x1c0] sm:$0xff]  ;;  %v281_v52 = vld [vmem:[#allocation3 + $0x1d0] sm:$0xff]  ;;  %v282_v53 = vld [vmem:[#allocation3 + $0x1d8] sm:$0xff]  ;;  %536 = vst.msk [vmem:[#allocation2 + $0x261] sm:$0xff] %vm70_vm0, %v280_v50  ;;  %v7089_v61 = vpack.i.bf16 %v1073_v48, %v1071_v47 }
  0xd4   :  { %7045 = vrot.lane.b32.xlu1 %v7044_v8, %s8241_s15  ;;  %535 = vst.msk [vmem:[#allocation2 + $0x259] sm:$0xff] %vm70_vm0, %v279_v49  ;;  %v287_v54 = vld [vmem:[#allocation3 + $0x200] sm:$0xff]  ;;  %537 = vst.msk [vmem:[#allocation2 + $0x269] sm:$0xff] %vm70_vm0, %v281_v52  ;;  %v288_v55 = vld [vmem:[#allocation3 + $0x208] sm:$0xff] }
  0xd5   :  { %7050 = vrot.lane.b32.xlu0 %v7049_v14, %s8241_s15  ;;  %538 = vst.msk [vmem:[#allocation2 + $0x271] sm:$0xff] %vm70_vm0, %v282_v53  ;;  %v289_v56 = vld [vmem:[#allocation3 + $0x210] sm:$0xff]  ;;  %v290_v57 = vld [vmem:[#allocation3 + $0x218] sm:$0xff]  ;;  %543 = vst.msk [vmem:[#allocation2 + $0x2a9] sm:$0xff] %vm70_vm0, %v287_v54 }
  0xd6   :  { %544 = vst.msk [vmem:[#allocation2 + $0x2b1] sm:$0xff] %vm70_vm0, %v288_v55  ;;  %545 = vst.msk [vmem:[#allocation2 + $0x2b9] sm:$0xff] %vm70_vm0, %v289_v56  ;;  %v1075_v59 = vld [vmem:[#allocation2 + $0x6e2] ss:$2 sm:$0xff]  ;;  %v1077_v60 = vld [vmem:[#allocation2 + $0x6f2] ss:$2 sm:$0xff] }
  0xd7   :  { %546 = vst.msk [vmem:[#allocation2 + $0x2c1] sm:$0xff] %vm70_vm0, %v290_v57  ;;  %v1079_v62 = vld [vmem:[#allocation2 + $0x732] ss:$2 sm:$0xff]  ;;  %v1081_v63 = vld [vmem:[#allocation2 + $0x742] ss:$2 sm:$0xff]  ;;  %v7094_v4 = vpack.i.bf16 %v1077_v60, %v1075_v59 }
  0xd8   :  { %7055 = vrot.lane.b32.xlu1 %v7054_v21, %s8241_s15  ;;  %v295_v0 = vld [vmem:[#allocation3 + $0x240] sm:$0xff]  ;;  %v296_v1 = vld [vmem:[#allocation3 + $0x248] sm:$0xff]  ;;  %v297_v2 = vld [vmem:[#allocation3 + $0x250] sm:$0xff]  ;;  %v7099_v11 = vpack.i.bf16 %v1081_v63, %v1079_v62 }
  0xd9   :  { %7060 = vrot.lane.b32.xlu0 %v7059_v27, %s8241_s15  ;;  %v298_v3 = vld [vmem:[#allocation3 + $0x258] sm:$0xff]  ;;  %551 = vst.msk [vmem:[#allocation2 + $0x2f9] sm:$0xff] %vm70_vm0, %v295_v0  ;;  %552 = vst.msk [vmem:[#allocation2 + $0x301] sm:$0xff] %vm70_vm0, %v296_v1  ;;  %v303_v5 = vld [vmem:[#allocation3 + $0x280] sm:$0xff] }
  0xda   :  { %553 = vst.msk [vmem:[#allocation2 + $0x309] sm:$0xff] %vm70_vm0, %v297_v2  ;;  %554 = vst.msk [vmem:[#allocation2 + $0x311] sm:$0xff] %vm70_vm0, %v298_v3  ;;  %v304_v6 = vld [vmem:[#allocation3 + $0x288] sm:$0xff]  ;;  %v305_v7 = vld [vmem:[#allocation3 + $0x290] sm:$0xff] }
  0xdb   :  { %v1083_v8 = vld [vmem:[#allocation2 + $0x782] ss:$2 sm:$0xff]  ;;  %v1085_v9 = vld [vmem:[#allocation2 + $0x792] ss:$2 sm:$0xff]  ;;  %559 = vst.msk [vmem:[#allocation2 + $0x349] sm:$0xff] %vm70_vm0, %v303_v5  ;;  %560 = vst.msk [vmem:[#allocation2 + $0x351] sm:$0xff] %vm70_vm0, %v304_v6 }
  0xdc   :  { %7065 = vrot.lane.b32.xlu1 %v7064_v32, %s8241_s15  ;;  %v306_v10 = vld [vmem:[#allocation3 + $0x298] sm:$0xff]  ;;  %561 = vst.msk [vmem:[#allocation2 + $0x359] sm:$0xff] %vm70_vm0, %v305_v7  ;;  %v1089_v13 = vld [vmem:[#allocation2 + $0x7e2] ss:$2 sm:$0xff]  ;;  %v7104_v16 = vpack.i.bf16 %v1085_v9, %v1083_v8 }
  0xdd   :  { %7070 = vrot.lane.b32.xlu0 %v7069_v39, %s8241_s15  ;;  %v1087_v12 = vld [vmem:[#allocation2 + $0x7d2] ss:$2 sm:$0xff]  ;;  %562 = vst.msk [vmem:[#allocation2 + $0x361] sm:$0xff] %vm70_vm0, %v306_v10  ;;  %v1091_v14 = vld [vmem:[#allocation2 + $0x822] ss:$2 sm:$0xff] }
  0xde   :  { %v1093_v15 = vld [vmem:[#allocation2 + $0x832] ss:$2 sm:$0xff]  ;;  %v312_v18 = vld [vmem:[#allocation3 + $0x2c8] sm:$0xff]  ;;  %v7109_v23 = vpack.i.bf16 %v1089_v13, %v1087_v12 }
  0xdf   :  { %v311_v17 = vld [vmem:[#allocation3 + $0x2c0] sm:$0xff]  ;;  %v313_v19 = vld [vmem:[#allocation3 + $0x2d0] sm:$0xff]  ;;  %v314_v20 = vld [vmem:[#allocation3 + $0x2d8] sm:$0xff]  ;;  %568 = vst.msk [vmem:[#allocation2 + $0x3a1] sm:$0xff] %vm70_vm0, %v312_v18  ;;  %v7114_v28 = vpack.i.bf16 %v1093_v15, %v1091_v14 }
  0xe0   :  { %7075 = vrot.lane.b32.xlu1 %v7074_v44, %s8241_s15  ;;  %567 = vst.msk [vmem:[#allocation2 + $0x399] sm:$0xff] %vm70_vm0, %v311_v17  ;;  %569 = vst.msk [vmem:[#allocation2 + $0x3a9] sm:$0xff] %vm70_vm0, %v313_v19  ;;  %v319_v21 = vld [vmem:[#allocation3 + $0x300] sm:$0xff]  ;;  %v320_v22 = vld [vmem:[#allocation3 + $0x308] sm:$0xff] }
  0xe1   :  { %7080 = vrot.lane.b32.xlu0 %v7079_v51, %s8241_s15  ;;  %570 = vst.msk [vmem:[#allocation2 + $0x3b1] sm:$0xff] %vm70_vm0, %v314_v20  ;;  %v321_v24 = vld [vmem:[#allocation3 + $0x310] sm:$0xff]  ;;  %v322_v25 = vld [vmem:[#allocation3 + $0x318] sm:$0xff]  ;;  %575 = vst.msk [vmem:[#allocation2 + $0x3e9] sm:$0xff] %vm70_vm0, %v319_v21 }
  0xe2   :  { %576 = vst.msk [vmem:[#allocation2 + $0x3f1] sm:$0xff] %vm70_vm0, %v320_v22  ;;  %v1095_v26 = vld [vmem:[#allocation2 + $0x872] ss:$2 sm:$0xff]  ;;  %v1097_v27 = vld [vmem:[#allocation2 + $0x882] ss:$2 sm:$0xff]  ;;  %577 = vst.msk [vmem:[#allocation2 + $0x3f9] sm:$0xff] %vm70_vm0, %v321_v24 }
  0xe3   :  { %578 = vst.msk [vmem:[#allocation2 + $0x401] sm:$0xff] %vm70_vm0, %v322_v25  ;;  %v1099_v29 = vld [vmem:[#allocation2 + $0x8c2] ss:$2 sm:$0xff]  ;;  %v1101_v30 = vld [vmem:[#allocation2 + $0x8d2] ss:$2 sm:$0xff]  ;;  %v7119_v36 = vpack.i.bf16 %v1097_v27, %v1095_v26 }
  0xe4   :  { %7085 = vrot.lane.b32.xlu1 %v7084_v58, %s8241_s15  ;;  %v1103_v31 = vld [vmem:[#allocation2 + $0x912] ss:$2 sm:$0xff]  ;;  %v1105_v32 = vld [vmem:[#allocation2 + $0x922] ss:$2 sm:$0xff]  ;;  %v7124_v43 = vpack.i.bf16 %v1101_v30, %v1099_v29 }
  0xe5   :  { %7090 = vrot.lane.b32.xlu0 %v7089_v61, %s8241_s15  ;;  %v327_v33 = vld [vmem:[#allocation3 + $0x340] sm:$0xff]  ;;  %v328_v34 = vld [vmem:[#allocation3 + $0x348] sm:$0xff]  ;;  %v329_v37 = vld [vmem:[#allocation3 + $0x350] sm:$0xff]  ;;  %v7129_v47 = vpack.i.bf16 %v1105_v32, %v1103_v31 }
  0xe6   :  { %v330_v38 = vld [vmem:[#allocation3 + $0x358] sm:$0xff]  ;;  %583 = vst.msk [vmem:[#allocation2 + $0x439] sm:$0xff] %vm70_vm0, %v327_v33  ;;  %584 = vst.msk [vmem:[#allocation2 + $0x441] sm:$0xff] %vm70_vm0, %v328_v34  ;;  %v335_v39 = vld [vmem:[#allocation3 + $0x380] sm:$0xff] }
  0xe7   :  { %585 = vst.msk [vmem:[#allocation2 + $0x449] sm:$0xff] %vm70_vm0, %v329_v37  ;;  %586 = vst.msk [vmem:[#allocation2 + $0x451] sm:$0xff] %vm70_vm0, %v330_v38  ;;  %v336_v40 = vld [vmem:[#allocation3 + $0x388] sm:$0xff]  ;;  %v337_v41 = vld [vmem:[#allocation3 + $0x390] sm:$0xff] }
  0xe8   :  { %7095 = vrot.lane.b32.xlu1 %v7094_v4, %s8241_s15  ;;  %v338_v42 = vld [vmem:[#allocation3 + $0x398] sm:$0xff]  ;;  %591 = vst.msk [vmem:[#allocation2 + $0x489] sm:$0xff] %vm70_vm0, %v335_v39  ;;  %592 = vst.msk [vmem:[#allocation2 + $0x491] sm:$0xff] %vm70_vm0, %v336_v40  ;;  %v1107_v44 = vld [vmem:[#allocation2 + $0x962] ss:$2 sm:$0xff] }
  0xe9   :  { %7100 = vrot.lane.b32.xlu0 %v7099_v11, %s8241_s15  ;;  %593 = vst.msk [vmem:[#allocation2 + $0x499] sm:$0xff] %vm70_vm0, %v337_v41  ;;  %594 = vst.msk [vmem:[#allocation2 + $0x4a1] sm:$0xff] %vm70_vm0, %v338_v42  ;;  %v1109_v45 = vld [vmem:[#allocation2 + $0x972] ss:$2 sm:$0xff]  ;;  %v1113_v49 = vld [vmem:[#allocation2 + $0x9c2] ss:$2 sm:$0xff] }
  0xea   :  { %v1111_v48 = vld [vmem:[#allocation2 + $0x9b2] ss:$2 sm:$0xff]  ;;  %v344_v51 = vld [vmem:[#allocation3 + $0x3c8] sm:$0xff]  ;;  %v7134_v55 = vpack.i.bf16 %v1109_v45, %v1107_v44 }
  0xeb   :  { %v343_v50 = vld [vmem:[#allocation3 + $0x3c0] sm:$0xff]  ;;  %v345_v52 = vld [vmem:[#allocation3 + $0x3d0] sm:$0xff]  ;;  %v346_v53 = vld [vmem:[#allocation3 + $0x3d8] sm:$0xff]  ;;  %600 = vst.msk [vmem:[#allocation2 + $0x4e1] sm:$0xff] %vm70_vm0, %v344_v51  ;;  %v7139_v63 = vpack.i.bf16 %v1113_v49, %v1111_v48 }
  0xec   :  { %7105 = vrot.lane.b32.xlu1 %v7104_v16, %s8241_s15  ;;  %599 = vst.msk [vmem:[#allocation2 + $0x4d9] sm:$0xff] %vm70_vm0, %v343_v50  ;;  %601 = vst.msk [vmem:[#allocation2 + $0x4e9] sm:$0xff] %vm70_vm0, %v345_v52  ;;  %v351_v56 = vld [vmem:[#allocation3 + $0x400] sm:$0xff]  ;;  %v352_v57 = vld [vmem:[#allocation3 + $0x408] sm:$0xff] }
  0xed   :  { %7110 = vrot.lane.b32.xlu0 %v7109_v23, %s8241_s15  ;;  %602 = vst.msk [vmem:[#allocation2 + $0x4f1] sm:$0xff] %vm70_vm0, %v346_v53  ;;  %v353_v58 = vld [vmem:[#allocation3 + $0x410] sm:$0xff]  ;;  %v354_v61 = vld [vmem:[#allocation3 + $0x418] sm:$0xff]  ;;  %607 = vst.msk [vmem:[#allocation2 + $0x579] sm:$0xff] %vm70_vm0, %v351_v56 }
  0xee   :  { %v1115_v59 = vld [vmem:[#allocation2 + $0xa02] ss:$2 sm:$0xff]  ;;  %v1117_v60 = vld [vmem:[#allocation2 + $0xa12] ss:$2 sm:$0xff]  ;;  %608 = vst.msk [vmem:[#allocation2 + $0x581] sm:$0xff] %vm70_vm0, %v352_v57  ;;  %609 = vst.msk [vmem:[#allocation2 + $0x589] sm:$0xff] %vm70_vm0, %v353_v58 }
  0xef   :  { %v8713_v46 = vpop.permute.xlu1 %6840  ;;  %v1118_v0 = vld [vmem:[#allocation2 + $0x28] ss:$2 sm:$0xff]  ;;  %610 = vst.msk [vmem:[#allocation2 + $0x591] sm:$0xff] %vm70_vm0, %v354_v61  ;;  %v1120_v1 = vld [vmem:[#allocation2 + $0x38] ss:$2 sm:$0xff]  ;;  %v7144_v5 = vpack.i.bf16 %v1117_v60, %v1115_v59 }
  0xf0   :  { %7115 = vrot.lane.b32.xlu1 %v7114_v28, %s8241_s15  ;;  %13079 = vst [vmem:[#allocation17_spill] sm:$0xff] %v8713_v46  ;;  %v1122_v2 = vld [vmem:[#allocation2 + $0x78] ss:$2 sm:$0xff]  ;;  %v1124_v3 = vld [vmem:[#allocation2 + $0x88] ss:$2 sm:$0xff]  ;;  %v7149_v13 = vpack.i.bf16 %v1120_v1, %v1118_v0 }
  0xf1   :  { %7120 = vrot.lane.b32.xlu0 %v7119_v36, %s8241_s15  ;;  %v8716_v54 = vpop.permute.xlu0 %6835  ;;  %v359_v6 = vld [vmem:[#allocation3 + $0x440] sm:$0xff]  ;;  %v360_v7 = vld [vmem:[#allocation3 + $0x448] sm:$0xff]  ;;  %v361_v8 = vld [vmem:[#allocation3 + $0x450] sm:$0xff]  ;;  %v7154_v19 = vpack.i.bf16 %v1124_v3, %v1122_v2 }
  0xf2   :  { %13080 = vst [vmem:[#allocation18_spill] sm:$0xff] %v8716_v54  ;;  %v362_v9 = vld [vmem:[#allocation3 + $0x458] sm:$0xff]  ;;  %615 = vst.msk [vmem:[#allocation2 + $0x5c9] sm:$0xff] %vm70_vm0, %v359_v6  ;;  %v367_v10 = vld [vmem:[#allocation3 + $0x480] sm:$0xff] }
  0xf3   :  { %v8726_v62 = vpop.permute.xlu1 %6845  ;;  %616 = vst.msk [vmem:[#allocation2 + $0x5d1] sm:$0xff] %vm70_vm0, %v360_v7  ;;  %617 = vst.msk [vmem:[#allocation2 + $0x5d9] sm:$0xff] %vm70_vm0, %v361_v8  ;;  %v368_v11 = vld [vmem:[#allocation3 + $0x488] sm:$0xff]  ;;  %v369_v14 = vld [vmem:[#allocation3 + $0x490] sm:$0xff] }
  0xf4   :  { %7125 = vrot.lane.b32.xlu1 %v7124_v43, %s8241_s15  ;;  %13081 = vst [vmem:[#allocation19_spill] sm:$0xff] %v8726_v62  ;;  %618 = vst.msk [vmem:[#allocation2 + $0x5e1] sm:$0xff] %vm70_vm0, %v362_v9  ;;  %v370_v15 = vld [vmem:[#allocation3 + $0x498] sm:$0xff]  ;;  %v1126_v16 = vld [vmem:[#allocation2 + $0xc8] ss:$2 sm:$0xff] }
  0xf5   :  { %7130 = vrot.lane.b32.xlu0 %v7129_v47, %s8241_s15  ;;  %v8729_v4 = vpop.permute.xlu0 %6850  ;;  %623 = vst.msk [vmem:[#allocation2 + $0x619] sm:$0xff] %vm70_vm0, %v367_v10  ;;  %624 = vst.msk [vmem:[#allocation2 + $0x621] sm:$0xff] %vm70_vm0, %v368_v11  ;;  %v1128_v17 = vld [vmem:[#allocation2 + $0xd8] ss:$2 sm:$0xff]  ;;  %v1132_v21 = vld [vmem:[#allocation2 + $0x128] ss:$2 sm:$0xff] }
  0xf6   :  { %13082 = vst [vmem:[#allocation20_spill] sm:$0xff] %v8729_v4  ;;  %625 = vst.msk [vmem:[#allocation2 + $0x629] sm:$0xff] %vm70_vm0, %v369_v14  ;;  %v1130_v20 = vld [vmem:[#allocation2 + $0x118] ss:$2 sm:$0xff]  ;;  %v1134_v22 = vld [vmem:[#allocation2 + $0x168] ss:$2 sm:$0xff]  ;;  %v7159_v27 = vpack.i.bf16 %v1128_v17, %v1126_v16 }
  0xf7   :  { %v8736_v12 = vpop.permute.xlu1 %6855  ;;  %626 = vst.msk [vmem:[#allocation2 + $0x631] sm:$0xff] %vm70_vm0, %v370_v15  ;;  %v1136_v23 = vld [vmem:[#allocation2 + $0x178] ss:$2 sm:$0xff]  ;;  %v376_v25 = vld [vmem:[#allocation3 + $0x4c8] sm:$0xff]  ;;  %v377_v28 = vld [vmem:[#allocation3 + $0x4d0] sm:$0xff]  ;;  %v7164_v36 = vpack.i.bf16 %v1132_v21, %v1130_v20 }
  0xf8   :  { %7135 = vrot.lane.b32.xlu1 %v7134_v55, %s8241_s15  ;;  %13083 = vst [vmem:[#allocation21_spill] sm:$0xff] %v8736_v12  ;;  %v375_v24 = vld [vmem:[#allocation3 + $0x4c0] sm:$0xff]  ;;  %v378_v29 = vld [vmem:[#allocation3 + $0x4d8] sm:$0xff]  ;;  %632 = vst.msk [vmem:[#allocation2 + $0x671] sm:$0xff] %vm70_vm0, %v376_v25  ;;  %v7169_v40 = vpack.i.bf16 %v1136_v23, %v1134_v22 }
  0xf9   :  { %7140 = vrot.lane.b32.xlu0 %v7139_v63, %s8241_s15  ;;  %v8743_v18 = vpop.permute.xlu0 %6860  ;;  %631 = vst.msk [vmem:[#allocation2 + $0x669] sm:$0xff] %vm70_vm0, %v375_v24  ;;  %v383_v30 = vld [vmem:[#allocation3 + $0x500] sm:$0xff]  ;;  %633 = vst.msk [vmem:[#allocation2 + $0x679] sm:$0xff] %vm70_vm0, %v377_v28  ;;  %v384_v31 = vld [vmem:[#allocation3 + $0x508] sm:$0xff] }
  0xfa   :  { %13084 = vst [vmem:[#allocation22_spill] sm:$0xff] %v8743_v18  ;;  %634 = vst.msk [vmem:[#allocation2 + $0x681] sm:$0xff] %vm70_vm0, %v378_v29  ;;  %v385_v32 = vld [vmem:[#allocation3 + $0x510] sm:$0xff]  ;;  %v386_v33 = vld [vmem:[#allocation3 + $0x518] sm:$0xff] }
  0xfb   :  { %v8747_v26 = vpop.permute.xlu1 %6865  ;;  %639 = vst.msk [vmem:[#allocation2 + $0x6b9] sm:$0xff] %vm70_vm0, %v383_v30  ;;  %640 = vst.msk [vmem:[#allocation2 + $0x6c1] sm:$0xff] %vm70_vm0, %v384_v31  ;;  %v1138_v37 = vld [vmem:[#allocation2 + $0x1b8] ss:$2 sm:$0xff]  ;;  %v1140_v38 = vld [vmem:[#allocation2 + $0x1c8] ss:$2 sm:$0xff] }
  0xfc   :  { %7145 = vrot.lane.b32.xlu1 %v7144_v5, %s8241_s15  ;;  %13085 = vst [vmem:[#allocation23_spill] sm:$0xff] %v8747_v26  ;;  %641 = vst.msk [vmem:[#allocation2 + $0x6c9] sm:$0xff] %vm70_vm0, %v385_v32  ;;  %v1142_v41 = vld [vmem:[#allocation2 + $0x208] ss:$2 sm:$0xff]  ;;  %v1144_v42 = vld [vmem:[#allocation2 + $0x218] ss:$2 sm:$0xff]  ;;  %v7174_v49 = vpack.i.bf16 %v1140_v38, %v1138_v37 }
  0xfd   :  { %7150 = vrot.lane.b32.xlu0 %v7149_v13, %s8242_s16  ;;  %v8754_v34 = vpop.permute.xlu0 %6870  ;;  %642 = vst.msk [vmem:[#allocation2 + $0x6d1] sm:$0xff] %vm70_vm0, %v386_v33  ;;  %v391_v43 = vld [vmem:[#allocation3 + $0x540] sm:$0xff]  ;;  %v392_v44 = vld [vmem:[#allocation3 + $0x548] sm:$0xff]  ;;  %v393_v45 = vld [vmem:[#allocation3 + $0x550] sm:$0xff]  ;;  %v7179_v58 = vpack.i.bf16 %v1144_v42, %v1142_v41 }
  0xfe   :  { %v394_v47 = vld [vmem:[#allocation3 + $0x558] sm:$0xff]  ;;  %647 = vst.msk [vmem:[#allocation2 + $0x709] sm:$0xff] %vm70_vm0, %v391_v43  ;;  %648 = vst.msk [vmem:[#allocation2 + $0x711] sm:$0xff] %vm70_vm0, %v392_v44  ;;  %v399_v50 = vld [vmem:[#allocation3 + $0x580] sm:$0xff] }
  0xff   :  { %v8761_v39 = vpop.permute.xlu1 %6875  ;;  %649 = vst.msk [vmem:[#allocation2 + $0x719] sm:$0xff] %vm70_vm0, %v393_v45  ;;  %650 = vst.msk [vmem:[#allocation2 + $0x721] sm:$0xff] %vm70_vm0, %v394_v47  ;;  %v400_v51 = vld [vmem:[#allocation3 + $0x588] sm:$0xff]  ;;  %v401_v52 = vld [vmem:[#allocation3 + $0x590] sm:$0xff] }
 0x100   :  { %7155 = vrot.lane.b32.xlu1 %v7154_v19, %s8242_s16  ;;  %v1146_v53 = vld [vmem:[#allocation2 + $0x258] ss:$2 sm:$0xff]  ;;  %v1148_v55 = vld [vmem:[#allocation2 + $0x268] ss:$2 sm:$0xff]  ;;  %655 = vst.msk [vmem:[#allocation2 + $0x759] sm:$0xff] %vm70_vm0, %v399_v50  ;;  %656 = vst.msk [vmem:[#allocation2 + $0x761] sm:$0xff] %vm70_vm0, %v400_v51 }
 0x101   :  { %7160 = vrot.lane.b32.xlu0 %v7159_v27, %s8242_s16  ;;  %v8764_v48 = vpop.permute.xlu0 %6880  ;;  %v402_v56 = vld [vmem:[#allocation3 + $0x598] sm:$0xff]  ;;  %657 = vst.msk [vmem:[#allocation2 + $0x769] sm:$0xff] %vm70_vm0, %v401_v52  ;;  %v1150_v59 = vld [vmem:[#allocation2 + $0x2a8] ss:$2 sm:$0xff]  ;;  %v7184_v1 = vpack.i.bf16 %v1148_v55, %v1146_v53  ;;  %v407_v2 = vld [vmem:[#allocation3 + $0x5c0] sm:$0xff] }
 0x102   :  { %658 = vst.msk [vmem:[#allocation2 + $0x771] sm:$0xff] %vm70_vm0, %v402_v56  ;;  %v1152_v60 = vld [vmem:[#allocation2 + $0x2b8] ss:$2 sm:$0xff]  ;;  %v1156_v63 = vld [vmem:[#allocation2 + $0x308] ss:$2 sm:$0xff]  ;;  %663 = vst.msk [vmem:[#allocation2 + $0x7a9] sm:$0xff] %vm70_vm0, %v407_v2 }
 0x103   :  { %v8774_v57 = vpop.permute.xlu1 %6885  ;;  %v1154_v61 = vld [vmem:[#allocation2 + $0x2f8] ss:$2 sm:$0xff]  ;;  %v408_v3 = vld [vmem:[#allocation3 + $0x5c8] sm:$0xff]  ;;  %v409_v5 = vld [vmem:[#allocation3 + $0x5d0] sm:$0xff]  ;;  %v7189_v10 = vpack.i.bf16 %v1152_v60, %v1150_v59 }
 0x104   :  { %7165 = vrot.lane.b32.xlu1 %v7164_v36, %s8242_s16  ;;  %v410_v6 = vld [vmem:[#allocation3 + $0x5d8] sm:$0xff]  ;;  %664 = vst.msk [vmem:[#allocation2 + $0x7b1] sm:$0xff] %vm70_vm0, %v408_v3  ;;  %665 = vst.msk [vmem:[#allocation2 + $0x7b9] sm:$0xff] %vm70_vm0, %v409_v5  ;;  %v415_v7 = vld [vmem:[#allocation3 + $0x600] sm:$0xff]  ;;  %v7194_v19 = vpack.i.bf16 %v1156_v63, %v1154_v61  ;;  %v6888_v35 = vunpack.i.h.bf16 %v8774_v57 }
 0x105   :  { %7170 = vrot.lane.b32.xlu0 %v7169_v40, %s8242_s16  ;;  %v8777_v0 = vpop.permute.xlu0 %6890  ;;  %v416_v8 = vld [vmem:[#allocation3 + $0x608] sm:$0xff]  ;;  %666 = vst.msk [vmem:[#allocation2 + $0x7c1] sm:$0xff] %vm70_vm0, %v410_v6  ;;  %v417_v11 = vld [vmem:[#allocation3 + $0x610] sm:$0xff]  ;;  %v418_v13 = vld [vmem:[#allocation3 + $0x618] sm:$0xff] }
 0x106   :  { %671 = vst.msk [vmem:[#allocation2 + $0x7f9] sm:$0xff] %vm70_vm0, %v415_v7  ;;  %672 = vst.msk [vmem:[#allocation2 + $0x801] sm:$0xff] %vm70_vm0, %v416_v8  ;;  %v1158_v14 = vld [vmem:[#allocation2 + $0x348] ss:$2 sm:$0xff]  ;;  %v1160_v15 = vld [vmem:[#allocation2 + $0x358] ss:$2 sm:$0xff] }
 0x107   :  { %v8784_v9 = vpop.permute.xlu1 %6895  ;;  %v1162_v16 = vld [vmem:[#allocation2 + $0x398] ss:$2 sm:$0xff]  ;;  %673 = vst.msk [vmem:[#allocation2 + $0x809] sm:$0xff] %vm70_vm0, %v417_v11  ;;  %674 = vst.msk [vmem:[#allocation2 + $0x811] sm:$0xff] %vm70_vm0, %v418_v13  ;;  %v1164_v20 = vld [vmem:[#allocation2 + $0x3a8] ss:$2 sm:$0xff]  ;;  %v7199_v29 = vpack.i.bf16 %v1160_v15, %v1158_v14 }
 0x108   :  { %7175 = vrot.lane.b32.xlu1 %v7174_v49, %s8242_s16  ;;  %v423_v21 = vld [vmem:[#allocation3 + $0x640] sm:$0xff]  ;;  %v424_v22 = vld [vmem:[#allocation3 + $0x648] sm:$0xff]  ;;  %v425_v25 = vld [vmem:[#allocation3 + $0x650] sm:$0xff]  ;;  %v7204_v40 = vpack.i.bf16 %v1164_v20, %v1162_v16 }
 0x109   :  { %7180 = vrot.lane.b32.xlu0 %v7179_v58, %s8242_s16  ;;  %v8791_v17 = vpop.permute.xlu0 %6900  ;;  %v1166_v23 = vld [vmem:[#allocation2 + $0x3e8] ss:$2 sm:$0xff]  ;;  %v1168_v24 = vld [vmem:[#allocation2 + $0x3f8] ss:$2 sm:$0xff]  ;;  %679 = vst.msk [vmem:[#allocation2 + $0x849] sm:$0xff] %vm70_vm0, %v423_v21  ;;  %680 = vst.msk [vmem:[#allocation2 + $0x851] sm:$0xff] %vm70_vm0, %v424_v22 }
 0x10a   :  { %v426_v27 = vld [vmem:[#allocation3 + $0x658] sm:$0xff]  ;;  %681 = vst.msk [vmem:[#allocation2 + $0x859] sm:$0xff] %vm70_vm0, %v425_v25  ;;  %v431_v30 = vld [vmem:[#allocation3 + $0x680] sm:$0xff]  ;;  %v432_v31 = vld [vmem:[#allocation3 + $0x688] sm:$0xff]  ;;  %v7209_v50 = vpack.i.bf16 %v1168_v24, %v1166_v23 }
 0x10b   :  { %v8797_v28 = vpop.permute.xlu1 %6905  ;;  %682 = vst.msk [vmem:[#allocation2 + $0x861] sm:$0xff] %vm70_vm0, %v426_v27  ;;  %v433_v32 = vld [vmem:[#allocation3 + $0x690] sm:$0xff]  ;;  %v434_v33 = vld [vmem:[#allocation3 + $0x698] sm:$0xff]  ;;  %687 = vst.msk [vmem:[#allocation2 + $0x899] sm:$0xff] %vm70_vm0, %v431_v30 }
 0x10c   :  { %7185 = vrot.lane.b32.xlu1 %v7184_v1, %s8242_s16  ;;  %688 = vst.msk [vmem:[#allocation2 + $0x8a1] sm:$0xff] %vm70_vm0, %v432_v31  ;;  %689 = vst.msk [vmem:[#allocation2 + $0x8a9] sm:$0xff] %vm70_vm0, %v433_v32  ;;  %v439_v36 = vld [vmem:[#allocation3 + $0x6c0] sm:$0xff]  ;;  %v440_v37 = vld [vmem:[#allocation3 + $0x6c8] sm:$0xff] }
 0x10d   :  { %7190 = vrot.lane.b32.xlu0 %v7189_v10, %s8242_s16  ;;  %v8804_v38 = vpop.permute.xlu0 %6910  ;;  %v1170_v41 = vld [vmem:[#allocation2 + $0x438] ss:$2 sm:$0xff]  ;;  %690 = vst.msk [vmem:[#allocation2 + $0x8b1] sm:$0xff] %vm70_vm0, %v434_v33  ;;  %v441_v42 = vld [vmem:[#allocation3 + $0x6d0] sm:$0xff]  ;;  %695 = vst.msk [vmem:[#allocation2 + $0x8e9] sm:$0xff] %vm70_vm0, %v439_v36 }
 0x10e   :  { %v442_v43 = vld [vmem:[#allocation3 + $0x6d8] sm:$0xff]  ;;  %696 = vst.msk [vmem:[#allocation2 + $0x8f1] sm:$0xff] %vm70_vm0, %v440_v37  ;;  %v1172_v44 = vld [vmem:[#allocation2 + $0x448] ss:$2 sm:$0xff]  ;;  %697 = vst.msk [vmem:[#allocation2 + $0x8f9] sm:$0xff] %vm70_vm0, %v441_v42 }
 0x10f   :  { %v1174_v45 = vld [vmem:[#allocation2 + $0x488] ss:$2 sm:$0xff]  ;;  %698 = vst.msk [vmem:[#allocation2 + $0x901] sm:$0xff] %vm70_vm0, %v442_v43  ;;  %v447_v47 = vld [vmem:[#allocation3 + $0x700] sm:$0xff]  ;;  %v8813_v49 = vpop.permute.xlu1 %6915  ;;  %v450_v55 = vld [vmem:[#allocation3 + $0x718] sm:$0xff]  ;;  %v7214_v60 = vpack.i.bf16 %v1172_v44, %v1170_v41 }
 0x110   :  { %7195 = vrot.lane.b32.xlu1 %v7194_v19, %s8242_s16  ;;  %v1176_v51 = vld [vmem:[#allocation2 + $0x498] ss:$2 sm:$0xff]  ;;  %v448_v52 = vld [vmem:[#allocation3 + $0x708] sm:$0xff]  ;;  %v449_v53 = vld [vmem:[#allocation3 + $0x710] sm:$0xff]  ;;  %703 = vst.msk [vmem:[#allocation2 + $0x939] sm:$0xff] %vm70_vm0, %v447_v47 }
 0x111   :  { %7200 = vrot.lane.b32.xlu0 %v7199_v29, %s8242_s16  ;;  %704 = vst.msk [vmem:[#allocation2 + $0x941] sm:$0xff] %vm70_vm0, %v448_v52  ;;  %705 = vst.msk [vmem:[#allocation2 + $0x949] sm:$0xff] %vm70_vm0, %v449_v53  ;;  %v455_v56 = vld [vmem:[#allocation3 + $0x740] sm:$0xff]  ;;  %v456_v58 = vld [vmem:[#allocation3 + $0x748] sm:$0xff]  ;;  %v8818_v59 = vpop.permute.xlu0 %6920  ;;  %v7219_v7 = vpack.i.bf16 %v1176_v51, %v1174_v45 }
 0x112   :  { %v1178_v61 = vld [vmem:[#allocation2 + $0x4d8] ss:$2 sm:$0xff]  ;;  %706 = vst.msk [vmem:[#allocation2 + $0x951] sm:$0xff] %vm70_vm0, %v450_v55  ;;  %v457_v63 = vld [vmem:[#allocation3 + $0x750] sm:$0xff]  ;;  %711 = vst.msk [vmem:[#allocation2 + $0x989] sm:$0xff] %vm70_vm0, %v455_v56 }
 0x113   :  { %v458_v1 = vld [vmem:[#allocation3 + $0x758] sm:$0xff]  ;;  %712 = vst.msk [vmem:[#allocation2 + $0x991] sm:$0xff] %vm70_vm0, %v456_v58  ;;  %v1180_v2 = vld [vmem:[#allocation2 + $0x4e8] ss:$2 sm:$0xff]  ;;  %713 = vst.msk [vmem:[#allocation2 + $0x999] sm:$0xff] %vm70_vm0, %v457_v63  ;;  %v8827_v6 = vpop.permute.xlu1 %6925 }
 0x114   :  { %7205 = vrot.lane.b32.xlu1 %v7204_v40, %s8242_s16  ;;  %714 = vst.msk [vmem:[#allocation2 + $0x9a1] sm:$0xff] %vm70_vm0, %v458_v1  ;;  %v463_v3 = vld [vmem:[#allocation3 + $0x780] sm:$0xff]  ;;  %v464_v5 = vld [vmem:[#allocation3 + $0x788] sm:$0xff]  ;;  %v465_v8 = vld [vmem:[#allocation3 + $0x790] sm:$0xff]  ;;  %v7224_v16 = vpack.i.bf16 %v1180_v2, %v1178_v61 }
 0x115   :  { %7210 = vrot.lane.b32.xlu0 %v7209_v50, %s8242_s16  ;;  %v466_v10 = vld [vmem:[#allocation3 + $0x798] sm:$0xff]  ;;  %719 = vst.msk [vmem:[#allocation2 + $0x9d9] sm:$0xff] %vm70_vm0, %v463_v3  ;;  %720 = vst.msk [vmem:[#allocation2 + $0x9e1] sm:$0xff] %vm70_vm0, %v464_v5  ;;  %v1184_v13 = vld [vmem:[#allocation2 + $0x588] ss:$2 sm:$0xff]  ;;  %v8833_v15 = vpop.permute.xlu0 %6930 }
 0x116   :  { %v1182_v11 = vld [vmem:[#allocation2 + $0x578] ss:$2 sm:$0xff]  ;;  %721 = vst.msk [vmem:[#allocation2 + $0x9e9] sm:$0xff] %vm70_vm0, %v465_v8  ;;  %722 = vst.msk [vmem:[#allocation2 + $0x9f1] sm:$0xff] %vm70_vm0, %v466_v10  ;;  %v472_v19 = vld [vmem:[#allocation3 + $0x7c8] sm:$0xff] }
 0x117   :  { %v471_v14 = vld [vmem:[#allocation3 + $0x7c0] sm:$0xff]  ;;  %v473_v20 = vld [vmem:[#allocation3 + $0x7d0] sm:$0xff]  ;;  %v474_v23 = vld [vmem:[#allocation3 + $0x7d8] sm:$0xff]  ;;  %728 = vst.msk [vmem:[#allocation2 + $0xa31] sm:$0xff] %vm70_vm0, %v472_v19  ;;  %v8840_v24 = vpop.permute.xlu1 %6935  ;;  %v7229_v25 = vpack.i.bf16 %v1184_v13, %v1182_v11 }
 0x118   :  { %7215 = vrot.lane.b32.xlu1 %v7214_v60, %s8242_s16  ;;  %727 = vst.msk [vmem:[#allocation2 + $0xa29] sm:$0xff] %vm70_vm0, %v471_v14  ;;  %v1186_v21 = vld [vmem:[#allocation2 + $0x5c8] ss:$2 sm:$0xff]  ;;  %v1188_v22 = vld [vmem:[#allocation2 + $0x5d8] ss:$2 sm:$0xff]  ;;  %729 = vst.msk [vmem:[#allocation2 + $0xa39] sm:$0xff] %vm70_vm0, %v473_v20 }
 0x119   :  { %7220 = vrot.lane.b32.xlu0 %v7219_v7, %s8242_s16  ;;  %730 = vst.msk [vmem:[#allocation2 + $0xa41] sm:$0xff] %vm70_vm0, %v474_v23  ;;  %v1190_v27 = vld [vmem:[#allocation2 + $0x618] ss:$2 sm:$0xff]  ;;  %v1192_v29 = vld [vmem:[#allocation2 + $0x628] ss:$2 sm:$0xff]  ;;  %v8843_v30 = vpop.permute.xlu0 %6940  ;;  %v7234_v31 = vpack.i.bf16 %v1188_v22, %v1186_v21 }
 0x11a   :  { %v1194_v32 = vld [vmem:[#allocation2 + $0x668] ss:$2 sm:$0xff]  ;;  %v1196_v33 = vld [vmem:[#allocation2 + $0x678] ss:$2 sm:$0xff]  ;;  %v7239_v37 = vpack.i.bf16 %v1192_v29, %v1190_v27 }
 0x11b   :  { %v1198_v40 = vld [vmem:[#allocation2 + $0x6b8] ss:$2 sm:$0xff]  ;;  %v1200_v41 = vld [vmem:[#allocation2 + $0x6c8] ss:$2 sm:$0xff]  ;;  %v7244_v43 = vpack.i.bf16 %v1196_v33, %v1194_v32 }
 0x11c   :  { %7225 = vrot.lane.b32.xlu1 %v7224_v16, %s8242_s16  ;;  %v8847_v36 = vpop.permute.xlu1 %6945  ;;  %v1202_v44 = vld [vmem:[#allocation2 + $0x708] ss:$2 sm:$0xff]  ;;  %v1204_v45 = vld [vmem:[#allocation2 + $0x718] ss:$2 sm:$0xff]  ;;  %v7249_v50 = vpack.i.bf16 %v1200_v41, %v1198_v40 }
 0x11d   :  { %7230 = vrot.lane.b32.xlu0 %v7229_v25, %s8242_s16  ;;  %v1206_v51 = vld [vmem:[#allocation2 + $0x758] ss:$2 sm:$0xff]  ;;  %v1208_v52 = vld [vmem:[#allocation2 + $0x768] ss:$2 sm:$0xff]  ;;  %v7254_v55 = vpack.i.bf16 %v1204_v45, %v1202_v44 }
 0x11e   :  { %v8849_v42 = vpop.permute.xlu0 %6950  ;;  %v1210_v56 = vld [vmem:[#allocation2 + $0x7a8] ss:$2 sm:$0xff]  ;;  %v1212_v58 = vld [vmem:[#allocation2 + $0x7b8] ss:$2 sm:$0xff]  ;;  %v7259_v61 = vpack.i.bf16 %v1208_v52, %v1206_v51 }
 0x11f   :  { %v1214_v63 = vld [vmem:[#allocation2 + $0x7f8] ss:$2 sm:$0xff]  ;;  %v1216_v1 = vld [vmem:[#allocation2 + $0x808] ss:$2 sm:$0xff]  ;;  %v7264_v3 = vpack.i.bf16 %v1212_v58, %v1210_v56  ;;  %v1248_v56 = vld [vmem:[#allocation2 + $0x39] ss:$2 sm:$0xff] }
 0x120   :  { %7235 = vrot.lane.b32.xlu1 %v7234_v31, %s8242_s16  ;;  %v1218_v5 = vld [vmem:[#allocation2 + $0x848] ss:$2 sm:$0xff]  ;;  %v1220_v7 = vld [vmem:[#allocation2 + $0x858] ss:$2 sm:$0xff]  ;;  %v7269_v10 = vpack.i.bf16 %v1216_v1, %v1214_v63  ;;  %v1250_v63 = vld [vmem:[#allocation2 + $0x79] ss:$2 sm:$0xff] }
 0x121   :  { %7240 = vrot.lane.b32.xlu0 %v7239_v37, %s8242_s16  ;;  %v8853_v47 = vpop.permute.xlu1 %6955  ;;  %v1222_v11 = vld [vmem:[#allocation2 + $0x898] ss:$2 sm:$0xff]  ;;  %v1224_v13 = vld [vmem:[#allocation2 + $0x8a8] ss:$2 sm:$0xff]  ;;  %v7274_v16 = vpack.i.bf16 %v1220_v7, %v1218_v5  ;;  %v1252_v1 = vld [vmem:[#allocation2 + $0x89] ss:$2 sm:$0xff] }
 0x122   :  { %v1226_v19 = vld [vmem:[#allocation2 + $0x8e8] ss:$2 sm:$0xff]  ;;  %v1228_v20 = vld [vmem:[#allocation2 + $0x8f8] ss:$2 sm:$0xff]  ;;  %v7279_v22 = vpack.i.bf16 %v1224_v13, %v1222_v11  ;;  %v1254_v7 = vld [vmem:[#allocation2 + $0xc9] ss:$2 sm:$0xff]  ;;  %v7314_v13 = vpack.i.bf16 %v1252_v1, %v1250_v63 }
 0x123   :  { %v8855_v53 = vpop.permute.xlu0 %6960  ;;  %v1230_v23 = vld [vmem:[#allocation2 + $0x938] ss:$2 sm:$0xff]  ;;  %v1232_v25 = vld [vmem:[#allocation2 + $0x948] ss:$2 sm:$0xff]  ;;  %v7284_v29 = vpack.i.bf16 %v1228_v20, %v1226_v19  ;;  %v1260_v19 = vld [vmem:[#allocation2 + $0x129] ss:$2 sm:$0xff] }
 0x124   :  { %7245 = vrot.lane.b32.xlu1 %v7244_v43, %s8242_s16  ;;  %v1234_v31 = vld [vmem:[#allocation2 + $0x988] ss:$2 sm:$0xff]  ;;  %v1236_v32 = vld [vmem:[#allocation2 + $0x998] ss:$2 sm:$0xff]  ;;  %v7289_v37 = vpack.i.bf16 %v1232_v25, %v1230_v23  ;;  %v1262_v23 = vld [vmem:[#allocation2 + $0x169] ss:$2 sm:$0xff] }
 0x125   :  { %7250 = vrot.lane.b32.xlu0 %v7249_v50, %s8242_s16  ;;  %v1238_v40 = vld [vmem:[#allocation2 + $0x9d8] ss:$2 sm:$0xff]  ;;  %v1240_v41 = vld [vmem:[#allocation2 + $0x9e8] ss:$2 sm:$0xff]  ;;  %v7294_v44 = vpack.i.bf16 %v1236_v32, %v1234_v31  ;;  %v1264_v25 = vld [vmem:[#allocation2 + $0x179] ss:$2 sm:$0xff] }
 0x126   :  { %v8859_v60 = vpop.permute.xlu1 %6965  ;;  %v1242_v45 = vld [vmem:[#allocation2 + $0xa28] ss:$2 sm:$0xff]  ;;  %v1244_v50 = vld [vmem:[#allocation2 + $0xa38] ss:$2 sm:$0xff]  ;;  %v7299_v52 = vpack.i.bf16 %v1240_v41, %v1238_v40  ;;  %v1266_v32 = vld [vmem:[#allocation2 + $0x1b9] ss:$2 sm:$0xff]  ;;  %v7329_v41 = vpack.i.bf16 %v1264_v25, %v1262_v23 }
 0x127   :  { %v8861_v2 = vpop.permute.xlu0 %6970  ;;  %v1278_v1 = vld [vmem:[#allocation2 + $0x2a9] ss:$2 sm:$0xff]  ;;  %v1288_v25 = vld [vmem:[#allocation2 + $0x359] ss:$2 sm:$0xff]  ;;  %v771_v18 = vld [vmem:[#allocation2 + $0x2d0] ss:$2 sm:$0xff] }
 0x128   :  { %7255 = vrot.lane.b32.xlu1 %v7254_v55, %s8242_s16  ;;  %v1246_v55 = vld [vmem:[#allocation2 + $0x29] ss:$2 sm:$0xff]  ;;  %v777_v12 = vld [vmem:[#allocation2 + $0x330] ss:$2 sm:$0xff]  ;;  %v1512_v46 = vld [vmem:[#allocation2 + $0x100] ss:$2 sm:$0xff] }
 0x129   :  { %7260 = vrot.lane.b32.xlu0 %v7259_v61, %s8242_s16  ;;  %v7304_v61 = vpack.i.bf16 %v1244_v50, %v1242_v45  ;;  %v7309_v5 = vpack.i.bf16 %v1248_v56, %v1246_v55  ;;  %v1272_v45 = vld [vmem:[#allocation2 + $0x219] ss:$2 sm:$0xff]  ;;  %v1276_v56 = vld [vmem:[#allocation2 + $0x269] ss:$2 sm:$0xff]  ;;  %v1386_v62 = vld [vmem:[#allocation2 + $0x11a] ss:$2 sm:$0xff] }
 0x12a   :  { %v8865_v8 = vpop.permute.xlu1 %6975  ;;  %v1274_v55 = vld [vmem:[#allocation2 + $0x259] ss:$2 sm:$0xff]  ;;  %v1286_v23 = vld [vmem:[#allocation2 + $0x349] ss:$2 sm:$0xff] }
 0x12b   :  { %v8867_v14 = vpop.permute.xlu0 %6980 }
 0x12c   :  { %7265 = vrot.lane.b32.xlu1 %v7264_v3, %s8242_s16 }
 0x12d   :  { %7270 = vrot.lane.b32.xlu0 %v7269_v10, %s8242_s16  ;;  %v1256_v10 = vld [vmem:[#allocation2 + $0xd9] ss:$2 sm:$0xff] }
 0x12e   :  { %v8871_v21 = vpop.permute.xlu1 %6985 }
 0x12f   :  { %13086 = vst [vmem:[#allocation24_spill] sm:$0xff] %v8871_v21  ;;  %v8873_v27 = vpop.permute.xlu0 %6990 }
 0x130   :  { %13087 = vst [vmem:[#allocation25_spill] sm:$0xff] %v8873_v27  ;;  %7275 = vrot.lane.b32.xlu1 %v7274_v16, %s8242_s16  ;;  %v1258_v16 = vld [vmem:[#allocation2 + $0x119] ss:$2 sm:$0xff]  ;;  %v773_v27 = vld [vmem:[#allocation2 + $0x2e0] ss:$2 sm:$0xff] }
 0x131   :  { %7280 = vrot.lane.b32.xlu0 %v7279_v22, %s8242_s16  ;;  %v7319_v22 = vpack.i.bf16 %v1256_v10, %v1254_v7  ;;  %v7324_v31 = vpack.i.bf16 %v1260_v19, %v1258_v16  ;;  %v7344_v10 = vpack.i.bf16 %v1276_v56, %v1274_v55  ;;  %v1284_v16 = vld [vmem:[#allocation2 + $0x309] ss:$2 sm:$0xff] }
 0x132   :  { %v8877_v33 = vpop.permute.xlu1 %6995  ;;  %v348_v55 = vld [vmem:[#allocation3 + $0x3e8] sm:$0xff]  ;;  %v349_v56 = vld [vmem:[#allocation3 + $0x3f0] sm:$0xff] }
 0x133   :  { %13088 = vst [vmem:[#allocation26_spill] sm:$0xff] %v8877_v33  ;;  %v8879_v43 = vpop.permute.xlu0 %7000  ;;  %604 = vst.msk [vmem:[#allocation2 + $0x509] sm:$0xff] %vm70_vm0, %v348_v55  ;;  %v1506_v55 = vld [vmem:[#allocation2 + $0xa0] ss:$2 sm:$0xff]  ;;  %v6873_v33 = vunpack.i.h.bf16 %v8754_v34 }
 0x134   :  { %13089 = vst [vmem:[#allocation27_spill] sm:$0xff] %v8879_v43  ;;  %7285 = vrot.lane.b32.xlu1 %v7284_v29, %s8242_s16  ;;  %605 = vst.msk [vmem:[#allocation2 + $0x511] sm:$0xff] %vm70_vm0, %v349_v56  ;;  %v1762_v43 = vld [vmem:[#allocation2 + $0xa2] ss:$2 sm:$0xff] }
 0x135   :  { %7290 = vrot.lane.b32.xlu0 %v7289_v37, %s8242_s16  ;;  %v1268_v37 = vld [vmem:[#allocation2 + $0x1c9] ss:$2 sm:$0xff] }
 0x136   :  { %v8883_v51 = vpop.permute.xlu1 %7005 }
 0x137   :  { %13090 = vst [vmem:[#allocation28_spill] sm:$0xff] %v8883_v51  ;;  %v8885_v58 = vpop.permute.xlu0 %7010  ;;  %v1636_v51 = vld [vmem:[#allocation2 + $0xb1] ss:$2 sm:$0xff] }
 0x138   :  { %13091 = vst [vmem:[#allocation29_spill] sm:$0xff] %v8885_v58  ;;  %7295 = vrot.lane.b32.xlu1 %v7294_v44, %s8242_s16  ;;  %v1270_v44 = vld [vmem:[#allocation2 + $0x209] ss:$2 sm:$0xff] }
 0x139   :  { %7300 = vrot.lane.b32.xlu0 %v7299_v52, %s8242_s16  ;;  %v7334_v52 = vpack.i.bf16 %v1268_v37, %v1266_v32  ;;  %v7339_v63 = vpack.i.bf16 %v1272_v45, %v1270_v44  ;;  %v347_v37 = vld [vmem:[#allocation3 + $0x3e0] sm:$0xff] }
 0x13a   :  { %v8889_v3 = vpop.permute.xlu1 %7015  ;;  %v1376_v44 = vld [vmem:[#allocation2 + $0x3a] ss:$2 sm:$0xff]  ;;  %603 = vst.msk [vmem:[#allocation2 + $0x501] sm:$0xff] %vm70_vm0, %v347_v37  ;;  %v1634_v58 = vld [vmem:[#allocation2 + $0xa1] ss:$2 sm:$0xff] }
 0x13b   :  { %13092 = vst [vmem:[#allocation30_spill] sm:$0xff] %v8889_v3  ;;  %v8891_v11 = vpop.permute.xlu0 %7020  ;;  %v1504_v37 = vld [vmem:[#allocation2 + $0x60] ss:$2 sm:$0xff] }
 0x13c   :  { %13093 = vst [vmem:[#allocation31_spill] sm:$0xff] %v8891_v11  ;;  %7305 = vrot.lane.b32.xlu1 %v7304_v61, %s8242_s16  ;;  %v1632_v11 = vld [vmem:[#allocation2 + $0x61] ss:$2 sm:$0xff] }
 0x13d   :  { %7310 = vrot.lane.b32.xlu0 %v7309_v5, %s8243_s17  ;;  %v1280_v5 = vld [vmem:[#allocation2 + $0x2b9] ss:$2 sm:$0xff] }
 0x13e   :  { %v8895_v20 = vpop.permute.xlu1 %7025 }
 0x13f   :  { %13094 = vst [vmem:[#allocation32_spill] sm:$0xff] %v8895_v20  ;;  %v8897_v29 = vpop.permute.xlu0 %7030  ;;  %v1508_v20 = vld [vmem:[#allocation2 + $0xb0] ss:$2 sm:$0xff] }
 0x140   :  { %7315 = vrot.lane.b32.xlu1 %v7314_v13, %s8243_s17  ;;  %v1282_v13 = vld [vmem:[#allocation2 + $0x2f9] ss:$2 sm:$0xff] }
 0x141   :  { %7320 = vrot.lane.b32.xlu0 %v7319_v22, %s8243_s17  ;;  %v7349_v22 = vpack.i.bf16 %v1280_v5, %v1278_v1  ;;  %v7354_v32 = vpack.i.bf16 %v1284_v16, %v1282_v13  ;;  %v1380_v1 = vld [vmem:[#allocation2 + $0x8a] ss:$2 sm:$0xff] }
 0x142   :  { %v8901_v40 = vpop.permute.xlu1 %7035  ;;  %v1502_v13 = vld [vmem:[#allocation2 + $0x50] ss:$2 sm:$0xff] }
 0x143   :  { %v8903_v50 = vpop.permute.xlu0 %7040  ;;  %v350_v16 = vld [vmem:[#allocation3 + $0x3f8] sm:$0xff] }
 0x144   :  { %7325 = vrot.lane.b32.xlu1 %v7324_v31, %s8243_s17  ;;  %606 = vst.msk [vmem:[#allocation2 + $0x519] sm:$0xff] %vm70_vm0, %v350_v16 }
 0x145   :  { %7330 = vrot.lane.b32.xlu0 %v7329_v41, %s8243_s17  ;;  %v1374_v41 = vld [vmem:[#allocation2 + $0x2a] ss:$2 sm:$0xff] }
 0x146   :  { %v8907_v61 = vpop.permute.xlu1 %7045 }
 0x147   :  { %v8909_v7 = vpop.permute.xlu0 %7050 }
 0x148   :  { %7335 = vrot.lane.b32.xlu1 %v7334_v52, %s8243_s17  ;;  %v7359_v52 = vpack.i.bf16 %v1288_v25, %v1286_v23 }
 0x149   :  { %7340 = vrot.lane.b32.xlu0 %v7339_v63, %s8243_s17  ;;  %v1378_v63 = vld [vmem:[#allocation2 + $0x7a] ss:$2 sm:$0xff] }
 0x14a   :  { %v8913_v19 = vpop.permute.xlu1 %7055  ;;  %v7369_v25 = vpack.i.bf16 %v1380_v1, %v1378_v63  ;;  %v7379_v1 = vpack.i.bf16 %v1508_v20, %v1506_v55  ;;  %v1764_v20 = vld [vmem:[#allocation2 + $0xb2] ss:$2 sm:$0xff] }
 0x14b   :  { %13095 = vst [vmem:[#allocation33_spill] sm:$0xff] %v8913_v19  ;;  %v8915_v31 = vpop.permute.xlu0 %7060  ;;  %v767_v55 = vld [vmem:[#allocation2 + $0x280] ss:$2 sm:$0xff]  ;;  %v7399_v4 = vpack.i.bf16 %v1764_v20, %v1762_v43 }
 0x14c   :  { %13096 = vst [vmem:[#allocation34_spill] sm:$0xff] %v8915_v31  ;;  %7345 = vrot.lane.b32.xlu1 %v7344_v10, %s8243_s17  ;;  %v7364_v10 = vpack.i.bf16 %v1376_v44, %v1374_v41  ;;  %v8110_v41 = vld [vmem:[#allocation6 + $0x8] sm:$0x3f]   ;;  %v8245_v44 = vmov 65535  }
 0x14d   :  { %7350 = vrot.lane.b32.xlu0 %v7349_v22, %s8243_s17  ;;  %v8109_v22 = vld [vmem:[#allocation6] sm:$0xff]   ;;  %v4598_v16 = vsel %vm4596_vm3, 4294967295, %v8245_v44 }
 0x14e   :  { %v8920_v45 = vpop.permute.xlu1 %7065  ;;  %6738 = vmatprep.subr.bf16.mxu0 %v8109_v22  ;;  %6806 = vmatprep.subr.bf16.mxu1 %v8109_v22  ;;  %v4599_v3 = vsel %vm4597_vm4, %v4598_v16, 0  ;;  %v1760_v44 = vld [vmem:[#allocation2 + $0x62] ss:$2 sm:$0xff]  ;;  %v1640_v31 = vld [vmem:[#allocation2 + $0x101] ss:$2 sm:$0xff] }
 0x14f   :  { %13097 = vst [vmem:[#allocation35_spill] sm:$0xff] %v8920_v45  ;;  %v8924_v5 = vpop.permute.xlu0 %7070  ;;  %6739 = vmatpush3.bf16.msra.mxu0 %v8109_v22  ;;  %6808 = vmatpush3.bf16.msra.mxu1 %v8109_v22  ;;  %v769_v16 = vld [vmem:[#allocation2 + $0x290] ss:$2 sm:$0xff]  ;;  %v1638_v45 = vld [vmem:[#allocation2 + $0xf1] ss:$2 sm:$0xff] }
 0x150   :  { %13098 = vst [vmem:[#allocation36_spill] sm:$0xff] %v8924_v5  ;;  %7355 = vrot.lane.b32.xlu1 %v7354_v32, %s8243_s17  ;;  %v7374_v32 = vpack.i.bf16 %v1504_v37, %v1502_v13  ;;  %v4601_v13 = vand.u32 %v8110_v41, %v4599_v3  ;;  %v1758_v37 = vld [vmem:[#allocation2 + $0x52] ss:$2 sm:$0xff]  ;;  %v6883_v41 = vunpack.i.h.bf16 %v8764_v48  ;;  %v6912_v5 = vunpack.i.l.bf16 %v8804_v38 }
 0x151   :  { %7360 = vrot.lane.b32.xlu0 %v7359_v52, %s8243_s17  ;;  %v1630_v52 = vld [vmem:[#allocation2 + $0x51] ss:$2 sm:$0xff]  ;;  %v7394_v3 = vpack.i.bf16 %v1760_v44, %v1758_v37 }
 0x152   :  { %v8929_v23 = vpop.permute.xlu1 %7075  ;;  %6740 = vmatprep.subr.bf16.mxu0 %v4601_v13  ;;  %6807 = vmatprep.subr.bf16.mxu1 %v4601_v13  ;;  %v8970_v20 = vsel %vm70_vm0, %v777_v12, %v6883_v41  ;;  %v6897_v41 = vunpack.i.l.bf16 %v8784_v9 }
 0x153   :  { %13099 = vst [vmem:[#allocation37_spill] sm:$0xff] %v8929_v23  ;;  %v8931_v56 = vpop.permute.xlu0 %7080  ;;  %6741 = vmatpush3.bf16.msra.mxu0 %v4601_v13  ;;  %6809 = vmatpush3.bf16.msra.mxu1 %v4601_v13  ;;  %v8955_v13 = vsel %vm70_vm0, %v769_v16, %v6873_v33  ;;  %v6882_v33 = vunpack.i.l.bf16 %v8764_v48  ;;  %v779_v16 = vld [vmem:[#allocation2 + $0x370] ss:$2 sm:$0xff]  ;;  %v6892_v48 = vunpack.i.l.bf16 %v8777_v0  ;;  %v6913_v23 = vunpack.i.h.bf16 %v8804_v38 }
 0x154   :  { %13100 = vst [vmem:[#allocation38_spill] sm:$0xff] %v8931_v56  ;;  %7365 = vrot.lane.b32.xlu1 %v7364_v10, %s8244_s18  ;;  %v7384_v10 = vpack.i.bf16 %v1632_v11, %v1630_v52  ;;  %v1382_v52 = vld [vmem:[#allocation2 + $0xca] ss:$2 sm:$0xff] }
 0x155   :  { %7370 = vrot.lane.b32.xlu0 %v7369_v25, %s8244_s18  ;;  %v7389_v25 = vpack.i.bf16 %v1636_v51, %v1634_v58  ;;  %v6878_v51 = vunpack.i.h.bf16 %v8761_v39  ;;  %v6877_v58 = vunpack.i.l.bf16 %v8761_v39  ;;  %v775_v39 = vld [vmem:[#allocation2 + $0x320] ss:$2 sm:$0xff] }
 0x156   :  { %v8935_v63 = vpop.permute.xlu1 %7085  ;;  %v797_v56 = vld [vmem:[#allocation2 + $0x4c0] ss:$2 sm:$0xff] }
 0x157   :  { %13101 = vst [vmem:[#allocation39_spill] sm:$0xff] %v8935_v63  ;;  %v8937_v26 = vpop.permute.xlu0 %7090  ;;  %v8967_v43 = vsel %vm70_vm0, %v771_v18, %v6877_v58  ;;  %v6898_v58 = vunpack.i.h.bf16 %v8784_v9  ;;  %v6902_v63 = vunpack.i.l.bf16 %v8791_v17  ;;  %v8990_v9 = vsel %vm70_vm0, %v775_v39, %v6882_v33  ;;  %v801_v39 = vld [vmem:[#allocation2 + $0x560] ss:$2 sm:$0xff]  ;;  %v805_v33 = vld [vmem:[#allocation2 + $0x5b0] ss:$2 sm:$0xff] }
 0x158   :  { %13102 = vst [vmem:[#allocation40_spill] sm:$0xff] %v8937_v26  ;;  %7375 = vrot.lane.b32.xlu1 %v7374_v32, %s8246_s19  ;;  %v6872_v32 = vunpack.i.l.bf16 %v8754_v34  ;;  %v793_v26 = vld [vmem:[#allocation2 + $0x470] ss:$2 sm:$0xff] }
 0x159   :  { %7380 = vrot.lane.b32.xlu0 %v7379_v1, %s8246_s19  ;;  %v1384_v1 = vld [vmem:[#allocation2 + $0xda] ss:$2 sm:$0xff] }
 0x15a   :  { %v8941_v22 = vpop.permute.xlu1 %7095  ;;  %v8958_v37 = vsel %vm70_vm0, %v767_v55, %v6872_v32  ;;  %v7404_v54 = vpack.i.bf16 %v1384_v1, %v1382_v52  ;;  %v781_v55 = vld [vmem:[#allocation2 + $0x380] ss:$2 sm:$0xff]  ;;  %v1510_v32 = vld [vmem:[#allocation2 + $0xf0] ss:$2 sm:$0xff] }
 0x15b   :  { %13103 = vst [vmem:[#allocation41_spill] sm:$0xff] %v8941_v22  ;;  %v8945_v11 = vpop.permute.xlu0 %7100  ;;  %v783_v52 = vld [vmem:[#allocation2 + $0x3c0] ss:$2 sm:$0xff]  ;;  %v785_v1 = vld [vmem:[#allocation2 + $0x3d0] ss:$2 sm:$0xff]  ;;  %v8996_v19 = vsel %vm70_vm0, %v781_v55, %v6888_v35 }
 0x15c   :  { %13104 = vst [vmem:[#allocation42_spill] sm:$0xff] %v8945_v11  ;;  %7385 = vrot.lane.b32.xlu1 %v7384_v10, %s8247_s20  ;;  %v1388_v10 = vld [vmem:[#allocation2 + $0x12a] ss:$2 sm:$0xff] }
 0x15d   :  { %7390 = vrot.lane.b32.xlu0 %v7389_v25, %s8247_s20  ;;  %v8964_v25 = vsel %vm70_vm0, %v773_v27, %v6878_v51  ;;  %v6893_v27 = vunpack.i.h.bf16 %v8777_v0  ;;  %v789_v51 = vld [vmem:[#allocation2 + $0x420] ss:$2 sm:$0xff]  ;;  %v7409_v12 = vpack.i.bf16 %v1388_v10, %v1386_v62  ;;  %v1516_v11 = vld [vmem:[#allocation2 + $0x150] ss:$2 sm:$0xff]  ;;  %v6907_v62 = vunpack.i.l.bf16 %v8797_v28 }
 0x15e   :  { %v8952_v34 = vpop.permute.xlu1 %7105  ;;  %v791_v22 = vld [vmem:[#allocation2 + $0x460] ss:$2 sm:$0xff]  ;;  %v7414_v0 = vpack.i.bf16 %v1512_v46, %v1510_v32  ;;  %v9011_v35 = vsel %vm70_vm0, %v789_v51, %v6898_v58 }
 0x15f   :  { %13105 = vst [vmem:[#allocation43_spill] sm:$0xff] %v8952_v34  ;;  %v8960_v44 = vpop.permute.xlu0 %7110  ;;  %v6903_v34 = vunpack.i.h.bf16 %v8791_v17  ;;  %v6918_v17 = vunpack.i.h.bf16 %v8813_v49  ;;  %v9002_v46 = vsel %vm70_vm0, %v785_v1, %v6893_v27  ;;  %13111 = vst [vmem:[#allocation49_spill] sm:$0xff] %v9011_v35  ;;  %v1644_v1 = vld [vmem:[#allocation2 + $0x151] ss:$2 sm:$0xff]  ;;  %v9020_v27 = vsel %vm70_vm0, %v791_v22, %v6902_v63  ;;  %v807_v22 = vld [vmem:[#allocation2 + $0x5f0] ss:$2 sm:$0xff] }
 0x160   :  { %13106 = vst [vmem:[#allocation44_spill] sm:$0xff] %v8960_v44  ;;  %7395 = vrot.lane.b32.xlu1 %v7394_v3, %s8248_s21  ;;  %v6887_v3 = vunpack.i.l.bf16 %v8774_v57  ;;  %v787_v44 = vld [vmem:[#allocation2 + $0x410] ss:$2 sm:$0xff]  ;;  %v1514_v57 = vld [vmem:[#allocation2 + $0x140] ss:$2 sm:$0xff]  ;;  %13109 = vst [vmem:[#allocation47_spill] sm:$0xff] %v9002_v46 }
 0x161   :  { %7400 = vrot.lane.b32.xlu0 %v7399_v4, %s8248_s21  ;;  %v6908_v4 = vunpack.i.h.bf16 %v8797_v28  ;;  %v7419_v38 = vpack.i.bf16 %v1516_v11, %v1514_v57  ;;  %v9014_v55 = vsel %vm70_vm0, %v787_v44, %v6897_v41  ;;  %13114 = vst [vmem:[#allocation52_spill] sm:$0xff] %v9020_v27  ;;  %v7424_v44 = vpack.i.bf16 %v1640_v31, %v1638_v45  ;;  %v1768_v58 = vld [vmem:[#allocation2 + $0x102] ss:$2 sm:$0xff] }
 0x162   :  { %v8977_v18 = vpop.permute.xlu1 %7115  ;;  %v8999_v28 = vsel %vm70_vm0, %v779_v16, %v6887_v3  ;;  %13112 = vst [vmem:[#allocation50_spill] sm:$0xff] %v9014_v55  ;;  %v9017_v16 = vsel %vm70_vm0, %v793_v26, %v6903_v34  ;;  %v1642_v3 = vld [vmem:[#allocation2 + $0x141] ss:$2 sm:$0xff]  ;;  %v9032_v26 = vsel %vm70_vm0, %v801_v39, %v6913_v23  ;;  %v9038_v63 = vsel %vm70_vm0, %v805_v33, %v6918_v17  ;;  %v813_v31 = vld [vmem:[#allocation2 + $0x650] ss:$2 sm:$0xff] }
 0x163   :  { %13107 = vst [vmem:[#allocation45_spill] sm:$0xff] %v8977_v18  ;;  %v8986_v10 = vpop.permute.xlu0 %7120  ;;  %v795_v18 = vld [vmem:[#allocation2 + $0x4b0] ss:$2 sm:$0xff]  ;;  %13113 = vst [vmem:[#allocation51_spill] sm:$0xff] %v9017_v16  ;;  %v6923_v41 = vunpack.i.h.bf16 %v8818_v59  ;;  %v6922_v57 = vunpack.i.l.bf16 %v8818_v59  ;;  %v6928_v45 = vunpack.i.h.bf16 %v8827_v6  ;;  %v811_v23 = vld [vmem:[#allocation2 + $0x640] ss:$2 sm:$0xff]  ;;  %v6933_v17 = vunpack.i.h.bf16 %v8833_v15 }
 0x164   :  { %13108 = vst [vmem:[#allocation46_spill] sm:$0xff] %v8986_v10  ;;  %7405 = vrot.lane.b32.xlu1 %v7404_v54, %s8244_s18  ;;  %v799_v54 = vld [vmem:[#allocation2 + $0x550] ss:$2 sm:$0xff]  ;;  %v9008_v10 = vsel %vm70_vm0, %v783_v52, %v6892_v48  ;;  %v9026_v11 = vsel %vm70_vm0, %v795_v18, %v6907_v62  ;;  %v803_v52 = vld [vmem:[#allocation2 + $0x5a0] ss:$2 sm:$0xff]  ;;  %13118 = vst [vmem:[#allocation56_spill] sm:$0xff] %v9032_v26  ;;  %v7429_v62 = vpack.i.bf16 %v1644_v1, %v1642_v3 }
 0x165   :  { %7410 = vrot.lane.b32.xlu0 %v7409_v12, %s8244_s18  ;;  %v9023_v12 = vsel %vm70_vm0, %v797_v56, %v6908_v4  ;;  %13116 = vst [vmem:[#allocation54_spill] sm:$0xff] %v9026_v11  ;;  %v9035_v34 = vsel %vm70_vm0, %v799_v54, %v6912_v5  ;;  %13120 = vst [vmem:[#allocation58_spill] sm:$0xff] %v9038_v63  ;;  %v6917_v56 = vunpack.i.l.bf16 %v8813_v49  ;;  %v809_v18 = vld [vmem:[#allocation2 + $0x600] ss:$2 sm:$0xff]  ;;  %v815_v4 = vld [vmem:[#allocation2 + $0x690] ss:$2 sm:$0xff]  ;;  %v6927_v49 = vunpack.i.l.bf16 %v8827_v6 }
 0x166   :  { %v9005_v32 = vpop.permute.xlu1 %7125  ;;  %13115 = vst [vmem:[#allocation53_spill] sm:$0xff] %v9023_v12  ;;  %13119 = vst [vmem:[#allocation57_spill] sm:$0xff] %v9035_v34  ;;  %v1766_v48 = vld [vmem:[#allocation2 + $0xf2] ss:$2 sm:$0xff]  ;;  %v6932_v54 = vunpack.i.l.bf16 %v8833_v15  ;;  %v6938_v39 = vunpack.i.h.bf16 %v8840_v24  ;;  %v1770_v59 = vld [vmem:[#allocation2 + $0x142] ss:$2 sm:$0xff]  ;;  %v6942_v3 = vunpack.i.l.bf16 %v8843_v30  ;;  %v6948_v34 = vunpack.i.h.bf16 %v8847_v36 }
 0x167   :  { %13110 = vst [vmem:[#allocation48_spill] sm:$0xff] %v9005_v32  ;;  %v9028_v51 = vpop.permute.xlu0 %7130  ;;  %v1772_v33 = vld [vmem:[#allocation2 + $0x152] ss:$2 sm:$0xff]  ;;  %v6937_v32 = vunpack.i.l.bf16 %v8840_v24  ;;  %v7434_v6 = vpack.i.bf16 %v1768_v58, %v1766_v48  ;;  %v9058_v15 = vsel %vm70_vm0, %v803_v52, %v6917_v56  ;;  %v6947_v11 = vunpack.i.l.bf16 %v8847_v36  ;;  %v9217_v46 = vld [vmem:[#allocation2 + $0x282] ss:$2 sm:$0xff] }
 0x168   :  { %13117 = vst [vmem:[#allocation55_spill] sm:$0xff] %v9028_v51  ;;  %7415 = vrot.lane.b32.xlu1 %v7414_v0, %s8246_s19  ;;  %v817_v0 = vld [vmem:[#allocation2 + $0x6a0] ss:$2 sm:$0xff]  ;;  %v821_v51 = vld [vmem:[#allocation2 + $0x6f0] ss:$2 sm:$0xff]  ;;  %13123 = vst [vmem:[#allocation61_spill] sm:$0xff] %v9058_v15  ;;  %v6953_v24 = vunpack.i.h.bf16 %v8849_v42  ;;  %v9064_v27 = vsel %vm70_vm0, %v809_v18, %v6923_v41  ;;  %v7439_v36 = vpack.i.bf16 %v1772_v33, %v1770_v59 }
 0x169   :  { %7420 = vrot.lane.b32.xlu0 %v7419_v38, %s8246_s19  ;;  %v819_v63 = vld [vmem:[#allocation2 + $0x6e0] ss:$2 sm:$0xff]  ;;  %v823_v26 = vld [vmem:[#allocation2 + $0x730] ss:$2 sm:$0xff]  ;;  %v6943_v38 = vunpack.i.h.bf16 %v8843_v30  ;;  %13124 = vst [vmem:[#allocation62_spill] sm:$0xff] %v9064_v27  ;;  %v9067_v30 = vsel %vm70_vm0, %v807_v22, %v6922_v57  ;;  %v9079_v18 = vsel %vm70_vm0, %v817_v0, %v6933_v17  ;;  %v9082_v22 = vsel %vm70_vm0, %v815_v4, %v6932_v54 }
 0x16a   :  { %v9045_v5 = vpop.permute.xlu1 %7135  ;;  %v1390_v12 = vld [vmem:[#allocation2 + $0x16a] ss:$2 sm:$0xff]  ;;  %v1392_v16 = vld [vmem:[#allocation2 + $0x17a] ss:$2 sm:$0xff]  ;;  %13125 = vst [vmem:[#allocation63_spill] sm:$0xff] %v9067_v30  ;;  %13129 = vst [vmem:[#allocation67_spill] sm:$0xff] %v9079_v18  ;;  %v9085_v41 = vsel %vm70_vm0, %v821_v51, %v6938_v39  ;;  %v6988_v18 = vunpack.i.h.bf16 %v8871_v21 }
 0x16b   :  { %13121 = vst [vmem:[#allocation59_spill] sm:$0xff] %v9045_v5  ;;  %v9054_v1 = vpop.permute.xlu0 %7140  ;;  %v825_v5 = vld [vmem:[#allocation2 + $0x740] ss:$2 sm:$0xff]  ;;  %v829_v52 = vld [vmem:[#allocation2 + $0x790] ss:$2 sm:$0xff]  ;;  %13130 = vst [vmem:[#allocation68_spill] sm:$0xff] %v9082_v22  ;;  %v7444_v51 = vpack.i.bf16 %v1392_v16, %v1390_v12  ;;  %v6958_v16 = vunpack.i.h.bf16 %v8853_v47  ;;  %v6957_v12 = vunpack.i.l.bf16 %v8853_v47 }
 0x16c   :  { %13122 = vst [vmem:[#allocation60_spill] sm:$0xff] %v9054_v1  ;;  %7425 = vrot.lane.b32.xlu1 %v7424_v44, %s8247_s20  ;;  %v9070_v44 = vsel %vm70_vm0, %v813_v31, %v6928_v45  ;;  %v827_v56 = vld [vmem:[#allocation2 + $0x780] ss:$2 sm:$0xff]  ;;  %v9076_v1 = vsel %vm70_vm0, %v811_v23, %v6927_v49  ;;  %13131 = vst [vmem:[#allocation69_spill] sm:$0xff] %v9085_v41  ;;  %v9092_v45 = vsel %vm70_vm0, %v819_v63, %v6937_v32  ;;  %v831_v49 = vld [vmem:[#allocation2 + $0x7d0] ss:$2 sm:$0xff] }
 0x16d   :  { %13126 = vst [vmem:[#allocation64_spill] sm:$0xff] %v9070_v44  ;;  %v833_v48 = vld [vmem:[#allocation2 + $0x7e0] ss:$2 sm:$0xff]  ;;  %7430 = vrot.lane.b32.xlu0 %v7429_v62, %s8247_s20  ;;  %13128 = vst [vmem:[#allocation66_spill] sm:$0xff] %v9076_v1  ;;  %v9095_v62 = vsel %vm70_vm0, %v825_v5, %v6943_v38  ;;  %v9098_v23 = vsel %vm70_vm0, %v823_v26, %v6942_v3  ;;  %v9104_v4 = vsel %vm70_vm0, %v829_v52, %v6948_v34  ;;  %v837_v5 = vld [vmem:[#allocation2 + $0x830] ss:$2 sm:$0xff] }
 0x16e   :  { %v9073_v58 = vpop.permute.xlu1 %7145  ;;  %v9087_v57 = vld [vmem:[#allocation2 + $0x1ba] ss:$2 sm:$0xff]  ;;  %v9089_v31 = vld [vmem:[#allocation2 + $0x1ca] ss:$2 sm:$0xff]  ;;  %13132 = vst [vmem:[#allocation70_spill] sm:$0xff] %v9092_v45  ;;  %13133 = vst [vmem:[#allocation71_spill] sm:$0xff] %v9095_v62  ;;  %v9107_v17 = vsel %vm70_vm0, %v827_v56, %v6947_v11  ;;  %v9110_v32 = vsel %vm70_vm0, %v833_v48, %v6953_v24  ;;  %v6952_v63 = vunpack.i.l.bf16 %v8849_v42  ;;  %v6963_v11 = vunpack.i.h.bf16 %v8855_v53 }
 0x16f   :  { %13127 = vst [vmem:[#allocation65_spill] sm:$0xff] %v9073_v58  ;;  %13134 = vst [vmem:[#allocation72_spill] sm:$0xff] %v9098_v23  ;;  %v9100_v0 = vpop.permute.xlu0 %7150  ;;  %v835_v26 = vld [vmem:[#allocation2 + $0x820] ss:$2 sm:$0xff]  ;;  %v9113_v39 = vld [vmem:[#allocation2 + $0x190] ss:$2 sm:$0xff]  ;;  %v6962_v24 = vunpack.i.l.bf16 %v8855_v53  ;;  %v6968_v52 = vunpack.i.h.bf16 %v8859_v60  ;;  %v6967_v56 = vunpack.i.l.bf16 %v8859_v60  ;;  %v6973_v48 = vunpack.i.h.bf16 %v8861_v2 }
 0x170   :  { %13135 = vst [vmem:[#allocation73_spill] sm:$0xff] %v9100_v0  ;;  %7435 = vrot.lane.b32.xlu1 %v7434_v6, %s8248_s21  ;;  %13136 = vst [vmem:[#allocation74_spill] sm:$0xff] %v9104_v4  ;;  %v841_v54 = vld [vmem:[#allocation2 + $0x880] ss:$2 sm:$0xff]  ;;  %v839_v34 = vld [vmem:[#allocation2 + $0x870] ss:$2 sm:$0xff]  ;;  %v7449_v6 = vpack.i.bf16 %v9089_v31, %v9087_v57  ;;  %v6977_v57 = vunpack.i.l.bf16 %v8865_v8  ;;  %v6983_v41 = vunpack.i.h.bf16 %v8867_v14 }
 0x171   :  { %13137 = vst [vmem:[#allocation75_spill] sm:$0xff] %v9107_v17  ;;  %13138 = vst [vmem:[#allocation76_spill] sm:$0xff] %v9110_v32  ;;  %v9115_v59 = vld [vmem:[#allocation2 + $0x1a0] ss:$2 sm:$0xff]  ;;  %v845_v33 = vld [vmem:[#allocation2 + $0x8d0] ss:$2 sm:$0xff]  ;;  %7440 = vrot.lane.b32.xlu0 %v7439_v36, %s8248_s21  ;;  %v6972_v36 = vunpack.i.l.bf16 %v8861_v2  ;;  %v9146_v2 = vsel %vm70_vm0, %v831_v49, %v6952_v63  ;;  %v9174_v44 = vsel %vm70_vm0, %v841_v54, %v6963_v11 }
 0x172   :  { %v843_v38 = vld [vmem:[#allocation2 + $0x8c0] ss:$2 sm:$0xff]  ;;  %v9121_v42 = vpop.permute.xlu1 %7155  ;;  %v847_v47 = vld [vmem:[#allocation2 + $0x910] ss:$2 sm:$0xff]  ;;  %v7454_v60 = vpack.i.bf16 %v9115_v59, %v9113_v39  ;;  %v9141_v23 = vld [vmem:[#allocation2 + $0x191] ss:$2 sm:$0xff]  ;;  %v9198_v11 = vsel %vm70_vm0, %v839_v34, %v6962_v24 }
 0x173   :  { %v849_v3 = vld [vmem:[#allocation2 + $0x920] ss:$2 sm:$0xff]  ;;  %13139 = vst [vmem:[#allocation77_spill] sm:$0xff] %v9121_v42  ;;  %v853_v0 = vld [vmem:[#allocation2 + $0x970] ss:$2 sm:$0xff]  ;;  %v6978_v42 = vunpack.i.h.bf16 %v8865_v8  ;;  %v9136_v62 = vpop.permute.xlu0 %7160  ;;  %13141 = vst [vmem:[#allocation79_spill] sm:$0xff] %v9146_v2  ;;  %v6982_v8 = vunpack.i.l.bf16 %v8867_v14  ;;  %v9168_v14 = vsel %vm70_vm0, %v837_v5, %v6958_v16  ;;  %v9171_v2 = vsel %vm70_vm0, %v835_v26, %v6957_v12 }
 0x174   :  { %v851_v58 = vld [vmem:[#allocation2 + $0x960] ss:$2 sm:$0xff]  ;;  %v9131_v17 = vld [vmem:[#allocation2 + $0x1f0] ss:$2 sm:$0xff]  ;;  %13140 = vst [vmem:[#allocation78_spill] sm:$0xff] %v9136_v62  ;;  %7445 = vrot.lane.b32.xlu1 %v7444_v51, %s8244_s18  ;;  %13142 = vst [vmem:[#allocation80_spill] sm:$0xff] %v9168_v14 }
 0x175   :  { %v9129_v32 = vld [vmem:[#allocation2 + $0x1e0] ss:$2 sm:$0xff]  ;;  %v855_v53 = vld [vmem:[#allocation2 + $0x9b0] ss:$2 sm:$0xff]  ;;  %v9143_v45 = vld [vmem:[#allocation2 + $0x1a1] ss:$2 sm:$0xff]  ;;  %7450 = vrot.lane.b32.xlu0 %v7449_v6, %s8244_s18  ;;  %v9207_v6 = vsel %vm70_vm0, %v849_v3, %v6973_v48  ;;  %v9229_v3 = vsel %vm70_vm0, %v853_v0, %v6978_v42 }
 0x176   :  { %v857_v31 = vld [vmem:[#allocation2 + $0x9c0] ss:$2 sm:$0xff]  ;;  %v861_v4 = vld [vmem:[#allocation2 + $0xa10] ss:$2 sm:$0xff]  ;;  %v9151_v22 = vld [vmem:[#allocation2 + $0x1e1] ss:$2 sm:$0xff]  ;;  %v9177_v27 = vpop.permute.xlu1 %7165  ;;  %v7459_v30 = vpack.i.bf16 %v9131_v17, %v9129_v32  ;;  %v9201_v17 = vsel %vm70_vm0, %v845_v33, %v6968_v52  ;;  %v9204_v32 = vsel %vm70_vm0, %v843_v38, %v6967_v56  ;;  %v9226_v38 = vsel %vm70_vm0, %v847_v47, %v6972_v36 }
 0x177   :  { %v9153_v62 = vld [vmem:[#allocation2 + $0x1f1] ss:$2 sm:$0xff]  ;;  %v9155_v51 = vld [vmem:[#allocation2 + $0x192] ss:$2 sm:$0xff]  ;;  %v9157_v39 = vld [vmem:[#allocation2 + $0x1a2] ss:$2 sm:$0xff]  ;;  %v9232_v52 = vsel %vm70_vm0, %v851_v58, %v6977_v57  ;;  %v9234_v56 = vpop.permute.xlu0 %7170  ;;  %v7464_v48 = vpack.i.bf16 %v9143_v45, %v9141_v23  ;;  %v9252_v42 = vsel %vm70_vm0, %v857_v31, %v6983_v41  ;;  %v9255_v57 = vsel %vm70_vm0, %v855_v53, %v6982_v8 }
 0x178   :  { %v9159_v59 = vld [vmem:[#allocation2 + $0x1e2] ss:$2 sm:$0xff]  ;;  %v9161_v1 = vld [vmem:[#allocation2 + $0x1f2] ss:$2 sm:$0xff]  ;;  %13143 = vst [vmem:[#allocation81_spill] sm:$0xff] %v9171_v2  ;;  %13144 = vst [vmem:[#allocation82_spill] sm:$0xff] %v9174_v44  ;;  %7455 = vrot.lane.b32.xlu1 %v7454_v60, %s8246_s19  ;;  %v9258_v45 = vsel %vm70_vm0, %v861_v4, %v6988_v18  ;;  %v7469_v18 = vpack.i.bf16 %v9153_v62, %v9151_v22  ;;  %v7474_v4 = vpack.i.bf16 %v9157_v39, %v9155_v51 }
 0x179   :  { %v9163_v49 = vld [vmem:[#allocation2 + $0x20a] ss:$2 sm:$0xff]  ;;  %v9165_v63 = vld [vmem:[#allocation2 + $0x21a] ss:$2 sm:$0xff]  ;;  %13145 = vst [vmem:[#allocation83_spill] sm:$0xff] %v9177_v27  ;;  %13146 = vst [vmem:[#allocation84_spill] sm:$0xff] %v9198_v11  ;;  %7460 = vrot.lane.b32.xlu0 %v7459_v30, %s8246_s19  ;;  %v7479_v31 = vpack.i.bf16 %v9161_v1, %v9159_v59  ;;  %v7033_v11 = vunpack.i.h.bf16 %v8897_v29  ;;  %v7038_v62 = vunpack.i.h.bf16 %v8901_v40 }
 0x17a   :  { %v9181_v15 = vld [vmem:[#allocation2 + $0x25a] ss:$2 sm:$0xff]  ;;  %v9183_v55 = vld [vmem:[#allocation2 + $0x26a] ss:$2 sm:$0xff]  ;;  %v9193_v54 = vld [vmem:[#allocation2 + $0x231] ss:$2 sm:$0xff]  ;;  %v9274_v53 = vpop.permute.xlu1 %7175 }
 0x17b   :  { %v9185_v35 = vld [vmem:[#allocation2 + $0x230] ss:$2 sm:$0xff]  ;;  %v9187_v5 = vld [vmem:[#allocation2 + $0x240] ss:$2 sm:$0xff]  ;;  %v9195_v12 = vld [vmem:[#allocation2 + $0x241] ss:$2 sm:$0xff]  ;;  %v9304_v8 = vpop.permute.xlu0 %7180 }
 0x17c   :  { %v9189_v26 = vld [vmem:[#allocation2 + $0x280] ss:$2 sm:$0xff]  ;;  %v9191_v16 = vld [vmem:[#allocation2 + $0x290] ss:$2 sm:$0xff]  ;;  %13147 = vst [vmem:[#allocation85_spill] sm:$0xff] %v9201_v17  ;;  %13148 = vst [vmem:[#allocation86_spill] sm:$0xff] %v9204_v32  ;;  %7465 = vrot.lane.b32.xlu1 %v7464_v48, %s8247_s20  ;;  %v7032_v48 = vunpack.i.l.bf16 %v8897_v29 }
 0x17d   :  { %13149 = vst [vmem:[#allocation87_spill] sm:$0xff] %v9207_v6  ;;  %v9209_v27 = vld [vmem:[#allocation2 + $0x281] ss:$2 sm:$0xff]  ;;  %v9211_v44 = vld [vmem:[#allocation2 + $0x291] ss:$2 sm:$0xff]  ;;  %13151 = vst [vmem:[#allocation89_spill] sm:$0xff] %v9226_v38  ;;  %7470 = vrot.lane.b32.xlu0 %v7469_v18, %s8247_s20 }
 0x17e   :  { %v9213_v2 = vld [vmem:[#allocation2 + $0x232] ss:$2 sm:$0xff]  ;;  %v9215_v14 = vld [vmem:[#allocation2 + $0x242] ss:$2 sm:$0xff]  ;;  %13152 = vst [vmem:[#allocation90_spill] sm:$0xff] %v9229_v3  ;;  %13153 = vst [vmem:[#allocation91_spill] sm:$0xff] %v9232_v52  ;;  %v4014_v30 = vsel %vm3997_vm5, %v8958_v37, %v7032_v48 }
 0x17f   :  { %v9219_v34 = vld [vmem:[#allocation2 + $0x292] ss:$2 sm:$0xff]  ;;  %13154 = vst [vmem:[#allocation92_spill] sm:$0xff] %v9234_v56  ;;  %13157 = vst [vmem:[#allocation95_spill] sm:$0xff] %v9252_v42  ;;  %v9261_v60 = vld [vmem:[#allocation2 + $0x2d1] ss:$2 sm:$0xff] }
 0x180   :  { %v9221_v33 = vld [vmem:[#allocation2 + $0x2aa] ss:$2 sm:$0xff]  ;;  %v9223_v24 = vld [vmem:[#allocation2 + $0x2ba] ss:$2 sm:$0xff]  ;;  %13158 = vst [vmem:[#allocation96_spill] sm:$0xff] %v9255_v57  ;;  %13159 = vst [vmem:[#allocation97_spill] sm:$0xff] %v9258_v45  ;;  %7475 = vrot.lane.b32.xlu1 %v7474_v4, %s8248_s21  ;;  %v7042_v4 = vunpack.i.l.bf16 %v8903_v50 }
 0x181   :  { %13150 = vst [vmem:[#allocation88_spill] sm:$0xff] %v9221_v33  ;;  %v9239_v6 = vld [vmem:[#allocation2 + $0x2fa] ss:$2 sm:$0xff]  ;;  %v9241_v32 = vld [vmem:[#allocation2 + $0x30a] ss:$2 sm:$0xff]  ;;  %13163 = vst [vmem:[#allocation101_spill] sm:$0xff] %v9274_v53  ;;  %v9336_v33 = vpop.permute.xlu1 %7185  ;;  %7480 = vrot.lane.b32.xlu0 %v7479_v31, %s8248_s21  ;;  %v7047_v31 = vunpack.i.l.bf16 %v8907_v61 }
 0x182   :  { %v9243_v47 = vld [vmem:[#allocation2 + $0x2d0] ss:$2 sm:$0xff]  ;;  %v9245_v36 = vld [vmem:[#allocation2 + $0x2e0] ss:$2 sm:$0xff]  ;;  %v9263_v56 = vld [vmem:[#allocation2 + $0x2e1] ss:$2 sm:$0xff] }
 0x183   :  { %v9247_v0 = vld [vmem:[#allocation2 + $0x320] ss:$2 sm:$0xff]  ;;  %v9249_v58 = vld [vmem:[#allocation2 + $0x330] ss:$2 sm:$0xff]  ;;  %v9265_v52 = vld [vmem:[#allocation2 + $0x321] ss:$2 sm:$0xff] }
 0x184   :  { %13155 = vst [vmem:[#allocation93_spill] sm:$0xff] %v9247_v0  ;;  %13156 = vst [vmem:[#allocation94_spill] sm:$0xff] %v9249_v58  ;;  %v9267_v3 = vld [vmem:[#allocation2 + $0x331] ss:$2 sm:$0xff]  ;;  %v9269_v38 = vld [vmem:[#allocation2 + $0x2d2] ss:$2 sm:$0xff] }
 0x185   :  { %13160 = vst [vmem:[#allocation98_spill] sm:$0xff] %v9265_v52  ;;  %13161 = vst [vmem:[#allocation99_spill] sm:$0xff] %v9269_v38  ;;  %v9271_v41 = vld [vmem:[#allocation2 + $0x2e2] ss:$2 sm:$0xff]  ;;  %v9286_v45 = vld [vmem:[#allocation2 + $0x332] ss:$2 sm:$0xff]  ;;  %v7037_v38 = vunpack.i.l.bf16 %v8901_v40  ;;  %v4015_v40 = vsel %vm3997_vm5, %v8955_v13, %v7033_v11  ;;  %v7196_v18 = vpop.permute.xlu1 %7195  ;;  %v4017_v13 = vsel %vm3997_vm5, %v8964_v25, %v7038_v62  ;;  %v7048_v11 = vunpack.i.h.bf16 %v8907_v61 }
 0x186   :  { %13162 = vst [vmem:[#allocation100_spill] sm:$0xff] %v9271_v41  ;;  %v9284_v23 = vld [vmem:[#allocation2 + $0x322] ss:$2 sm:$0xff]  ;;  %v9288_v42 = vld [vmem:[#allocation2 + $0x399] ss:$2 sm:$0xff]  ;;  %13165 = vst [vmem:[#allocation103_spill] sm:$0xff] %v9304_v8  ;;  %v7191_v41 = vpop.permute.xlu0 %7190  ;;  %v7198_v48 = vunpack.i.h.bf16 %v7196_v18 }
 0x187   :  { %v9298_v51 = vld [vmem:[#allocation2 + $0x3a9] ss:$2 sm:$0xff]  ;;  %v9300_v39 = vld [vmem:[#allocation2 + $0x34a] ss:$2 sm:$0xff]  ;;  %v9302_v59 = vld [vmem:[#allocation2 + $0x35a] ss:$2 sm:$0xff]  ;;  %v7193_v29 = vunpack.i.h.bf16 %v7191_v41 }
 0x188   :  { %13164 = vst [vmem:[#allocation102_spill] sm:$0xff] %v9300_v39  ;;  %v9315_v53 = vld [vmem:[#allocation2 + $0x39a] ss:$2 sm:$0xff]  ;;  %v9317_v57 = vld [vmem:[#allocation2 + $0x3aa] ss:$2 sm:$0xff]  ;;  %13168 = vst [vmem:[#allocation106_spill] sm:$0xff] %v9336_v33  ;;  %v7043_v39 = vunpack.i.h.bf16 %v8903_v50  ;;  %v4016_v50 = vsel %vm3997_vm5, %v8967_v43, %v7037_v38  ;;  %v4018_v43 = vsel %vm3997_vm5, %v8990_v9, %v7042_v4  ;;  %v7053_v38 = vunpack.i.h.bf16 %v8909_v7 }
 0x189   :  { %13166 = vst [vmem:[#allocation104_spill] sm:$0xff] %v9315_v53  ;;  %13167 = vst [vmem:[#allocation105_spill] sm:$0xff] %v9317_v57  ;;  %v9319_v21 = vld [vmem:[#allocation2 + $0x370] ss:$2 sm:$0xff]  ;;  %v9328_v8 = vld [vmem:[#allocation2 + $0x380] ss:$2 sm:$0xff]  ;;  %v7192_v53 = vunpack.i.l.bf16 %v7191_v41  ;;  %v9382_v41 = vsel %vm4062_vm6, %v4015_v40, %v7193_v29  ;;  %v7197_v57 = vunpack.i.l.bf16 %v7196_v18  ;;  %v7052_v18 = vunpack.i.l.bf16 %v8909_v7 }
 0x18a   :  { %v9330_v1 = vld [vmem:[#allocation2 + $0x3c0] ss:$2 sm:$0xff]  ;;  %v9332_v17 = vld [vmem:[#allocation2 + $0x3d0] ss:$2 sm:$0xff]  ;;  %v9344_v0 = vld [vmem:[#allocation2 + $0x371] ss:$2 sm:$0xff]  ;;  %v4019_v61 = vsel %vm3997_vm5, %v8970_v20, %v7043_v39  ;;  %v4021_v20 = vsel %vm3997_vm5, %v8996_v19, %v7048_v11  ;;  %v4020_v7 = vsel %vm3997_vm5, %v8999_v28, %v7047_v31 }
 0x18b   :  { %13169 = vst [vmem:[#allocation107_spill] sm:$0xff] %v9344_v0  ;;  %v9346_v58 = vld [vmem:[#allocation2 + $0x381] ss:$2 sm:$0xff]  ;;  %v9358_v52 = vld [vmem:[#allocation2 + $0x3d1] ss:$2 sm:$0xff]  ;;  %v9379_v37 = vsel %vm4062_vm6, %v4014_v30, %v7192_v53  ;;  %v7201_v0 = vpop.permute.xlu0 %7200  ;;  %v13170_v53 = vpack.i.bf16 %v9165_v63, %v9163_v49  ;;  %v9395_v30 = vsel %vm4062_vm6, %v4017_v13, %v7198_v48  ;;  %v9398_v29 = vsel %vm4062_vm6, %v4016_v50, %v7197_v57  ;;  %v7206_v63 = vpop.permute.xlu1 %7205 }
 0x18c   :  { %v9356_v22 = vld [vmem:[#allocation2 + $0x3c1] ss:$2 sm:$0xff]  ;;  %v7203_v25 = vunpack.i.h.bf16 %v7201_v0  ;;  %v7202_v62 = vunpack.i.l.bf16 %v7201_v0  ;;  %v13171_v49 = vpack.i.bf16 %v9183_v55, %v9181_v15  ;;  %v7208_v9 = vunpack.i.h.bf16 %v7206_v63 }
 0x18d   :  { %7485 = vrot.lane.b32.xlu1 %v13170_v53, %s8244_s18  ;;  %v7207_v40 = vunpack.i.l.bf16 %v7206_v63  ;;  %v13173_v39 = vld [vmem:[#allocation33_spill] sm:$0xff]  ;;  %v13174_v48 = vpack.i.bf16 %v9187_v5, %v9185_v35  ;;  %v4022_v28 = vsel %vm3997_vm5, %v9008_v10, %v7052_v18  ;;  %v13177_v31 = vld [vmem:[#allocation47_spill] sm:$0xff]  ;;  %v13179_v35 = vpack.i.bf16 %v9191_v16, %v9189_v26 }
 0x18e   :  { %7490 = vrot.lane.b32.xlu0 %v13171_v49, %s8244_s18  ;;  %v9411_v57 = vsel %vm4062_vm6, %v4018_v43, %v7202_v62  ;;  %v9414_v0 = vsel %vm4062_vm6, %v4019_v61, %v7203_v25  ;;  %v7058_v4 = vunpack.i.h.bf16 %v13173_v39  ;;  %v7057_v55 = vunpack.i.l.bf16 %v13173_v39  ;;  %v13178_v25 = vld [vmem:[#allocation34_spill] sm:$0xff]  ;;  %v13182_v63 = vld [vmem:[#allocation49_spill] sm:$0xff] }
 0x18f   :  { %13172 = vst [vmem:[#allocation108_spill] sm:$0xff] %v9414_v0  ;;  %v7211_v15 = vpop.permute.xlu0 %7210  ;;  %v9427_v13 = vsel %vm4062_vm6, %v4021_v20, %v7208_v9  ;;  %v9430_v50 = vsel %vm4062_vm6, %v4020_v7, %v7207_v40  ;;  %v4023_v53 = vsel %vm3997_vm5, %v13177_v31, %v7053_v38  ;;  %v7063_v62 = vunpack.i.h.bf16 %v13178_v25  ;;  %v7216_v5 = vpop.permute.xlu1 %7215  ;;  %v13183_v9 = vld [vmem:[#allocation50_spill] sm:$0xff]  ;;  %v13184_v20 = vld [vmem:[#allocation35_spill] sm:$0xff] }
 0x190   :  { %13175 = vst [vmem:[#allocation33_spill] sm:$0xff] %v9427_v13  ;;  %13176 = vst [vmem:[#allocation109_spill] sm:$0xff] %v9430_v50  ;;  %v7213_v19 = vunpack.i.h.bf16 %v7211_v15  ;;  %v7212_v11 = vunpack.i.l.bf16 %v7211_v15  ;;  %v7062_v43 = vunpack.i.l.bf16 %v13178_v25  ;;  %v7218_v10 = vunpack.i.h.bf16 %v7216_v5 }
 0x191   :  { %7495 = vrot.lane.b32.xlu1 %v13174_v48, %s8246_s19  ;;  %v7217_v18 = vunpack.i.l.bf16 %v7216_v5  ;;  %v4025_v38 = vsel %vm3997_vm5, %v13182_v63, %v7058_v4  ;;  %v4024_v40 = vsel %vm3997_vm5, %v13183_v9, %v7057_v55  ;;  %v7068_v7 = vunpack.i.h.bf16 %v13184_v20  ;;  %v13194_v63 = vld [vmem:[#allocation53_spill] sm:$0xff] }
 0x192   :  { %7500 = vrot.lane.b32.xlu0 %v13179_v35, %s8246_s19  ;;  %v9443_v61 = vsel %vm4062_vm6, %v4022_v28, %v7212_v11  ;;  %v9446_v49 = vsel %vm4062_vm6, %v4023_v53, %v7213_v19  ;;  %v7067_v26 = vunpack.i.l.bf16 %v13184_v20  ;;  %v13185_v39 = vpack.i.bf16 %v9195_v12, %v9193_v54  ;;  %v13188_v11 = vld [vmem:[#allocation52_spill] sm:$0xff]  ;;  %v13189_v28 = vld [vmem:[#allocation51_spill] sm:$0xff] }
 0x193   :  { %13180 = vst [vmem:[#allocation47_spill] sm:$0xff] %v9443_v61  ;;  %13181 = vst [vmem:[#allocation34_spill] sm:$0xff] %v9446_v49  ;;  %v7221_v16 = vpop.permute.xlu0 %7220  ;;  %v9459_v15 = vsel %vm4062_vm6, %v4025_v38, %v7218_v10  ;;  %v9462_v48 = vsel %vm4062_vm6, %v4024_v40, %v7217_v18  ;;  %v4026_v55 = vsel %vm3997_vm5, %v13188_v11, %v7062_v43  ;;  %v13190_v53 = vld [vmem:[#allocation36_spill] sm:$0xff]  ;;  %v7226_v12 = vpop.permute.xlu1 %7225  ;;  %v13195_v38 = vld [vmem:[#allocation54_spill] sm:$0xff] }
 0x194   :  { %13186 = vst [vmem:[#allocation49_spill] sm:$0xff] %v9459_v15  ;;  %13187 = vst [vmem:[#allocation50_spill] sm:$0xff] %v9462_v48  ;;  %v7223_v4 = vunpack.i.h.bf16 %v7221_v16  ;;  %v7222_v19 = vunpack.i.l.bf16 %v7221_v16  ;;  %v4027_v31 = vsel %vm3997_vm5, %v13189_v28, %v7063_v62  ;;  %v7073_v25 = vunpack.i.h.bf16 %v13190_v53  ;;  %v13196_v40 = vld [vmem:[#allocation37_spill] sm:$0xff] }
 0x195   :  { %7505 = vrot.lane.b32.xlu1 %v13185_v39, %s8247_s20  ;;  %v7072_v35 = vunpack.i.l.bf16 %v13190_v53  ;;  %v13191_v54 = vpack.i.bf16 %v9211_v44, %v9209_v27  ;;  %v7228_v43 = vunpack.i.h.bf16 %v7226_v12  ;;  %v7227_v18 = vunpack.i.l.bf16 %v7226_v12  ;;  %v13200_v11 = vld [vmem:[#allocation57_spill] sm:$0xff] }
 0x196   :  { %v9475_v5 = vsel %vm4062_vm6, %v4026_v55, %v7222_v19  ;;  %v9478_v10 = vsel %vm4062_vm6, %v4027_v31, %v7223_v4  ;;  %v4029_v62 = vsel %vm3997_vm5, %v13194_v63, %v7068_v7  ;;  %v4028_v9 = vsel %vm3997_vm5, %v13195_v38, %v7067_v26  ;;  %v13201_v55 = vld [vmem:[#allocation56_spill] sm:$0xff]  ;;  %v13202_v31 = vld [vmem:[#allocation38_spill] sm:$0xff] }
 0x197   :  { %7510 = vrot.lane.b32.xlu0 %v13191_v54, %s8247_s20  ;;  %13192 = vst [vmem:[#allocation35_spill] sm:$0xff] %v9475_v5  ;;  %13193 = vst [vmem:[#allocation52_spill] sm:$0xff] %v9478_v10  ;;  %v7078_v20 = vunpack.i.h.bf16 %v13196_v40  ;;  %v7077_v27 = vunpack.i.l.bf16 %v13196_v40  ;;  %v7231_v44 = vpop.permute.xlu0 %7230  ;;  %v13197_v16 = vpack.i.bf16 %v9215_v14, %v9213_v2  ;;  %v9491_v39 = vsel %vm4062_vm6, %v4029_v62, %v7228_v43  ;;  %v7236_v14 = vpop.permute.xlu1 %7235  ;;  %v13206_v63 = vld [vmem:[#allocation58_spill] sm:$0xff]  ;;  %v13207_v62 = vld [vmem:[#allocation61_spill] sm:$0xff] }
 0x198   :  { %13198 = vst [vmem:[#allocation51_spill] sm:$0xff] %v9491_v39  ;;  %v9494_v4 = vsel %vm4062_vm6, %v4028_v9, %v7227_v18  ;;  %v7233_v7 = vunpack.i.h.bf16 %v7231_v44  ;;  %v7232_v19 = vunpack.i.l.bf16 %v7231_v44  ;;  %v4030_v26 = vsel %vm3997_vm5, %v13200_v11, %v7072_v35  ;;  %v13208_v9 = vld [vmem:[#allocation39_spill] sm:$0xff]  ;;  %v13209_v44 = vld [vmem:[#allocation88_spill] sm:$0xff] }
 0x199   :  { %7515 = vrot.lane.b32.xlu1 %v13197_v16, %s8248_s21  ;;  %13199 = vst [vmem:[#allocation36_spill] sm:$0xff] %v9494_v4  ;;  %v4031_v28 = vsel %vm3997_vm5, %v13201_v55, %v7073_v25  ;;  %v7083_v53 = vunpack.i.h.bf16 %v13202_v31  ;;  %v7082_v54 = vunpack.i.l.bf16 %v13202_v31  ;;  %v13203_v2 = vpack.i.bf16 %v9219_v34, %v9217_v46  ;;  %v13214_v55 = vld [vmem:[#allocation62_spill] sm:$0xff]  ;;  %v13215_v31 = vld [vmem:[#allocation40_spill] sm:$0xff] }
 0x19a   :  { %v9507_v12 = vsel %vm4062_vm6, %v4030_v26, %v7232_v19  ;;  %v9510_v43 = vsel %vm4062_vm6, %v4031_v28, %v7233_v7  ;;  %v7238_v35 = vunpack.i.h.bf16 %v7236_v14  ;;  %v7237_v18 = vunpack.i.l.bf16 %v7236_v14  ;;  %v13213_v26 = vld [vmem:[#allocation63_spill] sm:$0xff] }
 0x19b   :  { %7520 = vrot.lane.b32.xlu0 %v13203_v2, %s8248_s21  ;;  %13204 = vst [vmem:[#allocation53_spill] sm:$0xff] %v9507_v12  ;;  %13205 = vst [vmem:[#allocation54_spill] sm:$0xff] %v9510_v43  ;;  %v4033_v25 = vsel %vm3997_vm5, %v13206_v63, %v7078_v20  ;;  %v4032_v38 = vsel %vm3997_vm5, %v13207_v62, %v7077_v27  ;;  %v7088_v40 = vunpack.i.h.bf16 %v13208_v9  ;;  %v7087_v46 = vunpack.i.l.bf16 %v13208_v9  ;;  %v7241_v34 = vpop.permute.xlu0 %7240  ;;  %v13219_v62 = vld [vmem:[#allocation64_spill] sm:$0xff]  ;;  %v9868_v48 = vld [vmem:[#allocation2 + $0x501] ss:$2 sm:$0xff] }
 0x19c   :  { %v13210_v16 = vpack.i.bf16 %v9223_v24, %v13209_v44  ;;  %v9523_v7 = vsel %vm4062_vm6, %v4033_v25, %v7238_v35  ;;  %v9526_v19 = vsel %vm4062_vm6, %v4032_v38, %v7237_v18  ;;  %v7243_v20 = vunpack.i.h.bf16 %v7241_v34  ;;  %v7246_v35 = vpop.permute.xlu1 %7245  ;;  %v13220_v38 = vld [vmem:[#allocation66_spill] sm:$0xff] }
 0x19d   :  { %13211 = vst [vmem:[#allocation37_spill] sm:$0xff] %v9523_v7  ;;  %13212 = vst [vmem:[#allocation57_spill] sm:$0xff] %v9526_v19  ;;  %v7242_v11 = vunpack.i.l.bf16 %v7241_v34  ;;  %v4034_v27 = vsel %vm3997_vm5, %v13213_v26, %v7082_v54  ;;  %v4035_v28 = vsel %vm3997_vm5, %v13214_v55, %v7083_v53  ;;  %v7093_v2 = vunpack.i.h.bf16 %v13215_v31  ;;  %v13221_v34 = vld [vmem:[#allocation41_spill] sm:$0xff]  ;;  %v13226_v55 = vld [vmem:[#allocation67_spill] sm:$0xff] }
 0x19e   :  { %7525 = vrot.lane.b32.xlu1 %v13210_v16, %s8244_s18  ;;  %v7092_v14 = vunpack.i.l.bf16 %v13215_v31  ;;  %v13216_v24 = vpack.i.bf16 %v9241_v32, %v9239_v6  ;;  %v9542_v63 = vsel %vm4062_vm6, %v4035_v28, %v7243_v20  ;;  %v7248_v54 = vunpack.i.h.bf16 %v7246_v35  ;;  %v13227_v31 = vld [vmem:[#allocation42_spill] sm:$0xff]  ;;  %v13312_v19 = vld [vmem:[#allocation25_spill] sm:$0xff] }
 0x19f   :  { %v9539_v18 = vsel %vm4062_vm6, %v4034_v27, %v7242_v11  ;;  %13218 = vst [vmem:[#allocation38_spill] sm:$0xff] %v9542_v63  ;;  %v7247_v25 = vunpack.i.l.bf16 %v7246_v35  ;;  %v4037_v53 = vsel %vm3997_vm5, %v13219_v62, %v7088_v40  ;;  %v4036_v9 = vsel %vm3997_vm5, %v13220_v38, %v7087_v46  ;;  %v7251_v6 = vpop.permute.xlu0 %7250  ;;  %v13225_v27 = vld [vmem:[#allocation68_spill] sm:$0xff]  ;;  %v13311_v63 = vld [vmem:[#allocation22_spill] sm:$0xff] }
 0x1a0   :  { %7530 = vrot.lane.b32.xlu0 %v13216_v24, %s8244_s18  ;;  %13217 = vst [vmem:[#allocation56_spill] sm:$0xff] %v9539_v18  ;;  %v7098_v44 = vunpack.i.h.bf16 %v13221_v34  ;;  %v7097_v32 = vunpack.i.l.bf16 %v13221_v34  ;;  %v13222_v16 = vpack.i.bf16 %v9245_v36, %v9243_v47  ;;  %v9555_v20 = vsel %vm4062_vm6, %v4037_v53, %v7248_v54  ;;  %v13228_v47 = vld [vmem:[#allocation94_spill] sm:$0xff]  ;;  %v13229_v36 = vld [vmem:[#allocation93_spill] sm:$0xff]  ;;  %v7256_v62 = vpop.permute.xlu1 %7255 }
 0x1a1   :  { %13223 = vst [vmem:[#allocation58_spill] sm:$0xff] %v9555_v20  ;;  %v9558_v11 = vsel %vm4062_vm6, %v4036_v9, %v7247_v25  ;;  %v7253_v40 = vunpack.i.h.bf16 %v7251_v6  ;;  %v7252_v26 = vunpack.i.l.bf16 %v7251_v6  ;;  %v4038_v46 = vsel %vm3997_vm5, %v13225_v27, %v7092_v14  ;;  %v13233_v9 = vld [vmem:[#allocation69_spill] sm:$0xff]  ;;  %v13234_v34 = vld [vmem:[#allocation70_spill] sm:$0xff] }
 0x1a2   :  { %7535 = vrot.lane.b32.xlu1 %v13222_v16, %s8246_s19  ;;  %13224 = vst [vmem:[#allocation61_spill] sm:$0xff] %v9558_v11  ;;  %v4039_v28 = vsel %vm3997_vm5, %v13226_v55, %v7093_v2  ;;  %v7103_v24 = vunpack.i.h.bf16 %v13227_v31  ;;  %v7102_v35 = vunpack.i.l.bf16 %v13227_v31  ;;  %v13230_v54 = vpack.i.bf16 %v13228_v47, %v13229_v36  ;;  %v13235_v16 = vld [vmem:[#allocation43_spill] sm:$0xff]  ;;  %v13239_v47 = vld [vmem:[#allocation72_spill] sm:$0xff] }
 0x1a3   :  { %v9571_v25 = vsel %vm4062_vm6, %v4038_v46, %v7252_v26  ;;  %v9574_v53 = vsel %vm4062_vm6, %v4039_v28, %v7253_v40  ;;  %v7258_v14 = vunpack.i.h.bf16 %v7256_v62  ;;  %v7257_v38 = vunpack.i.l.bf16 %v7256_v62  ;;  %v7261_v31 = vpop.permute.xlu0 %7260  ;;  %v13240_v36 = vld [vmem:[#allocation71_spill] sm:$0xff]  ;;  %v13241_v62 = vld [vmem:[#allocation44_spill] sm:$0xff] }
 0x1a4   :  { %7540 = vrot.lane.b32.xlu0 %v13230_v54, %s8246_s19  ;;  %13231 = vst [vmem:[#allocation39_spill] sm:$0xff] %v9571_v25  ;;  %13232 = vst [vmem:[#allocation88_spill] sm:$0xff] %v9574_v53  ;;  %v4041_v2 = vsel %vm3997_vm5, %v13233_v9, %v7098_v44  ;;  %v4040_v6 = vsel %vm3997_vm5, %v13234_v34, %v7097_v32  ;;  %v7108_v27 = vunpack.i.h.bf16 %v13235_v16  ;;  %v7107_v55 = vunpack.i.l.bf16 %v13235_v16  ;;  %v13246_v16 = vld [vmem:[#allocation74_spill] sm:$0xff]  ;;  %v753_v53 = vld [vmem:[#allocation2 + $0x150] ss:$2 sm:$0xff] }
 0x1a5   :  { %v13236_v26 = vpack.i.bf16 %v9263_v56, %v9261_v60  ;;  %v9587_v40 = vsel %vm4062_vm6, %v4041_v2, %v7258_v14  ;;  %v9590_v46 = vsel %vm4062_vm6, %v4040_v6, %v7257_v38  ;;  %v7263_v44 = vunpack.i.h.bf16 %v7261_v31  ;;  %v13242_v56 = vld [vmem:[#allocation98_spill] sm:$0xff]  ;;  %v7266_v14 = vpop.permute.xlu1 %7265 }
 0x1a6   :  { %13237 = vst [vmem:[#allocation63_spill] sm:$0xff] %v9587_v40  ;;  %13238 = vst [vmem:[#allocation62_spill] sm:$0xff] %v9590_v46  ;;  %v7262_v28 = vunpack.i.l.bf16 %v7261_v31  ;;  %v4042_v32 = vsel %vm3997_vm5, %v13239_v47, %v7102_v35  ;;  %v4043_v54 = vsel %vm3997_vm5, %v13240_v36, %v7103_v24  ;;  %v7113_v9 = vunpack.i.h.bf16 %v13241_v62  ;;  %v13247_v31 = vld [vmem:[#allocation75_spill] sm:$0xff]  ;;  %v13248_v47 = vld [vmem:[#allocation45_spill] sm:$0xff] }
 0x1a7   :  { %7545 = vrot.lane.b32.xlu1 %v13236_v26, %s8247_s20  ;;  %v7112_v34 = vunpack.i.l.bf16 %v13241_v62  ;;  %v13243_v60 = vpack.i.bf16 %v9267_v3, %v13242_v56  ;;  %v9606_v2 = vsel %vm4062_vm6, %v4043_v54, %v7263_v44  ;;  %v7268_v35 = vunpack.i.h.bf16 %v7266_v14  ;;  %v7271_v62 = vpop.permute.xlu0 %7270  ;;  %v13249_v56 = vld [vmem:[#allocation100_spill] sm:$0xff]  ;;  %v749_v46 = vld [vmem:[#allocation2 + $0x100] ss:$2 sm:$0xff] }
 0x1a8   :  { %v9603_v38 = vsel %vm4062_vm6, %v4042_v32, %v7262_v28  ;;  %13245 = vst [vmem:[#allocation64_spill] sm:$0xff] %v9606_v2  ;;  %v7267_v6 = vunpack.i.l.bf16 %v7266_v14  ;;  %v4045_v24 = vsel %vm3997_vm5, %v13246_v16, %v7108_v27  ;;  %v4044_v26 = vsel %vm3997_vm5, %v13247_v31, %v7107_v55  ;;  %v13250_v28 = vld [vmem:[#allocation99_spill] sm:$0xff]  ;;  %v13255_v16 = vld [vmem:[#allocation76_spill] sm:$0xff] }
 0x1a9   :  { %7550 = vrot.lane.b32.xlu0 %v13243_v60, %s8247_s20  ;;  %13244 = vst [vmem:[#allocation40_spill] sm:$0xff] %v9603_v38  ;;  %v7118_v36 = vunpack.i.h.bf16 %v13248_v47  ;;  %v7117_v3 = vunpack.i.l.bf16 %v13248_v47  ;;  %v13251_v32 = vpack.i.bf16 %v13249_v56, %v13250_v28  ;;  %v9619_v44 = vsel %vm4062_vm6, %v4045_v24, %v7268_v35  ;;  %v13254_v14 = vld [vmem:[#allocation79_spill] sm:$0xff]  ;;  %v13256_v47 = vld [vmem:[#allocation46_spill] sm:$0xff]  ;;  %v7276_v24 = vpop.permute.xlu1 %7275  ;;  %v13260_v56 = vld [vmem:[#allocation80_spill] sm:$0xff] }
 0x1aa   :  { %13252 = vst [vmem:[#allocation66_spill] sm:$0xff] %v9619_v44  ;;  %v9622_v54 = vsel %vm4062_vm6, %v4044_v26, %v7267_v6  ;;  %v7273_v27 = vunpack.i.h.bf16 %v7271_v62  ;;  %v7272_v60 = vunpack.i.l.bf16 %v7271_v62  ;;  %v4046_v55 = vsel %vm3997_vm5, %v13254_v14, %v7112_v34  ;;  %v13261_v28 = vld [vmem:[#allocation81_spill] sm:$0xff]  ;;  %v13262_v14 = vld [vmem:[#allocation48_spill] sm:$0xff] }
 0x1ab   :  { %7555 = vrot.lane.b32.xlu1 %v13251_v32, %s8248_s21  ;;  %13253 = vst [vmem:[#allocation41_spill] sm:$0xff] %v9622_v54  ;;  %v4047_v31 = vsel %vm3997_vm5, %v13255_v16, %v7113_v9  ;;  %v7123_v33 = vunpack.i.h.bf16 %v13256_v47  ;;  %v7122_v2 = vunpack.i.l.bf16 %v13256_v47  ;;  %v13257_v35 = vpack.i.bf16 %v9286_v45, %v9284_v23  ;;  %v7281_v23 = vpop.permute.xlu0 %7280  ;;  %v13266_v47 = vld [vmem:[#allocation84_spill] sm:$0xff] }
 0x1ac   :  { %v9635_v6 = vsel %vm4062_vm6, %v4046_v55, %v7272_v60  ;;  %v9638_v26 = vsel %vm4062_vm6, %v4047_v31, %v7273_v27  ;;  %v7278_v34 = vunpack.i.h.bf16 %v7276_v24  ;;  %v7277_v62 = vunpack.i.l.bf16 %v7276_v24  ;;  %v1684_v54 = vld [vmem:[#allocation2 + $0x471] ss:$2 sm:$0xff]  ;;  %v747_v40 = vld [vmem:[#allocation2 + $0xf0] ss:$2 sm:$0xff] }
 0x1ad   :  { %7560 = vrot.lane.b32.xlu0 %v13257_v35, %s8248_s21  ;;  %13258 = vst [vmem:[#allocation68_spill] sm:$0xff] %v9635_v6  ;;  %13259 = vst [vmem:[#allocation67_spill] sm:$0xff] %v9638_v26  ;;  %v4049_v9 = vsel %vm3997_vm5, %v13260_v56, %v7118_v36  ;;  %v4048_v32 = vsel %vm3997_vm5, %v13261_v28, %v7117_v3  ;;  %v7128_v16 = vunpack.i.h.bf16 %v13262_v14  ;;  %v7127_v45 = vunpack.i.l.bf16 %v13262_v14  ;;  %v13267_v35 = vld [vmem:[#allocation82_spill] sm:$0xff]  ;;  %v13268_v56 = vld [vmem:[#allocation55_spill] sm:$0xff] }
 0x1ae   :  { %v13263_v60 = vpack.i.bf16 %v9298_v51, %v9288_v42  ;;  %v9651_v27 = vsel %vm4062_vm6, %v4049_v9, %v7278_v34  ;;  %v9654_v55 = vsel %vm4062_vm6, %v4048_v32, %v7277_v62  ;;  %v7283_v36 = vunpack.i.h.bf16 %v7281_v23  ;;  %v13269_v42 = vld [vmem:[#allocation102_spill] sm:$0xff]  ;;  %v7286_v34 = vpop.permute.xlu1 %7285 }
 0x1af   :  { %13264 = vst [vmem:[#allocation42_spill] sm:$0xff] %v9651_v27  ;;  %13265 = vst [vmem:[#allocation94_spill] sm:$0xff] %v9654_v55  ;;  %v7282_v31 = vunpack.i.l.bf16 %v7281_v23  ;;  %v4050_v3 = vsel %vm3997_vm5, %v13266_v47, %v7122_v2  ;;  %v4051_v24 = vsel %vm3997_vm5, %v13267_v35, %v7123_v33  ;;  %v7133_v28 = vunpack.i.h.bf16 %v13268_v56  ;;  %v13273_v23 = vld [vmem:[#allocation85_spill] sm:$0xff]  ;;  %v13275_v35 = vld [vmem:[#allocation59_spill] sm:$0xff] }
 0x1b0   :  { %7565 = vrot.lane.b32.xlu1 %v13263_v60, %s8243_s17  ;;  %v7132_v14 = vunpack.i.l.bf16 %v13268_v56  ;;  %v13270_v51 = vpack.i.bf16 %v9302_v59, %v13269_v42  ;;  %v9670_v9 = vsel %vm4062_vm6, %v4051_v24, %v7283_v36  ;;  %v7288_v2 = vunpack.i.h.bf16 %v7286_v34  ;;  %v13274_v60 = vld [vmem:[#allocation86_spill] sm:$0xff]  ;;  %v7291_v42 = vpop.permute.xlu0 %7290  ;;  %v13308_v27 = vld [vmem:[#allocation19_spill] sm:$0xff] }
 0x1b1   :  { %v9667_v62 = vsel %vm4062_vm6, %v4050_v3, %v7282_v31  ;;  %13272 = vst [vmem:[#allocation69_spill] sm:$0xff] %v9670_v9  ;;  %v7287_v32 = vunpack.i.l.bf16 %v7286_v34  ;;  %v4053_v33 = vsel %vm3997_vm5, %v13273_v23, %v7128_v16  ;;  %v4052_v47 = vsel %vm3997_vm5, %v13274_v60, %v7127_v45  ;;  %v13277_v31 = vld [vmem:[#allocation104_spill] sm:$0xff]  ;;  %v13281_v23 = vld [vmem:[#allocation89_spill] sm:$0xff]  ;;  %v13282_v60 = vld [vmem:[#allocation87_spill] sm:$0xff] }
 0x1b2   :  { %7570 = vrot.lane.b32.xlu0 %v13270_v51, %s8244_s18  ;;  %13271 = vst [vmem:[#allocation93_spill] sm:$0xff] %v9667_v62  ;;  %v7138_v56 = vunpack.i.h.bf16 %v13275_v35  ;;  %v7137_v59 = vunpack.i.l.bf16 %v13275_v35  ;;  %v13276_v51 = vld [vmem:[#allocation105_spill] sm:$0xff]  ;;  %v9683_v36 = vsel %vm4062_vm6, %v4053_v33, %v7288_v2  ;;  %v7293_v16 = vunpack.i.h.bf16 %v7291_v42  ;;  %v13283_v9 = vld [vmem:[#allocation60_spill] sm:$0xff]  ;;  %v7296_v33 = vpop.permute.xlu1 %7295 }
 0x1b3   :  { %v13278_v3 = vpack.i.bf16 %v13276_v51, %v13277_v31  ;;  %13279 = vst [vmem:[#allocation70_spill] sm:$0xff] %v9683_v36  ;;  %v9686_v24 = vsel %vm4062_vm6, %v4052_v47, %v7287_v32  ;;  %v7292_v34 = vunpack.i.l.bf16 %v7291_v42  ;;  %v4054_v45 = vsel %vm3997_vm5, %v13281_v23, %v7132_v14  ;;  %v859_v32 = vld [vmem:[#allocation2 + $0xa00] ss:$2 sm:$0xff]  ;;  %v1682_v6 = vld [vmem:[#allocation2 + $0x461] ss:$2 sm:$0xff] }
 0x1b4   :  { %13280 = vst [vmem:[#allocation43_spill] sm:$0xff] %v9686_v24  ;;  %v4055_v35 = vsel %vm3997_vm5, %v13282_v60, %v7133_v28  ;;  %v7143_v62 = vunpack.i.h.bf16 %v13283_v9  ;;  %v7142_v55 = vunpack.i.l.bf16 %v13283_v9  ;;  %v13284_v2 = vpack.i.bf16 %v9328_v8, %v9319_v21  ;;  %v1798_v28 = vld [vmem:[#allocation2 + $0x372] ss:$2 sm:$0xff]  ;;  %v1800_v31 = vld [vmem:[#allocation2 + $0x382] ss:$2 sm:$0xff]  ;;  %v7301_v24 = vpop.permute.xlu0 %7300 }
 0x1b5   :  { %7575 = vrot.lane.b32.xlu1 %v13278_v3, %s8244_s18  ;;  %v9699_v47 = vsel %vm4062_vm6, %v4054_v45, %v7292_v34  ;;  %v9702_v42 = vsel %vm4062_vm6, %v4055_v35, %v7293_v16  ;;  %v7298_v14 = vunpack.i.h.bf16 %v7296_v33  ;;  %v7297_v51 = vunpack.i.l.bf16 %v7296_v33  ;;  %v13287_v3 = vld [vmem:[#allocation90_spill] sm:$0xff]  ;;  %v13288_v23 = vld [vmem:[#allocation91_spill] sm:$0xff]  ;;  %v13289_v21 = vld [vmem:[#allocation65_spill] sm:$0xff] }
 0x1b6   :  { %7580 = vrot.lane.b32.xlu0 %v13284_v2, %s8246_s19  ;;  %13285 = vst [vmem:[#allocation72_spill] sm:$0xff] %v9699_v47  ;;  %13286 = vst [vmem:[#allocation71_spill] sm:$0xff] %v9702_v42  ;;  %v4057_v9 = vsel %vm3997_vm5, %v13287_v3, %v7138_v56  ;;  %v4056_v60 = vsel %vm3997_vm5, %v13288_v23, %v7137_v59  ;;  %v7148_v8 = vunpack.i.h.bf16 %v13289_v21  ;;  %v7147_v2 = vunpack.i.l.bf16 %v13289_v21  ;;  %v1802_v33 = vld [vmem:[#allocation2 + $0x3c2] ss:$2 sm:$0xff]  ;;  %v1804_v59 = vld [vmem:[#allocation2 + $0x3d2] ss:$2 sm:$0xff] }
 0x1b7   :  { %v13290_v16 = vpack.i.bf16 %v9332_v17, %v9330_v1  ;;  %v9715_v34 = vsel %vm4062_vm6, %v4057_v9, %v7298_v14  ;;  %v9718_v45 = vsel %vm4062_vm6, %v4056_v60, %v7297_v51  ;;  %v7303_v56 = vunpack.i.h.bf16 %v7301_v24  ;;  %v13293_v3 = vld [vmem:[#allocation24_spill] sm:$0xff]  ;;  %v13296_v36 = vld [vmem:[#allocation95_spill] sm:$0xff]  ;;  %v7306_v51 = vpop.permute.xlu1 %7305 }
 0x1b8   :  { %13291 = vst [vmem:[#allocation44_spill] sm:$0xff] %v9715_v34  ;;  %13292 = vst [vmem:[#allocation98_spill] sm:$0xff] %v9718_v45  ;;  %v7302_v35 = vunpack.i.l.bf16 %v7301_v24  ;;  %v13294_v23 = vunpack.i.l.bf16 %v13293_v3  ;;  %v13295_v42 = vld [vmem:[#allocation96_spill] sm:$0xff]  ;;  %v4059_v17 = vsel %vm3997_vm5, %v13296_v36, %v7143_v62  ;;  %v13297_v1 = vld [vmem:[#allocation107_spill] sm:$0xff]  ;;  %v7599_v9 = vpack.i.bf16 %v1800_v31, %v1798_v28 }
 0x1b9   :  { %7585 = vrot.lane.b32.xlu1 %v13290_v16, %s8246_s19  ;;  %v4058_v47 = vsel %vm3997_vm5, %v13295_v42, %v7142_v55  ;;  %v13298_v14 = vpack.i.bf16 %v9346_v58, %v13297_v1  ;;  %v9735_v60 = vsel %vm4062_vm6, %v4059_v17, %v7303_v56  ;;  %v7307_v16 = vunpack.i.l.bf16 %v7306_v51  ;;  %v1294_v3 = vld [vmem:[#allocation2 + $0x3e9] ss:$2 sm:$0xff]  ;;  %v1296_v55 = vld [vmem:[#allocation2 + $0x3f9] ss:$2 sm:$0xff]  ;;  %v1424_v17 = vld [vmem:[#allocation2 + $0x3fa] ss:$2 sm:$0xff] }
 0x1ba   :  { %v3995_v21 = vsel %vm70_vm0, %v859_v32, %v13294_v23  ;;  %v9732_v24 = vsel %vm4062_vm6, %v4058_v47, %v7302_v35  ;;  %13300 = vst [vmem:[#allocation75_spill] sm:$0xff] %v9735_v60  ;;  %v7308_v32 = vunpack.i.h.bf16 %v7306_v51  ;;  %v13301_v42 = vld [vmem:[#allocation97_spill] sm:$0xff]  ;;  %v9740_v23 = vpop.permute.xlu0 %7310  ;;  %v13302_v58 = vpack.i.bf16 %v9358_v52, %v9356_v22  ;;  %v1300_v35 = vld [vmem:[#allocation2 + $0x449] ss:$2 sm:$0xff] }
 0x1bb   :  { %7590 = vrot.lane.b32.xlu0 %v13298_v14, %s8247_s20  ;;  %13299 = vst [vmem:[#allocation74_spill] sm:$0xff] %v9732_v24  ;;  %v4061_v62 = vsel %vm3997_vm5, %v13301_v42, %v7148_v8  ;;  %v4060_v36 = vsel %vm3997_vm5, %v3995_v21, %v7147_v2  ;;  %v7604_v47 = vpack.i.bf16 %v1804_v59, %v1802_v33  ;;  %v1298_v56 = vld [vmem:[#allocation2 + $0x439] ss:$2 sm:$0xff]  ;;  %v9753_v8 = vpop.permute.xlu1 %7315  ;;  %v1422_v21 = vld [vmem:[#allocation2 + $0x3ea] ss:$2 sm:$0xff]  ;;  %v6848_v26 = vunpack.i.h.bf16 %v13308_v27 }
 0x1bc   :  { %v9747_v28 = vsel %vm4062_vm6, %v4061_v62, %v7308_v32  ;;  %v9750_v31 = vsel %vm4062_vm6, %v4060_v36, %v7307_v16  ;;  %v7609_v2 = vpack.i.bf16 %v1296_v55, %v1294_v3  ;;  %v7614_v52 = vpack.i.bf16 %v1300_v35, %v1298_v56  ;;  %v1426_v22 = vld [vmem:[#allocation2 + $0x43a] ss:$2 sm:$0xff]  ;;  %v1428_v33 = vld [vmem:[#allocation2 + $0x44a] ss:$2 sm:$0xff]  ;;  %v1680_v60 = vld [vmem:[#allocation2 + $0x421] ss:$2 sm:$0xff] }
 0x1bd   :  { %7595 = vrot.lane.b32.xlu1 %v13302_v58, %s8247_s20  ;;  %13303 = vst [vmem:[#allocation45_spill] sm:$0xff] %v9747_v28  ;;  %13304 = vst [vmem:[#allocation100_spill] sm:$0xff] %v9750_v31  ;;  %v7619_v14 = vpack.i.bf16 %v1424_v17, %v1422_v21  ;;  %v1550_v51 = vld [vmem:[#allocation2 + $0x410] ss:$2 sm:$0xff]  ;;  %v1552_v32 = vld [vmem:[#allocation2 + $0x420] ss:$2 sm:$0xff]  ;;  %v7624_v16 = vpack.i.bf16 %v1428_v33, %v1426_v22  ;;  %v6863_v18 = vunpack.i.h.bf16 %v13311_v63  ;;  %v6993_v7 = vunpack.i.h.bf16 %v13312_v19 }
 0x1be   :  { %v9755_v1 = vpop.permute.xlu0 %7320  ;;  %v1554_v3 = vld [vmem:[#allocation2 + $0x460] ss:$2 sm:$0xff]  ;;  %v1556_v55 = vld [vmem:[#allocation2 + $0x470] ss:$2 sm:$0xff]  ;;  %v7629_v21 = vpack.i.bf16 %v1552_v32, %v1550_v51  ;;  %v1678_v28 = vld [vmem:[#allocation2 + $0x411] ss:$2 sm:$0xff]  ;;  %v6847_v51 = vunpack.i.l.bf16 %v13308_v27  ;;  %v7313_v10 = vunpack.i.h.bf16 %v9740_v23 }
 0x1bf   :  { %7600 = vrot.lane.b32.xlu0 %v7599_v9, %s8248_s21  ;;  %v9759_v59 = vpop.permute.xlu1 %7325  ;;  %v737_v42 = vld [vmem:[#allocation2 + $0x10] ss:$2 sm:$0xff]  ;;  %v743_v24 = vld [vmem:[#allocation2 + $0xa0] ss:$2 sm:$0xff]  ;;  %v1302_v43 = vld [vmem:[#allocation2 + $0x489] ss:$2 sm:$0xff] }
 0x1c0   :  { %v13305_v62 = vld [vmem:[#allocation16_spill] sm:$0xff]  ;;  %v13306_v56 = vld [vmem:[#allocation17_spill] sm:$0xff] }
 0x1c1   :  { %7605 = vrot.lane.b32.xlu1 %v7604_v47, %s8248_s21  ;;  %v6833_v36 = vunpack.i.h.bf16 %v13305_v62  ;;  %v6832_v58 = vunpack.i.l.bf16 %v13305_v62  ;;  %v735_v47 = vld [vmem:[#allocation2] ss:$2 sm:$0xff]  ;;  %v6843_v35 = vunpack.i.h.bf16 %v13306_v56  ;;  %v745_v17 = vld [vmem:[#allocation2 + $0xb0] ss:$2 sm:$0xff]  ;;  %v6842_v31 = vunpack.i.l.bf16 %v13306_v56  ;;  %v1304_v12 = vld [vmem:[#allocation2 + $0x499] ss:$2 sm:$0xff] }
 0x1c2   :  { %v9761_v9 = vpop.permute.xlu0 %7330  ;;  %v739_v45 = vld [vmem:[#allocation2 + $0x50] ss:$2 sm:$0xff]  ;;  %v741_v62 = vld [vmem:[#allocation2 + $0x60] ss:$2 sm:$0xff] }
 0x1c3   :  { %7610 = vrot.lane.b32.xlu0 %v7609_v2, %s8243_s17  ;;  %v9768_v2 = vpop.permute.xlu1 %7335  ;;  %v13309_v32 = vld [vmem:[#allocation20_spill] sm:$0xff]  ;;  %v3933_v44 = vsel %vm70_vm0, %v735_v47, %v6832_v58  ;;  %v9782_v38 = vsel %vm70_vm0, %v745_v17, %v6843_v35  ;;  %v3937_v27 = vsel %vm70_vm0, %v743_v24, %v6842_v31  ;;  %v1808_v58 = vld [vmem:[#allocation2 + $0x422] ss:$2 sm:$0xff]  ;;  %v7644_v24 = vpack.i.bf16 %v1684_v54, %v1682_v6 }
 0x1c4   :  { %v6853_v56 = vunpack.i.h.bf16 %v13309_v32  ;;  %v751_v47 = vld [vmem:[#allocation2 + $0x140] ss:$2 sm:$0xff] }
 0x1c5   :  { %7615 = vrot.lane.b32.xlu1 %v7614_v52, %s8243_s17  ;;  %v13307_v52 = vld [vmem:[#allocation18_spill] sm:$0xff]  ;;  %v13310_v17 = vld [vmem:[#allocation21_spill] sm:$0xff] }
 0x1c6   :  { %v6838_v22 = vunpack.i.h.bf16 %v13307_v52  ;;  %v6837_v33 = vunpack.i.l.bf16 %v13307_v52  ;;  %v9773_v34 = vpop.permute.xlu0 %7340  ;;  %v3934_v52 = vsel %vm70_vm0, %v737_v42, %v6833_v36  ;;  %v6852_v42 = vunpack.i.l.bf16 %v13309_v32  ;;  %v1806_v36 = vld [vmem:[#allocation2 + $0x412] ss:$2 sm:$0xff]  ;;  %v13313_v54 = vld [vmem:[#allocation26_spill] sm:$0xff] }
 0x1c7   :  { %7620 = vrot.lane.b32.xlu0 %v7619_v14, %s8244_s18  ;;  %v7634_v14 = vpack.i.bf16 %v1556_v55, %v1554_v3  ;;  %v7639_v3 = vpack.i.bf16 %v1680_v60, %v1678_v28  ;;  %v757_v35 = vld [vmem:[#allocation2 + $0x1a0] ss:$2 sm:$0xff]  ;;  %v6858_v11 = vunpack.i.h.bf16 %v13310_v17  ;;  %v6857_v20 = vunpack.i.l.bf16 %v13310_v17 }
 0x1c8   :  { %v3936_v55 = vsel %vm70_vm0, %v741_v62, %v6838_v22  ;;  %v3935_v25 = vsel %vm70_vm0, %v739_v45, %v6837_v33  ;;  %v9798_v45 = vsel %vm70_vm0, %v749_v46, %v6848_v26  ;;  %v9801_v28 = vsel %vm70_vm0, %v747_v40, %v6847_v51  ;;  %v761_v22 = vld [vmem:[#allocation2 + $0x1f0] ss:$2 sm:$0xff]  ;;  %v759_v17 = vld [vmem:[#allocation2 + $0x1e0] ss:$2 sm:$0xff] }
 0x1c9   :  { %7625 = vrot.lane.b32.xlu1 %v7624_v16, %s8244_s18  ;;  %v9785_v16 = vpop.permute.xlu1 %7345  ;;  %v9804_v31 = vsel %vm70_vm0, %v753_v53, %v6853_v56  ;;  %v6862_v33 = vunpack.i.l.bf16 %v13311_v63  ;;  %v1810_v62 = vld [vmem:[#allocation2 + $0x462] ss:$2 sm:$0xff]  ;;  %v1812_v32 = vld [vmem:[#allocation2 + $0x472] ss:$2 sm:$0xff]  ;;  %v6997_v6 = vunpack.i.l.bf16 %v13313_v54  ;;  %v7649_v40 = vpack.i.bf16 %v1808_v58, %v1806_v36 }
 0x1ca   :  { %v9794_v60 = vpop.permute.xlu0 %7350  ;;  %v9814_v53 = vsel %vm70_vm0, %v751_v47, %v6852_v42  ;;  %v6998_v26 = vunpack.i.h.bf16 %v13313_v54  ;;  %v13314_v63 = vld [vmem:[#allocation27_spill] sm:$0xff]  ;;  %v7654_v42 = vpack.i.bf16 %v1812_v32, %v1810_v62  ;;  %v1432_v62 = vld [vmem:[#allocation2 + $0x49a] ss:$2 sm:$0xff] }
 0x1cb   :  { %7630 = vrot.lane.b32.xlu0 %v7629_v21, %s8246_s19  ;;  %v755_v21 = vld [vmem:[#allocation2 + $0x190] ss:$2 sm:$0xff]  ;;  %v7003_v51 = vunpack.i.h.bf16 %v13314_v63  ;;  %v7002_v56 = vunpack.i.l.bf16 %v13314_v63  ;;  %v9832_v58 = vsel %vm70_vm0, %v759_v17, %v6862_v33 }
 0x1cc   :  { %v9823_v4 = vsel %vm70_vm0, %v755_v21, %v6857_v20  ;;  %v13315_v47 = vld [vmem:[#allocation23_spill] sm:$0xff]  ;;  %v4000_v21 = vsel %vm3997_vm5, %v3935_v25, %v6997_v6  ;;  %v1434_v32 = vld [vmem:[#allocation2 + $0x4da] ss:$2 sm:$0xff]  ;;  %v4001_v17 = vsel %vm3997_vm5, %v3936_v55, %v6998_v26 }
 0x1cd   :  { %7635 = vrot.lane.b32.xlu1 %v7634_v14, %s8246_s19  ;;  %v6992_v14 = vunpack.i.l.bf16 %v13312_v19  ;;  %v9811_v46 = vpop.permute.xlu1 %7355  ;;  %v9820_v19 = vsel %vm70_vm0, %v757_v35, %v6858_v11  ;;  %v1306_v11 = vld [vmem:[#allocation2 + $0x4d9] ss:$2 sm:$0xff]  ;;  %v1308_v35 = vld [vmem:[#allocation2 + $0x4e9] ss:$2 sm:$0xff]  ;;  %v1430_v33 = vld [vmem:[#allocation2 + $0x48a] ss:$2 sm:$0xff]  ;;  %v9845_v63 = vsel %vm3997_vm5, %v9782_v38, %v7003_v51 }
 0x1ce   :  { %v9828_v36 = vpop.permute.xlu0 %7360  ;;  %v9853_v6 = vld [vmem:[#allocation2 + $0x4c0] ss:$2 sm:$0xff]  ;;  %v7664_v38 = vpack.i.bf16 %v1308_v35, %v1306_v11  ;;  %v9861_v51 = vld [vmem:[#allocation2 + $0x4b1] ss:$2 sm:$0xff]  ;;  %v7669_v5 = vpack.i.bf16 %v1432_v62, %v1430_v33  ;;  %v7312_v33 = vunpack.i.l.bf16 %v9740_v23  ;;  %v7317_v23 = vunpack.i.l.bf16 %v9753_v8 }
 0x1cf   :  { %7640 = vrot.lane.b32.xlu0 %v7639_v3, %s8247_s20  ;;  %v9826_v3 = vsel %vm70_vm0, %v761_v22, %v6863_v18  ;;  %v3998_v20 = vsel %vm3997_vm5, %v3933_v44, %v6992_v14  ;;  %v3999_v18 = vsel %vm3997_vm5, %v3934_v52, %v6993_v7  ;;  %v7659_v22 = vpack.i.bf16 %v1304_v12, %v1302_v43  ;;  %v13316_v7 = vld [vmem:[#allocation28_spill] sm:$0xff]  ;;  %v13317_v43 = vld [vmem:[#allocation73_spill] sm:$0xff]  ;;  %v13319_v12 = vld [vmem:[#allocation30_spill] sm:$0xff] }
 0x1d0   :  { %v9848_v44 = vsel %vm3997_vm5, %v3937_v27, %v7002_v56  ;;  %v1436_v52 = vld [vmem:[#allocation2 + $0x4ea] ss:$2 sm:$0xff]  ;;  %v7152_v55 = vunpack.i.l.bf16 %v13317_v43  ;;  %v9863_v56 = vld [vmem:[#allocation2 + $0x4c1] ss:$2 sm:$0xff] }
 0x1d1   :  { %7645 = vrot.lane.b32.xlu1 %v7644_v24, %s8247_s20  ;;  %v9840_v24 = vpop.permute.xlu1 %7365  ;;  %v9851_v14 = vld [vmem:[#allocation2 + $0x4b0] ss:$2 sm:$0xff]  ;;  %v9859_v27 = vld [vmem:[#allocation2 + $0x500] ss:$2 sm:$0xff]  ;;  %v7674_v61 = vpack.i.bf16 %v1436_v52, %v1434_v32  ;;  %v7689_v62 = vpack.i.bf16 %v9863_v56, %v9861_v51  ;;  %v7318_v52 = vunpack.i.h.bf16 %v9753_v8 }
 0x1d2   :  { %v7371_v26 = vpop.permute.xlu0 %7370  ;;  %v13318_v54 = vld [vmem:[#allocation29_spill] sm:$0xff]  ;;  %v7679_v25 = vpack.i.bf16 %v9853_v6, %v9851_v14  ;;  %v4063_v39 = vsel %vm4062_vm6, %v3998_v20, %v7152_v55  ;;  %v7368_v14 = vunpack.i.h.bf16 %v9840_v24  ;;  %v7367_v6 = vunpack.i.l.bf16 %v9840_v24 }
 0x1d3   :  { %7650 = vrot.lane.b32.xlu0 %v7649_v40, %s8248_s21  ;;  %v7153_v40 = vunpack.i.h.bf16 %v13317_v43  ;;  %v1564_v43 = vld [vmem:[#allocation2 + $0x510] ss:$2 sm:$0xff]  ;;  %v7372_v55 = vunpack.i.l.bf16 %v7371_v26 }
 0x1d4   :  { %v13320_v11 = vld [vmem:[#allocation77_spill] sm:$0xff] }
 0x1d5   :  { %7655 = vrot.lane.b32.xlu1 %v7654_v42, %s8248_s21  ;;  %v9870_v42 = vld [vmem:[#allocation2 + $0x511] ss:$2 sm:$0xff]  ;;  %v7158_v35 = vunpack.i.h.bf16 %v13320_v11  ;;  %v7157_v15 = vunpack.i.l.bf16 %v13320_v11  ;;  %v7376_v49 = vpop.permute.xlu1 %7375  ;;  %v4064_v50 = vsel %vm4062_vm6, %v3999_v18, %v7153_v40  ;;  %v7373_v40 = vunpack.i.h.bf16 %v7371_v26 }
 0x1d6   :  { %v7381_v11 = vpop.permute.xlu0 %7380  ;;  %v4129_v51 = vsel %vm4127_vm7, %v4064_v50, %v7313_v10  ;;  %v7378_v56 = vunpack.i.h.bf16 %v7376_v49  ;;  %v7377_v8 = vunpack.i.l.bf16 %v7376_v49 }
 0x1d7   :  { %7660 = vrot.lane.b32.xlu0 %v7659_v22, %s8243_s17  ;;  %v7684_v22 = vpack.i.bf16 %v1564_v43, %v9859_v27  ;;  %v4065_v20 = vsel %vm4062_vm6, %v4000_v21, %v7157_v15  ;;  %v4066_v18 = vsel %vm4062_vm6, %v4001_v17, %v7158_v35  ;;  %v4128_v27 = vsel %vm4127_vm7, %v4063_v39, %v7312_v33 }
 0x1d8   :  { %v7383_v43 = vunpack.i.h.bf16 %v7381_v11  ;;  %v7382_v32 = vunpack.i.l.bf16 %v7381_v11  ;;  %v4130_v15 = vsel %vm4127_vm7, %v4065_v20, %v7317_v23  ;;  %v4131_v21 = vsel %vm4127_vm7, %v4066_v18, %v7318_v52  ;;  %v1816_v11 = vld [vmem:[#allocation2 + $0x4c2] ss:$2 sm:$0xff] }
 0x1d9   :  { %7665 = vrot.lane.b32.xlu1 %v7664_v38, %s8243_s17  ;;  %v7386_v38 = vpop.permute.xlu1 %7385  ;;  %v4194_v17 = vsel %vm4192_vm8, %v4129_v51, %v7368_v14  ;;  %v4195_v39 = vsel %vm4192_vm8, %v4130_v15, %v7372_v55  ;;  %v4196_v50 = vsel %vm4192_vm8, %v4131_v21, %v7373_v40  ;;  %v1820_v51 = vld [vmem:[#allocation2 + $0x512] ss:$2 sm:$0xff]  ;;  %v1314_v15 = vld [vmem:[#allocation2 + $0x5c9] ss:$2 sm:$0xff]  ;;  %v13321_v21 = vunpack.i.h.bf16 %v13316_v7 }
 0x1da   :  { %v7388_v13 = vunpack.i.h.bf16 %v7386_v38  ;;  %v7387_v24 = vunpack.i.l.bf16 %v7386_v38  ;;  %v7391_v0 = vpop.permute.xlu0 %7390  ;;  %v4259_v52 = vsel %vm4257_vm9, %v4194_v17, %v7378_v56  ;;  %v4261_v14 = vsel %vm4257_vm9, %v4196_v50, %v7383_v43 }
 0x1db   :  { %7670 = vrot.lane.b32.xlu0 %v7669_v5, %s8244_s18  ;;  %v4193_v5 = vsel %vm4192_vm8, %v4128_v27, %v7367_v6  ;;  %v7393_v49 = vunpack.i.h.bf16 %v7391_v0  ;;  %v7392_v10 = vunpack.i.l.bf16 %v7391_v0  ;;  %v4260_v6 = vsel %vm4257_vm9, %v4195_v39, %v7382_v32  ;;  %v1818_v27 = vld [vmem:[#allocation2 + $0x502] ss:$2 sm:$0xff] }
 0x1dc   :  { %v4258_v23 = vsel %vm4257_vm9, %v4193_v5, %v7377_v8  ;;  %v4005_v5 = vsel %vm3997_vm5, %v9798_v45, %v13321_v21  ;;  %v13322_v17 = vunpack.i.l.bf16 %v13316_v7  ;;  %v13324_v45 = vpack.i.bf16 %v9870_v42, %v9868_v48 }
 0x1dd   :  { %7675 = vrot.lane.b32.xlu1 %v7674_v61, %s8244_s18  ;;  %v7396_v26 = vpop.permute.xlu1 %7395  ;;  %v1814_v61 = vld [vmem:[#allocation2 + $0x4b2] ss:$2 sm:$0xff]  ;;  %v4323_v0 = vsel %vm4322_vm10, %v4258_v23, %v7387_v24  ;;  %v4325_v56 = vsel %vm4322_vm10, %v4260_v6, %v7392_v10  ;;  %v4326_v32 = vsel %vm4322_vm10, %v4261_v14, %v7393_v49  ;;  %v1310_v24 = vld [vmem:[#allocation2 + $0x579] ss:$2 sm:$0xff]  ;;  %v7704_v7 = vpack.i.bf16 %v1820_v51, %v1818_v27 }
 0x1de   :  { %v7398_v35 = vunpack.i.h.bf16 %v7396_v26  ;;  %v7397_v33 = vunpack.i.l.bf16 %v7396_v26  ;;  %v7401_v20 = vpop.permute.xlu0 %7400  ;;  %v4004_v39 = vsel %vm3997_vm5, %v9801_v28, %v13322_v17  ;;  %v1316_v49 = vld [vmem:[#allocation2 + $0x5d9] ss:$2 sm:$0xff]  ;;  %v9928_v10 = vld [vmem:[#allocation2 + $0x57a] ss:$2 sm:$0xff]  ;;  %v9930_v26 = vld [vmem:[#allocation2 + $0x58a] ss:$2 sm:$0xff]  ;;  %v13325_v14 = vunpack.i.l.bf16 %v13318_v54 }
 0x1df   :  { %7680 = vrot.lane.b32.xlu0 %v7679_v25, %s8246_s19  ;;  %v4324_v25 = vsel %vm4322_vm10, %v4259_v52, %v7388_v13  ;;  %v7403_v18 = vunpack.i.h.bf16 %v7401_v20  ;;  %v7402_v40 = vunpack.i.l.bf16 %v7401_v20  ;;  %v1312_v13 = vld [vmem:[#allocation2 + $0x589] ss:$2 sm:$0xff]  ;;  %v9939_v23 = vld [vmem:[#allocation2 + $0x5ca] ss:$2 sm:$0xff]  ;;  %v9941_v52 = vld [vmem:[#allocation2 + $0x5da] ss:$2 sm:$0xff]  ;;  %v13327_v42 = vunpack.i.h.bf16 %v13319_v12 }
 0x1e0   :  { %v4388_v55 = vsel %vm4387_vm11, %v4323_v0, %v7397_v33  ;;  %v4389_v38 = vsel %vm4387_vm11, %v4324_v25, %v7398_v35  ;;  %v13323_v35 = vld [vmem:[#allocation78_spill] sm:$0xff]  ;;  %v9949_v20 = vsel %vm3997_vm5, %v9814_v53, %v13325_v14  ;;  %v13326_v0 = vunpack.i.h.bf16 %v13318_v54 }
 0x1e1   :  { %7685 = vrot.lane.b32.xlu1 %v7684_v22, %s8246_s19  ;;  %v9916_v8 = vpop.permute.xlu1 %7405  ;;  %v7699_v22 = vpack.i.bf16 %v1816_v11, %v1814_v61  ;;  %v4456_v43 = vpack.c.bf16 %v4389_v38, %v4388_v55  ;;  %v4390_v50 = vsel %vm4387_vm11, %v4325_v56, %v7402_v40  ;;  %v7163_v33 = vunpack.i.h.bf16 %v13323_v35  ;;  %v9943_v6 = vld [vmem:[#allocation2 + $0x5a0] ss:$2 sm:$0xff]  ;;  %v9964_v40 = vld [vmem:[#allocation2 + $0x5b0] ss:$2 sm:$0xff] }
 0x1e2   :  { %v7162_v61 = vunpack.i.l.bf16 %v13323_v35  ;;  %v7411_v11 = vpop.permute.xlu0 %7410  ;;  %v9955_v48 = vsel %vm3997_vm5, %v9804_v31, %v13326_v0  ;;  %v9961_v25 = vsel %vm3997_vm5, %v9820_v19, %v13327_v42  ;;  %v9966_v55 = vld [vmem:[#allocation2 + $0x5f0] ss:$2 sm:$0xff]  ;;  %v9968_v53 = vld [vmem:[#allocation2 + $0x600] ss:$2 sm:$0xff]  ;;  %v7709_v51 = vpack.i.bf16 %v1312_v13, %v1310_v24 }
 0x1e3   :  { %7690 = vrot.lane.b32.xlu0 %v7689_v62, %s8247_s20  ;;  %v4391_v62 = vsel %vm4387_vm11, %v4326_v32, %v7403_v18  ;;  %6742 = vmatprep.mubr.msk.bf16.mxu0 %vm4499_vm12, %v4456_v43  ;;  %v7017_v18 = vunpack.i.l.bf16 %v13319_v12  ;;  %v13328_v38 = vld [vmem:[#allocation83_spill] sm:$0xff]  ;;  %v7714_v19 = vpack.i.bf16 %v1316_v49, %v1314_v15  ;;  %v7323_v56 = vunpack.i.h.bf16 %v9755_v1 }
 0x1e4   :  { %v4457_v28 = vpack.c.bf16 %v4391_v62, %v4390_v50  ;;  %v7168_v54 = vunpack.i.h.bf16 %v13328_v38  ;;  %v7167_v27 = vunpack.i.l.bf16 %v13328_v38  ;;  %v7322_v32 = vunpack.i.l.bf16 %v9755_v1 }
 0x1e5   :  { %7695 = vrot.lane.b32.xlu1 %v13324_v45, %s8247_s20  ;;  %v7416_v31 = vpop.permute.xlu1 %7415  ;;  %v7719_v43 = vpack.i.bf16 %v9930_v26, %v9928_v10  ;;  %v7724_v21 = vpack.i.bf16 %v9941_v52, %v9939_v23  ;;  %v4067_v17 = vsel %vm4062_vm6, %v9848_v44, %v7162_v61  ;;  %v7729_v24 = vpack.i.bf16 %v9964_v40, %v9943_v6 }
 0x1e6   :  { %6743 = vmatmul.mubr.msk.bf16.vlgmr.msra.gmra.mrb[0].mxu0 %vm4499_vm12, %v4457_v28  ;;  %v7421_v50 = vpop.permute.xlu0 %7420  ;;  %v7734_v1 = vpack.i.bf16 %v9968_v53, %v9966_v55  ;;  %v7328_v13 = vunpack.i.h.bf16 %v9759_v59  ;;  %v7327_v15 = vunpack.i.l.bf16 %v9759_v59  ;;  %v7408_v62 = vunpack.i.h.bf16 %v9916_v8  ;;  %v10063_v53 = vld [vmem:[#allocation2 + $0x67a] ss:$2 sm:$0xff] }
 0x1e7   :  { %7700 = vrot.lane.b32.xlu0 %v7699_v22, %s8248_s21  ;;  %v4068_v22 = vsel %vm4062_vm6, %v9845_v63, %v7163_v33  ;;  %v7407_v44 = vunpack.i.l.bf16 %v9916_v8  ;;  %v4070_v49 = vsel %vm4062_vm6, %v4005_v5, %v7168_v54  ;;  %v4069_v63 = vsel %vm4062_vm6, %v4004_v39, %v7167_v27 }
 0x1e8   :  { %v7413_v10 = vunpack.i.h.bf16 %v7411_v11  ;;  %v7412_v26 = vunpack.i.l.bf16 %v7411_v11  ;;  %v4132_v33 = vsel %vm4127_vm7, %v4067_v17, %v7322_v32  ;;  %v4133_v61 = vsel %vm4127_vm7, %v4068_v22, %v7323_v56  ;;  %v1696_v56 = vld [vmem:[#allocation2 + $0x5b1] ss:$2 sm:$0xff] }
 0x1e9   :  { %7705 = vrot.lane.b32.xlu1 %v7704_v7, %s8248_s21  ;;  %v7426_v35 = vpop.permute.xlu1 %7425  ;;  %v7418_v45 = vunpack.i.h.bf16 %v7416_v31  ;;  %v7417_v28 = vunpack.i.l.bf16 %v7416_v31  ;;  %v7423_v59 = vunpack.i.h.bf16 %v7421_v50  ;;  %v7422_v7 = vunpack.i.l.bf16 %v7421_v50 }
 0x1ea   :  { %v7428_v23 = vunpack.i.h.bf16 %v7426_v35  ;;  %v7427_v52 = vunpack.i.l.bf16 %v7426_v35  ;;  %v7431_v8 = vpop.permute.xlu0 %7430  ;;  %v4134_v5 = vsel %vm4127_vm7, %v4069_v63, %v7327_v15  ;;  %v4135_v39 = vsel %vm4127_vm7, %v4070_v49, %v7328_v13  ;;  %v1700_v63 = vld [vmem:[#allocation2 + $0x601] ss:$2 sm:$0xff] }
 0x1eb   :  { %7710 = vrot.lane.b32.xlu0 %v7709_v51, %s8243_s17  ;;  %v4197_v11 = vsel %vm4192_vm8, %v4132_v33, %v7407_v44  ;;  %v4198_v6 = vsel %vm4192_vm8, %v4133_v61, %v7408_v62  ;;  %v4200_v14 = vsel %vm4192_vm8, %v4135_v39, %v7413_v10  ;;  %v4199_v0 = vsel %vm4192_vm8, %v4134_v5, %v7412_v26  ;;  %v10015_v10 = vld [vmem:[#allocation2 + $0x5a2] ss:$2 sm:$0xff]  ;;  %v10017_v26 = vld [vmem:[#allocation2 + $0x5b2] ss:$2 sm:$0xff]  ;;  %v10037_v39 = vld [vmem:[#allocation2 + $0x629] ss:$2 sm:$0xff] }
 0x1ec   :  { %v7433_v42 = vunpack.i.h.bf16 %v7431_v8  ;;  %v7432_v40 = vunpack.i.l.bf16 %v7431_v8  ;;  %v4262_v54 = vsel %vm4257_vm9, %v4197_v11, %v7417_v28  ;;  %v4263_v27 = vsel %vm4257_vm9, %v4198_v6, %v7418_v45  ;;  %v10024_v28 = vld [vmem:[#allocation2 + $0x5f2] ss:$2 sm:$0xff]  ;;  %v10039_v11 = vld [vmem:[#allocation2 + $0x669] ss:$2 sm:$0xff]  ;;  %v10041_v6 = vld [vmem:[#allocation2 + $0x679] ss:$2 sm:$0xff] }
 0x1ed   :  { %7715 = vrot.lane.b32.xlu1 %v7714_v19, %s8243_s17  ;;  %v7436_v38 = vpop.permute.xlu1 %7435  ;;  %v1694_v19 = vld [vmem:[#allocation2 + $0x5a1] ss:$2 sm:$0xff]  ;;  %v4264_v32 = vsel %vm4257_vm9, %v4199_v0, %v7422_v7  ;;  %v4265_v17 = vsel %vm4257_vm9, %v4200_v14, %v7423_v59  ;;  %v4327_v22 = vsel %vm4322_vm10, %v4262_v54, %v7427_v52  ;;  %v4328_v50 = vsel %vm4322_vm10, %v4263_v27, %v7428_v23  ;;  %v10026_v59 = vld [vmem:[#allocation2 + $0x602] ss:$2 sm:$0xff]  ;;  %v13330_v14 = vld [vmem:[#allocation92_spill] sm:$0xff] }
 0x1ee   :  { %v7438_v31 = vunpack.i.h.bf16 %v7436_v38  ;;  %v7437_v51 = vunpack.i.l.bf16 %v7436_v38  ;;  %v7441_v13 = vpop.permute.xlu0 %7440  ;;  %v4329_v35 = vsel %vm4322_vm10, %v4264_v32, %v7432_v40  ;;  %v4330_v33 = vsel %vm4322_vm10, %v4265_v17, %v7433_v42  ;;  %v10028_v7 = vld [vmem:[#allocation2 + $0x619] ss:$2 sm:$0xff]  ;;  %v13329_v52 = vld [vmem:[#allocation31_spill] sm:$0xff]  ;;  %v10052_v40 = vld [vmem:[#allocation2 + $0x61a] ss:$2 sm:$0xff] }
 0x1ef   :  { %7720 = vrot.lane.b32.xlu0 %v7719_v43, %s8244_s18  ;;  %v1698_v43 = vld [vmem:[#allocation2 + $0x5f1] ss:$2 sm:$0xff]  ;;  %v7443_v44 = vunpack.i.h.bf16 %v7441_v13  ;;  %v7442_v49 = vunpack.i.l.bf16 %v7441_v13  ;;  %v4008_v23 = vsel %vm3997_vm5, %v9823_v4, %v7017_v18  ;;  %v7023_v8 = vunpack.i.h.bf16 %v13329_v52  ;;  %v10054_v38 = vld [vmem:[#allocation2 + $0x62a] ss:$2 sm:$0xff] }
 0x1f0   :  { %v4392_v15 = vsel %vm4387_vm11, %v4327_v22, %v7437_v51  ;;  %v4393_v62 = vsel %vm4387_vm11, %v4328_v50, %v7438_v31  ;;  %v7173_v0 = vunpack.i.h.bf16 %v13330_v14  ;;  %v7172_v42 = vunpack.i.l.bf16 %v13330_v14  ;;  %v10056_v54 = vld [vmem:[#allocation2 + $0x66a] ss:$2 sm:$0xff]  ;;  %v13332_v32 = vld [vmem:[#allocation101_spill] sm:$0xff] }
 0x1f1   :  { %7725 = vrot.lane.b32.xlu1 %v7724_v21, %s8244_s18  ;;  %v10022_v61 = vpop.permute.xlu1 %7445  ;;  %v7739_v21 = vpack.i.bf16 %v1696_v56, %v1694_v19  ;;  %v4458_v45 = vpack.c.bf16 %v4393_v62, %v4392_v15  ;;  %v4394_v5 = vsel %vm4387_vm11, %v4329_v35, %v7442_v49  ;;  %v7744_v18 = vpack.i.bf16 %v1700_v63, %v1698_v43  ;;  %v13331_v31 = vld [vmem:[#allocation32_spill] sm:$0xff] }
 0x1f2   :  { %v10045_v12 = vpop.permute.xlu0 %7450  ;;  %v7022_v27 = vunpack.i.l.bf16 %v13329_v52  ;;  %v7028_v51 = vunpack.i.h.bf16 %v13331_v31  ;;  %v7027_v19 = vunpack.i.l.bf16 %v13331_v31  ;;  %v7749_v55 = vpack.i.bf16 %v10017_v26, %v10015_v10  ;;  %v10067_v56 = vld [vmem:[#allocation2 + $0x650] ss:$2 sm:$0xff]  ;;  %v10172_v52 = vld [vmem:[#allocation2 + $0x6b9] ss:$2 sm:$0xff] }
 0x1f3   :  { %7730 = vrot.lane.b32.xlu0 %v7729_v24, %s8246_s19  ;;  %v4395_v24 = vsel %vm4387_vm11, %v4330_v33, %v7443_v44  ;;  %6746 = vmatprep.mubr.msk.bf16.mxu0 %vm4499_vm12, %v4458_v45  ;;  %v7178_v17 = vunpack.i.h.bf16 %v13332_v32  ;;  %v7177_v22 = vunpack.i.l.bf16 %v13332_v32  ;;  %v7754_v13 = vpack.i.bf16 %v10026_v59, %v10024_v28  ;;  %v475_v33 = vld [vmem:[#allocation3 + $0x7e0] sm:$0xff] }
 0x1f4   :  { %v4459_v4 = vpack.c.bf16 %v4395_v24, %v4394_v5  ;;  %v7759_v43 = vpack.i.bf16 %v10037_v39, %v10028_v7  ;;  %v7333_v15 = vunpack.i.h.bf16 %v9761_v9  ;;  %v7332_v62 = vunpack.i.l.bf16 %v9761_v9  ;;  %v478_v7 = vld [vmem:[#allocation3 + $0x7f8] sm:$0xff]  ;;  %731 = vst.msk [vmem:[#allocation2 + $0xa51] sm:$0xff] %vm70_vm0, %v475_v33 }
 0x1f5   :  { %7735 = vrot.lane.b32.xlu1 %v7734_v1, %s8246_s19  ;;  %v10065_v1 = vld [vmem:[#allocation2 + $0x640] ss:$2 sm:$0xff]  ;;  %v7456_v50 = vpop.permute.xlu1 %7455  ;;  %v7764_v44 = vpack.i.bf16 %v10041_v6, %v10039_v11  ;;  %v7769_v49 = vpack.i.bf16 %v10054_v38, %v10052_v40  ;;  %v4071_v63 = vsel %vm4062_vm6, %v9949_v20, %v7172_v42  ;;  %v4072_v10 = vsel %vm4062_vm6, %v9955_v48, %v7173_v0  ;;  %v477_v48 = vld [vmem:[#allocation3 + $0x7f0] sm:$0xff] }
 0x1f6   :  { %6747 = vmatmul.mubr.msk.bf16.gmra.mrb[4].mxu0 %vm4499_vm12, %v4459_v4  ;;  %v7461_v26 = vpop.permute.xlu0 %7460  ;;  %v7774_v35 = vpack.i.bf16 %v10063_v53, %v10056_v54  ;;  %v7779_v9 = vpack.i.bf16 %v10067_v56, %v10065_v1  ;;  %v7338_v45 = vunpack.i.h.bf16 %v9768_v2  ;;  %v7337_v28 = vunpack.i.l.bf16 %v9768_v2  ;;  %733 = vst.msk [vmem:[#allocation2 + $0xa61] sm:$0xff] %vm70_vm0, %v477_v48  ;;  %734 = vst.msk [vmem:[#allocation2 + $0xa69] sm:$0xff] %vm70_vm0, %v478_v7 }
 0x1f7   :  { %7740 = vrot.lane.b32.xlu0 %v7739_v21, %s8247_s20  ;;  %v476_v21 = vld [vmem:[#allocation3 + $0x7e8] sm:$0xff]  ;;  %v7448_v20 = vunpack.i.h.bf16 %v10022_v61  ;;  %v7447_v59 = vunpack.i.l.bf16 %v10022_v61  ;;  %v4074_v5 = vsel %vm4062_vm6, %v9961_v25, %v7178_v17  ;;  %v4073_v24 = vsel %vm4062_vm6, %v4008_v23, %v7177_v22 }
 0x1f8   :  { %732 = vst.msk [vmem:[#allocation2 + $0xa59] sm:$0xff] %vm70_vm0, %v476_v21  ;;  %v7453_v39 = vunpack.i.h.bf16 %v10045_v12  ;;  %v7452_v11 = vunpack.i.l.bf16 %v10045_v12  ;;  %v4136_v61 = vsel %vm4127_vm7, %v4071_v63, %v7332_v62  ;;  %v4137_v6 = vsel %vm4127_vm7, %v4072_v10, %v7333_v15  ;;  %v765_v21 = vld [vmem:[#allocation2 + $0x240] ss:$2 sm:$0xff] }
 0x1f9   :  { %7745 = vrot.lane.b32.xlu1 %v7744_v18, %s8247_s20  ;;  %v7466_v2 = vpop.permute.xlu1 %7465  ;;  %v7458_v14 = vunpack.i.h.bf16 %v7456_v50  ;;  %v7457_v0 = vunpack.i.l.bf16 %v7456_v50  ;;  %v7463_v25 = vunpack.i.h.bf16 %v7461_v26  ;;  %v7462_v42 = vunpack.i.l.bf16 %v7461_v26 }
 0x1fa   :  { %v7468_v23 = vunpack.i.h.bf16 %v7466_v2  ;;  %v7467_v4 = vunpack.i.l.bf16 %v7466_v2  ;;  %v7471_v18 = vpop.permute.xlu0 %7470  ;;  %v4138_v12 = vsel %vm4127_vm7, %v4073_v24, %v7337_v28  ;;  %v4201_v32 = vsel %vm4192_vm8, %v4136_v61, %v7447_v59  ;;  %v763_v2 = vld [vmem:[#allocation2 + $0x230] ss:$2 sm:$0xff] }
 0x1fb   :  { %7750 = vrot.lane.b32.xlu0 %v7749_v55, %s8248_s21  ;;  %v4139_v55 = vsel %vm4127_vm7, %v4074_v5, %v7338_v45  ;;  %v4202_v17 = vsel %vm4192_vm8, %v4137_v6, %v7448_v20  ;;  %v4203_v15 = vsel %vm4192_vm8, %v4138_v12, %v7452_v11  ;;  %v7473_v50 = vunpack.i.h.bf16 %v7471_v18  ;;  %v1580_v11 = vld [vmem:[#allocation2 + $0x6a0] ss:$2 sm:$0xff] }
 0x1fc   :  { %v4204_v22 = vsel %vm4192_vm8, %v4139_v55, %v7453_v39  ;;  %v7472_v62 = vunpack.i.l.bf16 %v7471_v18  ;;  %v4266_v10 = vsel %vm4257_vm9, %v4201_v32, %v7457_v0  ;;  %v4268_v45 = vsel %vm4257_vm9, %v4203_v15, %v7462_v42  ;;  %v1578_v39 = vld [vmem:[#allocation2 + $0x690] ss:$2 sm:$0xff]  ;;  %v1702_v55 = vld [vmem:[#allocation2 + $0x641] ss:$2 sm:$0xff]  ;;  %v1704_v32 = vld [vmem:[#allocation2 + $0x651] ss:$2 sm:$0xff] }
 0x1fd   :  { %7755 = vrot.lane.b32.xlu1 %v7754_v13, %s8248_s21  ;;  %v7476_v63 = vpop.permute.xlu1 %7475  ;;  %v4267_v13 = vsel %vm4257_vm9, %v4202_v17, %v7458_v14  ;;  %v4269_v28 = vsel %vm4257_vm9, %v4204_v22, %v7463_v25  ;;  %v4331_v20 = vsel %vm4322_vm10, %v4266_v10, %v7467_v4  ;;  %v13333_v61 = vld [vmem:[#allocation103_spill] sm:$0xff]  ;;  %v13334_v42 = vunpack.i.h.bf16 %v13315_v47  ;;  %v13335_v17 = vld [vmem:[#allocation106_spill] sm:$0xff] }
 0x1fe   :  { %v7478_v26 = vunpack.i.h.bf16 %v7476_v63  ;;  %v7477_v33 = vunpack.i.l.bf16 %v7476_v63  ;;  %v4332_v59 = vsel %vm4322_vm10, %v4267_v13, %v7468_v23  ;;  %v7481_v48 = vpop.permute.xlu0 %7480  ;;  %v7182_v6 = vunpack.i.l.bf16 %v13333_v61  ;;  %v1830_v63 = vld [vmem:[#allocation2 + $0x642] ss:$2 sm:$0xff] }
 0x1ff   :  { %7760 = vrot.lane.b32.xlu0 %v7759_v43, %s8243_s17  ;;  %v7483_v5 = vunpack.i.h.bf16 %v7481_v48  ;;  %v7482_v24 = vunpack.i.l.bf16 %v7481_v48  ;;  %v4333_v14 = vsel %vm4322_vm10, %v4268_v45, %v7472_v62  ;;  %v4334_v0 = vsel %vm4322_vm10, %v4269_v28, %v7473_v50  ;;  %v1706_v50 = vld [vmem:[#allocation2 + $0x691] ss:$2 sm:$0xff]  ;;  %v1708_v62 = vld [vmem:[#allocation2 + $0x6a1] ss:$2 sm:$0xff] }
 0x200   :  { %v4396_v43 = vsel %vm4387_vm11, %v4331_v20, %v7477_v33  ;;  %v4397_v7 = vsel %vm4387_vm11, %v4332_v59, %v7478_v26  ;;  %v3948_v23 = vsel %vm70_vm0, %v765_v21, %v13334_v42  ;;  %v7183_v4 = vunpack.i.h.bf16 %v13333_v61  ;;  %v10161_v33 = vld [vmem:[#allocation2 + $0x692] ss:$2 sm:$0xff]  ;;  %v10177_v28 = vld [vmem:[#allocation2 + $0x709] ss:$2 sm:$0xff]  ;;  %v10179_v20 = vld [vmem:[#allocation2 + $0x719] ss:$2 sm:$0xff] }
 0x201   :  { %7765 = vrot.lane.b32.xlu1 %v7764_v44, %s8243_s17  ;;  %v10132_v44 = vpop.permute.xlu1 %7485  ;;  %v4460_v25 = vpack.c.bf16 %v4397_v7, %v4396_v43  ;;  %v4398_v18 = vsel %vm4387_vm11, %v4333_v14, %v7482_v24  ;;  %v4399_v12 = vsel %vm4387_vm11, %v4334_v0, %v7483_v5  ;;  %v7188_v22 = vunpack.i.h.bf16 %v13335_v17 }
 0x202   :  { %v7187_v40 = vunpack.i.l.bf16 %v13335_v17  ;;  %v7491_v38 = vpop.permute.xlu0 %7490  ;;  %v7784_v15 = vpack.i.bf16 %v1580_v11, %v1578_v39  ;;  %v13336_v10 = vunpack.i.l.bf16 %v13315_v47  ;;  %v4010_v26 = vsel %vm3997_vm5, %v9832_v58, %v7022_v27  ;;  %v1836_v47 = vld [vmem:[#allocation2 + $0x6a2] ss:$2 sm:$0xff] }
 0x203   :  { %7770 = vrot.lane.b32.xlu0 %v7769_v49, %s8244_s18  ;;  %6750 = vmatprep.mubr.msk.bf16.mxu0 %vm4499_vm12, %v4460_v25  ;;  %v4461_v49 = vpack.c.bf16 %v4399_v12, %v4398_v18  ;;  %v4011_v54 = vsel %vm3997_vm5, %v9826_v3, %v7023_v8  ;;  %v4013_v53 = vsel %vm3997_vm5, %v3948_v23, %v7028_v51  ;;  %v7343_v27 = vunpack.i.h.bf16 %v9773_v34 }
 0x204   :  { %v3947_v13 = vsel %vm70_vm0, %v763_v2, %v13336_v10  ;;  %v4075_v45 = vsel %vm4062_vm6, %v4010_v26, %v7182_v6  ;;  %v7789_v58 = vpack.i.bf16 %v1704_v32, %v1702_v55  ;;  %v4076_v8 = vsel %vm4062_vm6, %v4011_v54, %v7183_v4  ;;  %v1454_v10 = vld [vmem:[#allocation2 + $0x6ba] ss:$2 sm:$0xff] }
 0x205   :  { %7775 = vrot.lane.b32.xlu1 %v7774_v35, %s8244_s18  ;;  %v1832_v35 = vld [vmem:[#allocation2 + $0x652] ss:$2 sm:$0xff]  ;;  %v4012_v21 = vsel %vm3997_vm5, %v3947_v13, %v7027_v19  ;;  %6751 = vmatmul.mubr.msk.bf16.gmra.mrb[8].mxu0 %vm4499_vm12, %v4461_v49  ;;  %v7496_v3 = vpop.permute.xlu1 %7495  ;;  %v7342_v31 = vunpack.i.l.bf16 %v9773_v34  ;;  %v7794_v51 = vpack.i.bf16 %v1708_v62, %v1706_v50  ;;  %v1328_v19 = vld [vmem:[#allocation2 + $0x6c9] ss:$2 sm:$0xff]  ;;  %v4078_v1 = vsel %vm4062_vm6, %v4013_v53, %v7188_v22 }
 0x206   :  { %v4077_v56 = vsel %vm4062_vm6, %v4012_v21, %v7187_v40  ;;  %v7799_v59 = vpack.i.bf16 %v1832_v35, %v1830_v63  ;;  %v7804_v48 = vpack.i.bf16 %v1836_v47, %v10161_v33  ;;  %v7348_v43 = vunpack.i.h.bf16 %v9785_v16  ;;  %v1456_v13 = vld [vmem:[#allocation2 + $0x6ca] ss:$2 sm:$0xff] }
 0x207   :  { %7780 = vrot.lane.b32.xlu0 %v7779_v9, %s8246_s19  ;;  %v7501_v9 = vpop.permute.xlu0 %7500  ;;  %v7347_v34 = vunpack.i.l.bf16 %v9785_v16  ;;  %v7488_v7 = vunpack.i.h.bf16 %v10132_v44  ;;  %v7487_v5 = vunpack.i.l.bf16 %v10132_v44  ;;  %v7493_v24 = vunpack.i.h.bf16 %v7491_v38 }
 0x208   :  { %v7492_v39 = vunpack.i.l.bf16 %v7491_v38  ;;  %v7809_v2 = vpack.i.bf16 %v1328_v19, %v10172_v52  ;;  %v7814_v61 = vpack.i.bf16 %v10179_v20, %v10177_v28  ;;  %v4140_v6 = vsel %vm4127_vm7, %v4075_v45, %v7342_v31  ;;  %v1460_v52 = vld [vmem:[#allocation2 + $0x71a] ss:$2 sm:$0xff] }
 0x209   :  { %7785 = vrot.lane.b32.xlu1 %v7784_v15, %s8246_s19  ;;  %v7506_v11 = vpop.permute.xlu1 %7505  ;;  %v4141_v14 = vsel %vm4127_vm7, %v4076_v8, %v7343_v27  ;;  %v7498_v0 = vunpack.i.h.bf16 %v7496_v3  ;;  %v7497_v16 = vunpack.i.l.bf16 %v7496_v3  ;;  %v7503_v25 = vunpack.i.h.bf16 %v7501_v9 }
 0x20a   :  { %v7502_v42 = vunpack.i.l.bf16 %v7501_v9  ;;  %v7508_v23 = vunpack.i.h.bf16 %v7506_v11  ;;  %v7507_v44 = vunpack.i.l.bf16 %v7506_v11  ;;  %v4142_v18 = vsel %vm4127_vm7, %v4077_v56, %v7347_v34  ;;  %v1584_v56 = vld [vmem:[#allocation2 + $0x6f0] ss:$2 sm:$0xff]  ;;  %v1588_v34 = vld [vmem:[#allocation2 + $0x740] ss:$2 sm:$0xff] }
 0x20b   :  { %7790 = vrot.lane.b32.xlu0 %v7789_v58, %s8247_s20  ;;  %v7511_v4 = vpop.permute.xlu0 %7510  ;;  %v4143_v12 = vsel %vm4127_vm7, %v4078_v1, %v7348_v43  ;;  %v4205_v55 = vsel %vm4192_vm8, %v4140_v6, %v7487_v5  ;;  %v4206_v32 = vsel %vm4192_vm8, %v4141_v14, %v7488_v7  ;;  %v4207_v22 = vsel %vm4192_vm8, %v4142_v18, %v7492_v39  ;;  %v1458_v58 = vld [vmem:[#allocation2 + $0x70a] ss:$2 sm:$0xff]  ;;  %v1710_v7 = vld [vmem:[#allocation2 + $0x6e1] ss:$2 sm:$0xff]  ;;  %v1712_v5 = vld [vmem:[#allocation2 + $0x6f1] ss:$2 sm:$0xff] }
 0x20c   :  { %v4208_v17 = vsel %vm4192_vm8, %v4143_v12, %v7493_v24  ;;  %v7513_v40 = vunpack.i.h.bf16 %v7511_v4  ;;  %v7512_v38 = vunpack.i.l.bf16 %v7511_v4  ;;  %v4270_v15 = vsel %vm4257_vm9, %v4205_v55, %v7497_v16  ;;  %v1582_v1 = vld [vmem:[#allocation2 + $0x6e0] ss:$2 sm:$0xff]  ;;  %v1586_v43 = vld [vmem:[#allocation2 + $0x730] ss:$2 sm:$0xff]  ;;  %v1714_v24 = vld [vmem:[#allocation2 + $0x731] ss:$2 sm:$0xff] }
 0x20d   :  { %7795 = vrot.lane.b32.xlu1 %v7794_v51, %s8247_s20  ;;  %v7516_v49 = vpop.permute.xlu1 %7515  ;;  %v4271_v50 = vsel %vm4257_vm9, %v4206_v32, %v7498_v0  ;;  %v4272_v26 = vsel %vm4257_vm9, %v4207_v22, %v7502_v42  ;;  %v4273_v54 = vsel %vm4257_vm9, %v4208_v17, %v7503_v25  ;;  %v4335_v53 = vsel %vm4322_vm10, %v4270_v15, %v7507_v44  ;;  %v1716_v39 = vld [vmem:[#allocation2 + $0x741] ss:$2 sm:$0xff]  ;;  %v1838_v6 = vld [vmem:[#allocation2 + $0x6e2] ss:$2 sm:$0xff]  ;;  %v1840_v0 = vld [vmem:[#allocation2 + $0x6f2] ss:$2 sm:$0xff] }
 0x20e   :  { %v7518_v62 = vunpack.i.h.bf16 %v7516_v49  ;;  %v7517_v63 = vunpack.i.l.bf16 %v7516_v49  ;;  %v4336_v35 = vsel %vm4322_vm10, %v4271_v50, %v7508_v23  ;;  %v4337_v8 = vsel %vm4322_vm10, %v4272_v26, %v7512_v38  ;;  %v10223_v16 = vld [vmem:[#allocation2 + $0x732] ss:$2 sm:$0xff]  ;;  %v10225_v25 = vld [vmem:[#allocation2 + $0x742] ss:$2 sm:$0xff] }
 0x20f   :  { %7800 = vrot.lane.b32.xlu0 %v7799_v59, %s8248_s21  ;;  %v7521_v33 = vpop.permute.xlu0 %7520  ;;  %v4338_v27 = vsel %vm4322_vm10, %v4273_v54, %v7513_v40  ;;  %v7819_v51 = vpack.i.bf16 %v1456_v13, %v1454_v10  ;;  %v7353_v14 = vunpack.i.h.bf16 %v9794_v60  ;;  %v7834_v23 = vpack.i.bf16 %v1588_v34, %v1586_v43 }
 0x210   :  { %v4400_v47 = vsel %vm4387_vm11, %v4335_v53, %v7517_v63  ;;  %v4401_v21 = vsel %vm4387_vm11, %v4336_v35, %v7518_v62  ;;  %v7523_v45 = vunpack.i.h.bf16 %v7521_v33  ;;  %v7522_v3 = vunpack.i.l.bf16 %v7521_v33 }
 0x211   :  { %7805 = vrot.lane.b32.xlu1 %v7804_v48, %s8248_s21  ;;  %v7526_v31 = vpop.permute.xlu1 %7525  ;;  %v4462_v19 = vpack.c.bf16 %v4401_v21, %v4400_v47  ;;  %v7824_v48 = vpack.i.bf16 %v1460_v52, %v1458_v58  ;;  %v7839_v44 = vpack.i.bf16 %v1712_v5, %v1710_v7  ;;  %v7844_v4 = vpack.i.bf16 %v1716_v39, %v1714_v24 }
 0x212   :  { %v4402_v28 = vsel %vm4387_vm11, %v4337_v8, %v7522_v3  ;;  %v4403_v20 = vsel %vm4387_vm11, %v4338_v27, %v7523_v45  ;;  %v7358_v18 = vunpack.i.h.bf16 %v9811_v46  ;;  %v7357_v12 = vunpack.i.l.bf16 %v9811_v46  ;;  %v1336_v8 = vld [vmem:[#allocation2 + $0x769] ss:$2 sm:$0xff] }
 0x213   :  { %7810 = vrot.lane.b32.xlu0 %v7809_v2, %s8243_s17  ;;  %v7531_v9 = vpop.permute.xlu0 %7530  ;;  %6754 = vmatprep.mubr.msk.bf16.mxu0 %vm4499_vm12, %v4462_v19  ;;  %v4463_v59 = vpack.c.bf16 %v4403_v20, %v4402_v28  ;;  %v7829_v2 = vpack.i.bf16 %v1584_v56, %v1582_v1  ;;  %v7528_v55 = vunpack.i.h.bf16 %v7526_v31  ;;  %v7527_v32 = vunpack.i.l.bf16 %v7526_v31 }
 0x214   :  { %v7533_v17 = vunpack.i.h.bf16 %v7531_v9  ;;  %v7532_v22 = vunpack.i.l.bf16 %v7531_v9  ;;  %v7849_v40 = vpack.i.bf16 %v1840_v0, %v1838_v6  ;;  %v7854_v38 = vpack.i.bf16 %v10225_v25, %v10223_v16  ;;  %v1464_v6 = vld [vmem:[#allocation2 + $0x76a] ss:$2 sm:$0xff]  ;;  %v1468_v25 = vld [vmem:[#allocation2 + $0x7ba] ss:$2 sm:$0xff] }
 0x215   :  { %7815 = vrot.lane.b32.xlu1 %v7814_v61, %s8243_s17  ;;  %6755 = vmatmul.mubr.msk.bf16.gmra.mrb[12].mxu0 %vm4499_vm12, %v4463_v59  ;;  %v7536_v11 = vpop.permute.xlu1 %7535  ;;  %v7352_v61 = vunpack.i.l.bf16 %v9794_v60  ;;  %v4145_v15 = vsel %vm4127_vm7, %v9382_v41, %v7353_v14  ;;  %v4146_v54 = vsel %vm4127_vm7, %v9398_v29, %v7357_v12  ;;  %v4147_v53 = vsel %vm4127_vm7, %v9395_v30, %v7358_v18  ;;  %v1334_v30 = vld [vmem:[#allocation2 + $0x759] ss:$2 sm:$0xff]  ;;  %v1338_v59 = vld [vmem:[#allocation2 + $0x7a9] ss:$2 sm:$0xff]  ;;  %v1466_v16 = vld [vmem:[#allocation2 + $0x7aa] ss:$2 sm:$0xff] }
 0x216   :  { %v7538_v50 = vunpack.i.h.bf16 %v7536_v11  ;;  %v7537_v62 = vunpack.i.l.bf16 %v7536_v11  ;;  %v4210_v35 = vsel %vm4192_vm8, %v4145_v15, %v7528_v55  ;;  %v4212_v41 = vsel %vm4192_vm8, %v4147_v53, %v7533_v17  ;;  %v1594_v18 = vld [vmem:[#allocation2 + $0x7d0] ss:$2 sm:$0xff]  ;;  %v1596_v12 = vld [vmem:[#allocation2 + $0x7e0] ss:$2 sm:$0xff]  ;;  %v1718_v55 = vld [vmem:[#allocation2 + $0x781] ss:$2 sm:$0xff] }
 0x217   :  { %7820 = vrot.lane.b32.xlu0 %v7819_v51, %s8244_s18  ;;  %v7541_v42 = vpop.permute.xlu0 %7540  ;;  %v4144_v49 = vsel %vm4127_vm7, %v9379_v37, %v7352_v61  ;;  %v4211_v33 = vsel %vm4192_vm8, %v4146_v54, %v7532_v22  ;;  %v7859_v5 = vpack.i.bf16 %v1336_v8, %v1334_v30  ;;  %v7874_v22 = vpack.i.bf16 %v1468_v25, %v1466_v16  ;;  %v10268_v15 = vld [vmem:[#allocation2 + $0x782] ss:$2 sm:$0xff] }
 0x218   :  { %v7543_v46 = vunpack.i.h.bf16 %v7541_v42  ;;  %v7542_v63 = vunpack.i.l.bf16 %v7541_v42  ;;  %v4209_v37 = vsel %vm4192_vm8, %v4144_v49, %v7527_v32  ;;  %v4275_v29 = vsel %vm4257_vm9, %v4210_v35, %v7538_v50  ;;  %v1720_v32 = vld [vmem:[#allocation2 + $0x791] ss:$2 sm:$0xff]  ;;  %v1724_v49 = vld [vmem:[#allocation2 + $0x7e1] ss:$2 sm:$0xff]  ;;  %v10270_v50 = vld [vmem:[#allocation2 + $0x792] ss:$2 sm:$0xff] }
 0x219   :  { %7825 = vrot.lane.b32.xlu1 %v7824_v48, %s8244_s18  ;;  %v7546_v60 = vpop.permute.xlu1 %7545  ;;  %v4274_v3 = vsel %vm4257_vm9, %v4209_v37, %v7537_v62  ;;  %v1340_v48 = vld [vmem:[#allocation2 + $0x7b9] ss:$2 sm:$0xff] }
 0x21a   :  { %v7548_v10 = vunpack.i.h.bf16 %v7546_v60  ;;  %v7547_v13 = vunpack.i.l.bf16 %v7546_v60  ;;  %v4276_v27 = vsel %vm4257_vm9, %v4211_v33, %v7542_v63  ;;  %v4277_v31 = vsel %vm4257_vm9, %v4212_v41, %v7543_v46  ;;  %v1722_v60 = vld [vmem:[#allocation2 + $0x7d1] ss:$2 sm:$0xff] }
 0x21b   :  { %7830 = vrot.lane.b32.xlu0 %v7829_v2, %s8246_s19  ;;  %v7551_v26 = vpop.permute.xlu0 %7550  ;;  %v1462_v2 = vld [vmem:[#allocation2 + $0x75a] ss:$2 sm:$0xff]  ;;  %v7864_v0 = vpack.i.bf16 %v1340_v48, %v1338_v59  ;;  %v7884_v63 = vpack.i.bf16 %v1596_v12, %v1594_v18  ;;  %v7899_v33 = vpack.i.bf16 %v10270_v50, %v10268_v15 }
 0x21c   :  { %v7553_v47 = vunpack.i.h.bf16 %v7551_v26  ;;  %v7552_v21 = vunpack.i.l.bf16 %v7551_v26  ;;  %v4339_v51 = vsel %vm4322_vm10, %v4274_v3, %v7547_v13  ;;  %v4340_v19 = vsel %vm4322_vm10, %v4275_v29, %v7548_v10  ;;  %v1470_v50 = vld [vmem:[#allocation2 + $0x7fa] ss:$2 sm:$0xff] }
 0x21d   :  { %7835 = vrot.lane.b32.xlu1 %v7834_v23, %s8246_s19  ;;  %v7556_v45 = vpop.permute.xlu1 %7555  ;;  %v7869_v23 = vpack.i.bf16 %v1464_v6, %v1462_v2  ;;  %v7889_v10 = vpack.i.bf16 %v1720_v32, %v1718_v55 }
 0x21e   :  { %v7558_v58 = vunpack.i.h.bf16 %v7556_v45  ;;  %v7557_v52 = vunpack.i.l.bf16 %v7556_v45  ;;  %v4341_v43 = vsel %vm4322_vm10, %v4276_v27, %v7552_v21  ;;  %v4342_v34 = vsel %vm4322_vm10, %v4277_v31, %v7553_v47  ;;  %v13337_v21 = vld [vmem:[#allocation108_spill] sm:$0xff]  ;;  %v13338_v31 = vld [vmem:[#allocation33_spill] sm:$0xff] }
 0x21f   :  { %7840 = vrot.lane.b32.xlu0 %v7839_v44, %s8247_s20  ;;  %v7561_v28 = vpop.permute.xlu0 %7560  ;;  %v1590_v44 = vld [vmem:[#allocation2 + $0x780] ss:$2 sm:$0xff] }
 0x220   :  { %v4404_v20 = vsel %vm4387_vm11, %v4339_v51, %v7557_v52  ;;  %v4405_v1 = vsel %vm4387_vm11, %v4340_v19, %v7558_v58  ;;  %v7563_v56 = vunpack.i.h.bf16 %v7561_v28  ;;  %v7562_v9 = vunpack.i.l.bf16 %v7561_v28  ;;  %v13339_v19 = vld [vmem:[#allocation109_spill] sm:$0xff] }
 0x221   :  { %7845 = vrot.lane.b32.xlu1 %v7844_v4, %s8247_s20  ;;  %v4464_v24 = vpack.c.bf16 %v4405_v1, %v4404_v20  ;;  %v1592_v4 = vld [vmem:[#allocation2 + $0x790] ss:$2 sm:$0xff] }
 0x222   :  { %v7566_v7 = vpop.permute.xlu1 %7565  ;;  %v4406_v39 = vsel %vm4387_vm11, %v4341_v43, %v7562_v9  ;;  %v4407_v11 = vsel %vm4387_vm11, %v4342_v34, %v7563_v56  ;;  %v7879_v46 = vpack.i.bf16 %v1592_v4, %v1590_v44  ;;  %v1344_v44 = vld [vmem:[#allocation2 + $0x809] ss:$2 sm:$0xff] }
 0x223   :  { %7850 = vrot.lane.b32.xlu0 %v7849_v40, %s8248_s21  ;;  %6758 = vmatprep.mubr.msk.bf16.mxu0 %vm4499_vm12, %v4464_v24  ;;  %v4465_v61 = vpack.c.bf16 %v4407_v11, %v4406_v39  ;;  %v7363_v40 = vunpack.i.h.bf16 %v9828_v36  ;;  %v7568_v13 = vunpack.i.h.bf16 %v7566_v7  ;;  %v7567_v26 = vunpack.i.l.bf16 %v7566_v7  ;;  %v1850_v24 = vld [vmem:[#allocation2 + $0x7d2] ss:$2 sm:$0xff]  ;;  %v1852_v39 = vld [vmem:[#allocation2 + $0x7e2] ss:$2 sm:$0xff] }
 0x224   :  { %v7571_v14 = vpop.permute.xlu0 %7570  ;;  %v7904_v32 = vpack.i.bf16 %v1852_v39, %v1850_v24 }
 0x225   :  { %7855 = vrot.lane.b32.xlu1 %v7854_v38, %s8248_s21  ;;  %6759 = vmatmul.mubr.msk.bf16.gmra.mrb[16].mxu0 %vm4499_vm12, %v4465_v61  ;;  %v7362_v38 = vunpack.i.l.bf16 %v9828_v36  ;;  %v7573_v54 = vunpack.i.h.bf16 %v7571_v14  ;;  %v7572_v53 = vunpack.i.l.bf16 %v7571_v14  ;;  %v7894_v36 = vpack.i.bf16 %v1724_v49, %v1722_v60  ;;  %v1346_v60 = vld [vmem:[#allocation2 + $0x849] ss:$2 sm:$0xff] }
 0x226   :  { %v4149_v45 = vsel %vm4127_vm7, %v13337_v21, %v7363_v40  ;;  %v4151_v51 = vsel %vm4127_vm7, %v13338_v31, %v7568_v13  ;;  %v4150_v28 = vsel %vm4127_vm7, %v13339_v19, %v7567_v26  ;;  %v1348_v40 = vld [vmem:[#allocation2 + $0x859] ss:$2 sm:$0xff]  ;;  %v1476_v13 = vld [vmem:[#allocation2 + $0x85a] ss:$2 sm:$0xff] }
 0x227   :  { %7860 = vrot.lane.b32.xlu0 %v7859_v5, %s8243_s17  ;;  %v7576_v42 = vpop.permute.xlu1 %7575  ;;  %v4148_v47 = vsel %vm4127_vm7, %v9411_v57, %v7362_v38  ;;  %v4214_v20 = vsel %vm4192_vm8, %v4149_v45, %v7573_v54  ;;  %v10310_v45 = vld [vmem:[#allocation2 + $0x871] ss:$2 sm:$0xff] }
 0x228   :  { %v7581_v17 = vpop.permute.xlu0 %7580  ;;  %v7578_v37 = vunpack.i.h.bf16 %v7576_v42  ;;  %v7577_v35 = vunpack.i.l.bf16 %v7576_v42  ;;  %v4213_v57 = vsel %vm4192_vm8, %v4148_v47, %v7572_v53  ;;  %v1598_v53 = vld [vmem:[#allocation2 + $0x820] ss:$2 sm:$0xff] }
 0x229   :  { %7865 = vrot.lane.b32.xlu1 %v7864_v0, %s8243_s17  ;;  %v7583_v3 = vunpack.i.h.bf16 %v7581_v17  ;;  %v7582_v29 = vunpack.i.l.bf16 %v7581_v17 }
 0x22a   :  { %v4215_v1 = vsel %vm4192_vm8, %v4150_v28, %v7577_v35  ;;  %v4216_v56 = vsel %vm4192_vm8, %v4151_v51, %v7578_v37  ;;  %v1600_v37 = vld [vmem:[#allocation2 + $0x830] ss:$2 sm:$0xff] }
 0x22b   :  { %7870 = vrot.lane.b32.xlu0 %v7869_v23, %s8244_s18  ;;  %v7586_v62 = vpop.permute.xlu1 %7585  ;;  %v4278_v43 = vsel %vm4257_vm9, %v4213_v57, %v7582_v29  ;;  %v4279_v34 = vsel %vm4257_vm9, %v4214_v20, %v7583_v3  ;;  %v1342_v23 = vld [vmem:[#allocation2 + $0x7f9] ss:$2 sm:$0xff]  ;;  %v1602_v35 = vld [vmem:[#allocation2 + $0x870] ss:$2 sm:$0xff] }
 0x22c   :  { %v7588_v58 = vunpack.i.h.bf16 %v7586_v62  ;;  %v7587_v52 = vunpack.i.l.bf16 %v7586_v62  ;;  %v7909_v49 = vpack.i.bf16 %v1344_v44, %v1342_v23  ;;  %v1472_v62 = vld [vmem:[#allocation2 + $0x80a] ss:$2 sm:$0xff] }
 0x22d   :  { %v7591_v41 = vpop.permute.xlu0 %7590  ;;  %7875 = vrot.lane.b32.xlu1 %v7874_v22, %s8244_s18  ;;  %v7919_v54 = vpack.i.bf16 %v1472_v62, %v1470_v50 }
 0x22e   :  { %v7593_v30 = vunpack.i.h.bf16 %v7591_v41  ;;  %v7592_v8 = vunpack.i.l.bf16 %v7591_v41  ;;  %v4280_v11 = vsel %vm4257_vm9, %v4215_v1, %v7587_v52  ;;  %v4281_v2 = vsel %vm4257_vm9, %v4216_v56, %v7588_v58  ;;  %v1604_v41 = vld [vmem:[#allocation2 + $0x880] ss:$2 sm:$0xff]  ;;  %v1732_v58 = vld [vmem:[#allocation2 + $0x881] ss:$2 sm:$0xff] }
 0x22f   :  { %7880 = vrot.lane.b32.xlu0 %v7879_v46, %s8246_s19  ;;  %v7596_v27 = vpop.permute.xlu1 %7595  ;;  %v10312_v52 = vld [vmem:[#allocation2 + $0x822] ss:$2 sm:$0xff]  ;;  %v7934_v31 = vpack.i.bf16 %v1604_v41, %v1602_v35 }
 0x230   :  { %v7598_v9 = vunpack.i.h.bf16 %v7596_v27  ;;  %v7597_v59 = vunpack.i.l.bf16 %v7596_v27  ;;  %v4343_v6 = vsel %vm4322_vm10, %v4278_v43, %v7592_v8  ;;  %v4344_v14 = vsel %vm4322_vm10, %v4279_v34, %v7593_v30  ;;  %v10314_v30 = vld [vmem:[#allocation2 + $0x832] ss:$2 sm:$0xff] }
 0x231   :  { %v7601_v48 = vpop.permute.xlu0 %7600  ;;  %7885 = vrot.lane.b32.xlu1 %v7884_v63, %s8246_s19  ;;  %v7914_v63 = vpack.i.bf16 %v1348_v40, %v1346_v60  ;;  %v7929_v27 = vpack.i.bf16 %v1600_v37, %v1598_v53  ;;  %v13340_v43 = vld [vmem:[#allocation47_spill] sm:$0xff]  ;;  %v1350_v53 = vld [vmem:[#allocation2 + $0x899] ss:$2 sm:$0xff] }
 0x232   :  { %v7603_v7 = vunpack.i.h.bf16 %v7601_v48  ;;  %v7602_v5 = vunpack.i.l.bf16 %v7601_v48  ;;  %v4345_v4 = vsel %vm4322_vm10, %v4280_v11, %v7597_v59  ;;  %v4346_v18 = vsel %vm4322_vm10, %v4281_v2, %v7598_v9  ;;  %v1352_v37 = vld [vmem:[#allocation2 + $0x8a9] ss:$2 sm:$0xff] }
 0x233   :  { %7890 = vrot.lane.b32.xlu0 %v7889_v10, %s8247_s20  ;;  %v7606_v61 = vpop.permute.xlu1 %7605  ;;  %v1474_v10 = vld [vmem:[#allocation2 + $0x84a] ss:$2 sm:$0xff]  ;;  %v7944_v59 = vpack.i.bf16 %v1732_v58, %v10310_v45  ;;  %v7949_v48 = vpack.i.bf16 %v10314_v30, %v10312_v52  ;;  %v7959_v30 = vpack.i.bf16 %v1352_v37, %v1350_v53 }
 0x234   :  { %v4408_v0 = vsel %vm4387_vm11, %v4343_v6, %v7602_v5  ;;  %v4409_v16 = vsel %vm4387_vm11, %v4344_v14, %v7603_v7  ;;  %v7608_v25 = vunpack.i.h.bf16 %v7606_v61  ;;  %v7607_v42 = vunpack.i.l.bf16 %v7606_v61  ;;  %v13341_v7 = vld [vmem:[#allocation34_spill] sm:$0xff] }
 0x235   :  { %v7611_v12 = vpop.permute.xlu0 %7610  ;;  %7895 = vrot.lane.b32.xlu1 %v7894_v36, %s8247_s20  ;;  %v4466_v55 = vpack.c.bf16 %v4409_v16, %v4408_v0  ;;  %v1726_v36 = vld [vmem:[#allocation2 + $0x821] ss:$2 sm:$0xff]  ;;  %v7924_v21 = vpack.i.bf16 %v1476_v13, %v1474_v10 }
 0x236   :  { %v4410_v17 = vsel %vm4387_vm11, %v4345_v4, %v7607_v42  ;;  %v4411_v22 = vsel %vm4387_vm11, %v4346_v18, %v7608_v25  ;;  %v7613_v3 = vunpack.i.h.bf16 %v7611_v12  ;;  %v7612_v29 = vunpack.i.l.bf16 %v7611_v12  ;;  %v13342_v0 = vld [vmem:[#allocation49_spill] sm:$0xff]  ;;  %v13343_v25 = vld [vmem:[#allocation50_spill] sm:$0xff] }
 0x237   :  { %7900 = vrot.lane.b32.xlu0 %v7899_v33, %s8248_s21  ;;  %6762 = vmatprep.mubr.msk.bf16.mxu0 %vm4499_vm12, %v4466_v55  ;;  %v7616_v38 = vpop.permute.xlu1 %7615  ;;  %v4467_v15 = vpack.c.bf16 %v4411_v22, %v4410_v17  ;;  %v1728_v33 = vld [vmem:[#allocation2 + $0x831] ss:$2 sm:$0xff] }
 0x238   :  { %v7939_v51 = vpack.i.bf16 %v1728_v33, %v1726_v36  ;;  %v7618_v19 = vunpack.i.h.bf16 %v7616_v38  ;;  %v7617_v28 = vunpack.i.l.bf16 %v7616_v38  ;;  %v4152_v34 = vsel %vm4127_vm7, %v13340_v43, %v7612_v29  ;;  %v1858_v38 = vld [vmem:[#allocation2 + $0x872] ss:$2 sm:$0xff]  ;;  %v1356_v29 = vld [vmem:[#allocation2 + $0x8f9] ss:$2 sm:$0xff] }
 0x239   :  { %v7621_v46 = vpop.permute.xlu0 %7620  ;;  %7905 = vrot.lane.b32.xlu1 %v7904_v32, %s8248_s21  ;;  %6763 = vmatmul.mubr.msk.bf16.gmra.mrb[20].mxu0 %vm4499_vm12, %v4467_v15  ;;  %v4153_v5 = vsel %vm4127_vm7, %v13341_v7, %v7613_v3  ;;  %v1354_v3 = vld [vmem:[#allocation2 + $0x8e9] ss:$2 sm:$0xff] }
 0x23a   :  { %v7623_v57 = vunpack.i.h.bf16 %v7621_v46  ;;  %v7622_v20 = vunpack.i.l.bf16 %v7621_v46  ;;  %v4155_v16 = vsel %vm4127_vm7, %v13342_v0, %v7618_v19  ;;  %v4154_v42 = vsel %vm4127_vm7, %v13343_v25, %v7617_v28  ;;  %v1482_v19 = vld [vmem:[#allocation2 + $0x8ea] ss:$2 sm:$0xff]  ;;  %v1484_v28 = vld [vmem:[#allocation2 + $0x8fa] ss:$2 sm:$0xff]  ;;  %v1736_v43 = vld [vmem:[#allocation2 + $0x8d1] ss:$2 sm:$0xff] }
 0x23b   :  { %7910 = vrot.lane.b32.xlu0 %v7909_v49, %s8243_s17  ;;  %v7626_v26 = vpop.permute.xlu1 %7625  ;;  %v1860_v49 = vld [vmem:[#allocation2 + $0x882] ss:$2 sm:$0xff]  ;;  %v7974_v7 = vpack.i.bf16 %v1484_v28, %v1482_v19 }
 0x23c   :  { %v7628_v1 = vunpack.i.h.bf16 %v7626_v26  ;;  %v7627_v56 = vunpack.i.l.bf16 %v7626_v26  ;;  %v4217_v23 = vsel %vm4192_vm8, %v4152_v34, %v7622_v20  ;;  %v4218_v44 = vsel %vm4192_vm8, %v4153_v5, %v7623_v57  ;;  %v10355_v5 = vld [vmem:[#allocation2 + $0x911] ss:$2 sm:$0xff] }
 0x23d   :  { %v7631_v47 = vpop.permute.xlu0 %7630  ;;  %7915 = vrot.lane.b32.xlu1 %v7914_v63, %s8243_s17 }
 0x23e   :  { %v7633_v24 = vunpack.i.h.bf16 %v7631_v47  ;;  %v7632_v39 = vunpack.i.l.bf16 %v7631_v47  ;;  %v4219_v4 = vsel %vm4192_vm8, %v4154_v42, %v7627_v56  ;;  %v4220_v18 = vsel %vm4192_vm8, %v4155_v16, %v7628_v1  ;;  %v1606_v1 = vld [vmem:[#allocation2 + $0x8c0] ss:$2 sm:$0xff]  ;;  %v1608_v56 = vld [vmem:[#allocation2 + $0x8d0] ss:$2 sm:$0xff] }
 0x23f   :  { %7920 = vrot.lane.b32.xlu0 %v7919_v54, %s8244_s18  ;;  %v7636_v8 = vpop.permute.xlu1 %7635  ;;  %v7954_v47 = vpack.i.bf16 %v1860_v49, %v1858_v38 }
 0x240   :  { %v7638_v11 = vunpack.i.h.bf16 %v7636_v8  ;;  %v7637_v2 = vunpack.i.l.bf16 %v7636_v8  ;;  %v4282_v17 = vsel %vm4257_vm9, %v4217_v23, %v7632_v39  ;;  %v4283_v22 = vsel %vm4257_vm9, %v4218_v44, %v7633_v24  ;;  %v1478_v8 = vld [vmem:[#allocation2 + $0x89a] ss:$2 sm:$0xff] }
 0x241   :  { %v7641_v9 = vpop.permute.xlu0 %7640  ;;  %7925 = vrot.lane.b32.xlu1 %v7924_v21, %s8244_s18 }
 0x242   :  { %v7643_v6 = vunpack.i.h.bf16 %v7641_v9  ;;  %v7642_v14 = vunpack.i.l.bf16 %v7641_v9  ;;  %v4284_v15 = vsel %vm4257_vm9, %v4219_v4, %v7637_v2  ;;  %v4285_v50 = vsel %vm4257_vm9, %v4220_v18, %v7638_v11  ;;  %v1610_v9 = vld [vmem:[#allocation2 + $0x910] ss:$2 sm:$0xff]  ;;  %v1740_v11 = vld [vmem:[#allocation2 + $0x921] ss:$2 sm:$0xff] }
 0x243   :  { %7930 = vrot.lane.b32.xlu0 %v7929_v27, %s8246_s19  ;;  %v7646_v61 = vpop.permute.xlu1 %7645  ;;  %v1480_v27 = vld [vmem:[#allocation2 + $0x8aa] ss:$2 sm:$0xff] }
 0x244   :  { %v7648_v12 = vunpack.i.h.bf16 %v7646_v61  ;;  %v7647_v55 = vunpack.i.l.bf16 %v7646_v61  ;;  %v4347_v62 = vsel %vm4322_vm10, %v4282_v17, %v7642_v14  ;;  %v4348_v46 = vsel %vm4322_vm10, %v4283_v22, %v7643_v6  ;;  %v10357_v2 = vld [vmem:[#allocation2 + $0x8c2] ss:$2 sm:$0xff]  ;;  %v10359_v6 = vld [vmem:[#allocation2 + $0x8d2] ss:$2 sm:$0xff] }
 0x245   :  { %v7651_v32 = vpop.permute.xlu0 %7650  ;;  %7935 = vrot.lane.b32.xlu1 %v7934_v31, %s8246_s19  ;;  %v7969_v20 = vpack.i.bf16 %v1480_v27, %v1478_v8  ;;  %v7979_v61 = vpack.i.bf16 %v1608_v56, %v1606_v1  ;;  %v13344_v17 = vld [vmem:[#allocation35_spill] sm:$0xff]  ;;  %v1358_v1 = vld [vmem:[#allocation2 + $0x939] ss:$2 sm:$0xff] }
 0x246   :  { %v7653_v60 = vunpack.i.h.bf16 %v7651_v32  ;;  %v7652_v40 = vunpack.i.l.bf16 %v7651_v32  ;;  %v4349_v35 = vsel %vm4322_vm10, %v4284_v15, %v7647_v55  ;;  %v4350_v41 = vsel %vm4322_vm10, %v4285_v50, %v7648_v12  ;;  %v1360_v56 = vld [vmem:[#allocation2 + $0x949] ss:$2 sm:$0xff] }
 0x247   :  { %7940 = vrot.lane.b32.xlu0 %v7939_v51, %s8247_s20  ;;  %v7656_v63 = vpop.permute.xlu1 %7655  ;;  %v7964_v51 = vpack.i.bf16 %v1356_v29, %v1354_v3  ;;  %v7994_v55 = vpack.i.bf16 %v1740_v11, %v10355_v5  ;;  %v7999_v32 = vpack.i.bf16 %v10359_v6, %v10357_v2  ;;  %v8009_v6 = vpack.i.bf16 %v1360_v56, %v1358_v1 }
 0x248   :  { %v4412_v10 = vsel %vm4387_vm11, %v4347_v62, %v7652_v40  ;;  %v4413_v13 = vsel %vm4387_vm11, %v4348_v46, %v7653_v60  ;;  %v7658_v26 = vunpack.i.h.bf16 %v7656_v63  ;;  %v7657_v54 = vunpack.i.l.bf16 %v7656_v63  ;;  %v13345_v60 = vld [vmem:[#allocation52_spill] sm:$0xff] }
 0x249   :  { %v4468_v36 = vpack.c.bf16 %v4413_v13, %v4412_v10  ;;  %v7661_v33 = vpop.permute.xlu0 %7660  ;;  %7945 = vrot.lane.b32.xlu1 %v7944_v59, %s8247_s20  ;;  %v1612_v59 = vld [vmem:[#allocation2 + $0x920] ss:$2 sm:$0xff] }
 0x24a   :  { %v4414_v21 = vsel %vm4387_vm11, %v4349_v35, %v7657_v54  ;;  %v4415_v45 = vsel %vm4387_vm11, %v4350_v41, %v7658_v26  ;;  %v7663_v24 = vunpack.i.h.bf16 %v7661_v33  ;;  %v7662_v39 = vunpack.i.l.bf16 %v7661_v33  ;;  %v13346_v10 = vld [vmem:[#allocation51_spill] sm:$0xff]  ;;  %v13347_v26 = vld [vmem:[#allocation36_spill] sm:$0xff] }
 0x24b   :  { %v4469_v58 = vpack.c.bf16 %v4415_v45, %v4414_v21  ;;  %7950 = vrot.lane.b32.xlu0 %v7949_v48, %s8248_s21  ;;  %6766 = vmatprep.mubr.msk.bf16.mxu0 %vm4499_vm12, %v4468_v36  ;;  %v7666_v52 = vpop.permute.xlu1 %7665  ;;  %v1734_v48 = vld [vmem:[#allocation2 + $0x8c1] ss:$2 sm:$0xff]  ;;  %v7984_v0 = vpack.i.bf16 %v1612_v59, %v1610_v9 }
 0x24c   :  { %v7989_v16 = vpack.i.bf16 %v1736_v43, %v1734_v48  ;;  %v7668_v25 = vunpack.i.h.bf16 %v7666_v52  ;;  %v7667_v42 = vunpack.i.l.bf16 %v7666_v52  ;;  %v4156_v22 = vsel %vm4127_vm7, %v13344_v17, %v7662_v39  ;;  %v1868_v52 = vld [vmem:[#allocation2 + $0x922] ss:$2 sm:$0xff]  ;;  %v1364_v39 = vld [vmem:[#allocation2 + $0x999] ss:$2 sm:$0xff] }
 0x24d   :  { %v7671_v31 = vpop.permute.xlu0 %7670  ;;  %7955 = vrot.lane.b32.xlu1 %v7954_v47, %s8248_s21  ;;  %6767 = vmatmul.mubr.msk.bf16.gmra.mrb[24].mxu0 %vm4499_vm12, %v4469_v58  ;;  %v4157_v40 = vsel %vm4127_vm7, %v13345_v60, %v7663_v24  ;;  %v1866_v58 = vld [vmem:[#allocation2 + $0x912] ss:$2 sm:$0xff]  ;;  %v1362_v24 = vld [vmem:[#allocation2 + $0x989] ss:$2 sm:$0xff] }
 0x24e   :  { %v7673_v23 = vunpack.i.h.bf16 %v7671_v31  ;;  %v7672_v44 = vunpack.i.l.bf16 %v7671_v31  ;;  %v4159_v13 = vsel %vm4127_vm7, %v13346_v10, %v7668_v25  ;;  %v4158_v54 = vsel %vm4127_vm7, %v13347_v26, %v7667_v42  ;;  %v1490_v25 = vld [vmem:[#allocation2 + $0x98a] ss:$2 sm:$0xff]  ;;  %v1492_v42 = vld [vmem:[#allocation2 + $0x99a] ss:$2 sm:$0xff]  ;;  %v1744_v17 = vld [vmem:[#allocation2 + $0x971] ss:$2 sm:$0xff] }
 0x24f   :  { %7960 = vrot.lane.b32.xlu0 %v7959_v30, %s8243_s17  ;;  %v7676_v57 = vpop.permute.xlu1 %7675  ;;  %v8024_v60 = vpack.i.bf16 %v1492_v42, %v1490_v25 }
 0x250   :  { %v7678_v4 = vunpack.i.h.bf16 %v7676_v57  ;;  %v7677_v18 = vunpack.i.l.bf16 %v7676_v57  ;;  %v4221_v53 = vsel %vm4192_vm8, %v4156_v22, %v7672_v44  ;;  %v4222_v37 = vsel %vm4192_vm8, %v4157_v40, %v7673_v23  ;;  %v1746_v40 = vld [vmem:[#allocation2 + $0x9b1] ss:$2 sm:$0xff] }
 0x251   :  { %v7681_v34 = vpop.permute.xlu0 %7680  ;;  %7965 = vrot.lane.b32.xlu1 %v7964_v51, %s8243_s17 }
 0x252   :  { %v7683_v38 = vunpack.i.h.bf16 %v7681_v34  ;;  %v7682_v49 = vunpack.i.l.bf16 %v7681_v34  ;;  %v4223_v35 = vsel %vm4192_vm8, %v4158_v54, %v7677_v18  ;;  %v4224_v41 = vsel %vm4192_vm8, %v4159_v13, %v7678_v4  ;;  %v1614_v4 = vld [vmem:[#allocation2 + $0x960] ss:$2 sm:$0xff]  ;;  %v1616_v18 = vld [vmem:[#allocation2 + $0x970] ss:$2 sm:$0xff] }
 0x253   :  { %7970 = vrot.lane.b32.xlu0 %v7969_v20, %s8244_s18  ;;  %v7686_v14 = vpop.permute.xlu1 %7685  ;;  %v8004_v34 = vpack.i.bf16 %v1868_v52, %v1866_v58 }
 0x254   :  { %v7688_v15 = vunpack.i.h.bf16 %v7686_v14  ;;  %v7687_v50 = vunpack.i.l.bf16 %v7686_v14  ;;  %v4286_v21 = vsel %vm4257_vm9, %v4221_v53, %v7682_v49  ;;  %v4287_v45 = vsel %vm4257_vm9, %v4222_v37, %v7683_v38  ;;  %v1486_v14 = vld [vmem:[#allocation2 + $0x93a] ss:$2 sm:$0xff] }
 0x255   :  { %v7691_v12 = vpop.permute.xlu0 %7690  ;;  %7975 = vrot.lane.b32.xlu1 %v7974_v7, %s8244_s18 }
 0x256   :  { %v7693_v62 = vunpack.i.h.bf16 %v7691_v12  ;;  %v7692_v46 = vunpack.i.l.bf16 %v7691_v12  ;;  %v4288_v30 = vsel %vm4257_vm9, %v4223_v35, %v7687_v50  ;;  %v4289_v8 = vsel %vm4257_vm9, %v4224_v41, %v7688_v15  ;;  %v1618_v12 = vld [vmem:[#allocation2 + $0x9b0] ss:$2 sm:$0xff]  ;;  %v1748_v15 = vld [vmem:[#allocation2 + $0x9c1] ss:$2 sm:$0xff] }
 0x257   :  { %7980 = vrot.lane.b32.xlu0 %v7979_v61, %s8246_s19  ;;  %v7696_v63 = vpop.permute.xlu1 %7695  ;;  %v1488_v61 = vld [vmem:[#allocation2 + $0x94a] ss:$2 sm:$0xff] }
 0x258   :  { %v7698_v36 = vunpack.i.h.bf16 %v7696_v63  ;;  %v7697_v33 = vunpack.i.l.bf16 %v7696_v63  ;;  %v4351_v27 = vsel %vm4322_vm10, %v4286_v21, %v7692_v46  ;;  %v4352_v31 = vsel %vm4322_vm10, %v4287_v45, %v7693_v62  ;;  %v10400_v50 = vld [vmem:[#allocation2 + $0x962] ss:$2 sm:$0xff]  ;;  %v10402_v62 = vld [vmem:[#allocation2 + $0x972] ss:$2 sm:$0xff] }
 0x259   :  { %v7701_v47 = vpop.permute.xlu0 %7700  ;;  %7985 = vrot.lane.b32.xlu1 %v7984_v0, %s8246_s19  ;;  %v8019_v44 = vpack.i.bf16 %v1488_v61, %v1486_v14  ;;  %v8029_v63 = vpack.i.bf16 %v1616_v18, %v1614_v4  ;;  %v13348_v21 = vld [vmem:[#allocation53_spill] sm:$0xff]  ;;  %v1368_v18 = vld [vmem:[#allocation2 + $0x9e9] ss:$2 sm:$0xff] }
 0x25a   :  { %v7703_v3 = vunpack.i.h.bf16 %v7701_v47  ;;  %v7702_v29 = vunpack.i.l.bf16 %v7701_v47  ;;  %v4353_v9 = vsel %vm4322_vm10, %v4288_v30, %v7697_v33  ;;  %v4354_v59 = vsel %vm4322_vm10, %v4289_v8, %v7698_v36  ;;  %v1366_v4 = vld [vmem:[#allocation2 + $0x9d9] ss:$2 sm:$0xff] }
 0x25b   :  { %7990 = vrot.lane.b32.xlu0 %v7989_v16, %s8247_s20  ;;  %v7706_v51 = vpop.permute.xlu1 %7705  ;;  %v8014_v16 = vpack.i.bf16 %v1364_v39, %v1362_v24  ;;  %v8044_v33 = vpack.i.bf16 %v1748_v15, %v1746_v40  ;;  %v8049_v47 = vpack.i.bf16 %v10402_v62, %v10400_v50  ;;  %v8059_v62 = vpack.i.bf16 %v1368_v18, %v1366_v4 }
 0x25c   :  { %v4416_v19 = vsel %vm4387_vm11, %v4351_v27, %v7702_v29  ;;  %v4417_v28 = vsel %vm4387_vm11, %v4352_v31, %v7703_v3  ;;  %v7708_v57 = vunpack.i.h.bf16 %v7706_v51  ;;  %v7707_v20 = vunpack.i.l.bf16 %v7706_v51  ;;  %v13349_v3 = vld [vmem:[#allocation54_spill] sm:$0xff] }
 0x25d   :  { %v4470_v48 = vpack.c.bf16 %v4417_v28, %v4416_v19  ;;  %v7711_v43 = vpop.permute.xlu0 %7710  ;;  %7995 = vrot.lane.b32.xlu1 %v7994_v55, %s8247_s20  ;;  %v1620_v55 = vld [vmem:[#allocation2 + $0x9c0] ss:$2 sm:$0xff] }
 0x25e   :  { %v4418_v7 = vsel %vm4387_vm11, %v4353_v9, %v7707_v20  ;;  %v4419_v5 = vsel %vm4387_vm11, %v4354_v59, %v7708_v57  ;;  %v7713_v38 = vunpack.i.h.bf16 %v7711_v43  ;;  %v7712_v49 = vunpack.i.l.bf16 %v7711_v43  ;;  %v13350_v19 = vld [vmem:[#allocation37_spill] sm:$0xff] }
 0x25f   :  { %v4471_v11 = vpack.c.bf16 %v4419_v5, %v4418_v7  ;;  %8000 = vrot.lane.b32.xlu0 %v7999_v32, %s8248_s21  ;;  %6770 = vmatprep.mubr.msk.bf16.mxu0 %vm4499_vm12, %v4470_v48  ;;  %v7716_v2 = vpop.permute.xlu1 %7715  ;;  %v1742_v32 = vld [vmem:[#allocation2 + $0x961] ss:$2 sm:$0xff]  ;;  %v8034_v10 = vpack.i.bf16 %v1620_v55, %v1618_v12 }
 0x260   :  { %v8039_v13 = vpack.i.bf16 %v1744_v17, %v1742_v32  ;;  %v7718_v26 = vunpack.i.h.bf16 %v7716_v2  ;;  %v7717_v54 = vunpack.i.l.bf16 %v7716_v2  ;;  %v4160_v45 = vsel %vm4127_vm7, %v13348_v21, %v7712_v49  ;;  %v13351_v57 = vld [vmem:[#allocation57_spill] sm:$0xff] }
 0x261   :  { %v7721_v0 = vpop.permute.xlu0 %7720  ;;  %8005 = vrot.lane.b32.xlu1 %v8004_v34, %s8248_s21  ;;  %6771 = vmatmul.mubr.msk.bf16.gmra.mrb[28].mxu0 %vm4499_vm12, %v4471_v11  ;;  %v4161_v29 = vsel %vm4127_vm7, %v13349_v3, %v7713_v38  ;;  %v1874_v11 = vld [vmem:[#allocation2 + $0x9b2] ss:$2 sm:$0xff]  ;;  %v1876_v2 = vld [vmem:[#allocation2 + $0x9c2] ss:$2 sm:$0xff]  ;;  %v1370_v38 = vld [vmem:[#allocation2 + $0xa29] ss:$2 sm:$0xff] }
 0x262   :  { %v7723_v53 = vunpack.i.h.bf16 %v7721_v0  ;;  %v7722_v37 = vunpack.i.l.bf16 %v7721_v0  ;;  %v4163_v28 = vsel %vm4127_vm7, %v13350_v19, %v7718_v26  ;;  %v4162_v20 = vsel %vm4127_vm7, %v13351_v57, %v7717_v54  ;;  %v1372_v49 = vld [vmem:[#allocation2 + $0xa39] ss:$2 sm:$0xff]  ;;  %v1498_v26 = vld [vmem:[#allocation2 + $0xa2a] ss:$2 sm:$0xff]  ;;  %v1500_v54 = vld [vmem:[#allocation2 + $0xa3a] ss:$2 sm:$0xff] }
 0x263   :  { %8010 = vrot.lane.b32.xlu0 %v8009_v6, %s8243_s17  ;;  %v7726_v23 = vpop.permute.xlu1 %7725  ;;  %v1752_v21 = vld [vmem:[#allocation2 + $0xa11] ss:$2 sm:$0xff]  ;;  %v8074_v3 = vpack.i.bf16 %v1500_v54, %v1498_v26 }
 0x264   :  { %v7728_v35 = vunpack.i.h.bf16 %v7726_v23  ;;  %v7727_v41 = vunpack.i.l.bf16 %v7726_v23  ;;  %v4225_v1 = vsel %vm4192_vm8, %v4160_v45, %v7722_v37  ;;  %v4226_v56 = vsel %vm4192_vm8, %v4161_v29, %v7723_v53  ;;  %v1754_v29 = vld [vmem:[#allocation2 + $0xa51] ss:$2 sm:$0xff] }
 0x265   :  { %v7731_v22 = vpop.permute.xlu0 %7730  ;;  %8015 = vrot.lane.b32.xlu1 %v8014_v16, %s8243_s17 }
 0x266   :  { %v7733_v58 = vunpack.i.h.bf16 %v7731_v22  ;;  %v7732_v52 = vunpack.i.l.bf16 %v7731_v22  ;;  %v4227_v9 = vsel %vm4192_vm8, %v4162_v20, %v7727_v41  ;;  %v4228_v59 = vsel %vm4192_vm8, %v4163_v28, %v7728_v35  ;;  %v1622_v35 = vld [vmem:[#allocation2 + $0xa00] ss:$2 sm:$0xff]  ;;  %v1624_v41 = vld [vmem:[#allocation2 + $0xa10] ss:$2 sm:$0xff] }
 0x267   :  { %8020 = vrot.lane.b32.xlu0 %v8019_v44, %s8244_s18  ;;  %v7736_v46 = vpop.permute.xlu1 %7735  ;;  %v8054_v22 = vpack.i.bf16 %v1876_v2, %v1874_v11 }
 0x268   :  { %v7738_v30 = vunpack.i.h.bf16 %v7736_v46  ;;  %v7737_v8 = vunpack.i.l.bf16 %v7736_v46  ;;  %v4290_v7 = vsel %vm4257_vm9, %v4225_v1, %v7732_v52  ;;  %v4291_v5 = vsel %vm4257_vm9, %v4226_v56, %v7733_v58  ;;  %v1494_v46 = vld [vmem:[#allocation2 + $0x9da] ss:$2 sm:$0xff] }
 0x269   :  { %v7741_v36 = vpop.permute.xlu0 %7740  ;;  %8025 = vrot.lane.b32.xlu1 %v8024_v60, %s8244_s18 }
 0x26a   :  { %v7743_v27 = vunpack.i.h.bf16 %v7741_v36  ;;  %v7742_v31 = vunpack.i.l.bf16 %v7741_v36  ;;  %v4292_v6 = vsel %vm4257_vm9, %v4227_v9, %v7737_v8  ;;  %v4293_v14 = vsel %vm4257_vm9, %v4228_v59, %v7738_v30  ;;  %v1750_v36 = vld [vmem:[#allocation2 + $0xa01] ss:$2 sm:$0xff]  ;;  %v1878_v8 = vld [vmem:[#allocation2 + $0xa02] ss:$2 sm:$0xff] }
 0x26b   :  { %8030 = vrot.lane.b32.xlu0 %v8029_v63, %s8246_s19  ;;  %v7746_v51 = vpop.permute.xlu1 %7745  ;;  %v1496_v63 = vld [vmem:[#allocation2 + $0x9ea] ss:$2 sm:$0xff]  ;;  %v1756_v30 = vld [vmem:[#allocation2 + $0xa61] ss:$2 sm:$0xff]  ;;  %v8089_v28 = vpack.i.bf16 %v1752_v21, %v1750_v36 }
 0x26c   :  { %v7748_v48 = vunpack.i.h.bf16 %v7746_v51  ;;  %v7747_v43 = vunpack.i.l.bf16 %v7746_v51  ;;  %v4355_v0 = vsel %vm4322_vm10, %v4290_v7, %v7742_v31  ;;  %v4356_v16 = vsel %vm4322_vm10, %v4291_v5, %v7743_v27  ;;  %v1880_v27 = vld [vmem:[#allocation2 + $0xa12] ss:$2 sm:$0xff] }
 0x26d   :  { %v7751_v34 = vpop.permute.xlu0 %7750  ;;  %8035 = vrot.lane.b32.xlu1 %v8034_v10, %s8246_s19  ;;  %v8069_v37 = vpack.i.bf16 %v1496_v63, %v1494_v46  ;;  %v8079_v51 = vpack.i.bf16 %v1624_v41, %v1622_v35  ;;  %v13352_v7 = vld [vmem:[#allocation56_spill] sm:$0xff] }
 0x26e   :  { %v7753_v24 = vunpack.i.h.bf16 %v7751_v34  ;;  %v7752_v39 = vunpack.i.l.bf16 %v7751_v34  ;;  %v4357_v12 = vsel %vm4322_vm10, %v4292_v6, %v7747_v43  ;;  %v4358_v55 = vsel %vm4322_vm10, %v4293_v14, %v7748_v48 }
 0x26f   :  { %8040 = vrot.lane.b32.xlu0 %v8039_v13, %s8247_s20  ;;  %v7756_v61 = vpop.permute.xlu1 %7755  ;;  %v8064_v13 = vpack.i.bf16 %v1372_v49, %v1370_v38  ;;  %v8094_v43 = vpack.i.bf16 %v1756_v30, %v1754_v29  ;;  %v8099_v34 = vpack.i.bf16 %v1880_v27, %v1878_v8 }
 0x270   :  { %v7758_v25 = vunpack.i.h.bf16 %v7756_v61  ;;  %v7757_v42 = vunpack.i.l.bf16 %v7756_v61  ;;  %v4420_v23 = vsel %vm4387_vm11, %v4355_v0, %v7752_v39  ;;  %v4421_v44 = vsel %vm4387_vm11, %v4356_v16, %v7753_v24  ;;  %v13353_v24 = vld [vmem:[#allocation38_spill] sm:$0xff] }
 0x271   :  { %v7761_v32 = vpop.permute.xlu0 %7760  ;;  %8045 = vrot.lane.b32.xlu1 %v8044_v33, %s8247_s20  ;;  %v4472_v17 = vpack.c.bf16 %v4421_v44, %v4420_v23  ;;  %v1626_v33 = vld [vmem:[#allocation2 + $0xa50] ss:$2 sm:$0xff] }
 0x272   :  { %v4422_v60 = vsel %vm4387_vm11, %v4357_v12, %v7757_v42  ;;  %v4423_v40 = vsel %vm4387_vm11, %v4358_v55, %v7758_v25  ;;  %v7763_v58 = vunpack.i.h.bf16 %v7761_v32  ;;  %v7762_v52 = vunpack.i.l.bf16 %v7761_v32  ;;  %v13354_v25 = vld [vmem:[#allocation58_spill] sm:$0xff]  ;;  %v13355_v23 = vld [vmem:[#allocation61_spill] sm:$0xff] }
 0x273   :  { %v4473_v15 = vpack.c.bf16 %v4423_v40, %v4422_v60  ;;  %8050 = vrot.lane.b32.xlu0 %v8049_v47, %s8248_s21  ;;  %6774 = vmatprep.mubr.msk.bf16.mxu1 %vm4499_vm12, %v4472_v17  ;;  %v7766_v50 = vpop.permute.xlu1 %7765  ;;  %v1628_v47 = vld [vmem:[#allocation2 + $0xa60] ss:$2 sm:$0xff] }
 0x274   :  { %v8084_v19 = vpack.i.bf16 %v1628_v47, %v1626_v33  ;;  %v7768_v57 = vunpack.i.h.bf16 %v7766_v50  ;;  %v7767_v20 = vunpack.i.l.bf16 %v7766_v50  ;;  %v4164_v5 = vsel %vm4127_vm7, %v13352_v7, %v7762_v52  ;;  %v1884_v50 = vld [vmem:[#allocation2 + $0xa62] ss:$2 sm:$0xff] }
 0x275   :  { %v7771_v10 = vpop.permute.xlu0 %7770  ;;  %8055 = vrot.lane.b32.xlu1 %v8054_v22, %s8248_s21  ;;  %6775 = vmatmul.mubr.msk.bf16.vlgmr.msra.gmra.mrb[0].mxu1 %vm4499_vm12, %v4473_v15  ;;  %v4165_v39 = vsel %vm4127_vm7, %v13353_v24, %v7763_v58  ;;  %v1882_v15 = vld [vmem:[#allocation2 + $0xa52] ss:$2 sm:$0xff] }
 0x276   :  { %v7773_v1 = vunpack.i.h.bf16 %v7771_v10  ;;  %v7772_v56 = vunpack.i.l.bf16 %v7771_v10  ;;  %v4167_v42 = vsel %vm4127_vm7, %v13354_v25, %v7768_v57  ;;  %v4166_v44 = vsel %vm4127_vm7, %v13355_v23, %v7767_v20 }
 0x277   :  { %8060 = vrot.lane.b32.xlu0 %v8059_v62, %s8243_s17  ;;  %v7776_v53 = vpop.permute.xlu1 %7775  ;;  %v8104_v47 = vpack.i.bf16 %v1884_v50, %v1882_v15 }
 0x278   :  { %v7778_v9 = vunpack.i.h.bf16 %v7776_v53  ;;  %v7777_v59 = vunpack.i.l.bf16 %v7776_v53  ;;  %v4229_v4 = vsel %vm4192_vm8, %v4164_v5, %v7772_v56  ;;  %v4230_v18 = vsel %vm4192_vm8, %v4165_v39, %v7773_v1 }
 0x279   :  { %v7781_v45 = vpop.permute.xlu0 %7780  ;;  %8065 = vrot.lane.b32.xlu1 %v8064_v13, %s8243_s17 }
 0x27a   :  { %v7783_v11 = vunpack.i.h.bf16 %v7781_v45  ;;  %v7782_v2 = vunpack.i.l.bf16 %v7781_v45  ;;  %v4231_v12 = vsel %vm4192_vm8, %v4166_v44, %v7777_v59  ;;  %v4232_v55 = vsel %vm4192_vm8, %v4167_v42, %v7778_v9  ;;  %v13356_v9 = vld [vmem:[#allocation39_spill] sm:$0xff] }
 0x27b   :  { %8070 = vrot.lane.b32.xlu0 %v8069_v37, %s8244_s18  ;;  %v7786_v31 = vpop.permute.xlu1 %7785 }
 0x27c   :  { %v7788_v6 = vunpack.i.h.bf16 %v7786_v31  ;;  %v7787_v14 = vunpack.i.l.bf16 %v7786_v31  ;;  %v4294_v60 = vsel %vm4257_vm9, %v4229_v4, %v7782_v2  ;;  %v4295_v40 = vsel %vm4257_vm9, %v4230_v18, %v7783_v11 }
 0x27d   :  { %v7791_v48 = vpop.permute.xlu0 %7790  ;;  %8075 = vrot.lane.b32.xlu1 %v8074_v3, %s8244_s18 }
 0x27e   :  { %v7793_v61 = vunpack.i.h.bf16 %v7791_v48  ;;  %v7792_v0 = vunpack.i.l.bf16 %v7791_v48  ;;  %v4296_v62 = vsel %vm4257_vm9, %v4231_v12, %v7787_v14  ;;  %v4297_v46 = vsel %vm4257_vm9, %v4232_v55, %v7788_v6  ;;  %v13357_v48 = vld [vmem:[#allocation88_spill] sm:$0xff]  ;;  %v13358_v6 = vld [vmem:[#allocation63_spill] sm:$0xff] }
 0x27f   :  { %8080 = vrot.lane.b32.xlu0 %v8079_v51, %s8246_s19  ;;  %v7796_v16 = vpop.permute.xlu1 %7795 }
 0x280   :  { %v7798_v32 = vunpack.i.h.bf16 %v7796_v16  ;;  %v7797_v17 = vunpack.i.l.bf16 %v7796_v16  ;;  %v4359_v63 = vsel %vm4322_vm10, %v4294_v60, %v7792_v0  ;;  %v4360_v10 = vsel %vm4322_vm10, %v4295_v40, %v7793_v61  ;;  %v13359_v61 = vld [vmem:[#allocation62_spill] sm:$0xff] }
 0x281   :  { %v7801_v22 = vpop.permute.xlu0 %7800  ;;  %8085 = vrot.lane.b32.xlu1 %v8084_v19, %s8246_s19 }
 0x282   :  { %v7803_v38 = vunpack.i.h.bf16 %v7801_v22  ;;  %v7802_v49 = vunpack.i.l.bf16 %v7801_v22  ;;  %v4361_v35 = vsel %vm4322_vm10, %v4296_v62, %v7797_v17  ;;  %v4362_v41 = vsel %vm4322_vm10, %v4297_v46, %v7798_v32 }
 0x283   :  { %8090 = vrot.lane.b32.xlu0 %v8089_v28, %s8247_s20  ;;  %v7806_v13 = vpop.permute.xlu1 %7805 }
 0x284   :  { %v4424_v26 = vsel %vm4387_vm11, %v4359_v63, %v7802_v49  ;;  %v4425_v54 = vsel %vm4387_vm11, %v4360_v10, %v7803_v38  ;;  %v7808_v53 = vunpack.i.h.bf16 %v7806_v13  ;;  %v7807_v37 = vunpack.i.l.bf16 %v7806_v13 }
 0x285   :  { %v4474_v36 = vpack.c.bf16 %v4425_v54, %v4424_v26  ;;  %v7811_v33 = vpop.permute.xlu0 %7810  ;;  %8095 = vrot.lane.b32.xlu1 %v8094_v43, %s8247_s20 }
 0x286   :  { %v4426_v21 = vsel %vm4387_vm11, %v4361_v35, %v7807_v37  ;;  %v4427_v45 = vsel %vm4387_vm11, %v4362_v41, %v7808_v53  ;;  %v7813_v8 = vunpack.i.h.bf16 %v7811_v33  ;;  %v7812_v27 = vunpack.i.l.bf16 %v7811_v33 }
 0x287   :  { %v4475_v3 = vpack.c.bf16 %v4427_v45, %v4426_v21  ;;  %8100 = vrot.lane.b32.xlu0 %v8099_v34, %s8248_s21  ;;  %6778 = vmatprep.mubr.msk.bf16.mxu1 %vm4499_vm12, %v4474_v36  ;;  %v7816_v29 = vpop.permute.xlu1 %7815 }
 0x288   :  { %v7818_v51 = vunpack.i.h.bf16 %v7816_v29  ;;  %v7817_v19 = vunpack.i.l.bf16 %v7816_v29  ;;  %v4168_v59 = vsel %vm4127_vm7, %v13356_v9, %v7812_v27  ;;  %v4169_v43 = vsel %vm4127_vm7, %v13357_v48, %v7813_v8 }
 0x289   :  { %v7821_v58 = vpop.permute.xlu0 %7820  ;;  %8105 = vrot.lane.b32.xlu1 %v8104_v47, %s8248_s21  ;;  %6779 = vmatmul.mubr.msk.bf16.gmra.mrb[4].mxu1 %vm4499_vm12, %v4475_v3 }
 0x28a   :  { %v7823_v28 = vunpack.i.h.bf16 %v7821_v58  ;;  %v7822_v57 = vunpack.i.l.bf16 %v7821_v58  ;;  %v4171_v14 = vsel %vm4127_vm7, %v13358_v6, %v7818_v51  ;;  %v4170_v0 = vsel %vm4127_vm7, %v13359_v61, %v7817_v19  ;;  %v13361_v19 = vld [vmem:[#allocation64_spill] sm:$0xff] }
 0x28b   :  { %v7826_v52 = vpop.permute.xlu1 %7825 }
 0x28c   :  { %v7828_v20 = vunpack.i.h.bf16 %v7826_v52  ;;  %v7827_v1 = vunpack.i.l.bf16 %v7826_v52  ;;  %v4233_v16 = vsel %vm4192_vm8, %v4168_v59, %v7822_v57  ;;  %v4234_v25 = vsel %vm4192_vm8, %v4169_v43, %v7823_v28  ;;  %v13362_v43 = vld [vmem:[#allocation66_spill] sm:$0xff] }
 0x28d   :  { %v7831_v30 = vpop.permute.xlu0 %7830 }
 0x28e   :  { %v7833_v34 = vunpack.i.h.bf16 %v7831_v30  ;;  %v7832_v7 = vunpack.i.l.bf16 %v7831_v30  ;;  %v4235_v42 = vsel %vm4192_vm8, %v4170_v0, %v7827_v1  ;;  %v4236_v23 = vsel %vm4192_vm8, %v4171_v14, %v7828_v20 }
 0x28f   :  { %v7836_v31 = vpop.permute.xlu1 %7835 }
 0x290   :  { %v7838_v5 = vunpack.i.h.bf16 %v7836_v31  ;;  %v7837_v24 = vunpack.i.l.bf16 %v7836_v31  ;;  %v4298_v12 = vsel %vm4257_vm9, %v4233_v16, %v7832_v7  ;;  %v4299_v55 = vsel %vm4257_vm9, %v4234_v25, %v7833_v34  ;;  %v13360_v31 = vld [vmem:[#allocation40_spill] sm:$0xff]  ;;  %v13363_v7 = vld [vmem:[#allocation41_spill] sm:$0xff] }
 0x291   :  { %v7841_v56 = vpop.permute.xlu0 %7840 }
 0x292   :  { %v7843_v39 = vunpack.i.h.bf16 %v7841_v56  ;;  %v7842_v11 = vunpack.i.l.bf16 %v7841_v56  ;;  %v4300_v22 = vsel %vm4257_vm9, %v4235_v42, %v7837_v24  ;;  %v4301_v60 = vsel %vm4257_vm9, %v4236_v23, %v7838_v5 }
 0x293   :  { %v7846_v2 = vpop.permute.xlu1 %7845 }
 0x294   :  { %v7848_v44 = vunpack.i.h.bf16 %v7846_v2  ;;  %v7847_v4 = vunpack.i.l.bf16 %v7846_v2  ;;  %v4363_v40 = vsel %vm4322_vm10, %v4298_v12, %v7842_v11  ;;  %v4364_v38 = vsel %vm4322_vm10, %v4299_v55, %v7843_v39 }
 0x295   :  { %v7851_v18 = vpop.permute.xlu0 %7850 }
 0x296   :  { %v7853_v32 = vunpack.i.h.bf16 %v7851_v18  ;;  %v7852_v17 = vunpack.i.l.bf16 %v7851_v18  ;;  %v4365_v63 = vsel %vm4322_vm10, %v4300_v22, %v7847_v4  ;;  %v4366_v10 = vsel %vm4322_vm10, %v4301_v60, %v7848_v44 }
 0x297   :  { %v7856_v49 = vpop.permute.xlu1 %7855 }
 0x298   :  { %v4428_v15 = vsel %vm4387_vm11, %v4363_v40, %v7852_v17  ;;  %v4429_v50 = vsel %vm4387_vm11, %v4364_v38, %v7853_v32  ;;  %v7858_v62 = vunpack.i.h.bf16 %v7856_v49  ;;  %v7857_v46 = vunpack.i.l.bf16 %v7856_v49 }
 0x299   :  { %v4476_v13 = vpack.c.bf16 %v4429_v50, %v4428_v15  ;;  %v7861_v26 = vpop.permute.xlu0 %7860 }
 0x29a   :  { %v4430_v54 = vsel %vm4387_vm11, %v4365_v63, %v7857_v46  ;;  %v4431_v53 = vsel %vm4387_vm11, %v4366_v10, %v7858_v62  ;;  %v7863_v47 = vunpack.i.h.bf16 %v7861_v26  ;;  %v7862_v21 = vunpack.i.l.bf16 %v7861_v26 }
 0x29b   :  { %v4477_v37 = vpack.c.bf16 %v4431_v53, %v4430_v54  ;;  %6782 = vmatprep.mubr.msk.bf16.mxu1 %vm4499_vm12, %v4476_v13  ;;  %v7866_v35 = vpop.permute.xlu1 %7865 }
 0x29c   :  { %v7868_v3 = vunpack.i.h.bf16 %v7866_v35  ;;  %v7867_v29 = vunpack.i.l.bf16 %v7866_v35  ;;  %v4172_v51 = vsel %vm4127_vm7, %v13360_v31, %v7862_v21  ;;  %v4173_v28 = vsel %vm4127_vm7, %v13361_v19, %v7863_v47  ;;  %v13366_v31 = vld [vmem:[#allocation42_spill] sm:$0xff] }
 0x29d   :  { %v7871_v41 = vpop.permute.xlu0 %7870  ;;  %6783 = vmatmul.mubr.msk.bf16.gmra.mrb[8].mxu1 %vm4499_vm12, %v4477_v37  ;;  %v13367_v19 = vld [vmem:[#allocation94_spill] sm:$0xff] }
 0x29e   :  { %v7873_v58 = vunpack.i.h.bf16 %v7871_v41  ;;  %v7872_v52 = vunpack.i.l.bf16 %v7871_v41  ;;  %v4175_v34 = vsel %vm4127_vm7, %v13362_v43, %v7868_v3  ;;  %v4174_v5 = vsel %vm4127_vm7, %v13363_v7, %v7867_v29 }
 0x29f   :  { %v7876_v36 = vpop.permute.xlu1 %7875 }
 0x2a0   :  { %v7878_v30 = vunpack.i.h.bf16 %v7876_v36  ;;  %v7877_v8 = vunpack.i.l.bf16 %v7876_v36  ;;  %v4237_v24 = vsel %vm4192_vm8, %v4172_v51, %v7872_v52  ;;  %v4238_v39 = vsel %vm4192_vm8, %v4173_v28, %v7873_v58  ;;  %v13364_v52 = vld [vmem:[#allocation68_spill] sm:$0xff] }
 0x2a1   :  { %v7881_v33 = vpop.permute.xlu0 %7880 }
 0x2a2   :  { %v7883_v57 = vunpack.i.h.bf16 %v7881_v33  ;;  %v7882_v20 = vunpack.i.l.bf16 %v7881_v33  ;;  %v4239_v11 = vsel %vm4192_vm8, %v4174_v5, %v7877_v8  ;;  %v4240_v2 = vsel %vm4192_vm8, %v4175_v34, %v7878_v30  ;;  %v13365_v8 = vld [vmem:[#allocation67_spill] sm:$0xff] }
 0x2a3   :  { %v7886_v45 = vpop.permute.xlu1 %7885 }
 0x2a4   :  { %v7888_v1 = vunpack.i.h.bf16 %v7886_v45  ;;  %v7887_v56 = vunpack.i.l.bf16 %v7886_v45  ;;  %v4302_v0 = vsel %vm4257_vm9, %v4237_v24, %v7882_v20  ;;  %v4303_v16 = vsel %vm4257_vm9, %v4238_v39, %v7883_v57 }
 0x2a5   :  { %v7891_v27 = vpop.permute.xlu0 %7890 }
 0x2a6   :  { %v7893_v9 = vunpack.i.h.bf16 %v7891_v27  ;;  %v7892_v59 = vunpack.i.l.bf16 %v7891_v27  ;;  %v4304_v23 = vsel %vm4257_vm9, %v4239_v11, %v7887_v56  ;;  %v4305_v44 = vsel %vm4257_vm9, %v4240_v2, %v7888_v1 }
 0x2a7   :  { %v7896_v48 = vpop.permute.xlu1 %7895 }
 0x2a8   :  { %v7898_v6 = vunpack.i.h.bf16 %v7896_v48  ;;  %v7897_v14 = vunpack.i.l.bf16 %v7896_v48  ;;  %v4367_v4 = vsel %vm4322_vm10, %v4302_v0, %v7892_v59  ;;  %v4368_v18 = vsel %vm4322_vm10, %v4303_v16, %v7893_v9 }
 0x2a9   :  { %v7901_v61 = vpop.permute.xlu0 %7900 }
 0x2aa   :  { %v7903_v25 = vunpack.i.h.bf16 %v7901_v61  ;;  %v7902_v42 = vunpack.i.l.bf16 %v7901_v61  ;;  %v4369_v60 = vsel %vm4322_vm10, %v4304_v23, %v7897_v14  ;;  %v4370_v40 = vsel %vm4322_vm10, %v4305_v44, %v7898_v6 }
 0x2ab   :  { %v7906_v12 = vpop.permute.xlu1 %7905 }
 0x2ac   :  { %v4432_v55 = vsel %vm4387_vm11, %v4367_v4, %v7902_v42  ;;  %v4433_v32 = vsel %vm4387_vm11, %v4368_v18, %v7903_v25  ;;  %v7908_v17 = vunpack.i.h.bf16 %v7906_v12  ;;  %v7907_v22 = vunpack.i.l.bf16 %v7906_v12 }
 0x2ad   :  { %v4478_v38 = vpack.c.bf16 %v4433_v32, %v4432_v55  ;;  %v7911_v49 = vpop.permute.xlu0 %7910 }
 0x2ae   :  { %v4434_v15 = vsel %vm4387_vm11, %v4369_v60, %v7907_v22  ;;  %v4435_v50 = vsel %vm4387_vm11, %v4370_v40, %v7908_v17  ;;  %v7913_v26 = vunpack.i.h.bf16 %v7911_v49  ;;  %v7912_v54 = vunpack.i.l.bf16 %v7911_v49 }
 0x2af   :  { %v4479_v62 = vpack.c.bf16 %v4435_v50, %v4434_v15  ;;  %6786 = vmatprep.mubr.msk.bf16.mxu1 %vm4499_vm12, %v4478_v38  ;;  %v7916_v46 = vpop.permute.xlu1 %7915 }
 0x2b0   :  { %v7918_v53 = vunpack.i.h.bf16 %v7916_v46  ;;  %v7917_v37 = vunpack.i.l.bf16 %v7916_v46  ;;  %v4176_v30 = vsel %vm4127_vm7, %v13364_v52, %v7912_v54  ;;  %v4177_v27 = vsel %vm4127_vm7, %v13365_v8, %v7913_v26 }
 0x2b1   :  { %v7921_v63 = vpop.permute.xlu0 %7920  ;;  %6787 = vmatmul.mubr.msk.bf16.gmra.mrb[12].mxu1 %vm4499_vm12, %v4479_v62 }
 0x2b2   :  { %v7923_v35 = vunpack.i.h.bf16 %v7921_v63  ;;  %v7922_v41 = vunpack.i.l.bf16 %v7921_v63  ;;  %v4179_v51 = vsel %vm4127_vm7, %v13366_v31, %v7918_v53  ;;  %v4178_v28 = vsel %vm4127_vm7, %v13367_v19, %v7917_v37 }
 0x2b3   :  { %v7926_v10 = vpop.permute.xlu1 %7925 }
 0x2b4   :  { %v7928_v33 = vunpack.i.h.bf16 %v7926_v10  ;;  %v7927_v47 = vunpack.i.l.bf16 %v7926_v10  ;;  %v4241_v20 = vsel %vm4192_vm8, %v4176_v30, %v7922_v41  ;;  %v4242_v1 = vsel %vm4192_vm8, %v4177_v27, %v7923_v35 }
 0x2b5   :  { %v7931_v13 = vpop.permute.xlu0 %7930 }
 0x2b6   :  { %v7933_v21 = vunpack.i.h.bf16 %v7931_v13  ;;  %v7932_v45 = vunpack.i.l.bf16 %v7931_v13  ;;  %v4243_v43 = vsel %vm4192_vm8, %v4178_v28, %v7927_v47  ;;  %v4244_v34 = vsel %vm4192_vm8, %v4179_v51, %v7928_v33  ;;  %v13370_v28 = vld [vmem:[#allocation70_spill] sm:$0xff] }
 0x2b7   :  { %v7936_v36 = vpop.permute.xlu1 %7935 }
 0x2b8   :  { %v7938_v3 = vunpack.i.h.bf16 %v7936_v36  ;;  %v7937_v29 = vunpack.i.l.bf16 %v7936_v36  ;;  %v4306_v7 = vsel %vm4257_vm9, %v4241_v20, %v7932_v45  ;;  %v4307_v5 = vsel %vm4257_vm9, %v4242_v1, %v7933_v21  ;;  %v13368_v45 = vld [vmem:[#allocation93_spill] sm:$0xff]  ;;  %v13371_v1 = vld [vmem:[#allocation43_spill] sm:$0xff] }
 0x2b9   :  { %v7941_v58 = vpop.permute.xlu0 %7940  ;;  %v10536_v57 = vpop.f32.mrb[0].mxu0 }
 0x2ba   :  { %v7943_v56 = vunpack.i.h.bf16 %v7941_v58  ;;  %v7942_v9 = vunpack.i.l.bf16 %v7941_v58  ;;  %v10540_v59 = vpop.f32.mrb[1].mxu0  ;;  %v4308_v39 = vsel %vm4257_vm9, %v4243_v43, %v7937_v29  ;;  %v4309_v11 = vsel %vm4257_vm9, %v4244_v34, %v7938_v3  ;;  %v13369_v29 = vld [vmem:[#allocation69_spill] sm:$0xff] }
 0x2bb   :  { %v7946_v48 = vpop.permute.xlu1 %7945  ;;  %v10546_v24 = vpop.f32.mrb[2].mxu0  ;;  %v4895_v0 = vsel %vm4894_vm13, %v10540_v59, 0.0  ;;  %v4898_v4 = vsel %vm4894_vm13, %v10536_v57, 0.0 }
 0x2bc   :  { %v7948_v2 = vunpack.i.h.bf16 %v7946_v48  ;;  %v7947_v6 = vunpack.i.l.bf16 %v7946_v48  ;;  %v10550_v61 = vpop.f32.mrb[3].mxu0  ;;  %v4371_v23 = vsel %vm4322_vm10, %v4306_v7, %v7942_v9  ;;  %v4372_v44 = vsel %vm4322_vm10, %v4307_v5, %v7943_v56 }
 0x2bd   :  { %v7951_v14 = vpop.permute.xlu0 %7950  ;;  %v4896_v42 = vsel %vm4894_vm13, %v10550_v61, 0.0  ;;  %v4900_v50 = vsel %vm4894_vm13, %v10546_v24, 0.0 }
 0x2be   :  { %v7953_v16 = vunpack.i.h.bf16 %v7951_v14  ;;  %v7952_v25 = vunpack.i.l.bf16 %v7951_v14  ;;  %v4897_v18 = vadd.f32 %v4896_v42, %v4895_v0  ;;  %v4373_v60 = vsel %vm4322_vm10, %v4308_v39, %v7947_v6 }
 0x2bf   :  { %v7956_v12 = vpop.permute.xlu1 %7955  ;;  %v4374_v40 = vsel %vm4322_vm10, %v4309_v11, %v7948_v2 }
 0x2c0   :  { %v4436_v55 = vsel %vm4387_vm11, %v4371_v23, %v7952_v25  ;;  %v4437_v32 = vsel %vm4387_vm11, %v4372_v44, %v7953_v16  ;;  %v7958_v17 = vunpack.i.h.bf16 %v7956_v12  ;;  %v7957_v22 = vunpack.i.l.bf16 %v7956_v12 }
 0x2c1   :  { %v4480_v38 = vpack.c.bf16 %v4437_v32, %v4436_v55  ;;  %v4899_v49 = vadd.f32 %v4898_v4, %v4897_v18  ;;  %v7961_v15 = vpop.permute.xlu0 %7960 }
 0x2c2   :  { %v4438_v62 = vsel %vm4387_vm11, %v4373_v60, %v7957_v22  ;;  %v4439_v46 = vsel %vm4387_vm11, %v4374_v40, %v7958_v17  ;;  %v7963_v54 = vunpack.i.h.bf16 %v7961_v15  ;;  %v7962_v53 = vunpack.i.l.bf16 %v7961_v15 }
 0x2c3   :  { %v4481_v63 = vpack.c.bf16 %v4439_v46, %v4438_v62  ;;  %6790 = vmatprep.mubr.msk.bf16.mxu1 %vm4499_vm12, %v4480_v38  ;;  %v7966_v10 = vpop.permute.xlu1 %7965  ;;  %v4901_v13 = vadd.f32 %v4900_v50, %v4899_v49 }
 0x2c4   :  { %v7968_v35 = vunpack.i.h.bf16 %v7966_v10  ;;  %v7967_v41 = vunpack.i.l.bf16 %v7966_v10  ;;  %v4180_v3 = vsel %vm4127_vm7, %v13368_v45, %v7962_v53  ;;  %v4181_v58 = vsel %vm4127_vm7, %v13369_v29, %v7963_v54 }
 0x2c5   :  { %v7971_v26 = vpop.permute.xlu0 %7970  ;;  %6791 = vmatmul.mubr.msk.bf16.gmra.mrb[16].mxu1 %vm4499_vm12, %v4481_v63 }
 0x2c6   :  { %v7973_v33 = vunpack.i.h.bf16 %v7971_v26  ;;  %v7972_v47 = vunpack.i.l.bf16 %v7971_v26  ;;  %v4183_v20 = vsel %vm4127_vm7, %v13370_v28, %v7968_v35  ;;  %v4182_v56 = vsel %vm4127_vm7, %v13371_v1, %v7967_v41  ;;  %v13372_v1 = vld [vmem:[#allocation72_spill] sm:$0xff] }
 0x2c7   :  { %v7976_v37 = vpop.permute.xlu1 %7975 }
 0x2c8   :  { %v7978_v8 = vunpack.i.h.bf16 %v7976_v37  ;;  %v7977_v27 = vunpack.i.l.bf16 %v7976_v37  ;;  %v4245_v7 = vsel %vm4192_vm8, %v4180_v3, %v7972_v47  ;;  %v4246_v5 = vsel %vm4192_vm8, %v4181_v58, %v7973_v33 }
 0x2c9   :  { %v7981_v36 = vpop.permute.xlu0 %7980  ;;  %v10570_v21 = vpop.f32.mrb[4].mxu0 }
 0x2ca   :  { %v10576_v52 = vpop.f32.mrb[5].mxu0  ;;  %v7982_v31 = vunpack.i.l.bf16 %v7981_v36  ;;  %v7983_v9 = vunpack.i.h.bf16 %v7981_v36  ;;  %v4247_v25 = vsel %vm4192_vm8, %v4182_v56, %v7977_v27  ;;  %v4248_v42 = vsel %vm4192_vm8, %v4183_v20, %v7978_v8 }
 0x2cb   :  { %v7986_v30 = vpop.permute.xlu1 %7985  ;;  %v4902_v51 = vsel %vm4894_vm13, %v10576_v52, 0.0  ;;  %v10580_v19 = vpop.f32.mrb[6].mxu0  ;;  %v4906_v44 = vsel %vm4894_vm13, %v10570_v21, 0.0 }
 0x2cc   :  { %v4903_v48 = vadd.f32 %v4902_v51, %v4901_v13  ;;  %v10586_v34 = vpop.f32.mrb[7].mxu0  ;;  %v7988_v39 = vunpack.i.h.bf16 %v7986_v30  ;;  %v7987_v2 = vunpack.i.l.bf16 %v7986_v30  ;;  %v4310_v23 = vsel %vm4257_vm9, %v4245_v7, %v7982_v31 }
 0x2cd   :  { %v7991_v43 = vpop.permute.xlu0 %7990  ;;  %v4904_v11 = vsel %vm4894_vm13, %v10586_v34, 0.0  ;;  %v4311_v4 = vsel %vm4257_vm9, %v4246_v5, %v7983_v9  ;;  %v4908_v22 = vsel %vm4894_vm13, %v10580_v19, 0.0 }
 0x2ce   :  { %v7993_v6 = vunpack.i.h.bf16 %v7991_v43  ;;  %v7992_v14 = vunpack.i.l.bf16 %v7991_v43  ;;  %v4905_v0 = vadd.f32 %v4904_v11, %v4903_v48  ;;  %v4313_v17 = vsel %vm4257_vm9, %v4248_v42, %v7988_v39 }
 0x2cf   :  { %v7996_v16 = vpop.permute.xlu1 %7995  ;;  %v4312_v38 = vsel %vm4257_vm9, %v4247_v25, %v7987_v2  ;;  %v13373_v2 = vld [vmem:[#allocation71_spill] sm:$0xff] }
 0x2d0   :  { %v4907_v18 = vadd.f32 %v4906_v44, %v4905_v0  ;;  %v7998_v12 = vunpack.i.h.bf16 %v7996_v16  ;;  %v7997_v55 = vunpack.i.l.bf16 %v7996_v16  ;;  %v4375_v49 = vsel %vm4322_vm10, %v4310_v23, %v7992_v14 }
 0x2d1   :  { %v8001_v32 = vpop.permute.xlu0 %8000  ;;  %v4376_v15 = vsel %vm4322_vm10, %v4311_v4, %v7993_v6 }
 0x2d2   :  { %v8003_v60 = vunpack.i.h.bf16 %v8001_v32  ;;  %v8002_v40 = vunpack.i.l.bf16 %v8001_v32  ;;  %v4909_v62 = vadd.f32 %v4908_v22, %v4907_v18  ;;  %v4377_v26 = vsel %vm4322_vm10, %v4312_v38, %v7997_v55  ;;  %v13374_v22 = vld [vmem:[#allocation44_spill] sm:$0xff] }
 0x2d3   :  { %v8006_v50 = vpop.permute.xlu1 %8005  ;;  %v4378_v54 = vsel %vm4322_vm10, %v4313_v17, %v7998_v12 }
 0x2d4   :  { %v4440_v46 = vsel %vm4387_vm11, %v4375_v49, %v8002_v40  ;;  %v4441_v63 = vsel %vm4387_vm11, %v4376_v15, %v8003_v60  ;;  %v8008_v10 = vunpack.i.h.bf16 %v8006_v50  ;;  %v8007_v13 = vunpack.i.l.bf16 %v8006_v50  ;;  %v13375_v40 = vld [vmem:[#allocation98_spill] sm:$0xff] }
 0x2d5   :  { %v4482_v53 = vpack.c.bf16 %v4441_v63, %v4440_v46  ;;  %v8011_v37 = vpop.permute.xlu0 %8010 }
 0x2d6   :  { %v4442_v35 = vsel %vm4387_vm11, %v4377_v26, %v8007_v13  ;;  %v4443_v41 = vsel %vm4387_vm11, %v4378_v54, %v8008_v10  ;;  %v8012_v3 = vunpack.i.l.bf16 %v8011_v37  ;;  %v8013_v27 = vunpack.i.h.bf16 %v8011_v37 }
 0x2d7   :  { %v4483_v36 = vpack.c.bf16 %v4443_v41, %v4442_v35  ;;  %6794 = vmatprep.mubr.msk.bf16.mxu1 %vm4499_vm12, %v4482_v53  ;;  %v8016_v33 = vpop.permute.xlu1 %8015 }
 0x2d8   :  { %v10612_v45 = vpop.f32.mrb[8].mxu0  ;;  %v4184_v56 = vsel %vm4127_vm7, %v13372_v1, %v8012_v3  ;;  %v8018_v9 = vunpack.i.h.bf16 %v8016_v33  ;;  %v8017_v7 = vunpack.i.l.bf16 %v8016_v33  ;;  %v4185_v6 = vsel %vm4127_vm7, %v13373_v2, %v8013_v27 }
 0x2d9   :  { %v8021_v47 = vpop.permute.xlu0 %8020  ;;  %6795 = vmatmul.mubr.msk.bf16.gmra.mrb[20].mxu1 %vm4499_vm12, %v4483_v36  ;;  %v10614_v29 = vpop.f32.mrb[9].mxu0  ;;  %v4914_v11 = vsel %vm4894_vm13, %v10612_v45, 0.0 }
 0x2da   :  { %v4910_v30 = vsel %vm4894_vm13, %v10614_v29, 0.0  ;;  %v10618_v8 = vpop.f32.mrb[10].mxu0  ;;  %v8023_v5 = vunpack.i.h.bf16 %v8021_v47  ;;  %v8022_v39 = vunpack.i.l.bf16 %v8021_v47  ;;  %v4187_v60 = vsel %vm4127_vm7, %v13374_v22, %v8018_v9 }
 0x2db   :  { %v8026_v58 = vpop.permute.xlu1 %8025  ;;  %v4911_v31 = vadd.f32 %v4910_v30, %v4909_v62  ;;  %v10620_v28 = vpop.f32.mrb[11].mxu0  ;;  %v4916_v44 = vsel %vm4894_vm13, %v10618_v8, 0.0  ;;  %v4186_v38 = vsel %vm4127_vm7, %v13375_v40, %v8017_v7 }
 0x2dc   :  { %v4912_v20 = vsel %vm4894_vm13, %v10620_v28, 0.0  ;;  %v8028_v14 = vunpack.i.h.bf16 %v8026_v58  ;;  %v8027_v0 = vunpack.i.l.bf16 %v8026_v58  ;;  %v4249_v49 = vsel %vm4192_vm8, %v4184_v56, %v8022_v39 }
 0x2dd   :  { %v8031_v51 = vpop.permute.xlu0 %8030  ;;  %v4913_v48 = vadd.f32 %v4912_v20, %v4911_v31  ;;  %v4250_v15 = vsel %vm4192_vm8, %v4185_v6, %v8023_v5 }
 0x2de   :  { %v8033_v42 = vunpack.i.h.bf16 %v8031_v51  ;;  %v8032_v23 = vunpack.i.l.bf16 %v8031_v51  ;;  %v4251_v50 = vsel %vm4192_vm8, %v4186_v38, %v8027_v0  ;;  %v4252_v62 = vsel %vm4192_vm8, %v4187_v60, %v8028_v14 }
 0x2df   :  { %v8036_v43 = vpop.permute.xlu1 %8035  ;;  %v4915_v16 = vadd.f32 %v4914_v11, %v4913_v48 }
 0x2e0   :  { %v8038_v4 = vunpack.i.h.bf16 %v8036_v43  ;;  %v8037_v18 = vunpack.i.l.bf16 %v8036_v43  ;;  %v4314_v13 = vsel %vm4257_vm9, %v4249_v49, %v8032_v23  ;;  %v4315_v26 = vsel %vm4257_vm9, %v4250_v15, %v8033_v42 }
 0x2e1   :  { %v8041_v25 = vpop.permute.xlu0 %8040  ;;  %v4917_v17 = vadd.f32 %v4916_v44, %v4915_v16 }
 0x2e2   :  { %v8043_v12 = vunpack.i.h.bf16 %v8041_v25  ;;  %v8042_v55 = vunpack.i.l.bf16 %v8041_v25  ;;  %v4316_v37 = vsel %vm4257_vm9, %v4251_v50, %v8037_v18  ;;  %v4317_v35 = vsel %vm4257_vm9, %v4252_v62, %v8038_v4  ;;  %v13376_v50 = vld [vmem:[#allocation74_spill] sm:$0xff] }
 0x2e3   :  { %v8046_v32 = vpop.permute.xlu1 %8045 }
 0x2e4   :  { %v8048_v46 = vunpack.i.h.bf16 %v8046_v32  ;;  %v8047_v63 = vunpack.i.l.bf16 %v8046_v32  ;;  %v4379_v41 = vsel %vm4322_vm10, %v4314_v13, %v8042_v55  ;;  %v4380_v36 = vsel %vm4322_vm10, %v4315_v26, %v8043_v12 }
 0x2e5   :  { %v8051_v10 = vpop.permute.xlu0 %8050 }
 0x2e6   :  { %v8053_v54 = vunpack.i.h.bf16 %v8051_v10  ;;  %v8052_v53 = vunpack.i.l.bf16 %v8051_v10  ;;  %v4381_v27 = vsel %vm4322_vm10, %v4316_v37, %v8047_v63  ;;  %v4382_v31 = vsel %vm4322_vm10, %v4317_v35, %v8048_v46  ;;  %v13377_v46 = vld [vmem:[#allocation75_spill] sm:$0xff]  ;;  %v13378_v35 = vld [vmem:[#allocation45_spill] sm:$0xff] }
 0x2e7   :  { %v8056_v33 = vpop.permute.xlu1 %8055 }
 0x2e8   :  { %v4444_v47 = vsel %vm4387_vm11, %v4379_v41, %v8052_v53  ;;  %v4445_v3 = vsel %vm4387_vm11, %v4380_v36, %v8053_v54  ;;  %v8058_v58 = vunpack.i.h.bf16 %v8056_v33  ;;  %v8057_v30 = vunpack.i.l.bf16 %v8056_v33  ;;  %v10652_v9 = vpop.f32.mrb[12].mxu0  ;;  %v13379_v36 = vld [vmem:[#allocation100_spill] sm:$0xff] }
 0x2e9   :  { %v4484_v51 = vpack.c.bf16 %v4445_v3, %v4444_v47  ;;  %v8061_v20 = vpop.permute.xlu0 %8060  ;;  %v10655_v43 = vpop.f32.mrb[13].mxu0  ;;  %v4922_v25 = vsel %vm4894_vm13, %v10652_v9, 0.0 }
 0x2ea   :  { %v4446_v1 = vsel %vm4387_vm11, %v4381_v27, %v8057_v30  ;;  %v4447_v56 = vsel %vm4387_vm11, %v4382_v31, %v8058_v58  ;;  %v4918_v5 = vsel %vm4894_vm13, %v10655_v43, 0.0  ;;  %v10659_v39 = vpop.f32.mrb[14].mxu0  ;;  %v8063_v44 = vunpack.i.h.bf16 %v8061_v20 }
 0x2eb   :  { %v4485_v48 = vpack.c.bf16 %v4447_v56, %v4446_v1  ;;  %6798 = vmatprep.mubr.msk.bf16.mxu1 %vm4499_vm12, %v4484_v51  ;;  %v8066_v7 = vpop.permute.xlu1 %8065  ;;  %v4919_v11 = vadd.f32 %v4918_v5, %v4917_v17  ;;  %v10661_v6 = vpop.f32.mrb[15].mxu0  ;;  %v8062_v4 = vunpack.i.l.bf16 %v8061_v20  ;;  %v4924_v18 = vsel %vm4894_vm13, %v10659_v39, 0.0 }
 0x2ec   :  { %v4920_v14 = vsel %vm4894_vm13, %v10661_v6, 0.0  ;;  %v8068_v32 = vunpack.i.h.bf16 %v8066_v7  ;;  %v8067_v17 = vunpack.i.l.bf16 %v8066_v7  ;;  %v4189_v63 = vsel %vm4127_vm7, %v13377_v46, %v8063_v44 }
 0x2ed   :  { %v8071_v2 = vpop.permute.xlu0 %8070  ;;  %6799 = vmatmul.mubr.msk.bf16.gmra.mrb[24].mxu1 %vm4499_vm12, %v4485_v48  ;;  %v4921_v0 = vadd.f32 %v4920_v14, %v4919_v11  ;;  %v4188_v62 = vsel %vm4127_vm7, %v13376_v50, %v8062_v4 }
 0x2ee   :  { %v8073_v22 = vunpack.i.h.bf16 %v8071_v2  ;;  %v8072_v60 = vunpack.i.l.bf16 %v8071_v2  ;;  %v4191_v41 = vsel %vm4127_vm7, %v13378_v35, %v8068_v32  ;;  %v4190_v33 = vsel %vm4127_vm7, %v13379_v36, %v8067_v17 }
 0x2ef   :  { %v8076_v16 = vpop.permute.xlu1 %8075  ;;  %v4923_v42 = vadd.f32 %v4922_v25, %v4921_v0 }
 0x2f0   :  { %v8078_v40 = vunpack.i.h.bf16 %v8076_v16  ;;  %v8077_v38 = vunpack.i.l.bf16 %v8076_v16  ;;  %v4253_v47 = vsel %vm4192_vm8, %v4188_v62, %v8072_v60  ;;  %v4254_v3 = vsel %vm4192_vm8, %v4189_v63, %v8073_v22 }
 0x2f1   :  { %v8081_v23 = vpop.permute.xlu0 %8080  ;;  %v4925_v55 = vadd.f32 %v4924_v18, %v4923_v42 }
 0x2f2   :  { %v8082_v49 = vunpack.i.l.bf16 %v8081_v23  ;;  %v8083_v10 = vunpack.i.h.bf16 %v8081_v23  ;;  %v4255_v58 = vsel %vm4192_vm8, %v4190_v33, %v8077_v38  ;;  %v4256_v30 = vsel %vm4192_vm8, %v4191_v41, %v8078_v40 }
 0x2f3   :  { %v8086_v12 = vpop.permute.xlu1 %8085 }
 0x2f4   :  { %v8088_v13 = vunpack.i.h.bf16 %v8086_v12  ;;  %v8087_v26 = vunpack.i.l.bf16 %v8086_v12  ;;  %v4318_v27 = vsel %vm4257_vm9, %v4253_v47, %v8082_v49  ;;  %v4319_v20 = vsel %vm4257_vm9, %v4254_v3, %v8083_v10 }
 0x2f5   :  { %v8091_v15 = vpop.permute.xlu0 %8090 }
 0x2f6   :  { %v8093_v54 = vunpack.i.h.bf16 %v8091_v15  ;;  %v8092_v53 = vunpack.i.l.bf16 %v8091_v15  ;;  %v4320_v5 = vsel %vm4257_vm9, %v4255_v58, %v8087_v26  ;;  %v4321_v11 = vsel %vm4257_vm9, %v4256_v30, %v8088_v13 }
 0x2f7   :  { %v8096_v37 = vpop.permute.xlu1 %8095 }
 0x2f8   :  { %v8098_v31 = vunpack.i.h.bf16 %v8096_v37  ;;  %v8097_v1 = vunpack.i.l.bf16 %v8096_v37  ;;  %v10684_v7 = vpop.f32.mrb[16].mxu0  ;;  %v4383_v2 = vsel %vm4322_vm10, %v4318_v27, %v8092_v53  ;;  %v4384_v14 = vsel %vm4322_vm10, %v4319_v20, %v8093_v54 }
 0x2f9   :  { %v8101_v51 = vpop.permute.xlu0 %8100  ;;  %v10690_v0 = vpop.f32.mrb[17].mxu0  ;;  %v4930_v50 = vsel %vm4894_vm13, %v10684_v7, 0.0 }
 0x2fa   :  { %v8103_v56 = vunpack.i.h.bf16 %v8101_v51  ;;  %v8102_v48 = vunpack.i.l.bf16 %v8101_v51  ;;  %v4926_v23 = vsel %vm4894_vm13, %v10690_v0, 0.0  ;;  %v10696_v4 = vpop.f32.mrb[18].mxu0  ;;  %v4386_v18 = vsel %vm4322_vm10, %v4321_v11, %v8098_v31 }
 0x2fb   :  { %v8106_v16 = vpop.permute.xlu1 %8105  ;;  %v4927_v32 = vadd.f32 %v4926_v23, %v4925_v55  ;;  %v10699_v22 = vpop.f32.mrb[19].mxu0  ;;  %v4385_v60 = vsel %vm4322_vm10, %v4320_v5, %v8097_v1  ;;  %v4932_v46 = vsel %vm4894_vm13, %v10696_v4, 0.0 }
 0x2fc   :  { %v4448_v25 = vsel %vm4387_vm11, %v4383_v2, %v8102_v48  ;;  %v4449_v42 = vsel %vm4387_vm11, %v4384_v14, %v8103_v56  ;;  %v8108_v44 = vunpack.i.h.bf16 %v8106_v16  ;;  %v8107_v17 = vunpack.i.l.bf16 %v8106_v16 }
 0x2fd   :  { %v4486_v12 = vpack.c.bf16 %v4449_v42, %v4448_v25  ;;  %v4928_v38 = vsel %vm4894_vm13, %v10699_v22, 0.0 }
 0x2fe   :  { %v4451_v40 = vsel %vm4387_vm11, %v4386_v18, %v8108_v44  ;;  %v4450_v49 = vsel %vm4387_vm11, %v4385_v60, %v8107_v17  ;;  %v4929_v15 = vadd.f32 %v4928_v38, %v4927_v32 }
 0x2ff   :  { %6802 = vmatprep.mubr.msk.bf16.mxu1 %vm4499_vm12, %v4486_v12  ;;  %v4487_v62 = vpack.c.bf16 %v4451_v40, %v4450_v49 }
 0x300   :  { %v4931_v55 = vadd.f32 %v4930_v50, %v4929_v15 }
 0x301   :  { %6803 = vmatmul.mubr.msk.bf16.gmra.mrb[28].mxu1 %vm4499_vm12, %v4487_v62 }
 0x302   :  { %v4933_v63 = vadd.f32 %v4932_v46, %v4931_v55 }
 0x30c   :  { %v10712_v10 = vpop.f32.mrb[20].mxu0 }
 0x30d   :  { %v10714_v13 = vpop.f32.mrb[21].mxu0  ;;  %v4938_v36 = vsel %vm4894_vm13, %v10712_v10, 0.0 }
 0x30e   :  { %v4934_v26 = vsel %vm4894_vm13, %v10714_v13, 0.0  ;;  %v10718_v54 = vpop.f32.mrb[22].mxu0 }
 0x30f   :  { %v4935_v53 = vadd.f32 %v4934_v26, %v4933_v63  ;;  %v10720_v37 = vpop.f32.mrb[23].mxu0  ;;  %v4940_v47 = vsel %vm4894_vm13, %v10718_v54, 0.0 }
 0x310   :  { %v4936_v35 = vsel %vm4894_vm13, %v10720_v37, 0.0 }
 0x311   :  { %v4937_v41 = vadd.f32 %v4936_v35, %v4935_v53 }
 0x313   :  { %v4939_v33 = vadd.f32 %v4938_v36, %v4937_v41 }
 0x315   :  { %v4941_v3 = vadd.f32 %v4940_v47, %v4939_v33 }
 0x320   :  { %v10728_v58 = vpop.f32.mrb[24].mxu0 }
 0x321   :  { %v10730_v30 = vpop.f32.mrb[25].mxu0  ;;  %v4946_v48 = vsel %vm4894_vm13, %v10728_v58, 0.0 }
 0x322   :  { %v4942_v27 = vsel %vm4894_vm13, %v10730_v30, 0.0  ;;  %v10734_v31 = vpop.f32.mrb[26].mxu0 }
 0x323   :  { %v4943_v51 = vadd.f32 %v4942_v27, %v4941_v3  ;;  %v10736_v20 = vpop.f32.mrb[27].mxu0  ;;  %v4948_v11 = vsel %vm4894_vm13, %v10734_v31, 0.0 }
 0x324   :  { %v4944_v1 = vsel %vm4894_vm13, %v10736_v20, 0.0 }
 0x325   :  { %v4945_v56 = vadd.f32 %v4944_v1, %v4943_v51 }
 0x327   :  { %v4947_v5 = vadd.f32 %v4946_v48, %v4945_v56 }
 0x329   :  { %v4949_v2 = vadd.f32 %v4948_v11, %v4947_v5 }
 0x334   :  { %v10744_v14 = vpop.f32.mrb[28].mxu0 }
 0x335   :  { %v10746_v16 = vpop.f32.mrb[29].mxu0  ;;  %v4954_v32 = vsel %vm4894_vm13, %v10744_v14, 0.0 }
 0x336   :  { %v4950_v25 = vsel %vm4894_vm13, %v10746_v16, 0.0  ;;  %v10750_v42 = vpop.f32.mrb[30].mxu0 }
 0x337   :  { %v4951_v23 = vadd.f32 %v4950_v25, %v4949_v2  ;;  %v10752_v44 = vpop.f32.mrb[31].mxu0  ;;  %v4956_v60 = vsel %vm4894_vm13, %v10750_v42, 0.0 }
 0x338   :  { %v4952_v18 = vsel %vm4894_vm13, %v10752_v44, 0.0 }
 0x339   :  { %v4953_v12 = vadd.f32 %v4952_v18, %v4951_v23 }
 0x33b   :  { %v4955_v17 = vadd.f32 %v4954_v32, %v4953_v12 }
 0x33d   :  { %v4957_v40 = vadd.f32 %v4956_v60, %v4955_v17 }
 0x348   :  { %v10760_v38 = vpop.f32.mrb[0].mxu1 }
 0x349   :  { %v10762_v49 = vpop.f32.mrb[1].mxu1  ;;  %v4962_v26 = vsel %vm4894_vm13, %v10760_v38, 0.0 }
 0x34a   :  { %v4958_v15 = vsel %vm4894_vm13, %v10762_v49, 0.0  ;;  %v10766_v50 = vpop.f32.mrb[2].mxu1 }
 0x34b   :  { %v4959_v62 = vadd.f32 %v4958_v15, %v4957_v40  ;;  %v10768_v55 = vpop.f32.mrb[3].mxu1  ;;  %v4964_v35 = vsel %vm4894_vm13, %v10766_v50, 0.0 }
 0x34c   :  { %v4960_v46 = vsel %vm4894_vm13, %v10768_v55, 0.0 }
 0x34d   :  { %v4961_v63 = vadd.f32 %v4960_v46, %v4959_v62 }
 0x34f   :  { %v4963_v53 = vadd.f32 %v4962_v26, %v4961_v63 }
 0x351   :  { %v4965_v41 = vadd.f32 %v4964_v35, %v4963_v53 }
 0x35c   :  { %v10776_v36 = vpop.f32.mrb[4].mxu1 }
 0x35d   :  { %v10778_v33 = vpop.f32.mrb[5].mxu1  ;;  %v4970_v48 = vsel %vm4894_vm13, %v10776_v36, 0.0 }
 0x35e   :  { %v4966_v47 = vsel %vm4894_vm13, %v10778_v33, 0.0  ;;  %v10782_v3 = vpop.f32.mrb[6].mxu1 }
 0x35f   :  { %v4967_v27 = vadd.f32 %v4966_v47, %v4965_v41  ;;  %v10784_v51 = vpop.f32.mrb[7].mxu1  ;;  %v4972_v11 = vsel %vm4894_vm13, %v10782_v3, 0.0 }
 0x360   :  { %v4968_v1 = vsel %vm4894_vm13, %v10784_v51, 0.0 }
 0x361   :  { %v4969_v56 = vadd.f32 %v4968_v1, %v4967_v27 }
 0x363   :  { %v4971_v5 = vadd.f32 %v4970_v48, %v4969_v56 }
 0x365   :  { %v4973_v2 = vadd.f32 %v4972_v11, %v4971_v5 }
 0x370   :  { %v10792_v25 = vpop.f32.mrb[8].mxu1 }
 0x371   :  { %v10794_v23 = vpop.f32.mrb[9].mxu1  ;;  %v4978_v15 = vsel %vm4894_vm13, %v10792_v25, 0.0 }
 0x372   :  { %v4974_v18 = vsel %vm4894_vm13, %v10794_v23, 0.0  ;;  %v10798_v12 = vpop.f32.mrb[10].mxu1 }
 0x373   :  { %v4975_v32 = vadd.f32 %v4974_v18, %v4973_v2  ;;  %v10800_v17 = vpop.f32.mrb[11].mxu1  ;;  %v4980_v46 = vsel %vm4894_vm13, %v10798_v12, 0.0 }
 0x374   :  { %v4976_v60 = vsel %vm4894_vm13, %v10800_v17, 0.0 }
 0x375   :  { %v4977_v40 = vadd.f32 %v4976_v60, %v4975_v32 }
 0x377   :  { %v4979_v62 = vadd.f32 %v4978_v15, %v4977_v40 }
 0x379   :  { %v4981_v63 = vadd.f32 %v4980_v46, %v4979_v62 }
 0x384   :  { %v10808_v26 = vpop.f32.mrb[12].mxu1 }
 0x385   :  { %v10810_v53 = vpop.f32.mrb[13].mxu1  ;;  %v4986_v48 = vsel %vm4894_vm13, %v10808_v26, 0.0 }
 0x386   :  { %v4982_v35 = vsel %vm4894_vm13, %v10810_v53, 0.0  ;;  %v10814_v41 = vpop.f32.mrb[14].mxu1 }
 0x387   :  { %13380 = vst [vmem:[#allocation99_spill] sm:$0xff] %v10814_v41  ;;  %v4983_v47 = vadd.f32 %v4982_v35, %v4981_v63  ;;  %v10816_v27 = vpop.f32.mrb[15].mxu1  ;;  %v4988_v11 = vsel %vm4894_vm13, %v10814_v41, 0.0 }
 0x388   :  { %v4984_v1 = vsel %vm4894_vm13, %v10816_v27, 0.0 }
 0x389   :  { %v4985_v56 = vadd.f32 %v4984_v1, %v4983_v47 }
 0x38b   :  { %v4987_v5 = vadd.f32 %v4986_v48, %v4985_v56 }
 0x38d   :  { %v4989_v2 = vadd.f32 %v4988_v11, %v4987_v5 }
 0x398   :  { %v10824_v18 = vpop.f32.mrb[16].mxu1 }
 0x399   :  { %13381 = vst [vmem:[#allocation79_spill] sm:$0xff] %v10824_v18  ;;  %v10826_v32 = vpop.f32.mrb[17].mxu1  ;;  %v4994_v35 = vsel %vm4894_vm13, %v10824_v18, 0.0 }
 0x39a   :  { %13382 = vst [vmem:[#allocation76_spill] sm:$0xff] %v10826_v32  ;;  %v4990_v60 = vsel %vm4894_vm13, %v10826_v32, 0.0  ;;  %v10830_v40 = vpop.f32.mrb[18].mxu1 }
 0x39b   :  { %13383 = vst [vmem:[#allocation46_spill] sm:$0xff] %v10830_v40  ;;  %v4991_v15 = vadd.f32 %v4990_v60, %v4989_v2  ;;  %v10832_v62 = vpop.f32.mrb[19].mxu1  ;;  %v4996_v1 = vsel %vm4894_vm13, %v10830_v40, 0.0 }
 0x39c   :  { %13384 = vst [vmem:[#allocation80_spill] sm:$0xff] %v10832_v62  ;;  %v4992_v46 = vsel %vm4894_vm13, %v10832_v62, 0.0 }
 0x39d   :  { %v4993_v63 = vadd.f32 %v4992_v46, %v4991_v15 }
 0x39f   :  { %v4995_v47 = vadd.f32 %v4994_v35, %v4993_v63 }
 0x3a1   :  { %v4997_v56 = vadd.f32 %v4996_v1, %v4995_v47 }
 0x3ac   :  { %v10840_v48 = vpop.f32.mrb[20].mxu1 }
 0x3ad   :  { %13385 = vst [vmem:[#allocation81_spill] sm:$0xff] %v10840_v48  ;;  %v10842_v5 = vpop.f32.mrb[21].mxu1  ;;  %v5002_v63 = vsel %vm4894_vm13, %v10840_v48, 0.0 }
 0x3ae   :  { %13386 = vst [vmem:[#allocation48_spill] sm:$0xff] %v10842_v5  ;;  %v4998_v11 = vsel %vm4894_vm13, %v10842_v5, 0.0  ;;  %v10846_v2 = vpop.f32.mrb[22].mxu1 }
 0x3af   :  { %13387 = vst [vmem:[#allocation84_spill] sm:$0xff] %v10846_v2  ;;  %v4999_v60 = vadd.f32 %v4998_v11, %v4997_v56  ;;  %v10848_v62 = vpop.f32.mrb[23].mxu1  ;;  %v5004_v47 = vsel %vm4894_vm13, %v10846_v2, 0.0 }
 0x3b0   :  { %13388 = vst [vmem:[#allocation82_spill] sm:$0xff] %v10848_v62  ;;  %v5000_v15 = vsel %vm4894_vm13, %v10848_v62, 0.0 }
 0x3b1   :  { %v5001_v46 = vadd.f32 %v5000_v15, %v4999_v60 }
 0x3b3   :  { %v5003_v35 = vadd.f32 %v5002_v63, %v5001_v46 }
 0x3b5   :  { %v5005_v1 = vadd.f32 %v5004_v47, %v5003_v35 }
 0x3c0   :  { %v10856_v40 = vpop.f32.mrb[24].mxu1 }
 0x3c1   :  { %13389 = vst [vmem:[#allocation55_spill] sm:$0xff] %v10856_v40  ;;  %v10858_v5 = vpop.f32.mrb[25].mxu1  ;;  %v5010_v46 = vsel %vm4894_vm13, %v10856_v40, 0.0 }
 0x3c2   :  { %13390 = vst [vmem:[#allocation102_spill] sm:$0xff] %v10858_v5  ;;  %v5006_v56 = vsel %vm4894_vm13, %v10858_v5, 0.0  ;;  %v10862_v11 = vpop.f32.mrb[26].mxu1 }
 0x3c3   :  { %13391 = vst [vmem:[#allocation85_spill] sm:$0xff] %v10862_v11  ;;  %v5007_v18 = vadd.f32 %v5006_v56, %v5005_v1  ;;  %v10864_v62 = vpop.f32.mrb[27].mxu1  ;;  %v5012_v35 = vsel %vm4894_vm13, %v10862_v11, 0.0 }
 0x3c4   :  { %13392 = vst [vmem:[#allocation86_spill] sm:$0xff] %v10864_v62  ;;  %v5008_v60 = vsel %vm4894_vm13, %v10864_v62, 0.0 }
 0x3c5   :  { %v5009_v15 = vadd.f32 %v5008_v60, %v5007_v18 }
 0x3c7   :  { %v5011_v63 = vadd.f32 %v5010_v46, %v5009_v15 }
 0x3c9   :  { %v5013_v47 = vadd.f32 %v5012_v35, %v5011_v63 }
 0x3d4   :  { %v10872_v2 = vpop.f32.mrb[28].mxu1 }
 0x3d5   :  { %v10874_v5 = vpop.f32.mrb[29].mxu1  ;;  %v5018_v15 = vsel %vm4894_vm13, %v10872_v2, 0.0 }
 0x3d6   :  { %13393 = vst [vmem:[#allocation59_spill] sm:$0xff] %v10874_v5  ;;  %v5014_v1 = vsel %vm4894_vm13, %v10874_v5, 0.0  ;;  %v10878_v56 = vpop.f32.mrb[30].mxu1 }
 0x3d7   :  { %v5015_v48 = vadd.f32 %v5014_v1, %v5013_v47  ;;  %v10880_v62 = vpop.f32.mrb[31].mxu1  ;;  %v5020_v63 = vsel %vm4894_vm13, %v10878_v56, 0.0 }
 0x3d8   :  { %13394 = vst [vmem:[#allocation105_spill] sm:$0xff] %v10880_v62  ;;  %v5016_v18 = vsel %vm4894_vm13, %v10880_v62, 0.0 }
 0x3d9   :  { %v5017_v60 = vadd.f32 %v5016_v18, %v5015_v48 }
 0x3db   :  { %v5019_v46 = vadd.f32 %v5018_v15, %v5017_v60  ;;  %v13405_v60 = vld [vmem:[#allocation79_spill] sm:$0xff]  ;;  %v13407_v15 = vld [vmem:[#allocation46_spill] sm:$0xff] }
 0x3dd   :  { %v5021_v35 = vadd.f32 %v5020_v63, %v5019_v46  ;;  %v13409_v46 = vld [vmem:[#allocation48_spill] sm:$0xff] }
 0x3df   :  { %v5022_v11 = vrot.slane %v5021_v35, 4 }
 0x3e1   :  { %v5023_v40 = vadd.f32 %v5022_v11, %v5021_v35  ;;  %v13411_v35 = vld [vmem:[#allocation82_spill] sm:$0xff] }
 0x3e3   :  { %v5024_v5 = vrot.slane %v5023_v40, 2 }
 0x3e5   :  { %v5025_v32 = vadd.f32 %v5024_v5, %v5023_v40  ;;  %v13401_v40 = vld [vmem:[#allocation76_spill] sm:$0xff] }
 0x3e6   :  { %v13403_v5 = vld [vmem:[#allocation80_spill] sm:$0xff] }
 0x3e7   :  { %v5026_v41 = vrot.slane %v5025_v32, 1 }
 0x3e9   :  { %v5027_v47 = vadd.f32 %v5026_v41, %v5025_v32  ;;  %v13399_v32 = vld [vmem:[#allocation99_spill] sm:$0xff] }
 0x3eb   :  { %v10888_v1 = vmul.f32 0.001953125, %v5027_v47 }
 0x3ed   :  { %v10892_v62 = vsub.f32 %v10540_v59, %v10888_v1  ;;  %v10896_v48 = vsub.f32 %v10550_v61, %v10888_v1  ;;  %v10900_v18 = vsub.f32 %v10536_v57, %v10888_v1  ;;  %v10904_v11 = vsub.f32 %v10546_v24, %v10888_v1 }
 0x3ee   :  { %v10908_v41 = vsub.f32 %v10576_v52, %v10888_v1  ;;  %v10912_v59 = vsub.f32 %v10586_v34, %v10888_v1  ;;  %v10916_v61 = vsub.f32 %v10570_v21, %v10888_v1  ;;  %v10920_v57 = vsub.f32 %v10580_v19, %v10888_v1 }
 0x3ef   :  { %13395 = vst [vmem:[#allocation104_spill] sm:$0xff] %v10892_v62  ;;  %13396 = vst [vmem:[#allocation89_spill] sm:$0xff] %v10896_v48  ;;  %v10924_v24 = vsub.f32 %v10614_v29, %v10888_v1  ;;  %v10928_v52 = vsub.f32 %v10620_v28, %v10888_v1  ;;  %v10932_v34 = vsub.f32 %v10612_v45, %v10888_v1 }
 0x3f0   :  { %13397 = vst [vmem:[#allocation87_spill] sm:$0xff] %v10900_v18  ;;  %13398 = vst [vmem:[#allocation60_spill] sm:$0xff] %v10904_v11  ;;  %v10936_v21 = vsub.f32 %v10618_v8, %v10888_v1  ;;  %v10940_v19 = vsub.f32 %v10655_v43, %v10888_v1  ;;  %v10944_v29 = vsub.f32 %v10661_v6, %v10888_v1 }
 0x3f1   :  { %v10948_v28 = vsub.f32 %v10652_v9, %v10888_v1  ;;  %v10952_v45 = vsub.f32 %v10659_v39, %v10888_v1  ;;  %v10956_v8 = vsub.f32 %v10690_v0, %v10888_v1  ;;  %v10960_v43 = vsub.f32 %v10699_v22, %v10888_v1 }
 0x3f2   :  { %v10964_v6 = vsub.f32 %v10684_v7, %v10888_v1  ;;  %v10968_v9 = vsub.f32 %v10696_v4, %v10888_v1  ;;  %v10972_v39 = vsub.f32 %v10714_v13, %v10888_v1  ;;  %v10976_v0 = vsub.f32 %v10720_v37, %v10888_v1 }
 0x3f3   :  { %v10980_v22 = vsub.f32 %v10712_v10, %v10888_v1  ;;  %v10984_v7 = vsub.f32 %v10718_v54, %v10888_v1  ;;  %v10988_v4 = vsub.f32 %v10730_v30, %v10888_v1  ;;  %v10992_v13 = vsub.f32 %v10736_v20, %v10888_v1 }
 0x3f4   :  { %v10996_v37 = vsub.f32 %v10728_v58, %v10888_v1  ;;  %v11000_v10 = vsub.f32 %v10734_v31, %v10888_v1  ;;  %v11004_v54 = vsub.f32 %v10746_v16, %v10888_v1  ;;  %v11008_v30 = vsub.f32 %v10752_v44, %v10888_v1 }
 0x3f5   :  { %v11012_v20 = vsub.f32 %v10744_v14, %v10888_v1  ;;  %v11016_v58 = vsub.f32 %v10750_v42, %v10888_v1  ;;  %v11020_v31 = vsub.f32 %v10762_v49, %v10888_v1  ;;  %v11024_v16 = vsub.f32 %v10768_v55, %v10888_v1 }
 0x3f6   :  { %v11028_v44 = vsub.f32 %v10760_v38, %v10888_v1  ;;  %v11032_v14 = vsub.f32 %v10766_v50, %v10888_v1  ;;  %v11036_v42 = vsub.f32 %v10778_v33, %v10888_v1  ;;  %v11040_v49 = vsub.f32 %v10784_v51, %v10888_v1 }
 0x3f7   :  { %v11044_v55 = vsub.f32 %v10776_v36, %v10888_v1  ;;  %v11048_v38 = vsub.f32 %v10782_v3, %v10888_v1  ;;  %v11052_v50 = vsub.f32 %v10794_v23, %v10888_v1  ;;  %v11056_v33 = vsub.f32 %v10800_v17, %v10888_v1 }
 0x3f8   :  { %v11060_v51 = vsub.f32 %v10792_v25, %v10888_v1  ;;  %v11064_v36 = vsub.f32 %v10798_v12, %v10888_v1  ;;  %v11068_v3 = vsub.f32 %v10810_v53, %v10888_v1  ;;  %v11072_v23 = vsub.f32 %v10816_v27, %v10888_v1 }
 0x3f9   :  { %v11076_v17 = vsub.f32 %v10808_v26, %v10888_v1  ;;  %v11080_v25 = vsub.f32 %v13399_v32, %v10888_v1  ;;  %v11084_v12 = vsub.f32 %v13401_v40, %v10888_v1  ;;  %v11088_v53 = vsub.f32 %v13403_v5, %v10888_v1  ;;  %v13413_v32 = vld [vmem:[#allocation81_spill] sm:$0xff]  ;;  %v13415_v5 = vld [vmem:[#allocation84_spill] sm:$0xff] }
 0x3fa   :  { %v11092_v27 = vsub.f32 %v13405_v60, %v10888_v1  ;;  %v11096_v26 = vsub.f32 %v13407_v15, %v10888_v1  ;;  %v11100_v63 = vsub.f32 %v13409_v46, %v10888_v1  ;;  %v11104_v47 = vsub.f32 %v13411_v35, %v10888_v1 }
 0x3fb   :  { %13400 = vst [vmem:[#allocation90_spill] sm:$0xff] %v11080_v25  ;;  %13402 = vst [vmem:[#allocation91_spill] sm:$0xff] %v11084_v12  ;;  %v11108_v40 = vsub.f32 %v13413_v32, %v10888_v1  ;;  %v11112_v60 = vsub.f32 %v13415_v5, %v10888_v1 }
 0x3fc   :  { %13404 = vst [vmem:[#allocation65_spill] sm:$0xff] %v11088_v53  ;;  %13406 = vst [vmem:[#allocation24_spill] sm:$0xff] %v11092_v27  ;;  %v13417_v27 = vld [vmem:[#allocation102_spill] sm:$0xff] }
 0x3fd   :  { %13408 = vst [vmem:[#allocation96_spill] sm:$0xff] %v11096_v26  ;;  %13410 = vst [vmem:[#allocation95_spill] sm:$0xff] %v11100_v63  ;;  %v11116_v15 = vsub.f32 %v13417_v27, %v10888_v1  ;;  %v13419_v26 = vld [vmem:[#allocation86_spill] sm:$0xff]  ;;  %v13421_v63 = vld [vmem:[#allocation55_spill] sm:$0xff] }
 0x3fe   :  { %13412 = vst [vmem:[#allocation107_spill] sm:$0xff] %v11104_v47  ;;  %13414 = vst [vmem:[#allocation97_spill] sm:$0xff] %v11108_v40  ;;  %v11120_v46 = vsub.f32 %v13419_v26, %v10888_v1  ;;  %v11124_v35 = vsub.f32 %v13421_v63, %v10888_v1  ;;  %v13423_v47 = vld [vmem:[#allocation85_spill] sm:$0xff]  ;;  %v13425_v40 = vld [vmem:[#allocation59_spill] sm:$0xff]  ;;  %v11140_v26 = vsub.f32 %v10872_v2, %v10888_v1 }
 0x3ff   :  { %13416 = vst [vmem:[#allocation16_spill] sm:$0xff] %v11112_v60  ;;  %13418 = vst [vmem:[#allocation17_spill] sm:$0xff] %v11116_v15  ;;  %v11128_v32 = vsub.f32 %v13423_v47, %v10888_v1  ;;  %v11132_v5 = vsub.f32 %v13425_v40, %v10888_v1  ;;  %v13427_v60 = vld [vmem:[#allocation105_spill] sm:$0xff]  ;;  %v11144_v63 = vsub.f32 %v10878_v56, %v10888_v1 }
 0x400   :  { %13420 = vst [vmem:[#allocation18_spill] sm:$0xff] %v11120_v46  ;;  %13422 = vst [vmem:[#allocation19_spill] sm:$0xff] %v11124_v35  ;;  %v11136_v27 = vsub.f32 %v13427_v60, %v10888_v1  ;;  %v5094_v47 = vmul.f32 %v10892_v62, %v10892_v62  ;;  %v5096_v40 = vmul.f32 %v10900_v18, %v10900_v18 }
 0x401   :  { %13424 = vst [vmem:[#allocation20_spill] sm:$0xff] %v11128_v32  ;;  %13426 = vst [vmem:[#allocation21_spill] sm:$0xff] %v11132_v5  ;;  %v5095_v32 = vmul.f32 %v10896_v48, %v10896_v48  ;;  %v5097_v60 = vmul.f32 %v10904_v11, %v10904_v11  ;;  %v5098_v56 = vmul.f32 %v10908_v41, %v10908_v41 }
 0x402   :  { %13428 = vst [vmem:[#allocation22_spill] sm:$0xff] %v11136_v27  ;;  %13429 = vst [vmem:[#allocation25_spill] sm:$0xff] %v11140_v26  ;;  %v5158_v27 = vsel %vm4894_vm13, %v5094_v47, 0.0  ;;  %v5161_v1 = vsel %vm4894_vm13, %v5096_v40, 0.0  ;;  %v5099_v48 = vmul.f32 %v10912_v59, %v10912_v59  ;;  %v5100_v11 = vmul.f32 %v10916_v61, %v10916_v61 }
 0x403   :  { %13430 = vst [vmem:[#allocation26_spill] sm:$0xff] %v11144_v63  ;;  %v5159_v2 = vsel %vm4894_vm13, %v5095_v32, 0.0  ;;  %v5163_v63 = vsel %vm4894_vm13, %v5097_v60, 0.0  ;;  %v5165_v47 = vsel %vm4894_vm13, %v5098_v56, 0.0  ;;  %v5101_v32 = vmul.f32 %v10920_v57, %v10920_v57 }
 0x404   :  { %v5160_v26 = vadd.f32 %v5159_v2, %v5158_v27  ;;  %v5167_v27 = vsel %vm4894_vm13, %v5099_v48, 0.0  ;;  %v5169_v40 = vsel %vm4894_vm13, %v5100_v11, 0.0  ;;  %v5105_v48 = vmul.f32 %v10936_v21, %v10936_v21 }
 0x405   :  { %v5106_v11 = vmul.f32 %v10940_v19, %v10940_v19 }
 0x406   :  { %v5162_v62 = vadd.f32 %v5161_v1, %v5160_v26  ;;  %v5102_v26 = vmul.f32 %v10924_v24, %v10924_v24 }
 0x408   :  { %v5164_v18 = vadd.f32 %v5163_v63, %v5162_v62  ;;  %v5103_v62 = vmul.f32 %v10928_v52, %v10928_v52  ;;  %v5171_v63 = vsel %vm4894_vm13, %v5101_v32, 0.0  ;;  %v5173_v56 = vsel %vm4894_vm13, %v5102_v26, 0.0 }
 0x409   :  { %v5107_v32 = vmul.f32 %v10944_v29, %v10944_v29  ;;  %v5108_v26 = vmul.f32 %v10948_v28, %v10948_v28 }
 0x40a   :  { %v5166_v5 = vadd.f32 %v5165_v47, %v5164_v18  ;;  %v5104_v18 = vmul.f32 %v10932_v34, %v10932_v34 }
 0x40c   :  { %v5168_v2 = vadd.f32 %v5167_v27, %v5166_v5  ;;  %v5175_v5 = vsel %vm4894_vm13, %v5103_v62, 0.0  ;;  %v5109_v62 = vmul.f32 %v10952_v45, %v10952_v45 }
 0x40e   :  { %v5170_v1 = vadd.f32 %v5169_v40, %v5168_v2  ;;  %v5177_v2 = vsel %vm4894_vm13, %v5104_v18, 0.0  ;;  %v5110_v18 = vmul.f32 %v10956_v8, %v10956_v8 }
 0x410   :  { %v5172_v60 = vadd.f32 %v5171_v63, %v5170_v1  ;;  %v5179_v1 = vsel %vm4894_vm13, %v5105_v48, 0.0  ;;  %v5111_v48 = vmul.f32 %v10960_v43, %v10960_v43 }
 0x412   :  { %v5174_v47 = vadd.f32 %v5173_v56, %v5172_v60  ;;  %v5181_v60 = vsel %vm4894_vm13, %v5106_v11, 0.0  ;;  %v5112_v11 = vmul.f32 %v10964_v6, %v10964_v6 }
 0x414   :  { %v5176_v27 = vadd.f32 %v5175_v5, %v5174_v47  ;;  %v5183_v47 = vsel %vm4894_vm13, %v5107_v32, 0.0  ;;  %v5113_v32 = vmul.f32 %v10968_v9, %v10968_v9 }
 0x416   :  { %v5178_v40 = vadd.f32 %v5177_v2, %v5176_v27  ;;  %v5185_v27 = vsel %vm4894_vm13, %v5108_v26, 0.0  ;;  %v5114_v26 = vmul.f32 %v10972_v39, %v10972_v39 }
 0x418   :  { %v5180_v63 = vadd.f32 %v5179_v1, %v5178_v40  ;;  %v5187_v40 = vsel %vm4894_vm13, %v5109_v62, 0.0  ;;  %v5115_v62 = vmul.f32 %v10976_v0, %v10976_v0 }
 0x41a   :  { %v5182_v56 = vadd.f32 %v5181_v60, %v5180_v63  ;;  %v5189_v63 = vsel %vm4894_vm13, %v5110_v18, 0.0  ;;  %v5116_v18 = vmul.f32 %v10980_v22, %v10980_v22 }
 0x41c   :  { %v5184_v5 = vadd.f32 %v5183_v47, %v5182_v56  ;;  %v5191_v56 = vsel %vm4894_vm13, %v5111_v48, 0.0  ;;  %v5117_v48 = vmul.f32 %v10984_v7, %v10984_v7 }
 0x41e   :  { %v5186_v2 = vadd.f32 %v5185_v27, %v5184_v5  ;;  %v5193_v5 = vsel %vm4894_vm13, %v5112_v11, 0.0  ;;  %v5118_v11 = vmul.f32 %v10988_v4, %v10988_v4 }
 0x420   :  { %v5188_v1 = vadd.f32 %v5187_v40, %v5186_v2  ;;  %v5195_v2 = vsel %vm4894_vm13, %v5113_v32, 0.0  ;;  %v5119_v32 = vmul.f32 %v10992_v13, %v10992_v13 }
 0x422   :  { %v5190_v60 = vadd.f32 %v5189_v63, %v5188_v1  ;;  %v5197_v1 = vsel %vm4894_vm13, %v5114_v26, 0.0  ;;  %v5120_v26 = vmul.f32 %v10996_v37, %v10996_v37 }
 0x424   :  { %v5192_v47 = vadd.f32 %v5191_v56, %v5190_v60  ;;  %v5199_v60 = vsel %vm4894_vm13, %v5115_v62, 0.0  ;;  %v5121_v62 = vmul.f32 %v11000_v10, %v11000_v10 }
 0x426   :  { %v5194_v27 = vadd.f32 %v5193_v5, %v5192_v47  ;;  %v5201_v47 = vsel %vm4894_vm13, %v5116_v18, 0.0  ;;  %v5122_v18 = vmul.f32 %v11004_v54, %v11004_v54 }
 0x428   :  { %v5196_v40 = vadd.f32 %v5195_v2, %v5194_v27  ;;  %v5203_v27 = vsel %vm4894_vm13, %v5117_v48, 0.0  ;;  %v5123_v48 = vmul.f32 %v11008_v30, %v11008_v30 }
 0x42a   :  { %v5198_v63 = vadd.f32 %v5197_v1, %v5196_v40  ;;  %v5205_v40 = vsel %vm4894_vm13, %v5118_v11, 0.0  ;;  %v5124_v11 = vmul.f32 %v11012_v20, %v11012_v20 }
 0x42c   :  { %v5200_v56 = vadd.f32 %v5199_v60, %v5198_v63  ;;  %v5207_v63 = vsel %vm4894_vm13, %v5119_v32, 0.0  ;;  %v5125_v32 = vmul.f32 %v11016_v58, %v11016_v58 }
 0x42e   :  { %v5202_v5 = vadd.f32 %v5201_v47, %v5200_v56  ;;  %v5209_v56 = vsel %vm4894_vm13, %v5120_v26, 0.0  ;;  %v5126_v26 = vmul.f32 %v11020_v31, %v11020_v31 }
 0x430   :  { %v5204_v2 = vadd.f32 %v5203_v27, %v5202_v5  ;;  %v5211_v5 = vsel %vm4894_vm13, %v5121_v62, 0.0  ;;  %v5127_v62 = vmul.f32 %v11024_v16, %v11024_v16 }
 0x432   :  { %v5206_v1 = vadd.f32 %v5205_v40, %v5204_v2  ;;  %v5213_v2 = vsel %vm4894_vm13, %v5122_v18, 0.0  ;;  %v5128_v18 = vmul.f32 %v11028_v44, %v11028_v44 }
 0x434   :  { %v5208_v60 = vadd.f32 %v5207_v63, %v5206_v1  ;;  %v5215_v1 = vsel %vm4894_vm13, %v5123_v48, 0.0  ;;  %v5129_v48 = vmul.f32 %v11032_v14, %v11032_v14 }
 0x436   :  { %v5210_v47 = vadd.f32 %v5209_v56, %v5208_v60  ;;  %v5217_v60 = vsel %vm4894_vm13, %v5124_v11, 0.0  ;;  %v5130_v11 = vmul.f32 %v11036_v42, %v11036_v42 }
 0x438   :  { %v5212_v27 = vadd.f32 %v5211_v5, %v5210_v47  ;;  %v5219_v47 = vsel %vm4894_vm13, %v5125_v32, 0.0  ;;  %v5131_v32 = vmul.f32 %v11040_v49, %v11040_v49 }
 0x43a   :  { %v5214_v40 = vadd.f32 %v5213_v2, %v5212_v27  ;;  %v5221_v27 = vsel %vm4894_vm13, %v5126_v26, 0.0  ;;  %v5132_v26 = vmul.f32 %v11044_v55, %v11044_v55 }
 0x43c   :  { %v5216_v63 = vadd.f32 %v5215_v1, %v5214_v40  ;;  %v5223_v40 = vsel %vm4894_vm13, %v5127_v62, 0.0  ;;  %v5133_v62 = vmul.f32 %v11048_v38, %v11048_v38 }
 0x43e   :  { %v5218_v56 = vadd.f32 %v5217_v60, %v5216_v63  ;;  %v5225_v63 = vsel %vm4894_vm13, %v5128_v18, 0.0  ;;  %v5134_v18 = vmul.f32 %v11052_v50, %v11052_v50 }
 0x440   :  { %v5220_v5 = vadd.f32 %v5219_v47, %v5218_v56  ;;  %v5227_v56 = vsel %vm4894_vm13, %v5129_v48, 0.0  ;;  %v5135_v48 = vmul.f32 %v11056_v33, %v11056_v33 }
 0x442   :  { %v5222_v2 = vadd.f32 %v5221_v27, %v5220_v5  ;;  %v5229_v5 = vsel %vm4894_vm13, %v5130_v11, 0.0  ;;  %v5136_v11 = vmul.f32 %v11060_v51, %v11060_v51 }
 0x444   :  { %v5224_v1 = vadd.f32 %v5223_v40, %v5222_v2  ;;  %v5231_v2 = vsel %vm4894_vm13, %v5131_v32, 0.0  ;;  %v5137_v32 = vmul.f32 %v11064_v36, %v11064_v36 }
 0x446   :  { %v5226_v60 = vadd.f32 %v5225_v63, %v5224_v1  ;;  %v5233_v1 = vsel %vm4894_vm13, %v5132_v26, 0.0  ;;  %v5138_v26 = vmul.f32 %v11068_v3, %v11068_v3 }
 0x448   :  { %v5228_v47 = vadd.f32 %v5227_v56, %v5226_v60  ;;  %v5235_v60 = vsel %vm4894_vm13, %v5133_v62, 0.0  ;;  %v5139_v62 = vmul.f32 %v11072_v23, %v11072_v23 }
 0x44a   :  { %v5230_v27 = vadd.f32 %v5229_v5, %v5228_v47  ;;  %v5237_v47 = vsel %vm4894_vm13, %v5134_v18, 0.0  ;;  %v5140_v18 = vmul.f32 %v11076_v17, %v11076_v17 }
 0x44c   :  { %v5232_v40 = vadd.f32 %v5231_v2, %v5230_v27  ;;  %v5239_v27 = vsel %vm4894_vm13, %v5135_v48, 0.0  ;;  %v5141_v48 = vmul.f32 %v11080_v25, %v11080_v25 }
 0x44e   :  { %v5234_v63 = vadd.f32 %v5233_v1, %v5232_v40  ;;  %v5241_v40 = vsel %vm4894_vm13, %v5136_v11, 0.0  ;;  %v5142_v11 = vmul.f32 %v11084_v12, %v11084_v12 }
 0x450   :  { %v5236_v56 = vadd.f32 %v5235_v60, %v5234_v63  ;;  %v5243_v63 = vsel %vm4894_vm13, %v5137_v32, 0.0  ;;  %v5143_v32 = vmul.f32 %v11088_v53, %v11088_v53 }
 0x452   :  { %v5238_v5 = vadd.f32 %v5237_v47, %v5236_v56  ;;  %v5245_v56 = vsel %vm4894_vm13, %v5138_v26, 0.0  ;;  %v13431_v26 = vld [vmem:[#allocation24_spill] sm:$0xff] }
 0x454   :  { %v5240_v2 = vadd.f32 %v5239_v27, %v5238_v5  ;;  %v5247_v5 = vsel %vm4894_vm13, %v5139_v62, 0.0  ;;  %v13432_v62 = vld [vmem:[#allocation96_spill] sm:$0xff] }
 0x456   :  { %v5242_v1 = vadd.f32 %v5241_v40, %v5240_v2  ;;  %v5249_v2 = vsel %vm4894_vm13, %v5140_v18, 0.0  ;;  %v13433_v18 = vld [vmem:[#allocation95_spill] sm:$0xff] }
 0x458   :  { %v5244_v60 = vadd.f32 %v5243_v63, %v5242_v1  ;;  %v5251_v1 = vsel %vm4894_vm13, %v5141_v48, 0.0  ;;  %v13434_v48 = vld [vmem:[#allocation107_spill] sm:$0xff] }
 0x45a   :  { %v5246_v47 = vadd.f32 %v5245_v56, %v5244_v60  ;;  %v5144_v60 = vmul.f32 %v13431_v26, %v13431_v26  ;;  %v5253_v56 = vsel %vm4894_vm13, %v5142_v11, 0.0  ;;  %v13435_v11 = vld [vmem:[#allocation97_spill] sm:$0xff] }
 0x45c   :  { %v5248_v27 = vadd.f32 %v5247_v5, %v5246_v47  ;;  %v5145_v47 = vmul.f32 %v13432_v62, %v13432_v62  ;;  %v5255_v5 = vsel %vm4894_vm13, %v5143_v32, 0.0  ;;  %v13436_v32 = vld [vmem:[#allocation16_spill] sm:$0xff] }
 0x45e   :  { %v5250_v40 = vadd.f32 %v5249_v2, %v5248_v27  ;;  %v5146_v27 = vmul.f32 %v13433_v18, %v13433_v18  ;;  %v5257_v2 = vsel %vm4894_vm13, %v5144_v60, 0.0 }
 0x460   :  { %v5252_v63 = vadd.f32 %v5251_v1, %v5250_v40  ;;  %v5147_v40 = vmul.f32 %v13434_v48, %v13434_v48  ;;  %v5259_v1 = vsel %vm4894_vm13, %v5145_v47, 0.0 }
 0x462   :  { %v5254_v25 = vadd.f32 %v5253_v56, %v5252_v63  ;;  %v5148_v63 = vmul.f32 %v13435_v11, %v13435_v11  ;;  %v5261_v56 = vsel %vm4894_vm13, %v5146_v27, 0.0 }
 0x464   :  { %v5256_v12 = vadd.f32 %v5255_v5, %v5254_v25  ;;  %v5149_v25 = vmul.f32 %v13436_v32, %v13436_v32  ;;  %v5263_v5 = vsel %vm4894_vm13, %v5147_v40, 0.0  ;;  %v5265_v60 = vsel %vm4894_vm13, %v5148_v63, 0.0  ;;  %v13437_v40 = vld [vmem:[#allocation20_spill] sm:$0xff]  ;;  %v13438_v63 = vld [vmem:[#allocation21_spill] sm:$0xff] }
 0x466   :  { %v5258_v53 = vadd.f32 %v5257_v2, %v5256_v12  ;;  %v5150_v12 = vmul.f32 %v11116_v15, %v11116_v15  ;;  %v5267_v47 = vsel %vm4894_vm13, %v5149_v25, 0.0  ;;  %v13439_v25 = vld [vmem:[#allocation22_spill] sm:$0xff] }
 0x468   :  { %v5260_v26 = vadd.f32 %v5259_v1, %v5258_v53  ;;  %v5151_v53 = vmul.f32 %v11120_v46, %v11120_v46  ;;  %v5269_v27 = vsel %vm4894_vm13, %v5150_v12, 0.0  ;;  %v13440_v12 = vld [vmem:[#allocation25_spill] sm:$0xff] }
 0x46a   :  { %v5262_v62 = vadd.f32 %v5261_v56, %v5260_v26  ;;  %v5152_v26 = vmul.f32 %v11124_v35, %v11124_v35 }
 0x46c   :  { %v5264_v18 = vadd.f32 %v5263_v5, %v5262_v62  ;;  %v5153_v62 = vmul.f32 %v13437_v40, %v13437_v40  ;;  %v5271_v5 = vsel %vm4894_vm13, %v5151_v53, 0.0  ;;  %v13441_v53 = vld [vmem:[#allocation26_spill] sm:$0xff] }
 0x46e   :  { %v5266_v2 = vadd.f32 %v5265_v60, %v5264_v18  ;;  %v5154_v18 = vmul.f32 %v13438_v63, %v13438_v63  ;;  %v5273_v60 = vsel %vm4894_vm13, %v5152_v26, 0.0 }
 0x470   :  { %v5268_v1 = vadd.f32 %v5267_v47, %v5266_v2  ;;  %v5155_v2 = vmul.f32 %v13439_v25, %v13439_v25  ;;  %v5275_v47 = vsel %vm4894_vm13, %v5153_v62, 0.0 }
 0x472   :  { %v5270_v56 = vadd.f32 %v5269_v27, %v5268_v1  ;;  %v5156_v1 = vmul.f32 %v13440_v12, %v13440_v12  ;;  %v5277_v27 = vsel %vm4894_vm13, %v5154_v18, 0.0 }
 0x474   :  { %v5272_v15 = vadd.f32 %v5271_v5, %v5270_v56  ;;  %v5157_v56 = vmul.f32 %v13441_v53, %v13441_v53  ;;  %v5279_v5 = vsel %vm4894_vm13, %v5155_v2, 0.0  ;;  %v11340_v53 = vld [vmem:[#allocation8] ss:$0 sm:$0xff] }
 0x476   :  { %v5274_v46 = vadd.f32 %v5273_v60, %v5272_v15  ;;  %v5281_v15 = vsel %vm4894_vm13, %v5156_v1, 0.0  ;;  %v5283_v60 = vsel %vm4894_vm13, %v5157_v56, 0.0  ;;  %v13443_v1 = vld [vmem:[#allocation89_spill] sm:$0xff]  ;;  %v13444_v56 = vld [vmem:[#allocation87_spill] sm:$0xff] }
 0x478   :  { %v5276_v35 = vadd.f32 %v5275_v47, %v5274_v46 }
 0x47a   :  { %v5278_v40 = vadd.f32 %v5277_v27, %v5276_v35 }
 0x47c   :  { %v5280_v63 = vadd.f32 %v5279_v5, %v5278_v40 }
 0x47e   :  { %v5282_v26 = vadd.f32 %v5281_v15, %v5280_v63  ;;  %v13442_v63 = vld [vmem:[#allocation104_spill] sm:$0xff] }
 0x480   :  { %v5284_v32 = vadd.f32 %v5283_v60, %v5282_v26 }
 0x482   :  { %v5285_v62 = vrot.slane %v5284_v32, 4 }
 0x484   :  { %v5286_v46 = vadd.f32 %v5285_v62, %v5284_v32 }
 0x486   :  { %v5287_v47 = vrot.slane %v5286_v46, 2 }
 0x488   :  { %v5288_v11 = vadd.f32 %v5287_v47, %v5286_v46 }
 0x48a   :  { %v5289_v12 = vrot.slane %v5288_v11, 1 }
 0x48c   :  { %v5290_v48 = vadd.f32 %v5289_v12, %v5288_v11  ;;  %v11356_v11 = vld [vmem:[#allocation9] ss:$0 sm:$0xff]  ;;  %v13446_v12 = vld [vmem:[#allocation60_spill] sm:$0xff] }
 0x48d   :  { %13445 = vst [vmem:[#allocation27_spill] sm:$0xff] %v11356_v11 }
 0x48e   :  { %v5291_v18 = vmul.f32 0.001953125, %v5290_v48 }
 0x490   :  { %v5292_v35 = vadd.f32 1e-05, %v5291_v18 }
 0x492   :  { %8111 = vrsqrt.f32 %v5292_v35 }
 0x49c   :  { %v11338_v27 = vpop.eup %8111 }
 0x49d   :  { %v5355_v40 = vmul.f32 %v11338_v27, %v13439_v25  ;;  %v11346_v2 = vmul.f32 %v11338_v27, %v13442_v63  ;;  %v11350_v32 = vmul.f32 %v11338_v27, %v13443_v1  ;;  %v11354_v48 = vmul.f32 %v11338_v27, %v13444_v56  ;;  %v13447_v1 = vld [vmem:[#allocation90_spill] sm:$0xff]  ;;  %v13448_v56 = vld [vmem:[#allocation91_spill] sm:$0xff] }
 0x49e   :  { %v11360_v5 = vmul.f32 %v11338_v27, %v13446_v12  ;;  %v11364_v25 = vmul.f32 %v11338_v27, %v10908_v41  ;;  %v11368_v15 = vmul.f32 %v11338_v27, %v10912_v59  ;;  %v11372_v26 = vmul.f32 %v11338_v27, %v10916_v61 }
 0x49f   :  { %v5425_v60 = vmul.f32 %v11340_v53, %v5355_v40  ;;  %v11377_v62 = vmul.f32 %v11338_v27, %v10920_v57  ;;  %v11381_v46 = vmul.f32 %v11338_v27, %v10924_v24  ;;  %v11385_v41 = vmul.f32 %v11338_v27, %v10928_v52 }
 0x4a0   :  { %v11389_v59 = vmul.f32 %v11338_v27, %v10932_v34  ;;  %v11393_v61 = vmul.f32 %v11338_v27, %v10936_v21  ;;  %v11397_v57 = vmul.f32 %v11338_v27, %v10940_v19  ;;  %v11401_v24 = vmul.f32 %v11338_v27, %v10944_v29 }
 0x4a1   :  { %v5495_v47 = vadd.f32 %v11356_v11, %v5425_v60  ;;  %v11406_v52 = vmul.f32 %v11338_v27, %v10948_v28  ;;  %v11410_v34 = vmul.f32 %v11338_v27, %v10952_v45  ;;  %v11414_v21 = vmul.f32 %v11338_v27, %v10956_v8  ;;  %v13449_v60 = vld [vmem:[#allocation65_spill] sm:$0xff]  ;;  %v13457_v11 = vld [vmem:[#allocation107_spill] sm:$0xff] }
 0x4a2   :  { %v11418_v19 = vmul.f32 %v11338_v27, %v10960_v43  ;;  %v11422_v29 = vmul.f32 %v11338_v27, %v10964_v6  ;;  %v11426_v28 = vmul.f32 %v11338_v27, %v10968_v9  ;;  %v11430_v45 = vmul.f32 %v11338_v27, %v10972_v39 }
 0x4a3   :  { %v5559_v18 = vadd.f32 3.0, %v5495_v47  ;;  %v11434_v8 = vmul.f32 %v11338_v27, %v10976_v0  ;;  %v11438_v43 = vmul.f32 %v11338_v27, %v10980_v22  ;;  %v11442_v6 = vmul.f32 %v11338_v27, %v10984_v7 }
 0x4a4   :  { %v11446_v9 = vmul.f32 %v11338_v27, %v10988_v4  ;;  %v11450_v39 = vmul.f32 %v11338_v27, %v10992_v13  ;;  %v11454_v0 = vmul.f32 %v11338_v27, %v10996_v37  ;;  %v11458_v22 = vmul.f32 %v11338_v27, %v11000_v10 }
 0x4a5   :  { %v5623_v35 = vmax.f32 %v5559_v18, 0.0  ;;  %v11462_v7 = vmul.f32 %v11338_v27, %v11004_v54  ;;  %v11466_v4 = vmul.f32 %v11338_v27, %v11008_v30  ;;  %v11470_v13 = vmul.f32 %v11338_v27, %v11012_v20  ;;  %v13451_v18 = vld [vmem:[#allocation24_spill] sm:$0xff] }
 0x4a6   :  { %v11474_v37 = vmul.f32 %v11338_v27, %v11016_v58  ;;  %v11478_v10 = vmul.f32 %v11338_v27, %v11020_v31  ;;  %v11482_v54 = vmul.f32 %v11338_v27, %v11024_v16  ;;  %v11486_v30 = vmul.f32 %v11338_v27, %v11028_v44 }
 0x4a7   :  { %v5687_v40 = vmin.f32 %v5623_v35, 6.0  ;;  %v11490_v20 = vmul.f32 %v11338_v27, %v11032_v14  ;;  %v11494_v58 = vmul.f32 %v11338_v27, %v11036_v42  ;;  %v11498_v31 = vmul.f32 %v11338_v27, %v11040_v49  ;;  %v13453_v35 = vld [vmem:[#allocation96_spill] sm:$0xff] }
 0x4a8   :  { %v11502_v16 = vmul.f32 %v11338_v27, %v11044_v55  ;;  %v11506_v44 = vmul.f32 %v11338_v27, %v11048_v38  ;;  %v11510_v14 = vmul.f32 %v11338_v27, %v11052_v50  ;;  %v11514_v42 = vmul.f32 %v11338_v27, %v11056_v33 }
 0x4a9   :  { %v5751_v63 = vmul.f32 0.16666667, %v5687_v40  ;;  %v11518_v49 = vmul.f32 %v11338_v27, %v11060_v51  ;;  %v11522_v55 = vmul.f32 %v11338_v27, %v11064_v36  ;;  %v11526_v38 = vmul.f32 %v11338_v27, %v11068_v3  ;;  %v13455_v40 = vld [vmem:[#allocation95_spill] sm:$0xff] }
 0x4aa   :  { %v11530_v50 = vmul.f32 %v11338_v27, %v11072_v23  ;;  %v11534_v33 = vmul.f32 %v11338_v27, %v11076_v17  ;;  %v11538_v51 = vmul.f32 %v11338_v27, %v13447_v1  ;;  %v11542_v36 = vmul.f32 %v11338_v27, %v13448_v56 }
 0x4ab   :  { %v5815_v12 = vmul.f32 %v5751_v63, %v5495_v47  ;;  %v11546_v3 = vmul.f32 %v11338_v27, %v13449_v60  ;;  %v11550_v23 = vmul.f32 %v11338_v27, %v13451_v18  ;;  %v11554_v17 = vmul.f32 %v11338_v27, %v13453_v35  ;;  %v13459_v47 = vld [vmem:[#allocation97_spill] sm:$0xff]  ;;  %v13461_v60 = vld [vmem:[#allocation16_spill] sm:$0xff] }
 0x4ac   :  { %v11558_v1 = vmul.f32 %v11338_v27, %v13455_v40  ;;  %v11562_v56 = vmul.f32 %v11338_v27, %v13457_v11  ;;  %v11566_v63 = vmul.f32 %v11338_v27, %v13459_v47  ;;  %v11570_v18 = vmul.f32 %v11338_v27, %v13461_v60 }
 0x4ad   :  { %13450 = vst [vmem:[#allocation23_spill] sm:$0xff] %v11546_v3  ;;  %13452 = vst [vmem:[#allocation28_spill] sm:$0xff] %v11550_v23  ;;  %v6701_v23 = vpack.c.bf16 %v5815_v12, %v5815_v12  ;;  %v13462_v3 = vld [vmem:[#allocation17_spill] sm:$0xff] }
 0x4ae   :  { %13454 = vst [vmem:[#allocation73_spill] sm:$0xff] %v11554_v17  ;;  %13456 = vst [vmem:[#allocation29_spill] sm:$0xff] %v11558_v1  ;;  %v11574_v35 = vmul.f32 %v11338_v27, %v13462_v3  ;;  %v13464_v17 = vld [vmem:[#allocation18_spill] sm:$0xff]  ;;  %v13465_v1 = vld [vmem:[#allocation19_spill] sm:$0xff] }
 0x4af   :  { %13458 = vst [vmem:[#allocation30_spill] sm:$0xff] %v11562_v56  ;;  %13460 = vst [vmem:[#allocation77_spill] sm:$0xff] %v11566_v63  ;;  %v11578_v40 = vmul.f32 %v11338_v27, %v13464_v17  ;;  %v11582_v11 = vmul.f32 %v11338_v27, %v13465_v1  ;;  %v13466_v56 = vld [vmem:[#allocation20_spill] sm:$0xff]  ;;  %v13467_v63 = vld [vmem:[#allocation21_spill] sm:$0xff]  ;;  %v11603_v1 = vmul.f32 %v11340_v53, %v11346_v2 }
 0x4b0   :  { %13463 = vst [vmem:[#allocation78_spill] sm:$0xff] %v11574_v35  ;;  %v11586_v47 = vmul.f32 %v11338_v27, %v13466_v56  ;;  %v11590_v60 = vmul.f32 %v11338_v27, %v13467_v63  ;;  %v13468_v12 = vld [vmem:[#allocation25_spill] sm:$0xff]  ;;  %v13469_v35 = vld [vmem:[#allocation26_spill] sm:$0xff]  ;;  %6136 = vst.msk [vmem:[#allocation11 + $0xf4] sm:$0xf] %vm6074_vm14, %v6701_v23  ;;  %v11607_v56 = vmul.f32 %v11340_v53, %v11350_v32 }
 0x4b1   :  { %v11594_v3 = vmul.f32 %v11338_v27, %v13468_v12  ;;  %v11598_v17 = vmul.f32 %v11338_v27, %v13469_v35  ;;  %v11611_v63 = vmul.f32 %v11340_v53, %v11354_v48  ;;  %v11615_v12 = vmul.f32 %v11340_v53, %v11360_v5 }
 0x4b2   :  { %v11619_v27 = vmul.f32 %v11340_v53, %v11364_v25  ;;  %v11623_v2 = vmul.f32 %v11340_v53, %v11368_v15  ;;  %v11627_v32 = vmul.f32 %v11340_v53, %v11372_v26  ;;  %v11631_v48 = vmul.f32 %v11340_v53, %v11377_v62 }
 0x4b3   :  { %v11635_v5 = vmul.f32 %v11340_v53, %v11381_v46  ;;  %v11639_v25 = vmul.f32 %v11340_v53, %v11385_v41  ;;  %v11643_v15 = vmul.f32 %v11340_v53, %v11389_v59  ;;  %v11647_v26 = vmul.f32 %v11340_v53, %v11393_v61 }
 0x4b4   :  { %v11651_v62 = vmul.f32 %v11340_v53, %v11397_v57  ;;  %v11655_v46 = vmul.f32 %v11340_v53, %v11401_v24  ;;  %v11659_v41 = vmul.f32 %v11340_v53, %v11406_v52  ;;  %v11663_v59 = vmul.f32 %v11340_v53, %v11410_v34  ;;  %v13474_v23 = vld [vmem:[#allocation23_spill] sm:$0xff]  ;;  %v13475_v35 = vld [vmem:[#allocation28_spill] sm:$0xff] }
 0x4b5   :  { %v11667_v61 = vmul.f32 %v11340_v53, %v11414_v21  ;;  %v11671_v57 = vmul.f32 %v11340_v53, %v11418_v19  ;;  %v11675_v24 = vmul.f32 %v11340_v53, %v11422_v29  ;;  %v11679_v52 = vmul.f32 %v11340_v53, %v11426_v28 }
 0x4b6   :  { %v11683_v34 = vmul.f32 %v11340_v53, %v11430_v45  ;;  %v11687_v21 = vmul.f32 %v11340_v53, %v11434_v8  ;;  %v11691_v19 = vmul.f32 %v11340_v53, %v11438_v43  ;;  %v11695_v29 = vmul.f32 %v11340_v53, %v11442_v6 }
 0x4b7   :  { %v11699_v28 = vmul.f32 %v11340_v53, %v11446_v9  ;;  %v11703_v45 = vmul.f32 %v11340_v53, %v11450_v39  ;;  %v11707_v8 = vmul.f32 %v11340_v53, %v11454_v0  ;;  %v11711_v43 = vmul.f32 %v11340_v53, %v11458_v22 }
 0x4b8   :  { %v11715_v6 = vmul.f32 %v11340_v53, %v11462_v7  ;;  %v11719_v9 = vmul.f32 %v11340_v53, %v11466_v4  ;;  %v11723_v39 = vmul.f32 %v11340_v53, %v11470_v13  ;;  %v11727_v0 = vmul.f32 %v11340_v53, %v11474_v37 }
 0x4b9   :  { %v11731_v22 = vmul.f32 %v11340_v53, %v11478_v10  ;;  %v11735_v7 = vmul.f32 %v11340_v53, %v11482_v54  ;;  %v11739_v4 = vmul.f32 %v11340_v53, %v11486_v30  ;;  %v11743_v13 = vmul.f32 %v11340_v53, %v11490_v20 }
 0x4ba   :  { %v11747_v37 = vmul.f32 %v11340_v53, %v11494_v58  ;;  %v11751_v10 = vmul.f32 %v11340_v53, %v11498_v31  ;;  %v11755_v54 = vmul.f32 %v11340_v53, %v11502_v16  ;;  %v11759_v30 = vmul.f32 %v11340_v53, %v11506_v44 }
 0x4bb   :  { %v11763_v20 = vmul.f32 %v11340_v53, %v11510_v14  ;;  %v11767_v58 = vmul.f32 %v11340_v53, %v11514_v42  ;;  %v11771_v31 = vmul.f32 %v11340_v53, %v11518_v49  ;;  %v11775_v16 = vmul.f32 %v11340_v53, %v11522_v55 }
 0x4bc   :  { %v11779_v44 = vmul.f32 %v11340_v53, %v11526_v38  ;;  %v11783_v14 = vmul.f32 %v11340_v53, %v11530_v50  ;;  %v11787_v42 = vmul.f32 %v11340_v53, %v11534_v33  ;;  %v11791_v49 = vmul.f32 %v11340_v53, %v11538_v51 }
 0x4bd   :  { %v11795_v55 = vmul.f32 %v11340_v53, %v11542_v36  ;;  %v11799_v38 = vmul.f32 %v11340_v53, %v13474_v23  ;;  %v11803_v50 = vmul.f32 %v11340_v53, %v13475_v35  ;;  %v11823_v35 = vmul.f32 %v11340_v53, %v11570_v18 }
 0x4be   :  { %13470 = vst [vmem:[#allocation83_spill] sm:$0xff] %v11783_v14  ;;  %13471 = vst [vmem:[#allocation31_spill] sm:$0xff] %v11787_v42  ;;  %v13477_v14 = vld [vmem:[#allocation73_spill] sm:$0xff]  ;;  %v11843_v18 = vmul.f32 %v11340_v53, %v11590_v60 }
 0x4bf   :  { %13472 = vst [vmem:[#allocation92_spill] sm:$0xff] %v11791_v49  ;;  %13473 = vst [vmem:[#allocation32_spill] sm:$0xff] %v11795_v55  ;;  %v11807_v33 = vmul.f32 %v11340_v53, %v13477_v14  ;;  %v13478_v42 = vld [vmem:[#allocation29_spill] sm:$0xff]  ;;  %v13479_v49 = vld [vmem:[#allocation30_spill] sm:$0xff] }
 0x4c0   :  { %13476 = vst [vmem:[#allocation101_spill] sm:$0xff] %v11803_v50  ;;  %v11811_v51 = vmul.f32 %v11340_v53, %v13478_v42  ;;  %v11815_v36 = vmul.f32 %v11340_v53, %v13479_v49  ;;  %v13480_v55 = vld [vmem:[#allocation77_spill] sm:$0xff]  ;;  %v13481_v50 = vld [vmem:[#allocation78_spill] sm:$0xff]  ;;  %v11831_v42 = vmul.f32 %v11340_v53, %v11578_v40  ;;  %v11835_v49 = vmul.f32 %v11340_v53, %v11582_v11 }
 0x4c1   :  { %v11819_v23 = vmul.f32 %v11340_v53, %v13480_v55  ;;  %v11827_v14 = vmul.f32 %v11340_v53, %v13481_v50  ;;  %v11839_v55 = vmul.f32 %v11340_v53, %v11586_v47  ;;  %v11847_v50 = vmul.f32 %v11340_v53, %v11594_v3 }
 0x4c2   :  { %13482 = vst [vmem:[#allocation103_spill] sm:$0xff] %v11831_v42  ;;  %v11851_v40 = vmul.f32 %v11340_v53, %v11598_v17  ;;  %v13483_v42 = vld [vmem:[#allocation27_spill] sm:$0xff] }
 0x4c3   :  { %v11855_v11 = vadd.f32 %v13483_v42, %v11603_v1  ;;  %v11859_v47 = vadd.f32 %v13483_v42, %v11607_v56  ;;  %v11863_v60 = vadd.f32 %v13483_v42, %v11611_v63  ;;  %v11867_v3 = vadd.f32 %v13483_v42, %v11615_v12 }
 0x4c4   :  { %v11871_v53 = vadd.f32 %v13483_v42, %v11619_v27  ;;  %v11875_v17 = vadd.f32 %v13483_v42, %v11623_v2  ;;  %v11879_v1 = vadd.f32 %v13483_v42, %v11627_v32  ;;  %v11883_v56 = vadd.f32 %v13483_v42, %v11631_v48 }
 0x4c5   :  { %13484 = vst [vmem:[#allocation106_spill] sm:$0xff] %v11855_v11  ;;  %13485 = vst [vmem:[#allocation108_spill] sm:$0xff] %v11859_v47  ;;  %v11887_v63 = vadd.f32 %v13483_v42, %v11635_v5  ;;  %v11891_v12 = vadd.f32 %v13483_v42, %v11639_v25  ;;  %v11895_v27 = vadd.f32 %v13483_v42, %v11643_v15 }
 0x4c6   :  { %13486 = vst [vmem:[#allocation33_spill] sm:$0xff] %v11863_v60  ;;  %13487 = vst [vmem:[#allocation109_spill] sm:$0xff] %v11867_v3  ;;  %v11899_v2 = vadd.f32 %v13483_v42, %v11647_v26  ;;  %v11903_v32 = vadd.f32 %v13483_v42, %v11651_v62  ;;  %v11907_v48 = vadd.f32 %v13483_v42, %v11655_v46 }
 0x4c7   :  { %13488 = vst [vmem:[#allocation47_spill] sm:$0xff] %v11871_v53  ;;  %13489 = vst [vmem:[#allocation34_spill] sm:$0xff] %v11875_v17  ;;  %v11911_v5 = vadd.f32 %v13483_v42, %v11659_v41  ;;  %v11915_v25 = vadd.f32 %v13483_v42, %v11663_v59  ;;  %v11919_v15 = vadd.f32 %v13483_v42, %v11667_v61 }
 0x4c8   :  { %13490 = vst [vmem:[#allocation49_spill] sm:$0xff] %v11879_v1  ;;  %13491 = vst [vmem:[#allocation50_spill] sm:$0xff] %v11883_v56  ;;  %v11923_v26 = vadd.f32 %v13483_v42, %v11671_v57  ;;  %v11927_v62 = vadd.f32 %v13483_v42, %v11675_v24  ;;  %v11931_v46 = vadd.f32 %v13483_v42, %v11679_v52 }
 0x4c9   :  { %13492 = vst [vmem:[#allocation35_spill] sm:$0xff] %v11887_v63  ;;  %13493 = vst [vmem:[#allocation52_spill] sm:$0xff] %v11891_v12  ;;  %v11935_v41 = vadd.f32 %v13483_v42, %v11683_v34  ;;  %v11939_v59 = vadd.f32 %v13483_v42, %v11687_v21  ;;  %v11943_v61 = vadd.f32 %v13483_v42, %v11691_v19 }
 0x4ca   :  { %13494 = vst [vmem:[#allocation51_spill] sm:$0xff] %v11895_v27  ;;  %13495 = vst [vmem:[#allocation36_spill] sm:$0xff] %v11899_v2  ;;  %v11947_v57 = vadd.f32 %v13483_v42, %v11695_v29  ;;  %v11951_v24 = vadd.f32 %v13483_v42, %v11699_v28  ;;  %v11955_v52 = vadd.f32 %v13483_v42, %v11703_v45 }
 0x4cb   :  { %13496 = vst [vmem:[#allocation53_spill] sm:$0xff] %v11903_v32  ;;  %13497 = vst [vmem:[#allocation54_spill] sm:$0xff] %v11907_v48  ;;  %v11959_v34 = vadd.f32 %v13483_v42, %v11707_v8  ;;  %v11963_v21 = vadd.f32 %v13483_v42, %v11711_v43  ;;  %v11967_v19 = vadd.f32 %v13483_v42, %v11715_v6 }
 0x4cc   :  { %13498 = vst [vmem:[#allocation37_spill] sm:$0xff] %v11911_v5  ;;  %13499 = vst [vmem:[#allocation57_spill] sm:$0xff] %v11915_v25  ;;  %v11971_v29 = vadd.f32 %v13483_v42, %v11719_v9  ;;  %v11975_v28 = vadd.f32 %v13483_v42, %v11723_v39  ;;  %v11979_v45 = vadd.f32 %v13483_v42, %v11727_v0 }
 0x4cd   :  { %13500 = vst [vmem:[#allocation56_spill] sm:$0xff] %v11919_v15  ;;  %13501 = vst [vmem:[#allocation38_spill] sm:$0xff] %v11923_v26  ;;  %v11983_v8 = vadd.f32 %v13483_v42, %v11731_v22  ;;  %v11987_v43 = vadd.f32 %v13483_v42, %v11735_v7  ;;  %v11991_v6 = vadd.f32 %v13483_v42, %v11739_v4 }
 0x4ce   :  { %13502 = vst [vmem:[#allocation58_spill] sm:$0xff] %v11927_v62  ;;  %13503 = vst [vmem:[#allocation61_spill] sm:$0xff] %v11931_v46  ;;  %v11995_v9 = vadd.f32 %v13483_v42, %v11743_v13  ;;  %v11999_v39 = vadd.f32 %v13483_v42, %v11747_v37  ;;  %v12003_v0 = vadd.f32 %v13483_v42, %v11751_v10 }
 0x4cf   :  { %13504 = vst [vmem:[#allocation39_spill] sm:$0xff] %v11935_v41  ;;  %13505 = vst [vmem:[#allocation88_spill] sm:$0xff] %v11939_v59  ;;  %v12007_v22 = vadd.f32 %v13483_v42, %v11755_v54  ;;  %v12011_v7 = vadd.f32 %v13483_v42, %v11759_v30  ;;  %v12015_v4 = vadd.f32 %v13483_v42, %v11763_v20  ;;  %v13529_v30 = vld [vmem:[#allocation83_spill] sm:$0xff] }
 0x4d0   :  { %13506 = vst [vmem:[#allocation63_spill] sm:$0xff] %v11943_v61  ;;  %13507 = vst [vmem:[#allocation62_spill] sm:$0xff] %v11947_v57  ;;  %v12019_v13 = vadd.f32 %v13483_v42, %v11767_v58  ;;  %v12023_v37 = vadd.f32 %v13483_v42, %v11771_v31  ;;  %v12027_v10 = vadd.f32 %v13483_v42, %v11775_v16 }
 0x4d1   :  { %13508 = vst [vmem:[#allocation40_spill] sm:$0xff] %v11951_v24  ;;  %13509 = vst [vmem:[#allocation64_spill] sm:$0xff] %v11955_v52  ;;  %v12031_v54 = vadd.f32 %v13483_v42, %v11779_v44  ;;  %v12035_v20 = vadd.f32 %v13483_v42, %v13529_v30  ;;  %v12051_v44 = vadd.f32 %v13483_v42, %v11799_v38 }
 0x4d2   :  { %13510 = vst [vmem:[#allocation66_spill] sm:$0xff] %v11959_v34  ;;  %13511 = vst [vmem:[#allocation41_spill] sm:$0xff] %v11963_v21  ;;  %v12071_v38 = vadd.f32 %v13483_v42, %v11819_v23  ;;  %v12091_v23 = vadd.f32 %v13483_v42, %v11839_v55  ;;  %v12112_v55 = vadd.f32 3.0, %v11863_v60  ;;  %v12133_v60 = vadd.f32 3.0, %v11891_v12 }
 0x4d3   :  { %13512 = vst [vmem:[#allocation68_spill] sm:$0xff] %v11967_v19  ;;  %13513 = vst [vmem:[#allocation67_spill] sm:$0xff] %v11971_v29  ;;  %v12154_v12 = vadd.f32 3.0, %v11919_v15  ;;  %v12175_v15 = vadd.f32 3.0, %v11947_v57  ;;  %v12196_v57 = vadd.f32 3.0, %v11975_v28 }
 0x4d4   :  { %13514 = vst [vmem:[#allocation42_spill] sm:$0xff] %v11975_v28  ;;  %13515 = vst [vmem:[#allocation94_spill] sm:$0xff] %v11979_v45  ;;  %v12217_v28 = vadd.f32 3.0, %v12003_v0 }
 0x4d5   :  { %13516 = vst [vmem:[#allocation93_spill] sm:$0xff] %v11983_v8  ;;  %13517 = vst [vmem:[#allocation69_spill] sm:$0xff] %v11987_v43 }
 0x4d6   :  { %13518 = vst [vmem:[#allocation70_spill] sm:$0xff] %v11991_v6  ;;  %13519 = vst [vmem:[#allocation43_spill] sm:$0xff] %v11995_v9 }
 0x4d7   :  { %13520 = vst [vmem:[#allocation72_spill] sm:$0xff] %v11999_v39  ;;  %13521 = vst [vmem:[#allocation71_spill] sm:$0xff] %v12003_v0 }
 0x4d8   :  { %13522 = vst [vmem:[#allocation44_spill] sm:$0xff] %v12007_v22  ;;  %13523 = vst [vmem:[#allocation98_spill] sm:$0xff] %v12011_v7 }
 0x4d9   :  { %13524 = vst [vmem:[#allocation74_spill] sm:$0xff] %v12015_v4  ;;  %13525 = vst [vmem:[#allocation75_spill] sm:$0xff] %v12019_v13  ;;  %v13531_v4 = vld [vmem:[#allocation31_spill] sm:$0xff]  ;;  %v13533_v13 = vld [vmem:[#allocation92_spill] sm:$0xff] }
 0x4da   :  { %13526 = vst [vmem:[#allocation45_spill] sm:$0xff] %v12023_v37  ;;  %13527 = vst [vmem:[#allocation100_spill] sm:$0xff] %v12027_v10  ;;  %v12039_v58 = vadd.f32 %v13483_v42, %v13531_v4  ;;  %v12043_v31 = vadd.f32 %v13483_v42, %v13533_v13  ;;  %v13535_v37 = vld [vmem:[#allocation32_spill] sm:$0xff]  ;;  %v12059_v4 = vadd.f32 %v13483_v42, %v11807_v33 }
 0x4db   :  { %13528 = vst [vmem:[#allocation99_spill] sm:$0xff] %v12031_v54  ;;  %13530 = vst [vmem:[#allocation76_spill] sm:$0xff] %v12035_v20  ;;  %v12047_v16 = vadd.f32 %v13483_v42, %v13535_v37  ;;  %v13538_v54 = vld [vmem:[#allocation101_spill] sm:$0xff]  ;;  %v12063_v13 = vadd.f32 %v13483_v42, %v11811_v51  ;;  %v12067_v37 = vadd.f32 %v13483_v42, %v11815_v36 }
 0x4dc   :  { %13532 = vst [vmem:[#allocation80_spill] sm:$0xff] %v12039_v58  ;;  %13534 = vst [vmem:[#allocation79_spill] sm:$0xff] %v12043_v31  ;;  %v12055_v30 = vadd.f32 %v13483_v42, %v13538_v54  ;;  %v12075_v54 = vadd.f32 %v13483_v42, %v11823_v35  ;;  %v12079_v33 = vadd.f32 %v13483_v42, %v11827_v14 }
 0x4dd   :  { %13536 = vst [vmem:[#allocation46_spill] sm:$0xff] %v12047_v16  ;;  %13537 = vst [vmem:[#allocation48_spill] sm:$0xff] %v12051_v44  ;;  %v12087_v36 = vadd.f32 %v13483_v42, %v11835_v49  ;;  %v12095_v35 = vadd.f32 %v13483_v42, %v11843_v18  ;;  %v12099_v14 = vadd.f32 %v13483_v42, %v11847_v50  ;;  %v12109_v49 = vadd.f32 3.0, %v11859_v47 }
 0x4de   :  { %13539 = vst [vmem:[#allocation82_spill] sm:$0xff] %v12055_v30  ;;  %13540 = vst [vmem:[#allocation81_spill] sm:$0xff] %v12059_v4  ;;  %v13546_v4 = vld [vmem:[#allocation103_spill] sm:$0xff]  ;;  %v12115_v18 = vadd.f32 3.0, %v11867_v3  ;;  %v12121_v50 = vadd.f32 3.0, %v11875_v17  ;;  %v12130_v47 = vadd.f32 3.0, %v11887_v63 }
 0x4df   :  { %13541 = vst [vmem:[#allocation84_spill] sm:$0xff] %v12063_v13  ;;  %13542 = vst [vmem:[#allocation102_spill] sm:$0xff] %v12067_v37  ;;  %v12083_v51 = vadd.f32 %v13483_v42, %v13546_v4  ;;  %v12103_v4 = vadd.f32 %v13483_v42, %v11851_v40  ;;  %v12124_v42 = vadd.f32 3.0, %v11879_v1  ;;  %v12127_v40 = vadd.f32 3.0, %v11883_v56 }
 0x4e0   :  { %13543 = vst [vmem:[#allocation86_spill] sm:$0xff] %v12071_v38  ;;  %13544 = vst [vmem:[#allocation55_spill] sm:$0xff] %v12075_v54  ;;  %v12136_v3 = vadd.f32 3.0, %v11895_v27  ;;  %v12142_v17 = vadd.f32 3.0, %v11903_v32  ;;  %v12145_v1 = vadd.f32 3.0, %v11907_v48  ;;  %v12148_v56 = vadd.f32 3.0, %v11911_v5 }
 0x4e1   :  { %13545 = vst [vmem:[#allocation85_spill] sm:$0xff] %v12079_v33  ;;  %13547 = vst [vmem:[#allocation59_spill] sm:$0xff] %v12083_v51  ;;  %v12106_v51 = vadd.f32 3.0, %v11855_v11  ;;  %v12151_v63 = vadd.f32 3.0, %v11915_v25  ;;  %v12157_v27 = vadd.f32 3.0, %v11923_v26  ;;  %v12163_v32 = vadd.f32 3.0, %v11931_v46 }
 0x4e2   :  { %13548 = vst [vmem:[#allocation105_spill] sm:$0xff] %v12087_v36  ;;  %13549 = vst [vmem:[#allocation22_spill] sm:$0xff] %v12091_v23  ;;  %v12166_v48 = vadd.f32 3.0, %v11935_v41  ;;  %v12169_v5 = vadd.f32 3.0, %v11939_v59  ;;  %v12172_v25 = vadd.f32 3.0, %v11943_v61  ;;  %v12178_v26 = vadd.f32 3.0, %v11951_v24 }
 0x4e3   :  { %13550 = vst [vmem:[#allocation104_spill] sm:$0xff] %v12095_v35  ;;  %13551 = vst [vmem:[#allocation89_spill] sm:$0xff] %v12099_v14  ;;  %v12118_v35 = vadd.f32 3.0, %v11871_v53  ;;  %v12139_v53 = vadd.f32 3.0, %v11899_v2  ;;  %v12160_v2 = vadd.f32 3.0, %v11927_v62  ;;  %v12181_v62 = vadd.f32 3.0, %v11955_v52 }
 0x4e4   :  { %13552 = vst [vmem:[#allocation87_spill] sm:$0xff] %v12103_v4  ;;  %v12184_v46 = vadd.f32 3.0, %v11959_v34  ;;  %v12187_v41 = vadd.f32 3.0, %v11963_v21  ;;  %v12190_v59 = vadd.f32 3.0, %v11967_v19  ;;  %v12193_v61 = vadd.f32 3.0, %v11971_v29  ;;  %13555 = vst [vmem:[#allocation91_spill] sm:$0xff] %v12217_v28 }
 0x4e5   :  { %v12199_v24 = vadd.f32 3.0, %v11979_v45  ;;  %v12202_v52 = vadd.f32 3.0, %v11983_v8  ;;  %v12205_v34 = vadd.f32 3.0, %v11987_v43  ;;  %v12208_v21 = vadd.f32 3.0, %v11991_v6  ;;  %v13556_v43 = vld [vmem:[#allocation74_spill] sm:$0xff]  ;;  %v13557_v6 = vld [vmem:[#allocation75_spill] sm:$0xff] }
 0x4e6   :  { %v12211_v19 = vadd.f32 3.0, %v11995_v9  ;;  %v12214_v29 = vadd.f32 3.0, %v11999_v39  ;;  %v12220_v45 = vadd.f32 3.0, %v12007_v22  ;;  %v12223_v8 = vadd.f32 3.0, %v12011_v7  ;;  %v13558_v9 = vld [vmem:[#allocation45_spill] sm:$0xff]  ;;  %v13559_v0 = vld [vmem:[#allocation99_spill] sm:$0xff] }
 0x4e7   :  { %13553 = vst [vmem:[#allocation60_spill] sm:$0xff] %v12208_v21  ;;  %v12226_v11 = vadd.f32 3.0, %v13556_v43  ;;  %v12229_v21 = vadd.f32 3.0, %v13557_v6  ;;  %v12235_v39 = vadd.f32 3.0, %v12027_v10  ;;  %v12238_v28 = vadd.f32 3.0, %v13559_v0  ;;  %v13562_v0 = vld [vmem:[#allocation81_spill] sm:$0xff] }
 0x4e8   :  { %13554 = vst [vmem:[#allocation90_spill] sm:$0xff] %v12211_v19  ;;  %v12232_v19 = vadd.f32 3.0, %v13558_v9  ;;  %v12241_v22 = vadd.f32 3.0, %v12035_v20  ;;  %v12244_v7 = vadd.f32 3.0, %v12039_v58  ;;  %v12247_v43 = vadd.f32 3.0, %v12043_v31 }
 0x4e9   :  { %13560 = vst [vmem:[#allocation65_spill] sm:$0xff] %v12238_v28  ;;  %v12250_v6 = vadd.f32 3.0, %v12047_v16  ;;  %v12253_v9 = vadd.f32 3.0, %v12051_v44  ;;  %v12256_v10 = vadd.f32 3.0, %v12055_v30  ;;  %v12259_v28 = vadd.f32 3.0, %v13562_v0  ;;  %v13567_v30 = vld [vmem:[#allocation59_spill] sm:$0xff] }
 0x4ea   :  { %v12262_v20 = vadd.f32 3.0, %v12063_v13  ;;  %v12265_v58 = vadd.f32 3.0, %v12067_v37  ;;  %v12268_v31 = vadd.f32 3.0, %v12071_v38  ;;  %v12271_v16 = vadd.f32 3.0, %v12075_v54  ;;  %v13571_v37 = vld [vmem:[#allocation104_spill] sm:$0xff] }
 0x4eb   :  { %13561 = vst [vmem:[#allocation24_spill] sm:$0xff] %v12256_v10  ;;  %v12274_v44 = vadd.f32 3.0, %v12079_v33  ;;  %v12277_v10 = vadd.f32 3.0, %v13567_v30  ;;  %v12280_v0 = vadd.f32 3.0, %v12087_v36  ;;  %v12283_v13 = vadd.f32 3.0, %v12091_v23 }
 0x4ec   :  { %13563 = vst [vmem:[#allocation96_spill] sm:$0xff] %v12265_v58  ;;  %13564 = vst [vmem:[#allocation95_spill] sm:$0xff] %v12268_v31  ;;  %v12286_v58 = vadd.f32 3.0, %v13571_v37  ;;  %v12289_v38 = vadd.f32 3.0, %v12099_v14  ;;  %v12292_v54 = vadd.f32 3.0, %v12103_v4  ;;  %v5562_v33 = vmax.f32 %v12106_v51, 0.0 }
 0x4ed   :  { %13565 = vst [vmem:[#allocation107_spill] sm:$0xff] %v12271_v16  ;;  %13566 = vst [vmem:[#allocation97_spill] sm:$0xff] %v12274_v44  ;;  %v5563_v30 = vmax.f32 %v12109_v49, 0.0  ;;  %v5565_v36 = vmax.f32 %v12115_v18, 0.0  ;;  %v5566_v23 = vmax.f32 %v12118_v35, 0.0  ;;  %v5568_v37 = vmax.f32 %v12124_v42, 0.0 }
 0x4ee   :  { %13568 = vst [vmem:[#allocation16_spill] sm:$0xff] %v12277_v10  ;;  %13569 = vst [vmem:[#allocation17_spill] sm:$0xff] %v12280_v0  ;;  %v5564_v10 = vmax.f32 %v12112_v55, 0.0  ;;  %v5569_v14 = vmax.f32 %v12127_v40, 0.0  ;;  %v5571_v4 = vmax.f32 %v12133_v60, 0.0  ;;  %v5572_v51 = vmax.f32 %v12136_v3, 0.0 }
 0x4ef   :  { %13570 = vst [vmem:[#allocation18_spill] sm:$0xff] %v12283_v13  ;;  %13572 = vst [vmem:[#allocation19_spill] sm:$0xff] %v12286_v58  ;;  %v5567_v13 = vmax.f32 %v12121_v50, 0.0  ;;  %v5573_v49 = vmax.f32 %v12139_v53, 0.0  ;;  %v5574_v55 = vmax.f32 %v12142_v17, 0.0  ;;  %v5575_v18 = vmax.f32 %v12145_v1, 0.0 }
 0x4f0   :  { %13573 = vst [vmem:[#allocation20_spill] sm:$0xff] %v12289_v38  ;;  %13574 = vst [vmem:[#allocation21_spill] sm:$0xff] %v12292_v54  ;;  %v5570_v38 = vmax.f32 %v12130_v47, 0.0  ;;  %v5576_v35 = vmax.f32 %v12148_v56, 0.0  ;;  %v5577_v50 = vmax.f32 %v12151_v63, 0.0  ;;  %v5578_v42 = vmax.f32 %v12154_v12, 0.0 }
 0x4f1   :  { %v5579_v40 = vmax.f32 %v12157_v27, 0.0  ;;  %v5580_v47 = vmax.f32 %v12160_v2, 0.0  ;;  %v5581_v60 = vmax.f32 %v12163_v32, 0.0  ;;  %v5582_v3 = vmax.f32 %v12166_v48, 0.0  ;;  %v13575_v54 = vld [vmem:[#allocation60_spill] sm:$0xff]  ;;  %v13576_v58 = vld [vmem:[#allocation90_spill] sm:$0xff] }
 0x4f2   :  { %v5583_v53 = vmax.f32 %v12169_v5, 0.0  ;;  %v5584_v17 = vmax.f32 %v12172_v25, 0.0  ;;  %v5585_v1 = vmax.f32 %v12175_v15, 0.0  ;;  %v5586_v56 = vmax.f32 %v12178_v26, 0.0  ;;  %v13577_v0 = vld [vmem:[#allocation91_spill] sm:$0xff]  ;;  %v13578_v44 = vld [vmem:[#allocation65_spill] sm:$0xff] }
 0x4f3   :  { %v5587_v63 = vmax.f32 %v12181_v62, 0.0  ;;  %v5588_v12 = vmax.f32 %v12184_v46, 0.0  ;;  %v5589_v27 = vmax.f32 %v12187_v41, 0.0  ;;  %v5590_v2 = vmax.f32 %v12190_v59, 0.0  ;;  %v13579_v16 = vld [vmem:[#allocation24_spill] sm:$0xff] }
 0x4f4   :  { %v5591_v32 = vmax.f32 %v12193_v61, 0.0  ;;  %v5592_v48 = vmax.f32 %v12196_v57, 0.0  ;;  %v5593_v5 = vmax.f32 %v12199_v24, 0.0  ;;  %v5594_v25 = vmax.f32 %v12202_v52, 0.0  ;;  %v13580_v31 = vld [vmem:[#allocation96_spill] sm:$0xff] }
 0x4f5   :  { %v5595_v15 = vmax.f32 %v12205_v34, 0.0  ;;  %v5596_v26 = vmax.f32 %v13575_v54, 0.0  ;;  %v5597_v62 = vmax.f32 %v13576_v58, 0.0  ;;  %v5598_v46 = vmax.f32 %v12214_v29, 0.0 }
 0x4f6   :  { %v5599_v41 = vmax.f32 %v13577_v0, 0.0  ;;  %v5600_v59 = vmax.f32 %v12220_v45, 0.0  ;;  %v5601_v61 = vmax.f32 %v12223_v8, 0.0  ;;  %v5602_v57 = vmax.f32 %v12226_v11, 0.0 }
 0x4f7   :  { %v5603_v24 = vmax.f32 %v12229_v21, 0.0  ;;  %v5604_v52 = vmax.f32 %v12232_v19, 0.0  ;;  %v5605_v34 = vmax.f32 %v12235_v39, 0.0  ;;  %v5606_v54 = vmax.f32 %v13578_v44, 0.0  ;;  %v13581_v44 = vld [vmem:[#allocation95_spill] sm:$0xff] }
 0x4f8   :  { %v5607_v58 = vmax.f32 %v12241_v22, 0.0  ;;  %v5608_v29 = vmax.f32 %v12244_v7, 0.0  ;;  %v5609_v0 = vmax.f32 %v12247_v43, 0.0  ;;  %v5610_v45 = vmax.f32 %v12250_v6, 0.0  ;;  %v13582_v7 = vld [vmem:[#allocation107_spill] sm:$0xff]  ;;  %v13583_v6 = vld [vmem:[#allocation97_spill] sm:$0xff] }
 0x4f9   :  { %v5611_v8 = vmax.f32 %v12253_v9, 0.0  ;;  %v5612_v11 = vmax.f32 %v13579_v16, 0.0  ;;  %v5613_v21 = vmax.f32 %v12259_v28, 0.0  ;;  %v5614_v19 = vmax.f32 %v12262_v20, 0.0  ;;  %v13584_v16 = vld [vmem:[#allocation16_spill] sm:$0xff]  ;;  %v13585_v20 = vld [vmem:[#allocation17_spill] sm:$0xff] }
 0x4fa   :  { %v5615_v39 = vmax.f32 %v13580_v31, 0.0  ;;  %v5616_v22 = vmax.f32 %v13581_v44, 0.0  ;;  %v5617_v43 = vmax.f32 %v13582_v7, 0.0  ;;  %v5618_v9 = vmax.f32 %v13583_v6, 0.0  ;;  %v13586_v44 = vld [vmem:[#allocation18_spill] sm:$0xff]  ;;  %v13587_v6 = vld [vmem:[#allocation19_spill] sm:$0xff] }
 0x4fb   :  { %v5619_v28 = vmax.f32 %v13584_v16, 0.0  ;;  %v5620_v31 = vmax.f32 %v13585_v20, 0.0  ;;  %v5621_v7 = vmax.f32 %v13586_v44, 0.0  ;;  %v5622_v16 = vmax.f32 %v13587_v6, 0.0  ;;  %v13588_v20 = vld [vmem:[#allocation20_spill] sm:$0xff]  ;;  %v13589_v6 = vld [vmem:[#allocation21_spill] sm:$0xff] }
 0x4fc   :  { %v5624_v44 = vmax.f32 %v13588_v20, 0.0  ;;  %v5625_v20 = vmax.f32 %v13589_v6, 0.0  ;;  %v5626_v6 = vmin.f32 %v5562_v33, 6.0  ;;  %v5627_v33 = vmin.f32 %v5563_v30, 6.0 }
 0x4fd   :  { %v5628_v30 = vmin.f32 %v5564_v10, 6.0  ;;  %v5629_v10 = vmin.f32 %v5565_v36, 6.0  ;;  %v5630_v36 = vmin.f32 %v5566_v23, 6.0  ;;  %v5631_v23 = vmin.f32 %v5567_v13, 6.0 }
 0x4fe   :  { %v5632_v13 = vmin.f32 %v5568_v37, 6.0  ;;  %v12357_v37 = vmin.f32 %v5569_v14, 6.0  ;;  %v12359_v14 = vmin.f32 %v5570_v38, 6.0  ;;  %v12363_v38 = vmin.f32 %v5572_v51, 6.0 }
 0x4ff   :  { %v12371_v51 = vmin.f32 %v5576_v35, 6.0  ;;  %v12387_v35 = vmin.f32 %v5584_v17, 6.0  ;;  %v12407_v17 = vmin.f32 %v5594_v25, 6.0  ;;  %v12427_v25 = vmin.f32 %v5604_v52, 6.0 }
 0x500   :  { %13590 = vst [vmem:[#allocation25_spill] sm:$0xff] %v12357_v37  ;;  %13591 = vst [vmem:[#allocation26_spill] sm:$0xff] %v12359_v14  ;;  %v12361_v37 = vmin.f32 %v5571_v4, 6.0  ;;  %v12365_v14 = vmin.f32 %v5573_v49, 6.0  ;;  %v12367_v4 = vmin.f32 %v5574_v55, 6.0  ;;  %v12375_v49 = vmin.f32 %v5578_v42, 6.0 }
 0x501   :  { %13593 = vst [vmem:[#allocation28_spill] sm:$0xff] %v12363_v38  ;;  %13597 = vst [vmem:[#allocation77_spill] sm:$0xff] %v12371_v51  ;;  %v12373_v38 = vmin.f32 %v5577_v50, 6.0  ;;  %v12379_v55 = vmin.f32 %v5580_v47, 6.0  ;;  %v12389_v51 = vmin.f32 %v5585_v1, 6.0  ;;  %v12391_v50 = vmin.f32 %v5586_v56, 6.0 }
 0x502   :  { %13592 = vst [vmem:[#allocation23_spill] sm:$0xff] %v12361_v37  ;;  %13594 = vst [vmem:[#allocation73_spill] sm:$0xff] %v12365_v14  ;;  %v12369_v37 = vmin.f32 %v5575_v18, 6.0  ;;  %v12377_v14 = vmin.f32 %v5579_v40, 6.0  ;;  %v12383_v18 = vmin.f32 %v5582_v3, 6.0  ;;  %v12395_v42 = vmin.f32 %v5588_v12, 6.0 }
 0x503   :  { %13595 = vst [vmem:[#allocation29_spill] sm:$0xff] %v12367_v4  ;;  %13598 = vst [vmem:[#allocation78_spill] sm:$0xff] %v12373_v38  ;;  %v12381_v4 = vmin.f32 %v5581_v60, 6.0  ;;  %v12393_v38 = vmin.f32 %v5587_v63, 6.0  ;;  %v12397_v40 = vmin.f32 %v5589_v27, 6.0  ;;  %v12399_v47 = vmin.f32 %v5590_v2, 6.0 }
 0x504   :  { %13596 = vst [vmem:[#allocation30_spill] sm:$0xff] %v12369_v37  ;;  %v12385_v37 = vmin.f32 %v5583_v53, 6.0  ;;  %v12401_v60 = vmin.f32 %v5591_v32, 6.0  ;;  %v12403_v3 = vmin.f32 %v5592_v48, 6.0  ;;  %v12405_v53 = vmin.f32 %v5593_v5, 6.0 }
 0x505   :  { %v12409_v1 = vmin.f32 %v5595_v15, 6.0  ;;  %v12411_v56 = vmin.f32 %v5596_v26, 6.0  ;;  %v12413_v63 = vmin.f32 %v5597_v62, 6.0  ;;  %v12415_v12 = vmin.f32 %v5598_v46, 6.0 }
 0x506   :  { %v12417_v27 = vmin.f32 %v5599_v41, 6.0  ;;  %v12419_v2 = vmin.f32 %v5600_v59, 6.0  ;;  %v12421_v32 = vmin.f32 %v5601_v61, 6.0  ;;  %v12423_v48 = vmin.f32 %v5602_v57, 6.0 }
 0x507   :  { %v12425_v5 = vmin.f32 %v5603_v24, 6.0  ;;  %v12429_v15 = vmin.f32 %v5605_v34, 6.0  ;;  %v12431_v26 = vmin.f32 %v5606_v54, 6.0  ;;  %v12433_v62 = vmin.f32 %v5607_v58, 6.0 }
 0x508   :  { %v12435_v46 = vmin.f32 %v5608_v29, 6.0  ;;  %v12437_v41 = vmin.f32 %v5609_v0, 6.0  ;;  %v12439_v59 = vmin.f32 %v5610_v45, 6.0  ;;  %v12441_v61 = vmin.f32 %v5611_v8, 6.0 }
 0x509   :  { %v12443_v57 = vmin.f32 %v5612_v11, 6.0  ;;  %v12445_v24 = vmin.f32 %v5613_v21, 6.0  ;;  %v12447_v52 = vmin.f32 %v5614_v19, 6.0  ;;  %v12449_v34 = vmin.f32 %v5615_v39, 6.0 }
 0x50a   :  { %v12451_v54 = vmin.f32 %v5616_v22, 6.0  ;;  %v12453_v58 = vmin.f32 %v5617_v43, 6.0  ;;  %v12455_v29 = vmin.f32 %v5618_v9, 6.0  ;;  %v12457_v0 = vmin.f32 %v5619_v28, 6.0 }
 0x50b   :  { %13599 = vst [vmem:[#allocation27_spill] sm:$0xff] %v12449_v34  ;;  %v12459_v45 = vmin.f32 %v5620_v31, 6.0  ;;  %v12461_v8 = vmin.f32 %v5621_v7, 6.0  ;;  %v12463_v11 = vmin.f32 %v5622_v16, 6.0  ;;  %v12465_v21 = vmin.f32 %v5624_v44, 6.0  ;;  %v13611_v31 = vld [vmem:[#allocation25_spill] sm:$0xff] }
 0x50c   :  { %13600 = vst [vmem:[#allocation83_spill] sm:$0xff] %v12451_v54  ;;  %13601 = vst [vmem:[#allocation31_spill] sm:$0xff] %v12453_v58  ;;  %v12467_v19 = vmin.f32 %v5625_v20, 6.0  ;;  %v5690_v39 = vmul.f32 0.16666667, %v5626_v6  ;;  %v13612_v7 = vld [vmem:[#allocation26_spill] sm:$0xff] }
 0x50d   :  { %13602 = vst [vmem:[#allocation92_spill] sm:$0xff] %v12455_v29  ;;  %13603 = vst [vmem:[#allocation32_spill] sm:$0xff] %v12457_v0  ;;  %v5691_v34 = vmul.f32 0.16666667, %v5627_v33  ;;  %v5692_v22 = vmul.f32 0.16666667, %v5628_v30 }
 0x50e   :  { %13604 = vst [vmem:[#allocation101_spill] sm:$0xff] %v12459_v45  ;;  %13605 = vst [vmem:[#allocation103_spill] sm:$0xff] %v12461_v8  ;;  %v5693_v54 = vmul.f32 0.16666667, %v5629_v10  ;;  %v5694_v43 = vmul.f32 0.16666667, %v5630_v36 }
 0x50f   :  { %13606 = vst [vmem:[#allocation60_spill] sm:$0xff] %v12463_v11  ;;  %13607 = vst [vmem:[#allocation90_spill] sm:$0xff] %v12465_v21  ;;  %v5695_v58 = vmul.f32 0.16666667, %v5631_v23  ;;  %v5696_v9 = vmul.f32 0.16666667, %v5632_v13 }
 0x510   :  { %13608 = vst [vmem:[#allocation91_spill] sm:$0xff] %v12467_v19  ;;  %v13609_v29 = vld [vmem:[#allocation106_spill] sm:$0xff]  ;;  %v5697_v45 = vmul.f32 0.16666667, %v13611_v31  ;;  %v5698_v8 = vmul.f32 0.16666667, %v13612_v7 }
 0x511   :  { %v12470_v28 = vmul.f32 %v5690_v39, %v13609_v29  ;;  %v13613_v16 = vld [vmem:[#allocation23_spill] sm:$0xff]  ;;  %v13614_v44 = vld [vmem:[#allocation108_spill] sm:$0xff]  ;;  %v13616_v33 = vld [vmem:[#allocation73_spill] sm:$0xff] }
 0x512   :  { %v5699_v11 = vmul.f32 0.16666667, %v13613_v16  ;;  %v12476_v21 = vmul.f32 %v5691_v34, %v13614_v44  ;;  %v13615_v20 = vld [vmem:[#allocation28_spill] sm:$0xff]  ;;  %v5701_v30 = vmul.f32 0.16666667, %v13616_v33  ;;  %v13617_v10 = vld [vmem:[#allocation29_spill] sm:$0xff] }
 0x513   :  { %13610 = vst [vmem:[#allocation65_spill] sm:$0xff] %v12470_v28  ;;  %v5700_v6 = vmul.f32 0.16666667, %v13615_v20  ;;  %v5702_v36 = vmul.f32 0.16666667, %v13617_v10  ;;  %v13618_v23 = vld [vmem:[#allocation33_spill] sm:$0xff] }
 0x514   :  { %v12482_v13 = vmul.f32 %v5692_v22, %v13618_v23  ;;  %v13619_v29 = vld [vmem:[#allocation30_spill] sm:$0xff]  ;;  %v13620_v28 = vld [vmem:[#allocation77_spill] sm:$0xff]  ;;  %v5706_v34 = vmul.f32 0.16666667, %v12375_v49  ;;  %v5707_v44 = vmul.f32 0.16666667, %v12377_v14 }
 0x515   :  { %v5703_v39 = vmul.f32 0.16666667, %v13619_v29  ;;  %v5704_v31 = vmul.f32 0.16666667, %v13620_v28  ;;  %v13621_v19 = vld [vmem:[#allocation78_spill] sm:$0xff]  ;;  %v13622_v0 = vld [vmem:[#allocation109_spill] sm:$0xff] }
 0x516   :  { %v5705_v7 = vmul.f32 0.16666667, %v13621_v19  ;;  %v12488_v16 = vmul.f32 %v5693_v54, %v13622_v0  ;;  %v5708_v20 = vmul.f32 0.16666667, %v12379_v55  ;;  %v13623_v33 = vld [vmem:[#allocation47_spill] sm:$0xff]  ;;  %v13624_v29 = vld [vmem:[#allocation34_spill] sm:$0xff] }
 0x517   :  { %v12494_v10 = vmul.f32 %v5694_v43, %v13623_v33  ;;  %v5709_v22 = vmul.f32 0.16666667, %v12381_v4  ;;  %v5710_v23 = vmul.f32 0.16666667, %v12383_v18  ;;  %v5711_v28 = vmul.f32 0.16666667, %v12385_v37 }
 0x518   :  { %v12500_v19 = vmul.f32 %v5695_v58, %v13624_v29  ;;  %v5712_v54 = vmul.f32 0.16666667, %v12387_v35  ;;  %v5713_v49 = vmul.f32 0.16666667, %v12389_v51  ;;  %v5714_v14 = vmul.f32 0.16666667, %v12391_v50 }
 0x519   :  { %v13625_v0 = vld [vmem:[#allocation49_spill] sm:$0xff]  ;;  %v5715_v43 = vmul.f32 0.16666667, %v12393_v38  ;;  %v5716_v4 = vmul.f32 0.16666667, %v12395_v42  ;;  %v13627_v33 = vld [vmem:[#allocation50_spill] sm:$0xff] }
 0x51a   :  { %v12506_v55 = vmul.f32 %v5696_v9, %v13625_v0  ;;  %v5717_v18 = vmul.f32 0.16666667, %v12397_v40  ;;  %v12512_v37 = vmul.f32 %v5697_v45, %v13627_v33  ;;  %v5718_v58 = vmul.f32 0.16666667, %v12399_v47  ;;  %v13629_v29 = vld [vmem:[#allocation35_spill] sm:$0xff]  ;;  %v13631_v0 = vld [vmem:[#allocation52_spill] sm:$0xff] }
 0x51b   :  { %v5719_v35 = vmul.f32 0.16666667, %v12401_v60  ;;  %v5720_v51 = vmul.f32 0.16666667, %v12403_v3  ;;  %v12518_v50 = vmul.f32 %v5698_v8, %v13629_v29  ;;  %v5721_v9 = vmul.f32 0.16666667, %v12405_v53 }
 0x51c   :  { %13626 = vst [vmem:[#allocation24_spill] sm:$0xff] %v12506_v55  ;;  %13628 = vst [vmem:[#allocation96_spill] sm:$0xff] %v12512_v37  ;;  %v5722_v38 = vmul.f32 0.16666667, %v12407_v17  ;;  %v5723_v42 = vmul.f32 0.16666667, %v12409_v1  ;;  %v12524_v40 = vmul.f32 %v5699_v11, %v13631_v0 }
 0x51d   :  { %13630 = vst [vmem:[#allocation95_spill] sm:$0xff] %v12518_v50  ;;  %v5724_v45 = vmul.f32 0.16666667, %v12411_v56  ;;  %v5725_v47 = vmul.f32 0.16666667, %v12413_v63  ;;  %v13633_v33 = vld [vmem:[#allocation51_spill] sm:$0xff] }
 0x51e   :  { %13632 = vst [vmem:[#allocation107_spill] sm:$0xff] %v12524_v40  ;;  %v5726_v60 = vmul.f32 0.16666667, %v12415_v12  ;;  %v12530_v3 = vmul.f32 %v5700_v6, %v13633_v33  ;;  %v5727_v8 = vmul.f32 0.16666667, %v12417_v27  ;;  %v13635_v29 = vld [vmem:[#allocation36_spill] sm:$0xff] }
 0x51f   :  { %v5728_v53 = vmul.f32 0.16666667, %v12419_v2  ;;  %v5729_v17 = vmul.f32 0.16666667, %v12421_v32  ;;  %v12536_v1 = vmul.f32 %v5701_v30, %v13635_v29  ;;  %v5730_v11 = vmul.f32 0.16666667, %v12423_v48 }
 0x520   :  { %13634 = vst [vmem:[#allocation97_spill] sm:$0xff] %v12530_v3  ;;  %v5731_v56 = vmul.f32 0.16666667, %v12425_v5  ;;  %v5732_v63 = vmul.f32 0.16666667, %v12427_v25  ;;  %v13637_v0 = vld [vmem:[#allocation53_spill] sm:$0xff] }
 0x521   :  { %13636 = vst [vmem:[#allocation16_spill] sm:$0xff] %v12536_v1  ;;  %v12542_v12 = vmul.f32 %v5702_v36, %v13637_v0  ;;  %v5733_v6 = vmul.f32 0.16666667, %v12429_v15  ;;  %v5734_v27 = vmul.f32 0.16666667, %v12431_v26  ;;  %v13639_v33 = vld [vmem:[#allocation54_spill] sm:$0xff] }
 0x522   :  { %v5735_v2 = vmul.f32 0.16666667, %v12433_v62  ;;  %v12548_v32 = vmul.f32 %v5703_v39, %v13639_v33  ;;  %v5736_v30 = vmul.f32 0.16666667, %v12435_v46  ;;  %v5737_v48 = vmul.f32 0.16666667, %v12437_v41 }
 0x523   :  { %13638 = vst [vmem:[#allocation17_spill] sm:$0xff] %v12542_v12  ;;  %v5738_v5 = vmul.f32 0.16666667, %v12439_v59  ;;  %v13641_v29 = vld [vmem:[#allocation37_spill] sm:$0xff]  ;;  %v5739_v36 = vmul.f32 0.16666667, %v12441_v61 }
 0x524   :  { %13640 = vst [vmem:[#allocation18_spill] sm:$0xff] %v12548_v32  ;;  %v12554_v25 = vmul.f32 %v5704_v31, %v13641_v29  ;;  %v5740_v15 = vmul.f32 0.16666667, %v12443_v57  ;;  %v5741_v26 = vmul.f32 0.16666667, %v12445_v24  ;;  %v13643_v0 = vld [vmem:[#allocation57_spill] sm:$0xff] }
 0x525   :  { %v12560_v62 = vmul.f32 %v5705_v7, %v13643_v0  ;;  %v5742_v39 = vmul.f32 0.16666667, %v12447_v52  ;;  %v13645_v33 = vld [vmem:[#allocation27_spill] sm:$0xff]  ;;  %v13647_v12 = vld [vmem:[#allocation56_spill] sm:$0xff]  ;;  %v13652_v3 = vld [vmem:[#allocation38_spill] sm:$0xff] }
 0x526   :  { %13642 = vst [vmem:[#allocation19_spill] sm:$0xff] %v12554_v25  ;;  %v5743_v46 = vmul.f32 0.16666667, %v13645_v33  ;;  %v13646_v32 = vld [vmem:[#allocation83_spill] sm:$0xff]  ;;  %v12566_v59 = vmul.f32 %v5706_v34, %v13647_v12  ;;  %v13650_v25 = vld [vmem:[#allocation92_spill] sm:$0xff]  ;;  %v12572_v24 = vmul.f32 %v5707_v44, %v13652_v3  ;;  %v13654_v7 = vld [vmem:[#allocation101_spill] sm:$0xff] }
 0x527   :  { %13644 = vst [vmem:[#allocation20_spill] sm:$0xff] %v12560_v62  ;;  %v5744_v41 = vmul.f32 0.16666667, %v13646_v32  ;;  %v13649_v31 = vld [vmem:[#allocation31_spill] sm:$0xff]  ;;  %v5746_v61 = vmul.f32 0.16666667, %v13650_v25 }
 0x528   :  { %13648 = vst [vmem:[#allocation21_spill] sm:$0xff] %v12566_v59  ;;  %v5745_v29 = vmul.f32 0.16666667, %v13649_v31  ;;  %v13651_v1 = vld [vmem:[#allocation32_spill] sm:$0xff]  ;;  %13653 = vst [vmem:[#allocation106_spill] sm:$0xff] %v12572_v24  ;;  %v13655_v62 = vld [vmem:[#allocation103_spill] sm:$0xff] }
 0x529   :  { %v5747_v57 = vmul.f32 0.16666667, %v13651_v1  ;;  %v5748_v0 = vmul.f32 0.16666667, %v13654_v7  ;;  %v5749_v52 = vmul.f32 0.16666667, %v13655_v62 }
 0x52a   :  { %v13656_v40 = vld [vmem:[#allocation60_spill] sm:$0xff]  ;;  %v13657_v50 = vld [vmem:[#allocation58_spill] sm:$0xff]  ;;  %v13659_v59 = vld [vmem:[#allocation91_spill] sm:$0xff] }
 0x52b   :  { %v5750_v33 = vmul.f32 0.16666667, %v13656_v40  ;;  %v12578_v32 = vmul.f32 %v5708_v20, %v13657_v50  ;;  %v13658_v34 = vld [vmem:[#allocation90_spill] sm:$0xff]  ;;  %v5753_v31 = vmul.f32 0.16666667, %v13659_v59  ;;  %v13660_v37 = vld [vmem:[#allocation61_spill] sm:$0xff] }
 0x52c   :  { %v5752_v12 = vmul.f32 0.16666667, %v13658_v34  ;;  %v12583_v25 = vmul.f32 %v5709_v22, %v13660_v37  ;;  %v13661_v1 = vld [vmem:[#allocation39_spill] sm:$0xff]  ;;  %v13662_v44 = vld [vmem:[#allocation88_spill] sm:$0xff]  ;;  %v13664_v40 = vld [vmem:[#allocation62_spill] sm:$0xff] }
 0x52d   :  { %v12586_v55 = vmul.f32 %v5710_v23, %v13661_v1  ;;  %v12589_v3 = vmul.f32 %v5711_v28, %v13662_v44  ;;  %v13663_v7 = vld [vmem:[#allocation63_spill] sm:$0xff]  ;;  %v12595_v24 = vmul.f32 %v5713_v49, %v13664_v40  ;;  %v13665_v20 = vld [vmem:[#allocation40_spill] sm:$0xff]  ;;  %v13667_v22 = vld [vmem:[#allocation66_spill] sm:$0xff] }
 0x52e   :  { %v12592_v62 = vmul.f32 %v5712_v54, %v13663_v7  ;;  %v12598_v50 = vmul.f32 %v5714_v14, %v13665_v20  ;;  %v13666_v34 = vld [vmem:[#allocation64_spill] sm:$0xff]  ;;  %v12604_v37 = vmul.f32 %v5716_v4, %v13667_v22  ;;  %v13668_v23 = vld [vmem:[#allocation41_spill] sm:$0xff]  ;;  %v13670_v54 = vld [vmem:[#allocation67_spill] sm:$0xff] }
 0x52f   :  { %v12601_v59 = vmul.f32 %v5715_v43, %v13666_v34  ;;  %v12607_v1 = vmul.f32 %v5717_v18, %v13668_v23  ;;  %v13669_v28 = vld [vmem:[#allocation68_spill] sm:$0xff]  ;;  %v12613_v7 = vmul.f32 %v5719_v35, %v13670_v54  ;;  %v13671_v49 = vld [vmem:[#allocation42_spill] sm:$0xff]  ;;  %v13673_v43 = vld [vmem:[#allocation93_spill] sm:$0xff] }
 0x530   :  { %v12610_v44 = vmul.f32 %v5718_v58, %v13669_v28  ;;  %v12616_v40 = vmul.f32 %v5720_v51, %v13671_v49  ;;  %v13672_v14 = vld [vmem:[#allocation94_spill] sm:$0xff]  ;;  %v12622_v34 = vmul.f32 %v5722_v38, %v13673_v43  ;;  %v13674_v4 = vld [vmem:[#allocation69_spill] sm:$0xff]  ;;  %v13676_v58 = vld [vmem:[#allocation43_spill] sm:$0xff] }
 0x531   :  { %v12619_v20 = vmul.f32 %v5721_v9, %v13672_v14  ;;  %v12625_v22 = vmul.f32 %v5723_v42, %v13674_v4  ;;  %v13675_v18 = vld [vmem:[#allocation70_spill] sm:$0xff]  ;;  %v12631_v28 = vmul.f32 %v5725_v47, %v13676_v58  ;;  %v13677_v35 = vld [vmem:[#allocation72_spill] sm:$0xff]  ;;  %v13678_v51 = vld [vmem:[#allocation71_spill] sm:$0xff] }
 0x532   :  { %v12628_v23 = vmul.f32 %v5724_v45, %v13675_v18  ;;  %v12634_v54 = vmul.f32 %v5726_v60, %v13677_v35  ;;  %v12637_v49 = vmul.f32 %v5727_v8, %v13678_v51  ;;  %v13679_v9 = vld [vmem:[#allocation44_spill] sm:$0xff]  ;;  %v13680_v38 = vld [vmem:[#allocation98_spill] sm:$0xff]  ;;  %v13682_v45 = vld [vmem:[#allocation75_spill] sm:$0xff] }
 0x533   :  { %v12640_v14 = vmul.f32 %v5728_v53, %v13679_v9  ;;  %v12643_v43 = vmul.f32 %v5729_v17, %v13680_v38  ;;  %v13681_v42 = vld [vmem:[#allocation74_spill] sm:$0xff]  ;;  %v12649_v18 = vmul.f32 %v5731_v56, %v13682_v45  ;;  %v13683_v47 = vld [vmem:[#allocation45_spill] sm:$0xff]  ;;  %v13684_v60 = vld [vmem:[#allocation100_spill] sm:$0xff] }
 0x534   :  { %v12646_v4 = vmul.f32 %v5730_v11, %v13681_v42  ;;  %v12652_v58 = vmul.f32 %v5732_v63, %v13683_v47  ;;  %v12655_v35 = vmul.f32 %v5733_v6, %v13684_v60  ;;  %v13685_v8 = vld [vmem:[#allocation99_spill] sm:$0xff]  ;;  %v13686_v53 = vld [vmem:[#allocation76_spill] sm:$0xff]  ;;  %v13689_v56 = vld [vmem:[#allocation46_spill] sm:$0xff] }
 0x535   :  { %v12658_v51 = vmul.f32 %v5734_v27, %v13685_v8  ;;  %v12661_v9 = vmul.f32 %v5735_v2, %v13686_v53  ;;  %v13687_v17 = vld [vmem:[#allocation80_spill] sm:$0xff]  ;;  %v13688_v11 = vld [vmem:[#allocation79_spill] sm:$0xff]  ;;  %v12670_v45 = vmul.f32 %v5738_v5, %v13689_v56  ;;  %v13691_v6 = vld [vmem:[#allocation82_spill] sm:$0xff] }
 0x536   :  { %v12664_v38 = vmul.f32 %v5736_v30, %v13687_v17  ;;  %v12667_v42 = vmul.f32 %v5737_v48, %v13688_v11  ;;  %v13690_v63 = vld [vmem:[#allocation48_spill] sm:$0xff]  ;;  %v12676_v60 = vmul.f32 %v5740_v15, %v13691_v6  ;;  %v13692_v27 = vld [vmem:[#allocation81_spill] sm:$0xff]  ;;  %v13694_v30 = vld [vmem:[#allocation102_spill] sm:$0xff] }
 0x537   :  { %v12673_v47 = vmul.f32 %v5739_v36, %v13690_v63  ;;  %v12679_v8 = vmul.f32 %v5741_v26, %v13692_v27  ;;  %v13693_v2 = vld [vmem:[#allocation84_spill] sm:$0xff]  ;;  %v12685_v17 = vmul.f32 %v5743_v46, %v13694_v30  ;;  %v13695_v48 = vld [vmem:[#allocation86_spill] sm:$0xff]  ;;  %v13696_v5 = vld [vmem:[#allocation55_spill] sm:$0xff] }
 0x538   :  { %v12682_v53 = vmul.f32 %v5742_v39, %v13693_v2  ;;  %v12688_v11 = vmul.f32 %v5744_v41, %v13695_v48  ;;  %v12691_v56 = vmul.f32 %v5745_v29, %v13696_v5  ;;  %v13697_v36 = vld [vmem:[#allocation85_spill] sm:$0xff]  ;;  %v13698_v15 = vld [vmem:[#allocation59_spill] sm:$0xff]  ;;  %v13700_v39 = vld [vmem:[#allocation22_spill] sm:$0xff] }
 0x539   :  { %v12694_v63 = vmul.f32 %v5746_v61, %v13697_v36  ;;  %v12697_v6 = vmul.f32 %v5747_v57, %v13698_v15  ;;  %v13699_v26 = vld [vmem:[#allocation105_spill] sm:$0xff]  ;;  %v12703_v2 = vmul.f32 %v5749_v52, %v13700_v39  ;;  %v13701_v46 = vld [vmem:[#allocation104_spill] sm:$0xff]  ;;  %v13703_v29 = vld [vmem:[#allocation87_spill] sm:$0xff]  ;;  %v6641_v57 = vpack.c.bf16 %v12476_v21, %v12476_v21 }
 0x53a   :  { %v12700_v27 = vmul.f32 %v5748_v0, %v13699_v26  ;;  %v12706_v30 = vmul.f32 %v5750_v33, %v13701_v46  ;;  %v13702_v41 = vld [vmem:[#allocation89_spill] sm:$0xff]  ;;  %v12712_v5 = vmul.f32 %v5753_v31, %v13703_v29  ;;  %v6642_v0 = vpack.c.bf16 %v12482_v13, %v12482_v13  ;;  %v13706_v31 = vld [vmem:[#allocation24_spill] sm:$0xff]  ;;  %v13708_v46 = vld [vmem:[#allocation95_spill] sm:$0xff] }
 0x53b   :  { %v12709_v48 = vmul.f32 %v5752_v12, %v13702_v41  ;;  %v13705_v61 = vld [vmem:[#allocation65_spill] sm:$0xff]  ;;  %v6643_v52 = vpack.c.bf16 %v12488_v16, %v12488_v16  ;;  %v6644_v33 = vpack.c.bf16 %v12494_v10, %v12494_v10  ;;  %v6645_v12 = vpack.c.bf16 %v12500_v19, %v12500_v19  ;;  %v13707_v26 = vld [vmem:[#allocation96_spill] sm:$0xff]  ;;  %v13709_v41 = vld [vmem:[#allocation107_spill] sm:$0xff]  ;;  %6076 = vst.msk [vmem:[#allocation11 + $0x4] sm:$0xf] %vm6074_vm14, %v6641_v57 }
 0x53c   :  { %13704 = vst [vmem:[#allocation25_spill] sm:$0xff] %v12712_v5  ;;  %v6640_v36 = vpack.c.bf16 %v13705_v61, %v13705_v61  ;;  %v6646_v15 = vpack.c.bf16 %v13706_v31, %v13706_v31  ;;  %v6647_v39 = vpack.c.bf16 %v13707_v26, %v13707_v26  ;;  %v6648_v21 = vpack.c.bf16 %v13708_v46, %v13708_v46  ;;  %v13710_v16 = vld [vmem:[#allocation97_spill] sm:$0xff]  ;;  %v13711_v19 = vld [vmem:[#allocation16_spill] sm:$0xff]  ;;  %v13713_v26 = vld [vmem:[#allocation18_spill] sm:$0xff] }
 0x53d   :  { %v6649_v13 = vpack.c.bf16 %v13709_v41, %v13709_v41  ;;  %v6650_v10 = vpack.c.bf16 %v13710_v16, %v13710_v16  ;;  %v6651_v29 = vpack.c.bf16 %v13711_v19, %v13711_v19  ;;  %v13712_v61 = vld [vmem:[#allocation17_spill] sm:$0xff]  ;;  %v6653_v5 = vpack.c.bf16 %v13713_v26, %v13713_v26  ;;  %6077 = vst.msk [vmem:[#allocation11 + $0x8] sm:$0xf] %vm6074_vm14, %v6642_v0  ;;  %v13715_v46 = vld [vmem:[#allocation20_spill] sm:$0xff] }
 0x53e   :  { %6075 = vst.msk [vmem:[#allocation11] sm:$0xf] %vm6074_vm14, %v6640_v36  ;;  %v6652_v31 = vpack.c.bf16 %v13712_v61, %v13712_v61  ;;  %6078 = vst.msk [vmem:[#allocation11 + $0xc] sm:$0xf] %vm6074_vm14, %v6643_v52  ;;  %v13714_v36 = vld [vmem:[#allocation19_spill] sm:$0xff]  ;;  %v6655_v41 = vpack.c.bf16 %v13715_v46, %v13715_v46  ;;  %v13716_v16 = vld [vmem:[#allocation21_spill] sm:$0xff]  ;;  %v6658_v0 = vpack.c.bf16 %v12578_v32, %v12578_v32 }
 0x53f   :  { %6079 = vst.msk [vmem:[#allocation11 + $0x10] sm:$0xf] %vm6074_vm14, %v6644_v33  ;;  %6080 = vst.msk [vmem:[#allocation11 + $0x14] sm:$0xf] %vm6074_vm14, %v6645_v12  ;;  %v6654_v57 = vpack.c.bf16 %v13714_v36, %v13714_v36  ;;  %v6656_v19 = vpack.c.bf16 %v13716_v16, %v13716_v16  ;;  %v13717_v61 = vld [vmem:[#allocation106_spill] sm:$0xff]  ;;  %v6659_v52 = vpack.c.bf16 %v12583_v25, %v12583_v25 }
 0x540   :  { %v6657_v26 = vpack.c.bf16 %v13717_v61, %v13717_v61  ;;  %6081 = vst.msk [vmem:[#allocation11 + $0x18] sm:$0xf] %vm6074_vm14, %v6646_v15  ;;  %6082 = vst.msk [vmem:[#allocation11 + $0x1c] sm:$0xf] %vm6074_vm14, %v6647_v39  ;;  %v6660_v33 = vpack.c.bf16 %v12586_v55, %v12586_v55  ;;  %v6661_v12 = vpack.c.bf16 %v12589_v3, %v12589_v3 }
 0x541   :  { %6083 = vst.msk [vmem:[#allocation11 + $0x20] sm:$0xf] %vm6074_vm14, %v6648_v21  ;;  %6084 = vst.msk [vmem:[#allocation11 + $0x24] sm:$0xf] %vm6074_vm14, %v6649_v13  ;;  %v6662_v32 = vpack.c.bf16 %v12592_v62, %v12592_v62  ;;  %v6663_v25 = vpack.c.bf16 %v12595_v24, %v12595_v24  ;;  %v6664_v55 = vpack.c.bf16 %v12598_v50, %v12598_v50 }
 0x542   :  { %6085 = vst.msk [vmem:[#allocation11 + $0x28] sm:$0xf] %vm6074_vm14, %v6650_v10  ;;  %6086 = vst.msk [vmem:[#allocation11 + $0x2c] sm:$0xf] %vm6074_vm14, %v6651_v29  ;;  %v6665_v3 = vpack.c.bf16 %v12601_v59, %v12601_v59  ;;  %v6666_v62 = vpack.c.bf16 %v12604_v37, %v12604_v37  ;;  %v6667_v24 = vpack.c.bf16 %v12607_v1, %v12607_v1 }
 0x543   :  { %6087 = vst.msk [vmem:[#allocation11 + $0x30] sm:$0xf] %vm6074_vm14, %v6652_v31  ;;  %6088 = vst.msk [vmem:[#allocation11 + $0x34] sm:$0xf] %vm6074_vm14, %v6653_v5  ;;  %v6668_v50 = vpack.c.bf16 %v12610_v44, %v12610_v44  ;;  %v6669_v59 = vpack.c.bf16 %v12613_v7, %v12613_v7  ;;  %v6670_v37 = vpack.c.bf16 %v12616_v40, %v12616_v40  ;;  %v13718_v5 = vld [vmem:[#allocation25_spill] sm:$0xff] }
 0x544   :  { %6089 = vst.msk [vmem:[#allocation11 + $0x38] sm:$0xf] %vm6074_vm14, %v6654_v57  ;;  %6090 = vst.msk [vmem:[#allocation11 + $0x3c] sm:$0xf] %vm6074_vm14, %v6655_v41  ;;  %v6671_v1 = vpack.c.bf16 %v12619_v20, %v12619_v20  ;;  %v6672_v44 = vpack.c.bf16 %v12622_v34, %v12622_v34  ;;  %v6673_v7 = vpack.c.bf16 %v12625_v22, %v12625_v22 }
 0x545   :  { %6091 = vst.msk [vmem:[#allocation11 + $0x40] sm:$0xf] %vm6074_vm14, %v6656_v19  ;;  %6092 = vst.msk [vmem:[#allocation11 + $0x44] sm:$0xf] %vm6074_vm14, %v6657_v26  ;;  %v6674_v40 = vpack.c.bf16 %v12628_v23, %v12628_v23  ;;  %v6675_v20 = vpack.c.bf16 %v12631_v28, %v12631_v28  ;;  %v6676_v34 = vpack.c.bf16 %v12634_v54, %v12634_v54 }
 0x546   :  { %6093 = vst.msk [vmem:[#allocation11 + $0x48] sm:$0xf] %vm6074_vm14, %v6658_v0  ;;  %6094 = vst.msk [vmem:[#allocation11 + $0x4c] sm:$0xf] %vm6074_vm14, %v6659_v52  ;;  %v6677_v22 = vpack.c.bf16 %v12637_v49, %v12637_v49  ;;  %v6678_v23 = vpack.c.bf16 %v12640_v14, %v12640_v14  ;;  %v6679_v28 = vpack.c.bf16 %v12643_v43, %v12643_v43 }
 0x547   :  { %6095 = vst.msk [vmem:[#allocation11 + $0x50] sm:$0xf] %vm6074_vm14, %v6660_v33  ;;  %6096 = vst.msk [vmem:[#allocation11 + $0x54] sm:$0xf] %vm6074_vm14, %v6661_v12  ;;  %v6680_v54 = vpack.c.bf16 %v12646_v4, %v12646_v4  ;;  %v6681_v49 = vpack.c.bf16 %v12649_v18, %v12649_v18  ;;  %v6682_v14 = vpack.c.bf16 %v12652_v58, %v12652_v58 }
 0x548   :  { %6097 = vst.msk [vmem:[#allocation11 + $0x58] sm:$0xf] %vm6074_vm14, %v6662_v32  ;;  %6098 = vst.msk [vmem:[#allocation11 + $0x5c] sm:$0xf] %vm6074_vm14, %v6663_v25  ;;  %v6683_v43 = vpack.c.bf16 %v12655_v35, %v12655_v35  ;;  %v6684_v4 = vpack.c.bf16 %v12658_v51, %v12658_v51  ;;  %v6685_v18 = vpack.c.bf16 %v12661_v9, %v12661_v9 }
 0x549   :  { %6099 = vst.msk [vmem:[#allocation11 + $0x60] sm:$0xf] %vm6074_vm14, %v6664_v55  ;;  %6100 = vst.msk [vmem:[#allocation11 + $0x64] sm:$0xf] %vm6074_vm14, %v6665_v3  ;;  %v6686_v58 = vpack.c.bf16 %v12664_v38, %v12664_v38  ;;  %v6687_v35 = vpack.c.bf16 %v12667_v42, %v12667_v42  ;;  %v6688_v51 = vpack.c.bf16 %v12670_v45, %v12670_v45 }
 0x54a   :  { %6101 = vst.msk [vmem:[#allocation11 + $0x68] sm:$0xf] %vm6074_vm14, %v6666_v62  ;;  %6102 = vst.msk [vmem:[#allocation11 + $0x6c] sm:$0xf] %vm6074_vm14, %v6667_v24  ;;  %v6689_v9 = vpack.c.bf16 %v12673_v47, %v12673_v47  ;;  %v6690_v38 = vpack.c.bf16 %v12676_v60, %v12676_v60  ;;  %v6691_v42 = vpack.c.bf16 %v12679_v8, %v12679_v8 }
 0x54b   :  { %6103 = vst.msk [vmem:[#allocation11 + $0x70] sm:$0xf] %vm6074_vm14, %v6668_v50  ;;  %6104 = vst.msk [vmem:[#allocation11 + $0x74] sm:$0xf] %vm6074_vm14, %v6669_v59  ;;  %v6692_v45 = vpack.c.bf16 %v12682_v53, %v12682_v53  ;;  %v6693_v47 = vpack.c.bf16 %v12685_v17, %v12685_v17  ;;  %v6694_v60 = vpack.c.bf16 %v12688_v11, %v12688_v11 }
 0x54c   :  { %6105 = vst.msk [vmem:[#allocation11 + $0x78] sm:$0xf] %vm6074_vm14, %v6670_v37  ;;  %6106 = vst.msk [vmem:[#allocation11 + $0x7c] sm:$0xf] %vm6074_vm14, %v6671_v1  ;;  %v6695_v8 = vpack.c.bf16 %v12691_v56, %v12691_v56  ;;  %v6696_v53 = vpack.c.bf16 %v12694_v63, %v12694_v63  ;;  %v6697_v17 = vpack.c.bf16 %v12697_v6, %v12697_v6 }
 0x54d   :  { %6107 = vst.msk [vmem:[#allocation11 + $0x80] sm:$0xf] %vm6074_vm14, %v6672_v44  ;;  %6108 = vst.msk [vmem:[#allocation11 + $0x84] sm:$0xf] %vm6074_vm14, %v6673_v7  ;;  %v6698_v11 = vpack.c.bf16 %v12700_v27, %v12700_v27  ;;  %v6699_v56 = vpack.c.bf16 %v12703_v2, %v12703_v2  ;;  %v6700_v63 = vpack.c.bf16 %v12706_v30, %v12706_v30 }
 0x54e   :  { %6109 = vst.msk [vmem:[#allocation11 + $0x88] sm:$0xf] %vm6074_vm14, %v6674_v40  ;;  %6110 = vst.msk [vmem:[#allocation11 + $0x8c] sm:$0xf] %vm6074_vm14, %v6675_v20  ;;  %v6702_v6 = vpack.c.bf16 %v12709_v48, %v12709_v48  ;;  %v6703_v27 = vpack.c.bf16 %v13718_v5, %v13718_v5 }
 0x54f   :  { %6111 = vst.msk [vmem:[#allocation11 + $0x90] sm:$0xf] %vm6074_vm14, %v6676_v34  ;;  %6112 = vst.msk [vmem:[#allocation11 + $0x94] sm:$0xf] %vm6074_vm14, %v6677_v22 }
 0x550   :  { %6113 = vst.msk [vmem:[#allocation11 + $0x98] sm:$0xf] %vm6074_vm14, %v6678_v23  ;;  %6114 = vst.msk [vmem:[#allocation11 + $0x9c] sm:$0xf] %vm6074_vm14, %v6679_v28 }
 0x551   :  { %6115 = vst.msk [vmem:[#allocation11 + $0xa0] sm:$0xf] %vm6074_vm14, %v6680_v54  ;;  %6116 = vst.msk [vmem:[#allocation11 + $0xa4] sm:$0xf] %vm6074_vm14, %v6681_v49 }
 0x552   :  { %6117 = vst.msk [vmem:[#allocation11 + $0xa8] sm:$0xf] %vm6074_vm14, %v6682_v14  ;;  %6118 = vst.msk [vmem:[#allocation11 + $0xac] sm:$0xf] %vm6074_vm14, %v6683_v43 }
 0x553   :  { %6119 = vst.msk [vmem:[#allocation11 + $0xb0] sm:$0xf] %vm6074_vm14, %v6684_v4  ;;  %6120 = vst.msk [vmem:[#allocation11 + $0xb4] sm:$0xf] %vm6074_vm14, %v6685_v18 }
 0x554   :  { %6121 = vst.msk [vmem:[#allocation11 + $0xb8] sm:$0xf] %vm6074_vm14, %v6686_v58  ;;  %6122 = vst.msk [vmem:[#allocation11 + $0xbc] sm:$0xf] %vm6074_vm14, %v6687_v35 }
 0x555   :  { %6123 = vst.msk [vmem:[#allocation11 + $0xc0] sm:$0xf] %vm6074_vm14, %v6688_v51  ;;  %6124 = vst.msk [vmem:[#allocation11 + $0xc4] sm:$0xf] %vm6074_vm14, %v6689_v9 }
 0x556   :  { %6125 = vst.msk [vmem:[#allocation11 + $0xc8] sm:$0xf] %vm6074_vm14, %v6690_v38  ;;  %6126 = vst.msk [vmem:[#allocation11 + $0xcc] sm:$0xf] %vm6074_vm14, %v6691_v42 }
 0x557   :  { %6127 = vst.msk [vmem:[#allocation11 + $0xd0] sm:$0xf] %vm6074_vm14, %v6692_v45  ;;  %6128 = vst.msk [vmem:[#allocation11 + $0xd4] sm:$0xf] %vm6074_vm14, %v6693_v47 }
 0x558   :  { %6129 = vst.msk [vmem:[#allocation11 + $0xd8] sm:$0xf] %vm6074_vm14, %v6694_v60  ;;  %6130 = vst.msk [vmem:[#allocation11 + $0xdc] sm:$0xf] %vm6074_vm14, %v6695_v8 }
 0x559   :  { %6131 = vst.msk [vmem:[#allocation11 + $0xe0] sm:$0xf] %vm6074_vm14, %v6696_v53  ;;  %6132 = vst.msk [vmem:[#allocation11 + $0xe4] sm:$0xf] %vm6074_vm14, %v6697_v17 }
 0x55a   :  { %6133 = vst.msk [vmem:[#allocation11 + $0xe8] sm:$0xf] %vm6074_vm14, %v6698_v11  ;;  %6134 = vst.msk [vmem:[#allocation11 + $0xec] sm:$0xf] %vm6074_vm14, %v6699_v56 }
 0x55b   :  { %6135 = vst.msk [vmem:[#allocation11 + $0xf0] sm:$0xf] %vm6074_vm14, %v6700_v63  ;;  %6137 = vst.msk [vmem:[#allocation11 + $0xf8] sm:$0xf] %vm6074_vm14, %v6702_v6 }
 0x55c   :  { %6138 = vst.msk [vmem:[#allocation11 + $0xfc] sm:$0xf] %vm6074_vm14, %v6703_v27 }
 0x55d   :  { %8212 = shalt.err (!%p8209_p8)
}
 0x55e   :  { %s8213_s0 = scalar_lea.hbm %s12922_s4, 4096 }
 0x55f   :  { %p8214_p9 = scmp.ne.s32.totalorder %s12922_s4, %s8213_s0  ;;  %p8217_p10 = scmp.lt.u32.totalorder %s8213_s0, %s12922_s4 }
 0x561   :  { %p8219_p11 = pnand %p8217_p10, %p8214_p9 }
 0x563   :  { %8222 = shalt.err (!%p8219_p11)
}
 0x564   :  { %6150 = dma.vmem_to_hbm [thread:$0]  %s6145_s23, 4096, %s12922_s4, [#allocation5], %s8232_s25, %s8232_s25, %s8233_s26  }
 0x565   :  { %8229 = dma.done.wait [#allocation5], 4096  }
 0x566   :  { %8230 = vsyncadd [#allocation5], 4294963200 }
 0x567   :  { %6154 = vsyncpa [#allocation4], 1 }
 0x568   :  { %6155 = vsyncpa [#allocation7], 1 }
 0x569   :  { %6156 = vsyncpa [#allocation10], 1 }
 0x56a   :  { %6157 = vsyncpa [#allocation5], 1 }

</bundles_post_ra>
